<compile_context>
chip_gen: v7x
topology: tpu7x:2x2x1
jax: 0.10.0
libtpu: 0.0.40
codegen_flags: <defaults>
</compile_context>

<pallas_src>
import jax
import jax.numpy as jnp
from jax.experimental import pallas as pl
from jax.experimental.pallas import tpu as pltpu

LEAKY_SLOPE = 0.2
BN_EPS = 1e-5


# ----------------------------------------------------------------------------
# Fused kernel factory
# ----------------------------------------------------------------------------
def _make_fused_kernel(N, H, W, C_in, G):
    H1, W1 = H // 2, W // 2          # down_1 spatial
    H2, W2 = H1 // 2, W1 // 2        # down_2 spatial
    H3, W3 = H2 // 2, W2 // 2        # down_3 spatial
    Hp0, Wp0 = H + 2, W + 2          # padded input
    Hp1, Wp1 = H1 + 2, W1 + 2        # padded down_1
    Hp2, Wp2 = H2 + 2, W2 + 2        # padded down_2
    C1, C2, C3 = G, 2 * G, 4 * G

    # Per-image "tap slab" length: slab row m holds output (oh, ow) at m = oh*Wp + ow
    # (rows with ow >= OW are in-bounds garbage that is never extracted).
    L1 = (H1 - 1) * Wp0 + W1
    L2 = (H2 - 1) * Wp1 + W2
    L3 = (H3 - 1) * Wp2 + W3

    def conv3x3_s2(src_ref, Hp, Wp, Cin, OH, OW, L, w_ref, b_ref, dsc_ref, emit_row):
        """3x3 / stride-2 conv on a zero-padded (N*Hp*Wp, Cin) VMEM ref.

        Per image: 9 stride-2 slab loads + 9 accumulating MXU dots over ALL output
        rows at once (slab row m = oh*Wp + ow), then folded-BN bias + LeakyReLU once,
        staged in dsc_ref; emit_row stores each (OW, Cout) output row.
        """
        bias = b_ref[...]                                    # (1, Cout)
        for n in range(N):
            acc = None
            for kh in range(3):
                for kw in range(3):
                    s0 = n * Hp * Wp + kh * Wp + kw
                    tap = src_ref[pl.ds(s0, L, stride=2), :]          # (L, Cin)
                    d = jnp.dot(tap, w_ref[3 * kh + kw],
                                preferred_element_type=jnp.float32)   # (L, Cout)
                    acc = d if acc is None else acc + d
            t = acc + bias
            dsc_ref[...] = jnp.maximum(t, LEAKY_SLOPE * t)   # LeakyReLU(0.2)
            for oh in range(OH):
                emit_row(n, oh, dsc_ref[oh * Wp:oh * Wp + OW, :])     # (OW, Cout)

    def scatter_convT(y, dst_ref, Hin, Win, Cout):
        """Scatter y[(n,i,j), (2a+b)*Cout+co] -> dst_ref[(n,2i+a,2j+b), co]
        with one stride-2 sublane store per (n, i, a, b)."""
        for n in range(N):
            for i in range(Hin):
                rows = y[(n * Hin + i) * Win:(n * Hin + i + 1) * Win, :]   # (Win, 4*Cout)
                for a in range(2):
                    for b in range(2):
                        sub = rows[:, (2 * a + b) * Cout:(2 * a + b + 1) * Cout]
                        dst0 = (n * 2 * Hin + 2 * i + a) * (2 * Win) + b
                        dst_ref[pl.ds(dst0, Win, stride=2), :] = sub

    def kernel(xp_ref,
               wd1, bd1, wd2, bd2, wd3, bd3,
               wb1, bb1, wu3, bu3, wb2, bb2,
               wu2, bu2, wu1, bu1, wb3, bb3,
               out_ref, up3c_ref, up2c_ref, up1c_ref,
               pad1_ref, pad2_ref, dsc1_ref, dsc2_ref, dsc3_ref,
               up2s_ref, up1s_ref):
        # Zero the padded scratches (the 1-pixel halo must read as 0).
        pad1_ref[...] = jnp.zeros(pad1_ref.shape, pad1_ref.dtype)
        pad2_ref[...] = jnp.zeros(pad2_ref.shape, pad2_ref.dtype)

        # ---- down_1 = LeakyReLU(BN(conv_down_1(x))) ----
        def emit_d1(n, oh, y):
            pad1_ref[pl.ds((n * Hp1 + oh + 1) * Wp1 + 1, W1), :] = y
            up1c_ref[pl.ds((n * H1 + oh) * W1, W1), 0:C1] = y          # up_1_concat[:, :G]
        conv3x3_s2(xp_ref, Hp0, Wp0, C_in, H1, W1, L1, wd1, bd1, dsc1_ref, emit_d1)

        # ---- down_2 ----
        def emit_d2(n, oh, y):
            pad2_ref[pl.ds((n * Hp2 + oh + 1) * Wp2 + 1, W2), :] = y
            up2c_ref[pl.ds((n * H2 + oh) * W2, W2), 0:C2] = y          # up_2_concat[:, :2G]
        conv3x3_s2(pad1_ref, Hp1, Wp1, C1, H2, W2, L2, wd2, bd2, dsc2_ref, emit_d2)

        # ---- down_3 ----
        def emit_d3(n, oh, y):
            up3c_ref[pl.ds((n * H3 + oh) * W3, W3), 0:C3] = y          # up_3_concat[:, :4G]
        conv3x3_s2(pad2_ref, Hp2, Wp2, C2, H3, W3, L3, wd3, bd3, dsc3_ref, emit_d3)

        # ---- bottleneck_1 (1x1) ; up_3_concat = [down_3, bottleneck] ----
        d3 = up3c_ref[:, 0:C3]
        up3c_ref[:, C3:C3 + C1] = (
            jnp.dot(d3, wb1[...], preferred_element_type=jnp.float32) + bb1[...])

        # ---- conv_up_3: ConvT(5G->4G, k2 s2) + BN + ReLU ----
        y = jnp.dot(up3c_ref[...], wu3[...], preferred_element_type=jnp.float32) + bu3[...]
        y = jnp.maximum(y, 0.0)                     # (N*H3*W3, 4*4G), cols = (a, b, co)
        scatter_convT(y, up2s_ref, H3, W3, C3)
        up2c_ref[:, C2:C2 + C3] = up2s_ref[...]     # up_2_concat = [down_2, up_2]

        # ---- bottleneck_2 (1x1, 6G->4G, no act) ----
        up2v = (jnp.dot(up2c_ref[...], wb2[...], preferred_element_type=jnp.float32)
                + bb2[...])                         # (N*H2*W2, 4G)

        # ---- conv_up_2: ConvT(4G->2G) + BN + ReLU ----
        y = jnp.dot(up2v, wu2[...], preferred_element_type=jnp.float32) + bu2[...]
        y = jnp.maximum(y, 0.0)
        scatter_convT(y, up1s_ref, H2, W2, C2)
        up1c_ref[:, C1:C1 + C2] = up1s_ref[...]     # up_1_concat = [down_1, up_1]

        # ---- conv_up_1: ConvT(3G->G) + BN + ReLU, bottleneck_3 fused (block-diag) ----
        z = jnp.dot(up1c_ref[...], wu1[...], preferred_element_type=jnp.float32) + bu1[...]
        z = jnp.maximum(z, 0.0)                     # (N*H1*W1, 4*G), cols = (a, b, c)
        z = jnp.dot(z, wb3[...], preferred_element_type=jnp.float32) + bb3[...]
        scatter_convT(z, out_ref, H1, W1, C_in)     # final output (N*H*W, C_in)

    return kernel, (L1, L2, L3)


# ----------------------------------------------------------------------------
# Weight preparation (BN / bias folding) — plain JAX, runs once per call
# ----------------------------------------------------------------------------
def _bn_affine(bn):
    gamma, beta, mean, var = bn
    scale = gamma * jax.lax.rsqrt(var + BN_EPS)
    shift = beta - mean * scale
    return scale, shift


def _prep_conv3x3(w_oihw, b, bn):
    cout, cin = w_oihw.shape[0], w_oihw.shape[1]
    scale, shift = _bn_affine(bn)
    # tap-major layout: w[(kh*3 + kw)] is the (cin, cout) slab for that tap
    w2 = (jnp.transpose(w_oihw, (2, 3, 1, 0)).reshape(9, cin, cout)
          * scale[None, None, :])
    b2 = (b * scale + shift).reshape(1, cout)
    return w2, b2


def _prep_convT(w_iohw, b, bn):
    cin, cout = w_iohw.shape[0], w_iohw.shape[1]
    scale, shift = _bn_affine(bn)
    # col order = (a*2 + b)*cout + co
    w2 = jnp.transpose(w_iohw, (0, 2, 3, 1)).reshape(cin, 4 * cout)
    w2 = w2 * jnp.tile(scale, 4)[None, :]
    b2 = jnp.tile(b * scale + shift, 4).reshape(1, 4 * cout)
    return w2, b2


def _prep_conv1x1(w_oihw, b):
    cout, cin = w_oihw.shape[0], w_oihw.shape[1]
    return w_oihw.reshape(cout, cin).T, b.reshape(1, cout)


def _prep_conv1x1_blockdiag(w_oihw, b, reps):
    # 1x1 conv applied independently to each of the 4 convT subpixel groups.
    cout, cin = w_oihw.shape[0], w_oihw.shape[1]
    w2 = w_oihw.reshape(cout, cin).T
    wbd = jnp.kron(jnp.eye(reps, dtype=w2.dtype), w2)     # (reps*cin, reps*cout)
    return wbd, jnp.tile(b, reps).reshape(1, reps * cout)


# ----------------------------------------------------------------------------
# Fused forward pass (single pallas_call)
# ----------------------------------------------------------------------------
def cresblock_forward_pallas(p, x):
    N, H, W, C_in = x.shape
    G = p["cd1_w"].shape[0]
    H1, W1, H2, W2, H3, W3 = H // 2, W // 2, H // 4, W // 4, H // 8, W // 8

    wd1, bd1 = _prep_conv3x3(p["cd1_w"], p["cd1_b"], p["bn_d1"])
    wd2, bd2 = _prep_conv3x3(p["cd2_w"], p["cd2_b"], p["bn_d2"])
    wd3, bd3 = _prep_conv3x3(p["cd3_w"], p["cd3_b"], p["bn_d3"])
    wb1, bb1 = _prep_conv1x1(p["b1_w"], p["b1_b"])
    wu3, bu3 = _prep_convT(p["cu3_w"], p["cu3_b"], p["bn_u3"])
    wb2, bb2 = _prep_conv1x1(p["b2_w"], p["b2_b"])
    wu2, bu2 = _prep_convT(p["cu2_w"], p["cu2_b"], p["bn_u2"])
    wu1, bu1 = _prep_convT(p["cu1_w"], p["cu1_b"], p["bn_u1"])
    wb3, bb3 = _prep_conv1x1_blockdiag(p["b3_w"], p["b3_b"], 4)

    # Pre-padded NHWC input, flattened to (pixel, channel) rows.
    xp = jnp.pad(x, ((0, 0), (1, 1), (1, 1), (0, 0))).reshape(
        N * (H + 2) * (W + 2), C_in)

    args = (xp, wd1, bd1, wd2, bd2, wd3, bd3, wb1, bb1, wu3, bu3,
            wb2, bb2, wu2, bu2, wu1, bu1, wb3, bb3)

    out_shapes = (
        jax.ShapeDtypeStruct((N * H * W, C_in), jnp.float32),        # out
        jax.ShapeDtypeStruct((N * H3 * W3, 5 * G), jnp.float32),     # up_3_concat
        jax.ShapeDtypeStruct((N * H2 * W2, 6 * G), jnp.float32),     # up_2_concat
        jax.ShapeDtypeStruct((N * H1 * W1, 3 * G), jnp.float32),     # up_1_concat
    )

    def full(shape):
        nd = len(shape)
        return pl.BlockSpec(shape, lambda i, _nd=nd: (0,) * _nd)

    kernel, (L1, L2, L3) = _make_fused_kernel(N, H, W, C_in, G)
    outs = pl.pallas_call(
        kernel,
        out_shape=out_shapes,
        grid=(1,),
        in_specs=[full(a.shape) for a in args],
        out_specs=tuple(full(s.shape) for s in out_shapes),
        scratch_shapes=[
            pltpu.VMEM((N * (H1 + 2) * (W1 + 2), G), jnp.float32),       # padded down_1
            pltpu.VMEM((N * (H2 + 2) * (W2 + 2), 2 * G), jnp.float32),   # padded down_2
            pltpu.VMEM((L1, G), jnp.float32),                            # down_1 slab
            pltpu.VMEM((L2, 2 * G), jnp.float32),                        # down_2 slab
            pltpu.VMEM((L3, 4 * G), jnp.float32),                        # down_3 slab
            pltpu.VMEM((N * H2 * W2, 4 * G), jnp.float32),               # up_2 (pre-bneck2)
            pltpu.VMEM((N * H1 * W1, 2 * G), jnp.float32),               # up_1 (pre-concat)
        ],
        compiler_params=pltpu.CompilerParams(dimension_semantics=("arbitrary",)),
    )(*args)

    out2d, up3c, up2c, up1c = outs
    out = out2d.reshape(N, H, W, C_in)
    layers = [up3c.reshape(N, H3, W3, 5 * G),
              up2c.reshape(N, H2, W2, 6 * G),
              up1c.reshape(N, H1, W1, 3 * G)]
    return out, layers


# ----------------------------------------------------------------------------
# Pure-JAX reference (same math, unfused) for the correctness check
# ----------------------------------------------------------------------------
def _ref_conv3x3_s2(x, w_oihw, b, bn, slope):
    N, H, W, C = x.shape
    OH, OW = H // 2, W // 2
    xp = jnp.pad(x, ((0, 0), (1, 1), (1, 1), (0, 0)))
    patches = [xp[:, kh:kh + 2 * OH:2, kw:kw + 2 * OW:2, :]
               for kh in range(3) for kw in range(3)]
    pm = jnp.concatenate(patches, axis=-1).reshape(N * OH * OW, 9 * C)
    cout = w_oihw.shape[0]
    w2 = jnp.transpose(w_oihw, (2, 3, 1, 0)).reshape(9 * C, cout)
    y = pm @ w2 + b[None, :]
    scale, shift = _bn_affine(bn)
    y = y * scale[None, :] + shift[None, :]
    y = jnp.where(y > 0.0, y, slope * y)
    return y.reshape(N, OH, OW, cout)


def _ref_conv1x1(x, w_oihw, b):
    N, H, W, C = x.shape
    cout = w_oihw.shape[0]
    y = x.reshape(-1, C) @ w_oihw.reshape(cout, C).T + b[None, :]
    return y.reshape(N, H, W, cout)


def _ref_convT2x2_s2(x, w_iohw, b, bn):
    N, H, W, Cin = x.shape
    cout = w_iohw.shape[1]
    w2 = jnp.transpose(w_iohw, (0, 2, 3, 1)).reshape(Cin, 4 * cout)
    y = x.reshape(-1, Cin) @ w2 + jnp.tile(b, 4)[None, :]
    scale, shift = _bn_affine(bn)
    y = y * jnp.tile(scale, 4)[None, :] + jnp.tile(shift, 4)[None, :]
    y = jnp.maximum(y, 0.0)
    y = y.reshape(N, H, W, 2, 2, cout).transpose(0, 1, 3, 2, 4, 5)
    return y.reshape(N, 2 * H, 2 * W, cout)


def cresblock_forward_reference(p, x):
    # TODO(synk): Dropout2d / BatchNorm implemented in eval (inference) mode only.
    down_1 = _ref_conv3x3_s2(x, p["cd1_w"], p["cd1_b"], p["bn_d1"], LEAKY_SLOPE)
    down_2 = _ref_conv3x3_s2(down_1, p["cd2_w"], p["cd2_b"], p["bn_d2"], LEAKY_SLOPE)
    down_3 = _ref_conv3x3_s2(down_2, p["cd3_w"], p["cd3_b"], p["bn_d3"], LEAKY_SLOPE)
    bottleneck = _ref_conv1x1(down_3, p["b1_w"], p["b1_b"])
    up_3_concat = jnp.concatenate((down_3, bottleneck), axis=-1)
    up_2 = _ref_convT2x2_s2(up_3_concat, p["cu3_w"], p["cu3_b"], p["bn_u3"])
    up_2_concat = jnp.concatenate((down_2, up_2), axis=-1)
    up_2 = _ref_conv1x1(up_2_concat, p["b2_w"], p["b2_b"])
    up_1 = _ref_convT2x2_s2(up_2, p["cu2_w"], p["cu2_b"], p["bn_u2"])
    up_1_concat = jnp.concatenate((down_1, up_1), axis=-1)
    up_1 = _ref_convT2x2_s2(up_1_concat, p["cu1_w"], p["cu1_b"], p["bn_u1"])
    out = _ref_conv1x1(up_1, p["b3_w"], p["b3_b"])
    return out, [up_3_concat, up_2_concat, up_1_concat]


# ----------------------------------------------------------------------------
# Deterministic parameter initialization (shapes follow CResBlock.__init__)
# ----------------------------------------------------------------------------
def init_params(key, c_in=4, g=8):
    ks = list(jax.random.split(key, 64))
    it = iter(range(64))

    def w(shape, s=0.1):
        return s * jax.random.normal(ks[next(it)], shape, jnp.float32)

    def bias(c):
        return 0.05 * jax.random.normal(ks[next(it)], (c,), jnp.float32)

    def bn(c):
        gamma = 1.0 + 0.1 * jax.random.normal(ks[next(it)], (c,), jnp.float32)
        beta = 0.1 * jax.random.normal(ks[next(it)], (c,), jnp.float32)
        mean = 0.1 * jax.random.normal(ks[next(it)], (c,), jnp.float32)
        var = jnp.abs(jax.random.normal(ks[next(it)], (c,), jnp.float32)) + 0.5
        return (gamma, beta, mean, var)

    p = {}
    p["cd1_w"], p["cd1_b"], p["bn_d1"] = w((g, c_in, 3, 3)), bias(g), bn(g)
    p["cd2_w"], p["cd2_b"], p["bn_d2"] = w((2 * g, g, 3, 3)), bias(2 * g), bn(2 * g)
    p["cd3_w"], p["cd3_b"], p["bn_d3"] = w((4 * g, 2 * g, 3, 3)), bias(4 * g), bn(4 * g)
    p["b1_w"], p["b1_b"] = w((g, 4 * g, 1, 1)), bias(g)
    p["cu3_w"], p["cu3_b"], p["bn_u3"] = w((5 * g, 4 * g, 2, 2)), bias(4 * g), bn(4 * g)
    p["b2_w"], p["b2_b"] = w((4 * g, 6 * g, 1, 1)), bias(4 * g)
    p["cu2_w"], p["cu2_b"], p["bn_u2"] = w((4 * g, 2 * g, 2, 2)), bias(2 * g), bn(2 * g)
    p["cu1_w"], p["cu1_b"], p["bn_u1"] = w((3 * g, g, 2, 2)), bias(g), bn(g)
    p["b3_w"], p["b3_b"] = w((c_in, g, 1, 1)), bias(c_in)
    return p


if __name__ == "__main__":
    key = jax.random.PRNGKey(0)
    pkey, xkey = jax.random.split(key)

    C_IN, G, H, W, N = 4, 8, 16, 16, 2
    params = init_params(pkey, c_in=C_IN, g=G)

    # PyTorch input would be NCHW (2, 4, 16, 16); this script uses NHWC.
    x_nhwc = jax.random.normal(xkey, (N, H, W, C_IN), jnp.float32)

    fwd = jax.jit(cresblock_forward_pallas)
    out, layers = fwd(params, x_nhwc)
    out = jax.block_until_ready(out)
    layers = [jax.block_until_ready(l) for l in layers]

    # Correctness check against the pure-JAX reference of the same math.
    ref_out, ref_layers = cresblock_forward_reference(params, x_nhwc)
    assert out.shape == (N, H, W, C_IN)
    assert jnp.allclose(out, ref_out, atol=1e-4, rtol=1e-4), \
        float(jnp.max(jnp.abs(out - ref_out)))
    for a, b in zip(layers, ref_layers):
        assert a.shape == b.shape
        assert jnp.allclose(a, b, atol=1e-4, rtol=1e-4), \
            float(jnp.max(jnp.abs(a - b)))

    print("KERNEL_OK")
</pallas_src>

<mosaic_0001>
module attributes {stable_mosaic.version = 11 : i64} {
  func.func @kernel(%arg0: i32, %arg1: memref<648x4xf32, #tpu.memory_space<vmem>>, %arg2: memref<9x4x8xf32, #tpu.memory_space<vmem>>, %arg3: memref<1x8xf32, #tpu.memory_space<vmem>>, %arg4: memref<9x8x16xf32, #tpu.memory_space<vmem>>, %arg5: memref<1x16xf32, #tpu.memory_space<vmem>>, %arg6: memref<9x16x32xf32, #tpu.memory_space<vmem>>, %arg7: memref<1x32xf32, #tpu.memory_space<vmem>>, %arg8: memref<32x8xf32, #tpu.memory_space<vmem>>, %arg9: memref<1x8xf32, #tpu.memory_space<vmem>>, %arg10: memref<40x128xf32, #tpu.memory_space<vmem>>, %arg11: memref<1x128xf32, #tpu.memory_space<vmem>>, %arg12: memref<48x32xf32, #tpu.memory_space<vmem>>, %arg13: memref<1x32xf32, #tpu.memory_space<vmem>>, %arg14: memref<32x64xf32, #tpu.memory_space<vmem>>, %arg15: memref<1x64xf32, #tpu.memory_space<vmem>>, %arg16: memref<24x32xf32, #tpu.memory_space<vmem>>, %arg17: memref<1x32xf32, #tpu.memory_space<vmem>>, %arg18: memref<32x16xf32, #tpu.memory_space<vmem>>, %arg19: memref<1x16xf32, #tpu.memory_space<vmem>>, %arg20: memref<512x4xf32, #tpu.memory_space<vmem>>, %arg21: memref<8x40xf32, #tpu.memory_space<vmem>>, %arg22: memref<32x48xf32, #tpu.memory_space<vmem>>, %arg23: memref<128x24xf32, #tpu.memory_space<vmem>>, %arg24: memref<200x8xf32, #tpu.memory_space<vmem>>, %arg25: memref<72x16xf32, #tpu.memory_space<vmem>>, %arg26: memref<134x8xf32, #tpu.memory_space<vmem>>, %arg27: memref<34x16xf32, #tpu.memory_space<vmem>>, %arg28: memref<8x32xf32, #tpu.memory_space<vmem>>, %arg29: memref<32x32xf32, #tpu.memory_space<vmem>>, %arg30: memref<128x16xf32, #tpu.memory_space<vmem>>) attributes {dimension_semantics = [#tpu.dimension_semantics<arbitrary>], iteration_bounds = array<i64: 1>, scalar_prefetch = 0 : i64, scratch_operands = 7 : i64, tpu.core_type = #tpu.core_type<tc>, window_params = [{pipeline_mode = #tpu.pipeline_mode<synchronous>, transform_indices = @transform_0, window_bounds = array<i64: 648, 4>}, {pipeline_mode = #tpu.pipeline_mode<synchronous>, transform_indices = @transform_1, window_bounds = array<i64: 9, 4, 8>}, {pipeline_mode = #tpu.pipeline_mode<synchronous>, transform_indices = @transform_2, window_bounds = array<i64: 1, 8>}, {pipeline_mode = #tpu.pipeline_mode<synchronous>, transform_indices = @transform_3, window_bounds = array<i64: 9, 8, 16>}, {pipeline_mode = #tpu.pipeline_mode<synchronous>, transform_indices = @transform_4, window_bounds = array<i64: 1, 16>}, {pipeline_mode = #tpu.pipeline_mode<synchronous>, transform_indices = @transform_5, window_bounds = array<i64: 9, 16, 32>}, {pipeline_mode = #tpu.pipeline_mode<synchronous>, transform_indices = @transform_6, window_bounds = array<i64: 1, 32>}, {pipeline_mode = #tpu.pipeline_mode<synchronous>, transform_indices = @transform_7, window_bounds = array<i64: 32, 8>}, {pipeline_mode = #tpu.pipeline_mode<synchronous>, transform_indices = @transform_8, window_bounds = array<i64: 1, 8>}, {pipeline_mode = #tpu.pipeline_mode<synchronous>, transform_indices = @transform_9, window_bounds = array<i64: 40, 128>}, {pipeline_mode = #tpu.pipeline_mode<synchronous>, transform_indices = @transform_10, window_bounds = array<i64: 1, 128>}, {pipeline_mode = #tpu.pipeline_mode<synchronous>, transform_indices = @transform_11, window_bounds = array<i64: 48, 32>}, {pipeline_mode = #tpu.pipeline_mode<synchronous>, transform_indices = @transform_12, window_bounds = array<i64: 1, 32>}, {pipeline_mode = #tpu.pipeline_mode<synchronous>, transform_indices = @transform_13, window_bounds = array<i64: 32, 64>}, {pipeline_mode = #tpu.pipeline_mode<synchronous>, transform_indices = @transform_14, window_bounds = array<i64: 1, 64>}, {pipeline_mode = #tpu.pipeline_mode<synchronous>, transform_indices = @transform_15, window_bounds = array<i64: 24, 32>}, {pipeline_mode = #tpu.pipeline_mode<synchronous>, transform_indices = @transform_16, window_bounds = array<i64: 1, 32>}, {pipeline_mode = #tpu.pipeline_mode<synchronous>, transform_indices = @transform_17, window_bounds = array<i64: 32, 16>}, {pipeline_mode = #tpu.pipeline_mode<synchronous>, transform_indices = @transform_18, window_bounds = array<i64: 1, 16>}, {pipeline_mode = #tpu.pipeline_mode<synchronous>, transform_indices = @transform_19, window_bounds = array<i64: 512, 4>}, {pipeline_mode = #tpu.pipeline_mode<synchronous>, transform_indices = @transform_20, window_bounds = array<i64: 8, 40>}, {pipeline_mode = #tpu.pipeline_mode<synchronous>, transform_indices = @transform_21, window_bounds = array<i64: 32, 48>}, {pipeline_mode = #tpu.pipeline_mode<synchronous>, transform_indices = @transform_22, window_bounds = array<i64: 128, 24>}]} {
    %cst = arith.constant 0.000000e+00 : f32
    %0 = vector.broadcast %cst : f32 to vector<200x8xf32>
    %c0 = arith.constant 0 : index
    %c0_0 = arith.constant 0 : index
    %1 = vector.load %arg24[%c0, %c0_0] : memref<200x8xf32, #tpu.memory_space<vmem>>, vector<200x8xf32>
    tpu.vector_store %arg24[%c0, %c0_0], %0 {strides = array<i32>} : memref<200x8xf32, #tpu.memory_space<vmem>>, vector<200x8xf32>,
    %cst_1 = arith.constant 0.000000e+00 : f32
    %2 = vector.broadcast %cst_1 : f32 to vector<72x16xf32>
    %c0_2 = arith.constant 0 : index
    %c0_3 = arith.constant 0 : index
    %3 = vector.load %arg25[%c0_2, %c0_3] : memref<72x16xf32, #tpu.memory_space<vmem>>, vector<72x16xf32>
    tpu.vector_store %arg25[%c0_2, %c0_3], %2 {strides = array<i32>} : memref<72x16xf32, #tpu.memory_space<vmem>>, vector<72x16xf32>,
    %c0_4 = arith.constant 0 : index
    %c0_5 = arith.constant 0 : index
    %4 = vector.load %arg3[%c0_4, %c0_5] : memref<1x8xf32, #tpu.memory_space<vmem>>, vector<1x8xf32>
    %c0_6 = arith.constant 0 : index
    %c0_7 = arith.constant 0 : index
    %5 = tpu.strided_load %arg1[%c0_6, %c0_7] {strides = array<i32: 2, 1>} : memref<648x4xf32, #tpu.memory_space<vmem>>, vector<134x4xf32>
    %c0_8 = arith.constant 0 : index
    %c0_9 = arith.constant 0 : index
    %c0_10 = arith.constant 0 : index
    %6 = vector.load %arg2[%c0_8, %c0_9, %c0_10] : memref<9x4x8xf32, #tpu.memory_space<vmem>>, vector<1x4x8xf32>
    %7 = vector.shape_cast %6 : vector<1x4x8xf32> to vector<4x8xf32>
    %cst_11 = arith.constant dense<0.000000e+00> : vector<134x8xf32>
    %8 = tpu.matmul %5, %7, %cst_11 {dimension_numbers = #tpu.dot_dimension_numbers<[1], [0], [0], [1], [0, 0, 1, 1], [], []>} : vector<134x4xf32>, vector<4x8xf32>, vector<134x8xf32> -> vector<134x8xf32>
    %c1 = arith.constant 1 : index
    %c0_12 = arith.constant 0 : index
    %9 = tpu.strided_load %arg1[%c1, %c0_12] {strides = array<i32: 2, 1>} : memref<648x4xf32, #tpu.memory_space<vmem>>, vector<134x4xf32>
    %c1_13 = arith.constant 1 : index
    %c0_14 = arith.constant 0 : index
    %c0_15 = arith.constant 0 : index
    %10 = vector.load %arg2[%c1_13, %c0_14, %c0_15] : memref<9x4x8xf32, #tpu.memory_space<vmem>>, vector<1x4x8xf32>
    %11 = vector.shape_cast %10 : vector<1x4x8xf32> to vector<4x8xf32>
    %cst_16 = arith.constant dense<0.000000e+00> : vector<134x8xf32>
    %12 = tpu.matmul %9, %11, %cst_16 {dimension_numbers = #tpu.dot_dimension_numbers<[1], [0], [0], [1], [0, 0, 1, 1], [], []>} : vector<134x4xf32>, vector<4x8xf32>, vector<134x8xf32> -> vector<134x8xf32>
    %13 = arith.addf %8, %12 : vector<134x8xf32>
    %c2 = arith.constant 2 : index
    %c0_17 = arith.constant 0 : index
    %14 = tpu.strided_load %arg1[%c2, %c0_17] {strides = array<i32: 2, 1>} : memref<648x4xf32, #tpu.memory_space<vmem>>, vector<134x4xf32>
    %c2_18 = arith.constant 2 : index
    %c0_19 = arith.constant 0 : index
    %c0_20 = arith.constant 0 : index
    %15 = vector.load %arg2[%c2_18, %c0_19, %c0_20] : memref<9x4x8xf32, #tpu.memory_space<vmem>>, vector<1x4x8xf32>
    %16 = vector.shape_cast %15 : vector<1x4x8xf32> to vector<4x8xf32>
    %cst_21 = arith.constant dense<0.000000e+00> : vector<134x8xf32>
    %17 = tpu.matmul %14, %16, %cst_21 {dimension_numbers = #tpu.dot_dimension_numbers<[1], [0], [0], [1], [0, 0, 1, 1], [], []>} : vector<134x4xf32>, vector<4x8xf32>, vector<134x8xf32> -> vector<134x8xf32>
    %18 = arith.addf %13, %17 : vector<134x8xf32>
    %c18 = arith.constant 18 : index
    %c0_22 = arith.constant 0 : index
    %19 = tpu.strided_load %arg1[%c18, %c0_22] {strides = array<i32: 2, 1>} : memref<648x4xf32, #tpu.memory_space<vmem>>, vector<134x4xf32>
    %c3 = arith.constant 3 : index
    %c0_23 = arith.constant 0 : index
    %c0_24 = arith.constant 0 : index
    %20 = vector.load %arg2[%c3, %c0_23, %c0_24] : memref<9x4x8xf32, #tpu.memory_space<vmem>>, vector<1x4x8xf32>
    %21 = vector.shape_cast %20 : vector<1x4x8xf32> to vector<4x8xf32>
    %cst_25 = arith.constant dense<0.000000e+00> : vector<134x8xf32>
    %22 = tpu.matmul %19, %21, %cst_25 {dimension_numbers = #tpu.dot_dimension_numbers<[1], [0], [0], [1], [0, 0, 1, 1], [], []>} : vector<134x4xf32>, vector<4x8xf32>, vector<134x8xf32> -> vector<134x8xf32>
    %23 = arith.addf %18, %22 : vector<134x8xf32>
    %c19 = arith.constant 19 : index
    %c0_26 = arith.constant 0 : index
    %24 = tpu.strided_load %arg1[%c19, %c0_26] {strides = array<i32: 2, 1>} : memref<648x4xf32, #tpu.memory_space<vmem>>, vector<134x4xf32>
    %c4 = arith.constant 4 : index
    %c0_27 = arith.constant 0 : index
    %c0_28 = arith.constant 0 : index
    %25 = vector.load %arg2[%c4, %c0_27, %c0_28] : memref<9x4x8xf32, #tpu.memory_space<vmem>>, vector<1x4x8xf32>
    %26 = vector.shape_cast %25 : vector<1x4x8xf32> to vector<4x8xf32>
    %cst_29 = arith.constant dense<0.000000e+00> : vector<134x8xf32>
    %27 = tpu.matmul %24, %26, %cst_29 {dimension_numbers = #tpu.dot_dimension_numbers<[1], [0], [0], [1], [0, 0, 1, 1], [], []>} : vector<134x4xf32>, vector<4x8xf32>, vector<134x8xf32> -> vector<134x8xf32>
    %28 = arith.addf %23, %27 : vector<134x8xf32>
    %c20 = arith.constant 20 : index
    %c0_30 = arith.constant 0 : index
    %29 = tpu.strided_load %arg1[%c20, %c0_30] {strides = array<i32: 2, 1>} : memref<648x4xf32, #tpu.memory_space<vmem>>, vector<134x4xf32>
    %c5 = arith.constant 5 : index
    %c0_31 = arith.constant 0 : index
    %c0_32 = arith.constant 0 : index
    %30 = vector.load %arg2[%c5, %c0_31, %c0_32] : memref<9x4x8xf32, #tpu.memory_space<vmem>>, vector<1x4x8xf32>
    %31 = vector.shape_cast %30 : vector<1x4x8xf32> to vector<4x8xf32>
    %cst_33 = arith.constant dense<0.000000e+00> : vector<134x8xf32>
    %32 = tpu.matmul %29, %31, %cst_33 {dimension_numbers = #tpu.dot_dimension_numbers<[1], [0], [0], [1], [0, 0, 1, 1], [], []>} : vector<134x4xf32>, vector<4x8xf32>, vector<134x8xf32> -> vector<134x8xf32>
    %33 = arith.addf %28, %32 : vector<134x8xf32>
    %c36 = arith.constant 36 : index
    %c0_34 = arith.constant 0 : index
    %34 = tpu.strided_load %arg1[%c36, %c0_34] {strides = array<i32: 2, 1>} : memref<648x4xf32, #tpu.memory_space<vmem>>, vector<134x4xf32>
    %c6 = arith.constant 6 : index
    %c0_35 = arith.constant 0 : index
    %c0_36 = arith.constant 0 : index
    %35 = vector.load %arg2[%c6, %c0_35, %c0_36] : memref<9x4x8xf32, #tpu.memory_space<vmem>>, vector<1x4x8xf32>
    %36 = vector.shape_cast %35 : vector<1x4x8xf32> to vector<4x8xf32>
    %cst_37 = arith.constant dense<0.000000e+00> : vector<134x8xf32>
    %37 = tpu.matmul %34, %36, %cst_37 {dimension_numbers = #tpu.dot_dimension_numbers<[1], [0], [0], [1], [0, 0, 1, 1], [], []>} : vector<134x4xf32>, vector<4x8xf32>, vector<134x8xf32> -> vector<134x8xf32>
    %38 = arith.addf %33, %37 : vector<134x8xf32>
    %c37 = arith.constant 37 : index
    %c0_38 = arith.constant 0 : index
    %39 = tpu.strided_load %arg1[%c37, %c0_38] {strides = array<i32: 2, 1>} : memref<648x4xf32, #tpu.memory_space<vmem>>, vector<134x4xf32>
    %c7 = arith.constant 7 : index
    %c0_39 = arith.constant 0 : index
    %c0_40 = arith.constant 0 : index
    %40 = vector.load %arg2[%c7, %c0_39, %c0_40] : memref<9x4x8xf32, #tpu.memory_space<vmem>>, vector<1x4x8xf32>
    %41 = vector.shape_cast %40 : vector<1x4x8xf32> to vector<4x8xf32>
    %cst_41 = arith.constant dense<0.000000e+00> : vector<134x8xf32>
    %42 = tpu.matmul %39, %41, %cst_41 {dimension_numbers = #tpu.dot_dimension_numbers<[1], [0], [0], [1], [0, 0, 1, 1], [], []>} : vector<134x4xf32>, vector<4x8xf32>, vector<134x8xf32> -> vector<134x8xf32>
    %43 = arith.addf %38, %42 : vector<134x8xf32>
    %c38 = arith.constant 38 : index
    %c0_42 = arith.constant 0 : index
    %44 = tpu.strided_load %arg1[%c38, %c0_42] {strides = array<i32: 2, 1>} : memref<648x4xf32, #tpu.memory_space<vmem>>, vector<134x4xf32>
    %c8 = arith.constant 8 : index
    %c0_43 = arith.constant 0 : index
    %c0_44 = arith.constant 0 : index
    %45 = vector.load %arg2[%c8, %c0_43, %c0_44] : memref<9x4x8xf32, #tpu.memory_space<vmem>>, vector<1x4x8xf32>
    %46 = vector.shape_cast %45 : vector<1x4x8xf32> to vector<4x8xf32>
    %cst_45 = arith.constant dense<0.000000e+00> : vector<134x8xf32>
    %47 = tpu.matmul %44, %46, %cst_45 {dimension_numbers = #tpu.dot_dimension_numbers<[1], [0], [0], [1], [0, 0, 1, 1], [], []>} : vector<134x4xf32>, vector<4x8xf32>, vector<134x8xf32> -> vector<134x8xf32>
    %48 = arith.addf %43, %47 : vector<134x8xf32>
    %49 = vector.broadcast %4 : vector<1x8xf32> to vector<134x8xf32>
    %50 = arith.addf %48, %49 : vector<134x8xf32>
    %cst_46 = arith.constant 2.000000e-01 : f32
    %51 = vector.broadcast %cst_46 : f32 to vector<134x8xf32>
    %52 = arith.mulf %51, %50 : vector<134x8xf32>
    %53 = arith.maximumf %50, %52 : vector<134x8xf32>
    %c0_47 = arith.constant 0 : index
    %c0_48 = arith.constant 0 : index
    %54 = vector.load %arg26[%c0_47, %c0_48] : memref<134x8xf32, #tpu.memory_space<vmem>>, vector<134x8xf32>
    tpu.vector_store %arg26[%c0_47, %c0_48], %53 {strides = array<i32>} : memref<134x8xf32, #tpu.memory_space<vmem>>, vector<134x8xf32>,
    %c0_49 = arith.constant 0 : index
    %c0_50 = arith.constant 0 : index
    %55 = vector.load %arg26[%c0_49, %c0_50] : memref<134x8xf32, #tpu.memory_space<vmem>>, vector<8x8xf32>
    %c11 = arith.constant 11 : index
    %c0_51 = arith.constant 0 : index
    %56 = vector.load %arg24[%c11, %c0_51] : memref<200x8xf32, #tpu.memory_space<vmem>>, vector<8x8xf32>
    tpu.vector_store %arg24[%c11, %c0_51], %55 {strides = array<i32>} : memref<200x8xf32, #tpu.memory_space<vmem>>, vector<8x8xf32>,
    %c0_52 = arith.constant 0 : index
    %c0_53 = arith.constant 0 : index
    %57 = vector.load %arg23[%c0_52, %c0_53] : memref<128x24xf32, #tpu.memory_space<vmem>>, vector<8x8xf32>
    tpu.vector_store %arg23[%c0_52, %c0_53], %55 {strides = array<i32>} : memref<128x24xf32, #tpu.memory_space<vmem>>, vector<8x8xf32>,
    %c18_54 = arith.constant 18 : index
    %c0_55 = arith.constant 0 : index
    %58 = vector.load %arg26[%c18_54, %c0_55] : memref<134x8xf32, #tpu.memory_space<vmem>>, vector<8x8xf32>
    %c21 = arith.constant 21 : index
    %c0_56 = arith.constant 0 : index
    %59 = vector.load %arg24[%c21, %c0_56] : memref<200x8xf32, #tpu.memory_space<vmem>>, vector<8x8xf32>
    tpu.vector_store %arg24[%c21, %c0_56], %58 {strides = array<i32>} : memref<200x8xf32, #tpu.memory_space<vmem>>, vector<8x8xf32>,
    %c8_57 = arith.constant 8 : index
    %c0_58 = arith.constant 0 : index
    %60 = vector.load %arg23[%c8_57, %c0_58] : memref<128x24xf32, #tpu.memory_space<vmem>>, vector<8x8xf32>
    tpu.vector_store %arg23[%c8_57, %c0_58], %58 {strides = array<i32>} : memref<128x24xf32, #tpu.memory_space<vmem>>, vector<8x8xf32>,
    %c36_59 = arith.constant 36 : index
    %c0_60 = arith.constant 0 : index
    %61 = vector.load %arg26[%c36_59, %c0_60] : memref<134x8xf32, #tpu.memory_space<vmem>>, vector<8x8xf32>
    %c31 = arith.constant 31 : index
    %c0_61 = arith.constant 0 : index
    %62 = vector.load %arg24[%c31, %c0_61] : memref<200x8xf32, #tpu.memory_space<vmem>>, vector<8x8xf32>
    tpu.vector_store %arg24[%c31, %c0_61], %61 {strides = array<i32>} : memref<200x8xf32, #tpu.memory_space<vmem>>, vector<8x8xf32>,
    %c16 = arith.constant 16 : index
    %c0_62 = arith.constant 0 : index
    %63 = vector.load %arg23[%c16, %c0_62] : memref<128x24xf32, #tpu.memory_space<vmem>>, vector<8x8xf32>
    tpu.vector_store %arg23[%c16, %c0_62], %61 {strides = array<i32>} : memref<128x24xf32, #tpu.memory_space<vmem>>, vector<8x8xf32>,
    %c54 = arith.constant 54 : index
    %c0_63 = arith.constant 0 : index
    %64 = vector.load %arg26[%c54, %c0_63] : memref<134x8xf32, #tpu.memory_space<vmem>>, vector<8x8xf32>
    %c41 = arith.constant 41 : index
    %c0_64 = arith.constant 0 : index
    %65 = vector.load %arg24[%c41, %c0_64] : memref<200x8xf32, #tpu.memory_space<vmem>>, vector<8x8xf32>
    tpu.vector_store %arg24[%c41, %c0_64], %64 {strides = array<i32>} : memref<200x8xf32, #tpu.memory_space<vmem>>, vector<8x8xf32>,
    %c24 = arith.constant 24 : index
    %c0_65 = arith.constant 0 : index
    %66 = vector.load %arg23[%c24, %c0_65] : memref<128x24xf32, #tpu.memory_space<vmem>>, vector<8x8xf32>
    tpu.vector_store %arg23[%c24, %c0_65], %64 {strides = array<i32>} : memref<128x24xf32, #tpu.memory_space<vmem>>, vector<8x8xf32>,
    %c72 = arith.constant 72 : index
    %c0_66 = arith.constant 0 : index
    %67 = vector.load %arg26[%c72, %c0_66] : memref<134x8xf32, #tpu.memory_space<vmem>>, vector<8x8xf32>
    %c51 = arith.constant 51 : index
    %c0_67 = arith.constant 0 : index
    %68 = vector.load %arg24[%c51, %c0_67] : memref<200x8xf32, #tpu.memory_space<vmem>>, vector<8x8xf32>
    tpu.vector_store %arg24[%c51, %c0_67], %67 {strides = array<i32>} : memref<200x8xf32, #tpu.memory_space<vmem>>, vector<8x8xf32>,
    %c32 = arith.constant 32 : index
    %c0_68 = arith.constant 0 : index
    %69 = vector.load %arg23[%c32, %c0_68] : memref<128x24xf32, #tpu.memory_space<vmem>>, vector<8x8xf32>
    tpu.vector_store %arg23[%c32, %c0_68], %67 {strides = array<i32>} : memref<128x24xf32, #tpu.memory_space<vmem>>, vector<8x8xf32>,
    %c90 = arith.constant 90 : index
    %c0_69 = arith.constant 0 : index
    %70 = vector.load %arg26[%c90, %c0_69] : memref<134x8xf32, #tpu.memory_space<vmem>>, vector<8x8xf32>
    %c61 = arith.constant 61 : index
    %c0_70 = arith.constant 0 : index
    %71 = vector.load %arg24[%c61, %c0_70] : memref<200x8xf32, #tpu.memory_space<vmem>>, vector<8x8xf32>
    tpu.vector_store %arg24[%c61, %c0_70], %70 {strides = array<i32>} : memref<200x8xf32, #tpu.memory_space<vmem>>, vector<8x8xf32>,
    %c40 = arith.constant 40 : index
    %c0_71 = arith.constant 0 : index
    %72 = vector.load %arg23[%c40, %c0_71] : memref<128x24xf32, #tpu.memory_space<vmem>>, vector<8x8xf32>
    tpu.vector_store %arg23[%c40, %c0_71], %70 {strides = array<i32>} : memref<128x24xf32, #tpu.memory_space<vmem>>, vector<8x8xf32>,
    %c108 = arith.constant 108 : index
    %c0_72 = arith.constant 0 : index
    %73 = vector.load %arg26[%c108, %c0_72] : memref<134x8xf32, #tpu.memory_space<vmem>>, vector<8x8xf32>
    %c71 = arith.constant 71 : index
    %c0_73 = arith.constant 0 : index
    %74 = vector.load %arg24[%c71, %c0_73] : memref<200x8xf32, #tpu.memory_space<vmem>>, vector<8x8xf32>
    tpu.vector_store %arg24[%c71, %c0_73], %73 {strides = array<i32>} : memref<200x8xf32, #tpu.memory_space<vmem>>, vector<8x8xf32>,
    %c48 = arith.constant 48 : index
    %c0_74 = arith.constant 0 : index
    %75 = vector.load %arg23[%c48, %c0_74] : memref<128x24xf32, #tpu.memory_space<vmem>>, vector<8x8xf32>
    tpu.vector_store %arg23[%c48, %c0_74], %73 {strides = array<i32>} : memref<128x24xf32, #tpu.memory_space<vmem>>, vector<8x8xf32>,
    %c126 = arith.constant 126 : index
    %c0_75 = arith.constant 0 : index
    %76 = vector.load %arg26[%c126, %c0_75] : memref<134x8xf32, #tpu.memory_space<vmem>>, vector<8x8xf32>
    %c81 = arith.constant 81 : index
    %c0_76 = arith.constant 0 : index
    %77 = vector.load %arg24[%c81, %c0_76] : memref<200x8xf32, #tpu.memory_space<vmem>>, vector<8x8xf32>
    tpu.vector_store %arg24[%c81, %c0_76], %76 {strides = array<i32>} : memref<200x8xf32, #tpu.memory_space<vmem>>, vector<8x8xf32>,
    %c56 = arith.constant 56 : index
    %c0_77 = arith.constant 0 : index
    %78 = vector.load %arg23[%c56, %c0_77] : memref<128x24xf32, #tpu.memory_space<vmem>>, vector<8x8xf32>
    tpu.vector_store %arg23[%c56, %c0_77], %76 {strides = array<i32>} : memref<128x24xf32, #tpu.memory_space<vmem>>, vector<8x8xf32>,
    %c324 = arith.constant 324 : index
    %c0_78 = arith.constant 0 : index
    %79 = tpu.strided_load %arg1[%c324, %c0_78] {strides = array<i32: 2, 1>} : memref<648x4xf32, #tpu.memory_space<vmem>>, vector<134x4xf32>
    %c0_79 = arith.constant 0 : index
    %c0_80 = arith.constant 0 : index
    %c0_81 = arith.constant 0 : index
    %80 = vector.load %arg2[%c0_79, %c0_80, %c0_81] : memref<9x4x8xf32, #tpu.memory_space<vmem>>, vector<1x4x8xf32>
    %81 = vector.shape_cast %80 : vector<1x4x8xf32> to vector<4x8xf32>
    %cst_82 = arith.constant dense<0.000000e+00> : vector<134x8xf32>
    %82 = tpu.matmul %79, %81, %cst_82 {dimension_numbers = #tpu.dot_dimension_numbers<[1], [0], [0], [1], [0, 0, 1, 1], [], []>} : vector<134x4xf32>, vector<4x8xf32>, vector<134x8xf32> -> vector<134x8xf32>
    %c325 = arith.constant 325 : index
    %c0_83 = arith.constant 0 : index
    %83 = tpu.strided_load %arg1[%c325, %c0_83] {strides = array<i32: 2, 1>} : memref<648x4xf32, #tpu.memory_space<vmem>>, vector<134x4xf32>
    %c1_84 = arith.constant 1 : index
    %c0_85 = arith.constant 0 : index
    %c0_86 = arith.constant 0 : index
    %84 = vector.load %arg2[%c1_84, %c0_85, %c0_86] : memref<9x4x8xf32, #tpu.memory_space<vmem>>, vector<1x4x8xf32>
    %85 = vector.shape_cast %84 : vector<1x4x8xf32> to vector<4x8xf32>
    %cst_87 = arith.constant dense<0.000000e+00> : vector<134x8xf32>
    %86 = tpu.matmul %83, %85, %cst_87 {dimension_numbers = #tpu.dot_dimension_numbers<[1], [0], [0], [1], [0, 0, 1, 1], [], []>} : vector<134x4xf32>, vector<4x8xf32>, vector<134x8xf32> -> vector<134x8xf32>
    %87 = arith.addf %82, %86 : vector<134x8xf32>
    %c326 = arith.constant 326 : index
    %c0_88 = arith.constant 0 : index
    %88 = tpu.strided_load %arg1[%c326, %c0_88] {strides = array<i32: 2, 1>} : memref<648x4xf32, #tpu.memory_space<vmem>>, vector<134x4xf32>
    %c2_89 = arith.constant 2 : index
    %c0_90 = arith.constant 0 : index
    %c0_91 = arith.constant 0 : index
    %89 = vector.load %arg2[%c2_89, %c0_90, %c0_91] : memref<9x4x8xf32, #tpu.memory_space<vmem>>, vector<1x4x8xf32>
    %90 = vector.shape_cast %89 : vector<1x4x8xf32> to vector<4x8xf32>
    %cst_92 = arith.constant dense<0.000000e+00> : vector<134x8xf32>
    %91 = tpu.matmul %88, %90, %cst_92 {dimension_numbers = #tpu.dot_dimension_numbers<[1], [0], [0], [1], [0, 0, 1, 1], [], []>} : vector<134x4xf32>, vector<4x8xf32>, vector<134x8xf32> -> vector<134x8xf32>
    %92 = arith.addf %87, %91 : vector<134x8xf32>
    %c342 = arith.constant 342 : index
    %c0_93 = arith.constant 0 : index
    %93 = tpu.strided_load %arg1[%c342, %c0_93] {strides = array<i32: 2, 1>} : memref<648x4xf32, #tpu.memory_space<vmem>>, vector<134x4xf32>
    %c3_94 = arith.constant 3 : index
    %c0_95 = arith.constant 0 : index
    %c0_96 = arith.constant 0 : index
    %94 = vector.load %arg2[%c3_94, %c0_95, %c0_96] : memref<9x4x8xf32, #tpu.memory_space<vmem>>, vector<1x4x8xf32>
    %95 = vector.shape_cast %94 : vector<1x4x8xf32> to vector<4x8xf32>
    %cst_97 = arith.constant dense<0.000000e+00> : vector<134x8xf32>
    %96 = tpu.matmul %93, %95, %cst_97 {dimension_numbers = #tpu.dot_dimension_numbers<[1], [0], [0], [1], [0, 0, 1, 1], [], []>} : vector<134x4xf32>, vector<4x8xf32>, vector<134x8xf32> -> vector<134x8xf32>
    %97 = arith.addf %92, %96 : vector<134x8xf32>
    %c343 = arith.constant 343 : index
    %c0_98 = arith.constant 0 : index
    %98 = tpu.strided_load %arg1[%c343, %c0_98] {strides = array<i32: 2, 1>} : memref<648x4xf32, #tpu.memory_space<vmem>>, vector<134x4xf32>
    %c4_99 = arith.constant 4 : index
    %c0_100 = arith.constant 0 : index
    %c0_101 = arith.constant 0 : index
    %99 = vector.load %arg2[%c4_99, %c0_100, %c0_101] : memref<9x4x8xf32, #tpu.memory_space<vmem>>, vector<1x4x8xf32>
    %100 = vector.shape_cast %99 : vector<1x4x8xf32> to vector<4x8xf32>
    %cst_102 = arith.constant dense<0.000000e+00> : vector<134x8xf32>
    %101 = tpu.matmul %98, %100, %cst_102 {dimension_numbers = #tpu.dot_dimension_numbers<[1], [0], [0], [1], [0, 0, 1, 1], [], []>} : vector<134x4xf32>, vector<4x8xf32>, vector<134x8xf32> -> vector<134x8xf32>
    %102 = arith.addf %97, %101 : vector<134x8xf32>
    %c344 = arith.constant 344 : index
    %c0_103 = arith.constant 0 : index
    %103 = tpu.strided_load %arg1[%c344, %c0_103] {strides = array<i32: 2, 1>} : memref<648x4xf32, #tpu.memory_space<vmem>>, vector<134x4xf32>
    %c5_104 = arith.constant 5 : index
    %c0_105 = arith.constant 0 : index
    %c0_106 = arith.constant 0 : index
    %104 = vector.load %arg2[%c5_104, %c0_105, %c0_106] : memref<9x4x8xf32, #tpu.memory_space<vmem>>, vector<1x4x8xf32>
    %105 = vector.shape_cast %104 : vector<1x4x8xf32> to vector<4x8xf32>
    %cst_107 = arith.constant dense<0.000000e+00> : vector<134x8xf32>
    %106 = tpu.matmul %103, %105, %cst_107 {dimension_numbers = #tpu.dot_dimension_numbers<[1], [0], [0], [1], [0, 0, 1, 1], [], []>} : vector<134x4xf32>, vector<4x8xf32>, vector<134x8xf32> -> vector<134x8xf32>
    %107 = arith.addf %102, %106 : vector<134x8xf32>
    %c360 = arith.constant 360 : index
    %c0_108 = arith.constant 0 : index
    %108 = tpu.strided_load %arg1[%c360, %c0_108] {strides = array<i32: 2, 1>} : memref<648x4xf32, #tpu.memory_space<vmem>>, vector<134x4xf32>
    %c6_109 = arith.constant 6 : index
    %c0_110 = arith.constant 0 : index
    %c0_111 = arith.constant 0 : index
    %109 = vector.load %arg2[%c6_109, %c0_110, %c0_111] : memref<9x4x8xf32, #tpu.memory_space<vmem>>, vector<1x4x8xf32>
    %110 = vector.shape_cast %109 : vector<1x4x8xf32> to vector<4x8xf32>
    %cst_112 = arith.constant dense<0.000000e+00> : vector<134x8xf32>
    %111 = tpu.matmul %108, %110, %cst_112 {dimension_numbers = #tpu.dot_dimension_numbers<[1], [0], [0], [1], [0, 0, 1, 1], [], []>} : vector<134x4xf32>, vector<4x8xf32>, vector<134x8xf32> -> vector<134x8xf32>
    %112 = arith.addf %107, %111 : vector<134x8xf32>
    %c361 = arith.constant 361 : index
    %c0_113 = arith.constant 0 : index
    %113 = tpu.strided_load %arg1[%c361, %c0_113] {strides = array<i32: 2, 1>} : memref<648x4xf32, #tpu.memory_space<vmem>>, vector<134x4xf32>
    %c7_114 = arith.constant 7 : index
    %c0_115 = arith.constant 0 : index
    %c0_116 = arith.constant 0 : index
    %114 = vector.load %arg2[%c7_114, %c0_115, %c0_116] : memref<9x4x8xf32, #tpu.memory_space<vmem>>, vector<1x4x8xf32>
    %115 = vector.shape_cast %114 : vector<1x4x8xf32> to vector<4x8xf32>
    %cst_117 = arith.constant dense<0.000000e+00> : vector<134x8xf32>
    %116 = tpu.matmul %113, %115, %cst_117 {dimension_numbers = #tpu.dot_dimension_numbers<[1], [0], [0], [1], [0, 0, 1, 1], [], []>} : vector<134x4xf32>, vector<4x8xf32>, vector<134x8xf32> -> vector<134x8xf32>
    %117 = arith.addf %112, %116 : vector<134x8xf32>
    %c362 = arith.constant 362 : index
    %c0_118 = arith.constant 0 : index
    %118 = tpu.strided_load %arg1[%c362, %c0_118] {strides = array<i32: 2, 1>} : memref<648x4xf32, #tpu.memory_space<vmem>>, vector<134x4xf32>
    %c8_119 = arith.constant 8 : index
    %c0_120 = arith.constant 0 : index
    %c0_121 = arith.constant 0 : index
    %119 = vector.load %arg2[%c8_119, %c0_120, %c0_121] : memref<9x4x8xf32, #tpu.memory_space<vmem>>, vector<1x4x8xf32>
    %120 = vector.shape_cast %119 : vector<1x4x8xf32> to vector<4x8xf32>
    %cst_122 = arith.constant dense<0.000000e+00> : vector<134x8xf32>
    %121 = tpu.matmul %118, %120, %cst_122 {dimension_numbers = #tpu.dot_dimension_numbers<[1], [0], [0], [1], [0, 0, 1, 1], [], []>} : vector<134x4xf32>, vector<4x8xf32>, vector<134x8xf32> -> vector<134x8xf32>
    %122 = arith.addf %117, %121 : vector<134x8xf32>
    %123 = vector.broadcast %4 : vector<1x8xf32> to vector<134x8xf32>
    %124 = arith.addf %122, %123 : vector<134x8xf32>
    %cst_123 = arith.constant 2.000000e-01 : f32
    %125 = vector.broadcast %cst_123 : f32 to vector<134x8xf32>
    %126 = arith.mulf %125, %124 : vector<134x8xf32>
    %127 = arith.maximumf %124, %126 : vector<134x8xf32>
    %c0_124 = arith.constant 0 : index
    %c0_125 = arith.constant 0 : index
    %128 = vector.load %arg26[%c0_124, %c0_125] : memref<134x8xf32, #tpu.memory_space<vmem>>, vector<134x8xf32>
    tpu.vector_store %arg26[%c0_124, %c0_125], %127 {strides = array<i32>} : memref<134x8xf32, #tpu.memory_space<vmem>>, vector<134x8xf32>,
    %c0_126 = arith.constant 0 : index
    %c0_127 = arith.constant 0 : index
    %129 = vector.load %arg26[%c0_126, %c0_127] : memref<134x8xf32, #tpu.memory_space<vmem>>, vector<8x8xf32>
    %c111 = arith.constant 111 : index
    %c0_128 = arith.constant 0 : index
    %130 = vector.load %arg24[%c111, %c0_128] : memref<200x8xf32, #tpu.memory_space<vmem>>, vector<8x8xf32>
    tpu.vector_store %arg24[%c111, %c0_128], %129 {strides = array<i32>} : memref<200x8xf32, #tpu.memory_space<vmem>>, vector<8x8xf32>,
    %c64 = arith.constant 64 : index
    %c0_129 = arith.constant 0 : index
    %131 = vector.load %arg23[%c64, %c0_129] : memref<128x24xf32, #tpu.memory_space<vmem>>, vector<8x8xf32>
    tpu.vector_store %arg23[%c64, %c0_129], %129 {strides = array<i32>} : memref<128x24xf32, #tpu.memory_space<vmem>>, vector<8x8xf32>,
    %c18_130 = arith.constant 18 : index
    %c0_131 = arith.constant 0 : index
    %132 = vector.load %arg26[%c18_130, %c0_131] : memref<134x8xf32, #tpu.memory_space<vmem>>, vector<8x8xf32>
    %c121 = arith.constant 121 : index
    %c0_132 = arith.constant 0 : index
    %133 = vector.load %arg24[%c121, %c0_132] : memref<200x8xf32, #tpu.memory_space<vmem>>, vector<8x8xf32>
    tpu.vector_store %arg24[%c121, %c0_132], %132 {strides = array<i32>} : memref<200x8xf32, #tpu.memory_space<vmem>>, vector<8x8xf32>,
    %c72_133 = arith.constant 72 : index
    %c0_134 = arith.constant 0 : index
    %134 = vector.load %arg23[%c72_133, %c0_134] : memref<128x24xf32, #tpu.memory_space<vmem>>, vector<8x8xf32>
    tpu.vector_store %arg23[%c72_133, %c0_134], %132 {strides = array<i32>} : memref<128x24xf32, #tpu.memory_space<vmem>>, vector<8x8xf32>,
    %c36_135 = arith.constant 36 : index
    %c0_136 = arith.constant 0 : index
    %135 = vector.load %arg26[%c36_135, %c0_136] : memref<134x8xf32, #tpu.memory_space<vmem>>, vector<8x8xf32>
    %c131 = arith.constant 131 : index
    %c0_137 = arith.constant 0 : index
    %136 = vector.load %arg24[%c131, %c0_137] : memref<200x8xf32, #tpu.memory_space<vmem>>, vector<8x8xf32>
    tpu.vector_store %arg24[%c131, %c0_137], %135 {strides = array<i32>} : memref<200x8xf32, #tpu.memory_space<vmem>>, vector<8x8xf32>,
    %c80 = arith.constant 80 : index
    %c0_138 = arith.constant 0 : index
    %137 = vector.load %arg23[%c80, %c0_138] : memref<128x24xf32, #tpu.memory_space<vmem>>, vector<8x8xf32>
    tpu.vector_store %arg23[%c80, %c0_138], %135 {strides = array<i32>} : memref<128x24xf32, #tpu.memory_space<vmem>>, vector<8x8xf32>,
    %c54_139 = arith.constant 54 : index
    %c0_140 = arith.constant 0 : index
    %138 = vector.load %arg26[%c54_139, %c0_140] : memref<134x8xf32, #tpu.memory_space<vmem>>, vector<8x8xf32>
    %c141 = arith.constant 141 : index
    %c0_141 = arith.constant 0 : index
    %139 = vector.load %arg24[%c141, %c0_141] : memref<200x8xf32, #tpu.memory_space<vmem>>, vector<8x8xf32>
    tpu.vector_store %arg24[%c141, %c0_141], %138 {strides = array<i32>} : memref<200x8xf32, #tpu.memory_space<vmem>>, vector<8x8xf32>,
    %c88 = arith.constant 88 : index
    %c0_142 = arith.constant 0 : index
    %140 = vector.load %arg23[%c88, %c0_142] : memref<128x24xf32, #tpu.memory_space<vmem>>, vector<8x8xf32>
    tpu.vector_store %arg23[%c88, %c0_142], %138 {strides = array<i32>} : memref<128x24xf32, #tpu.memory_space<vmem>>, vector<8x8xf32>,
    %c72_143 = arith.constant 72 : index
    %c0_144 = arith.constant 0 : index
    %141 = vector.load %arg26[%c72_143, %c0_144] : memref<134x8xf32, #tpu.memory_space<vmem>>, vector<8x8xf32>
    %c151 = arith.constant 151 : index
    %c0_145 = arith.constant 0 : index
    %142 = vector.load %arg24[%c151, %c0_145] : memref<200x8xf32, #tpu.memory_space<vmem>>, vector<8x8xf32>
    tpu.vector_store %arg24[%c151, %c0_145], %141 {strides = array<i32>} : memref<200x8xf32, #tpu.memory_space<vmem>>, vector<8x8xf32>,
    %c96 = arith.constant 96 : index
    %c0_146 = arith.constant 0 : index
    %143 = vector.load %arg23[%c96, %c0_146] : memref<128x24xf32, #tpu.memory_space<vmem>>, vector<8x8xf32>
    tpu.vector_store %arg23[%c96, %c0_146], %141 {strides = array<i32>} : memref<128x24xf32, #tpu.memory_space<vmem>>, vector<8x8xf32>,
    %c90_147 = arith.constant 90 : index
    %c0_148 = arith.constant 0 : index
    %144 = vector.load %arg26[%c90_147, %c0_148] : memref<134x8xf32, #tpu.memory_space<vmem>>, vector<8x8xf32>
    %c161 = arith.constant 161 : index
    %c0_149 = arith.constant 0 : index
    %145 = vector.load %arg24[%c161, %c0_149] : memref<200x8xf32, #tpu.memory_space<vmem>>, vector<8x8xf32>
    tpu.vector_store %arg24[%c161, %c0_149], %144 {strides = array<i32>} : memref<200x8xf32, #tpu.memory_space<vmem>>, vector<8x8xf32>,
    %c104 = arith.constant 104 : index
    %c0_150 = arith.constant 0 : index
    %146 = vector.load %arg23[%c104, %c0_150] : memref<128x24xf32, #tpu.memory_space<vmem>>, vector<8x8xf32>
    tpu.vector_store %arg23[%c104, %c0_150], %144 {strides = array<i32>} : memref<128x24xf32, #tpu.memory_space<vmem>>, vector<8x8xf32>,
    %c108_151 = arith.constant 108 : index
    %c0_152 = arith.constant 0 : index
    %147 = vector.load %arg26[%c108_151, %c0_152] : memref<134x8xf32, #tpu.memory_space<vmem>>, vector<8x8xf32>
    %c171 = arith.constant 171 : index
    %c0_153 = arith.constant 0 : index
    %148 = vector.load %arg24[%c171, %c0_153] : memref<200x8xf32, #tpu.memory_space<vmem>>, vector<8x8xf32>
    tpu.vector_store %arg24[%c171, %c0_153], %147 {strides = array<i32>} : memref<200x8xf32, #tpu.memory_space<vmem>>, vector<8x8xf32>,
    %c112 = arith.constant 112 : index
    %c0_154 = arith.constant 0 : index
    %149 = vector.load %arg23[%c112, %c0_154] : memref<128x24xf32, #tpu.memory_space<vmem>>, vector<8x8xf32>
    tpu.vector_store %arg23[%c112, %c0_154], %147 {strides = array<i32>} : memref<128x24xf32, #tpu.memory_space<vmem>>, vector<8x8xf32>,
    %c126_155 = arith.constant 126 : index
    %c0_156 = arith.constant 0 : index
    %150 = vector.load %arg26[%c126_155, %c0_156] : memref<134x8xf32, #tpu.memory_space<vmem>>, vector<8x8xf32>
    %c181 = arith.constant 181 : index
    %c0_157 = arith.constant 0 : index
    %151 = vector.load %arg24[%c181, %c0_157] : memref<200x8xf32, #tpu.memory_space<vmem>>, vector<8x8xf32>
    tpu.vector_store %arg24[%c181, %c0_157], %150 {strides = array<i32>} : memref<200x8xf32, #tpu.memory_space<vmem>>, vector<8x8xf32>,
    %c120 = arith.constant 120 : index
    %c0_158 = arith.constant 0 : index
    %152 = vector.load %arg23[%c120, %c0_158] : memref<128x24xf32, #tpu.memory_space<vmem>>, vector<8x8xf32>
    tpu.vector_store %arg23[%c120, %c0_158], %150 {strides = array<i32>} : memref<128x24xf32, #tpu.memory_space<vmem>>, vector<8x8xf32>,
    %c0_159 = arith.constant 0 : index
    %c0_160 = arith.constant 0 : index
    %153 = vector.load %arg5[%c0_159, %c0_160] : memref<1x16xf32, #tpu.memory_space<vmem>>, vector<1x16xf32>
    %c0_161 = arith.constant 0 : index
    %c0_162 = arith.constant 0 : index
    %154 = tpu.strided_load %arg24[%c0_161, %c0_162] {strides = array<i32: 2, 1>} : memref<200x8xf32, #tpu.memory_space<vmem>>, vector<34x8xf32>
    %c0_163 = arith.constant 0 : index
    %c0_164 = arith.constant 0 : index
    %c0_165 = arith.constant 0 : index
    %155 = vector.load %arg4[%c0_163, %c0_164, %c0_165] : memref<9x8x16xf32, #tpu.memory_space<vmem>>, vector<1x8x16xf32>
    %156 = vector.shape_cast %155 : vector<1x8x16xf32> to vector<8x16xf32>
    %cst_166 = arith.constant dense<0.000000e+00> : vector<34x16xf32>
    %157 = tpu.matmul %154, %156, %cst_166 {dimension_numbers = #tpu.dot_dimension_numbers<[1], [0], [0], [1], [0, 0, 1, 1], [], []>} : vector<34x8xf32>, vector<8x16xf32>, vector<34x16xf32> -> vector<34x16xf32>
    %c1_167 = arith.constant 1 : index
    %c0_168 = arith.constant 0 : index
    %158 = tpu.strided_load %arg24[%c1_167, %c0_168] {strides = array<i32: 2, 1>} : memref<200x8xf32, #tpu.memory_space<vmem>>, vector<34x8xf32>
    %c1_169 = arith.constant 1 : index
    %c0_170 = arith.constant 0 : index
    %c0_171 = arith.constant 0 : index
    %159 = vector.load %arg4[%c1_169, %c0_170, %c0_171] : memref<9x8x16xf32, #tpu.memory_space<vmem>>, vector<1x8x16xf32>
    %160 = vector.shape_cast %159 : vector<1x8x16xf32> to vector<8x16xf32>
    %cst_172 = arith.constant dense<0.000000e+00> : vector<34x16xf32>
    %161 = tpu.matmul %158, %160, %cst_172 {dimension_numbers = #tpu.dot_dimension_numbers<[1], [0], [0], [1], [0, 0, 1, 1], [], []>} : vector<34x8xf32>, vector<8x16xf32>, vector<34x16xf32> -> vector<34x16xf32>
    %162 = arith.addf %157, %161 : vector<34x16xf32>
    %c2_173 = arith.constant 2 : index
    %c0_174 = arith.constant 0 : index
    %163 = tpu.strided_load %arg24[%c2_173, %c0_174] {strides = array<i32: 2, 1>} : memref<200x8xf32, #tpu.memory_space<vmem>>, vector<34x8xf32>
    %c2_175 = arith.constant 2 : index
    %c0_176 = arith.constant 0 : index
    %c0_177 = arith.constant 0 : index
    %164 = vector.load %arg4[%c2_175, %c0_176, %c0_177] : memref<9x8x16xf32, #tpu.memory_space<vmem>>, vector<1x8x16xf32>
    %165 = vector.shape_cast %164 : vector<1x8x16xf32> to vector<8x16xf32>
    %cst_178 = arith.constant dense<0.000000e+00> : vector<34x16xf32>
    %166 = tpu.matmul %163, %165, %cst_178 {dimension_numbers = #tpu.dot_dimension_numbers<[1], [0], [0], [1], [0, 0, 1, 1], [], []>} : vector<34x8xf32>, vector<8x16xf32>, vector<34x16xf32> -> vector<34x16xf32>
    %167 = arith.addf %162, %166 : vector<34x16xf32>
    %c10 = arith.constant 10 : index
    %c0_179 = arith.constant 0 : index
    %168 = tpu.strided_load %arg24[%c10, %c0_179] {strides = array<i32: 2, 1>} : memref<200x8xf32, #tpu.memory_space<vmem>>, vector<34x8xf32>
    %c3_180 = arith.constant 3 : index
    %c0_181 = arith.constant 0 : index
    %c0_182 = arith.constant 0 : index
    %169 = vector.load %arg4[%c3_180, %c0_181, %c0_182] : memref<9x8x16xf32, #tpu.memory_space<vmem>>, vector<1x8x16xf32>
    %170 = vector.shape_cast %169 : vector<1x8x16xf32> to vector<8x16xf32>
    %cst_183 = arith.constant dense<0.000000e+00> : vector<34x16xf32>
    %171 = tpu.matmul %168, %170, %cst_183 {dimension_numbers = #tpu.dot_dimension_numbers<[1], [0], [0], [1], [0, 0, 1, 1], [], []>} : vector<34x8xf32>, vector<8x16xf32>, vector<34x16xf32> -> vector<34x16xf32>
    %172 = arith.addf %167, %171 : vector<34x16xf32>
    %c11_184 = arith.constant 11 : index
    %c0_185 = arith.constant 0 : index
    %173 = tpu.strided_load %arg24[%c11_184, %c0_185] {strides = array<i32: 2, 1>} : memref<200x8xf32, #tpu.memory_space<vmem>>, vector<34x8xf32>
    %c4_186 = arith.constant 4 : index
    %c0_187 = arith.constant 0 : index
    %c0_188 = arith.constant 0 : index
    %174 = vector.load %arg4[%c4_186, %c0_187, %c0_188] : memref<9x8x16xf32, #tpu.memory_space<vmem>>, vector<1x8x16xf32>
    %175 = vector.shape_cast %174 : vector<1x8x16xf32> to vector<8x16xf32>
    %cst_189 = arith.constant dense<0.000000e+00> : vector<34x16xf32>
    %176 = tpu.matmul %173, %175, %cst_189 {dimension_numbers = #tpu.dot_dimension_numbers<[1], [0], [0], [1], [0, 0, 1, 1], [], []>} : vector<34x8xf32>, vector<8x16xf32>, vector<34x16xf32> -> vector<34x16xf32>
    %177 = arith.addf %172, %176 : vector<34x16xf32>
    %c12 = arith.constant 12 : index
    %c0_190 = arith.constant 0 : index
    %178 = tpu.strided_load %arg24[%c12, %c0_190] {strides = array<i32: 2, 1>} : memref<200x8xf32, #tpu.memory_space<vmem>>, vector<34x8xf32>
    %c5_191 = arith.constant 5 : index
    %c0_192 = arith.constant 0 : index
    %c0_193 = arith.constant 0 : index
    %179 = vector.load %arg4[%c5_191, %c0_192, %c0_193] : memref<9x8x16xf32, #tpu.memory_space<vmem>>, vector<1x8x16xf32>
    %180 = vector.shape_cast %179 : vector<1x8x16xf32> to vector<8x16xf32>
    %cst_194 = arith.constant dense<0.000000e+00> : vector<34x16xf32>
    %181 = tpu.matmul %178, %180, %cst_194 {dimension_numbers = #tpu.dot_dimension_numbers<[1], [0], [0], [1], [0, 0, 1, 1], [], []>} : vector<34x8xf32>, vector<8x16xf32>, vector<34x16xf32> -> vector<34x16xf32>
    %182 = arith.addf %177, %181 : vector<34x16xf32>
    %c20_195 = arith.constant 20 : index
    %c0_196 = arith.constant 0 : index
    %183 = tpu.strided_load %arg24[%c20_195, %c0_196] {strides = array<i32: 2, 1>} : memref<200x8xf32, #tpu.memory_space<vmem>>, vector<34x8xf32>
    %c6_197 = arith.constant 6 : index
    %c0_198 = arith.constant 0 : index
    %c0_199 = arith.constant 0 : index
    %184 = vector.load %arg4[%c6_197, %c0_198, %c0_199] : memref<9x8x16xf32, #tpu.memory_space<vmem>>, vector<1x8x16xf32>
    %185 = vector.shape_cast %184 : vector<1x8x16xf32> to vector<8x16xf32>
    %cst_200 = arith.constant dense<0.000000e+00> : vector<34x16xf32>
    %186 = tpu.matmul %183, %185, %cst_200 {dimension_numbers = #tpu.dot_dimension_numbers<[1], [0], [0], [1], [0, 0, 1, 1], [], []>} : vector<34x8xf32>, vector<8x16xf32>, vector<34x16xf32> -> vector<34x16xf32>
    %187 = arith.addf %182, %186 : vector<34x16xf32>
    %c21_201 = arith.constant 21 : index
    %c0_202 = arith.constant 0 : index
    %188 = tpu.strided_load %arg24[%c21_201, %c0_202] {strides = array<i32: 2, 1>} : memref<200x8xf32, #tpu.memory_space<vmem>>, vector<34x8xf32>
    %c7_203 = arith.constant 7 : index
    %c0_204 = arith.constant 0 : index
    %c0_205 = arith.constant 0 : index
    %189 = vector.load %arg4[%c7_203, %c0_204, %c0_205] : memref<9x8x16xf32, #tpu.memory_space<vmem>>, vector<1x8x16xf32>
    %190 = vector.shape_cast %189 : vector<1x8x16xf32> to vector<8x16xf32>
    %cst_206 = arith.constant dense<0.000000e+00> : vector<34x16xf32>
    %191 = tpu.matmul %188, %190, %cst_206 {dimension_numbers = #tpu.dot_dimension_numbers<[1], [0], [0], [1], [0, 0, 1, 1], [], []>} : vector<34x8xf32>, vector<8x16xf32>, vector<34x16xf32> -> vector<34x16xf32>
    %192 = arith.addf %187, %191 : vector<34x16xf32>
    %c22 = arith.constant 22 : index
    %c0_207 = arith.constant 0 : index
    %193 = tpu.strided_load %arg24[%c22, %c0_207] {strides = array<i32: 2, 1>} : memref<200x8xf32, #tpu.memory_space<vmem>>, vector<34x8xf32>
    %c8_208 = arith.constant 8 : index
    %c0_209 = arith.constant 0 : index
    %c0_210 = arith.constant 0 : index
    %194 = vector.load %arg4[%c8_208, %c0_209, %c0_210] : memref<9x8x16xf32, #tpu.memory_space<vmem>>, vector<1x8x16xf32>
    %195 = vector.shape_cast %194 : vector<1x8x16xf32> to vector<8x16xf32>
    %cst_211 = arith.constant dense<0.000000e+00> : vector<34x16xf32>
    %196 = tpu.matmul %193, %195, %cst_211 {dimension_numbers = #tpu.dot_dimension_numbers<[1], [0], [0], [1], [0, 0, 1, 1], [], []>} : vector<34x8xf32>, vector<8x16xf32>, vector<34x16xf32> -> vector<34x16xf32>
    %197 = arith.addf %192, %196 : vector<34x16xf32>
    %198 = vector.broadcast %153 : vector<1x16xf32> to vector<34x16xf32>
    %199 = arith.addf %197, %198 : vector<34x16xf32>
    %cst_212 = arith.constant 2.000000e-01 : f32
    %200 = vector.broadcast %cst_212 : f32 to vector<34x16xf32>
    %201 = arith.mulf %200, %199 : vector<34x16xf32>
    %202 = arith.maximumf %199, %201 : vector<34x16xf32>
    %c0_213 = arith.constant 0 : index
    %c0_214 = arith.constant 0 : index
    %203 = vector.load %arg27[%c0_213, %c0_214] : memref<34x16xf32, #tpu.memory_space<vmem>>, vector<34x16xf32>
    tpu.vector_store %arg27[%c0_213, %c0_214], %202 {strides = array<i32>} : memref<34x16xf32, #tpu.memory_space<vmem>>, vector<34x16xf32>,
    %c0_215 = arith.constant 0 : index
    %c0_216 = arith.constant 0 : index
    %204 = vector.load %arg27[%c0_215, %c0_216] : memref<34x16xf32, #tpu.memory_space<vmem>>, vector<4x16xf32>
    %c7_217 = arith.constant 7 : index
    %c0_218 = arith.constant 0 : index
    %205 = vector.load %arg25[%c7_217, %c0_218] : memref<72x16xf32, #tpu.memory_space<vmem>>, vector<4x16xf32>
    tpu.vector_store %arg25[%c7_217, %c0_218], %204 {strides = array<i32>} : memref<72x16xf32, #tpu.memory_space<vmem>>, vector<4x16xf32>,
    %c0_219 = arith.constant 0 : index
    %c0_220 = arith.constant 0 : index
    %206 = vector.load %arg22[%c0_219, %c0_220] : memref<32x48xf32, #tpu.memory_space<vmem>>, vector<4x16xf32>
    tpu.vector_store %arg22[%c0_219, %c0_220], %204 {strides = array<i32>} : memref<32x48xf32, #tpu.memory_space<vmem>>, vector<4x16xf32>,
    %c10_221 = arith.constant 10 : index
    %c0_222 = arith.constant 0 : index
    %207 = vector.load %arg27[%c10_221, %c0_222] : memref<34x16xf32, #tpu.memory_space<vmem>>, vector<4x16xf32>
    %c13 = arith.constant 13 : index
    %c0_223 = arith.constant 0 : index
    %208 = vector.load %arg25[%c13, %c0_223] : memref<72x16xf32, #tpu.memory_space<vmem>>, vector<4x16xf32>
    tpu.vector_store %arg25[%c13, %c0_223], %207 {strides = array<i32>} : memref<72x16xf32, #tpu.memory_space<vmem>>, vector<4x16xf32>,
    %c4_224 = arith.constant 4 : index
    %c0_225 = arith.constant 0 : index
    %209 = vector.load %arg22[%c4_224, %c0_225] : memref<32x48xf32, #tpu.memory_space<vmem>>, vector<4x16xf32>
    tpu.vector_store %arg22[%c4_224, %c0_225], %207 {strides = array<i32>} : memref<32x48xf32, #tpu.memory_space<vmem>>, vector<4x16xf32>,
    %c20_226 = arith.constant 20 : index
    %c0_227 = arith.constant 0 : index
    %210 = vector.load %arg27[%c20_226, %c0_227] : memref<34x16xf32, #tpu.memory_space<vmem>>, vector<4x16xf32>
    %c19_228 = arith.constant 19 : index
    %c0_229 = arith.constant 0 : index
    %211 = vector.load %arg25[%c19_228, %c0_229] : memref<72x16xf32, #tpu.memory_space<vmem>>, vector<4x16xf32>
    tpu.vector_store %arg25[%c19_228, %c0_229], %210 {strides = array<i32>} : memref<72x16xf32, #tpu.memory_space<vmem>>, vector<4x16xf32>,
    %c8_230 = arith.constant 8 : index
    %c0_231 = arith.constant 0 : index
    %212 = vector.load %arg22[%c8_230, %c0_231] : memref<32x48xf32, #tpu.memory_space<vmem>>, vector<4x16xf32>
    tpu.vector_store %arg22[%c8_230, %c0_231], %210 {strides = array<i32>} : memref<32x48xf32, #tpu.memory_space<vmem>>, vector<4x16xf32>,
    %c30 = arith.constant 30 : index
    %c0_232 = arith.constant 0 : index
    %213 = vector.load %arg27[%c30, %c0_232] : memref<34x16xf32, #tpu.memory_space<vmem>>, vector<4x16xf32>
    %c25 = arith.constant 25 : index
    %c0_233 = arith.constant 0 : index
    %214 = vector.load %arg25[%c25, %c0_233] : memref<72x16xf32, #tpu.memory_space<vmem>>, vector<4x16xf32>
    tpu.vector_store %arg25[%c25, %c0_233], %213 {strides = array<i32>} : memref<72x16xf32, #tpu.memory_space<vmem>>, vector<4x16xf32>,
    %c12_234 = arith.constant 12 : index
    %c0_235 = arith.constant 0 : index
    %215 = vector.load %arg22[%c12_234, %c0_235] : memref<32x48xf32, #tpu.memory_space<vmem>>, vector<4x16xf32>
    tpu.vector_store %arg22[%c12_234, %c0_235], %213 {strides = array<i32>} : memref<32x48xf32, #tpu.memory_space<vmem>>, vector<4x16xf32>,
    %c100 = arith.constant 100 : index
    %c0_236 = arith.constant 0 : index
    %216 = tpu.strided_load %arg24[%c100, %c0_236] {strides = array<i32: 2, 1>} : memref<200x8xf32, #tpu.memory_space<vmem>>, vector<34x8xf32>
    %c0_237 = arith.constant 0 : index
    %c0_238 = arith.constant 0 : index
    %c0_239 = arith.constant 0 : index
    %217 = vector.load %arg4[%c0_237, %c0_238, %c0_239] : memref<9x8x16xf32, #tpu.memory_space<vmem>>, vector<1x8x16xf32>
    %218 = vector.shape_cast %217 : vector<1x8x16xf32> to vector<8x16xf32>
    %cst_240 = arith.constant dense<0.000000e+00> : vector<34x16xf32>
    %219 = tpu.matmul %216, %218, %cst_240 {dimension_numbers = #tpu.dot_dimension_numbers<[1], [0], [0], [1], [0, 0, 1, 1], [], []>} : vector<34x8xf32>, vector<8x16xf32>, vector<34x16xf32> -> vector<34x16xf32>
    %c101 = arith.constant 101 : index
    %c0_241 = arith.constant 0 : index
    %220 = tpu.strided_load %arg24[%c101, %c0_241] {strides = array<i32: 2, 1>} : memref<200x8xf32, #tpu.memory_space<vmem>>, vector<34x8xf32>
    %c1_242 = arith.constant 1 : index
    %c0_243 = arith.constant 0 : index
    %c0_244 = arith.constant 0 : index
    %221 = vector.load %arg4[%c1_242, %c0_243, %c0_244] : memref<9x8x16xf32, #tpu.memory_space<vmem>>, vector<1x8x16xf32>
    %222 = vector.shape_cast %221 : vector<1x8x16xf32> to vector<8x16xf32>
    %cst_245 = arith.constant dense<0.000000e+00> : vector<34x16xf32>
    %223 = tpu.matmul %220, %222, %cst_245 {dimension_numbers = #tpu.dot_dimension_numbers<[1], [0], [0], [1], [0, 0, 1, 1], [], []>} : vector<34x8xf32>, vector<8x16xf32>, vector<34x16xf32> -> vector<34x16xf32>
    %224 = arith.addf %219, %223 : vector<34x16xf32>
    %c102 = arith.constant 102 : index
    %c0_246 = arith.constant 0 : index
    %225 = tpu.strided_load %arg24[%c102, %c0_246] {strides = array<i32: 2, 1>} : memref<200x8xf32, #tpu.memory_space<vmem>>, vector<34x8xf32>
    %c2_247 = arith.constant 2 : index
    %c0_248 = arith.constant 0 : index
    %c0_249 = arith.constant 0 : index
    %226 = vector.load %arg4[%c2_247, %c0_248, %c0_249] : memref<9x8x16xf32, #tpu.memory_space<vmem>>, vector<1x8x16xf32>
    %227 = vector.shape_cast %226 : vector<1x8x16xf32> to vector<8x16xf32>
    %cst_250 = arith.constant dense<0.000000e+00> : vector<34x16xf32>
    %228 = tpu.matmul %225, %227, %cst_250 {dimension_numbers = #tpu.dot_dimension_numbers<[1], [0], [0], [1], [0, 0, 1, 1], [], []>} : vector<34x8xf32>, vector<8x16xf32>, vector<34x16xf32> -> vector<34x16xf32>
    %229 = arith.addf %224, %228 : vector<34x16xf32>
    %c110 = arith.constant 110 : index
    %c0_251 = arith.constant 0 : index
    %230 = tpu.strided_load %arg24[%c110, %c0_251] {strides = array<i32: 2, 1>} : memref<200x8xf32, #tpu.memory_space<vmem>>, vector<34x8xf32>
    %c3_252 = arith.constant 3 : index
    %c0_253 = arith.constant 0 : index
    %c0_254 = arith.constant 0 : index
    %231 = vector.load %arg4[%c3_252, %c0_253, %c0_254] : memref<9x8x16xf32, #tpu.memory_space<vmem>>, vector<1x8x16xf32>
    %232 = vector.shape_cast %231 : vector<1x8x16xf32> to vector<8x16xf32>
    %cst_255 = arith.constant dense<0.000000e+00> : vector<34x16xf32>
    %233 = tpu.matmul %230, %232, %cst_255 {dimension_numbers = #tpu.dot_dimension_numbers<[1], [0], [0], [1], [0, 0, 1, 1], [], []>} : vector<34x8xf32>, vector<8x16xf32>, vector<34x16xf32> -> vector<34x16xf32>
    %234 = arith.addf %229, %233 : vector<34x16xf32>
    %c111_256 = arith.constant 111 : index
    %c0_257 = arith.constant 0 : index
    %235 = tpu.strided_load %arg24[%c111_256, %c0_257] {strides = array<i32: 2, 1>} : memref<200x8xf32, #tpu.memory_space<vmem>>, vector<34x8xf32>
    %c4_258 = arith.constant 4 : index
    %c0_259 = arith.constant 0 : index
    %c0_260 = arith.constant 0 : index
    %236 = vector.load %arg4[%c4_258, %c0_259, %c0_260] : memref<9x8x16xf32, #tpu.memory_space<vmem>>, vector<1x8x16xf32>
    %237 = vector.shape_cast %236 : vector<1x8x16xf32> to vector<8x16xf32>
    %cst_261 = arith.constant dense<0.000000e+00> : vector<34x16xf32>
    %238 = tpu.matmul %235, %237, %cst_261 {dimension_numbers = #tpu.dot_dimension_numbers<[1], [0], [0], [1], [0, 0, 1, 1], [], []>} : vector<34x8xf32>, vector<8x16xf32>, vector<34x16xf32> -> vector<34x16xf32>
    %239 = arith.addf %234, %238 : vector<34x16xf32>
    %c112_262 = arith.constant 112 : index
    %c0_263 = arith.constant 0 : index
    %240 = tpu.strided_load %arg24[%c112_262, %c0_263] {strides = array<i32: 2, 1>} : memref<200x8xf32, #tpu.memory_space<vmem>>, vector<34x8xf32>
    %c5_264 = arith.constant 5 : index
    %c0_265 = arith.constant 0 : index
    %c0_266 = arith.constant 0 : index
    %241 = vector.load %arg4[%c5_264, %c0_265, %c0_266] : memref<9x8x16xf32, #tpu.memory_space<vmem>>, vector<1x8x16xf32>
    %242 = vector.shape_cast %241 : vector<1x8x16xf32> to vector<8x16xf32>
    %cst_267 = arith.constant dense<0.000000e+00> : vector<34x16xf32>
    %243 = tpu.matmul %240, %242, %cst_267 {dimension_numbers = #tpu.dot_dimension_numbers<[1], [0], [0], [1], [0, 0, 1, 1], [], []>} : vector<34x8xf32>, vector<8x16xf32>, vector<34x16xf32> -> vector<34x16xf32>
    %244 = arith.addf %239, %243 : vector<34x16xf32>
    %c120_268 = arith.constant 120 : index
    %c0_269 = arith.constant 0 : index
    %245 = tpu.strided_load %arg24[%c120_268, %c0_269] {strides = array<i32: 2, 1>} : memref<200x8xf32, #tpu.memory_space<vmem>>, vector<34x8xf32>
    %c6_270 = arith.constant 6 : index
    %c0_271 = arith.constant 0 : index
    %c0_272 = arith.constant 0 : index
    %246 = vector.load %arg4[%c6_270, %c0_271, %c0_272] : memref<9x8x16xf32, #tpu.memory_space<vmem>>, vector<1x8x16xf32>
    %247 = vector.shape_cast %246 : vector<1x8x16xf32> to vector<8x16xf32>
    %cst_273 = arith.constant dense<0.000000e+00> : vector<34x16xf32>
    %248 = tpu.matmul %245, %247, %cst_273 {dimension_numbers = #tpu.dot_dimension_numbers<[1], [0], [0], [1], [0, 0, 1, 1], [], []>} : vector<34x8xf32>, vector<8x16xf32>, vector<34x16xf32> -> vector<34x16xf32>
    %249 = arith.addf %244, %248 : vector<34x16xf32>
    %c121_274 = arith.constant 121 : index
    %c0_275 = arith.constant 0 : index
    %250 = tpu.strided_load %arg24[%c121_274, %c0_275] {strides = array<i32: 2, 1>} : memref<200x8xf32, #tpu.memory_space<vmem>>, vector<34x8xf32>
    %c7_276 = arith.constant 7 : index
    %c0_277 = arith.constant 0 : index
    %c0_278 = arith.constant 0 : index
    %251 = vector.load %arg4[%c7_276, %c0_277, %c0_278] : memref<9x8x16xf32, #tpu.memory_space<vmem>>, vector<1x8x16xf32>
    %252 = vector.shape_cast %251 : vector<1x8x16xf32> to vector<8x16xf32>
    %cst_279 = arith.constant dense<0.000000e+00> : vector<34x16xf32>
    %253 = tpu.matmul %250, %252, %cst_279 {dimension_numbers = #tpu.dot_dimension_numbers<[1], [0], [0], [1], [0, 0, 1, 1], [], []>} : vector<34x8xf32>, vector<8x16xf32>, vector<34x16xf32> -> vector<34x16xf32>
    %254 = arith.addf %249, %253 : vector<34x16xf32>
    %c122 = arith.constant 122 : index
    %c0_280 = arith.constant 0 : index
    %255 = tpu.strided_load %arg24[%c122, %c0_280] {strides = array<i32: 2, 1>} : memref<200x8xf32, #tpu.memory_space<vmem>>, vector<34x8xf32>
    %c8_281 = arith.constant 8 : index
    %c0_282 = arith.constant 0 : index
    %c0_283 = arith.constant 0 : index
    %256 = vector.load %arg4[%c8_281, %c0_282, %c0_283] : memref<9x8x16xf32, #tpu.memory_space<vmem>>, vector<1x8x16xf32>
    %257 = vector.shape_cast %256 : vector<1x8x16xf32> to vector<8x16xf32>
    %cst_284 = arith.constant dense<0.000000e+00> : vector<34x16xf32>
    %258 = tpu.matmul %255, %257, %cst_284 {dimension_numbers = #tpu.dot_dimension_numbers<[1], [0], [0], [1], [0, 0, 1, 1], [], []>} : vector<34x8xf32>, vector<8x16xf32>, vector<34x16xf32> -> vector<34x16xf32>
    %259 = arith.addf %254, %258 : vector<34x16xf32>
    %260 = vector.broadcast %153 : vector<1x16xf32> to vector<34x16xf32>
    %261 = arith.addf %259, %260 : vector<34x16xf32>
    %cst_285 = arith.constant 2.000000e-01 : f32
    %262 = vector.broadcast %cst_285 : f32 to vector<34x16xf32>
    %263 = arith.mulf %262, %261 : vector<34x16xf32>
    %264 = arith.maximumf %261, %263 : vector<34x16xf32>
    %c0_286 = arith.constant 0 : index
    %c0_287 = arith.constant 0 : index
    %265 = vector.load %arg27[%c0_286, %c0_287] : memref<34x16xf32, #tpu.memory_space<vmem>>, vector<34x16xf32>
    tpu.vector_store %arg27[%c0_286, %c0_287], %264 {strides = array<i32>} : memref<34x16xf32, #tpu.memory_space<vmem>>, vector<34x16xf32>,
    %c0_288 = arith.constant 0 : index
    %c0_289 = arith.constant 0 : index
    %266 = vector.load %arg27[%c0_288, %c0_289] : memref<34x16xf32, #tpu.memory_space<vmem>>, vector<4x16xf32>
    %c43 = arith.constant 43 : index
    %c0_290 = arith.constant 0 : index
    %267 = vector.load %arg25[%c43, %c0_290] : memref<72x16xf32, #tpu.memory_space<vmem>>, vector<4x16xf32>
    tpu.vector_store %arg25[%c43, %c0_290], %266 {strides = array<i32>} : memref<72x16xf32, #tpu.memory_space<vmem>>, vector<4x16xf32>,
    %c16_291 = arith.constant 16 : index
    %c0_292 = arith.constant 0 : index
    %268 = vector.load %arg22[%c16_291, %c0_292] : memref<32x48xf32, #tpu.memory_space<vmem>>, vector<4x16xf32>
    tpu.vector_store %arg22[%c16_291, %c0_292], %266 {strides = array<i32>} : memref<32x48xf32, #tpu.memory_space<vmem>>, vector<4x16xf32>,
    %c10_293 = arith.constant 10 : index
    %c0_294 = arith.constant 0 : index
    %269 = vector.load %arg27[%c10_293, %c0_294] : memref<34x16xf32, #tpu.memory_space<vmem>>, vector<4x16xf32>
    %c49 = arith.constant 49 : index
    %c0_295 = arith.constant 0 : index
    %270 = vector.load %arg25[%c49, %c0_295] : memref<72x16xf32, #tpu.memory_space<vmem>>, vector<4x16xf32>
    tpu.vector_store %arg25[%c49, %c0_295], %269 {strides = array<i32>} : memref<72x16xf32, #tpu.memory_space<vmem>>, vector<4x16xf32>,
    %c20_296 = arith.constant 20 : index
    %c0_297 = arith.constant 0 : index
    %271 = vector.load %arg22[%c20_296, %c0_297] : memref<32x48xf32, #tpu.memory_space<vmem>>, vector<4x16xf32>
    tpu.vector_store %arg22[%c20_296, %c0_297], %269 {strides = array<i32>} : memref<32x48xf32, #tpu.memory_space<vmem>>, vector<4x16xf32>,
    %c20_298 = arith.constant 20 : index
    %c0_299 = arith.constant 0 : index
    %272 = vector.load %arg27[%c20_298, %c0_299] : memref<34x16xf32, #tpu.memory_space<vmem>>, vector<4x16xf32>
    %c55 = arith.constant 55 : index
    %c0_300 = arith.constant 0 : index
    %273 = vector.load %arg25[%c55, %c0_300] : memref<72x16xf32, #tpu.memory_space<vmem>>, vector<4x16xf32>
    tpu.vector_store %arg25[%c55, %c0_300], %272 {strides = array<i32>} : memref<72x16xf32, #tpu.memory_space<vmem>>, vector<4x16xf32>,
    %c24_301 = arith.constant 24 : index
    %c0_302 = arith.constant 0 : index
    %274 = vector.load %arg22[%c24_301, %c0_302] : memref<32x48xf32, #tpu.memory_space<vmem>>, vector<4x16xf32>
    tpu.vector_store %arg22[%c24_301, %c0_302], %272 {strides = array<i32>} : memref<32x48xf32, #tpu.memory_space<vmem>>, vector<4x16xf32>,
    %c30_303 = arith.constant 30 : index
    %c0_304 = arith.constant 0 : index
    %275 = vector.load %arg27[%c30_303, %c0_304] : memref<34x16xf32, #tpu.memory_space<vmem>>, vector<4x16xf32>
    %c61_305 = arith.constant 61 : index
    %c0_306 = arith.constant 0 : index
    %276 = vector.load %arg25[%c61_305, %c0_306] : memref<72x16xf32, #tpu.memory_space<vmem>>, vector<4x16xf32>
    tpu.vector_store %arg25[%c61_305, %c0_306], %275 {strides = array<i32>} : memref<72x16xf32, #tpu.memory_space<vmem>>, vector<4x16xf32>,
    %c28 = arith.constant 28 : index
    %c0_307 = arith.constant 0 : index
    %277 = vector.load %arg22[%c28, %c0_307] : memref<32x48xf32, #tpu.memory_space<vmem>>, vector<4x16xf32>
    tpu.vector_store %arg22[%c28, %c0_307], %275 {strides = array<i32>} : memref<32x48xf32, #tpu.memory_space<vmem>>, vector<4x16xf32>,
    %c0_308 = arith.constant 0 : index
    %c0_309 = arith.constant 0 : index
    %278 = vector.load %arg7[%c0_308, %c0_309] : memref<1x32xf32, #tpu.memory_space<vmem>>, vector<1x32xf32>
    %c0_310 = arith.constant 0 : index
    %c0_311 = arith.constant 0 : index
    %279 = tpu.strided_load %arg25[%c0_310, %c0_311] {strides = array<i32: 2, 1>} : memref<72x16xf32, #tpu.memory_space<vmem>>, vector<8x16xf32>
    %c0_312 = arith.constant 0 : index
    %c0_313 = arith.constant 0 : index
    %c0_314 = arith.constant 0 : index
    %280 = vector.load %arg6[%c0_312, %c0_313, %c0_314] : memref<9x16x32xf32, #tpu.memory_space<vmem>>, vector<1x16x32xf32>
    %281 = vector.shape_cast %280 : vector<1x16x32xf32> to vector<16x32xf32>
    %cst_315 = arith.constant dense<0.000000e+00> : vector<8x32xf32>
    %282 = tpu.matmul %279, %281, %cst_315 {dimension_numbers = #tpu.dot_dimension_numbers<[1], [0], [0], [1], [0, 0, 1, 1], [], []>} : vector<8x16xf32>, vector<16x32xf32>, vector<8x32xf32> -> vector<8x32xf32>
    %c1_316 = arith.constant 1 : index
    %c0_317 = arith.constant 0 : index
    %283 = tpu.strided_load %arg25[%c1_316, %c0_317] {strides = array<i32: 2, 1>} : memref<72x16xf32, #tpu.memory_space<vmem>>, vector<8x16xf32>
    %c1_318 = arith.constant 1 : index
    %c0_319 = arith.constant 0 : index
    %c0_320 = arith.constant 0 : index
    %284 = vector.load %arg6[%c1_318, %c0_319, %c0_320] : memref<9x16x32xf32, #tpu.memory_space<vmem>>, vector<1x16x32xf32>
    %285 = vector.shape_cast %284 : vector<1x16x32xf32> to vector<16x32xf32>
    %cst_321 = arith.constant dense<0.000000e+00> : vector<8x32xf32>
    %286 = tpu.matmul %283, %285, %cst_321 {dimension_numbers = #tpu.dot_dimension_numbers<[1], [0], [0], [1], [0, 0, 1, 1], [], []>} : vector<8x16xf32>, vector<16x32xf32>, vector<8x32xf32> -> vector<8x32xf32>
    %287 = arith.addf %282, %286 : vector<8x32xf32>
    %c2_322 = arith.constant 2 : index
    %c0_323 = arith.constant 0 : index
    %288 = tpu.strided_load %arg25[%c2_322, %c0_323] {strides = array<i32: 2, 1>} : memref<72x16xf32, #tpu.memory_space<vmem>>, vector<8x16xf32>
    %c2_324 = arith.constant 2 : index
    %c0_325 = arith.constant 0 : index
    %c0_326 = arith.constant 0 : index
    %289 = vector.load %arg6[%c2_324, %c0_325, %c0_326] : memref<9x16x32xf32, #tpu.memory_space<vmem>>, vector<1x16x32xf32>
    %290 = vector.shape_cast %289 : vector<1x16x32xf32> to vector<16x32xf32>
    %cst_327 = arith.constant dense<0.000000e+00> : vector<8x32xf32>
    %291 = tpu.matmul %288, %290, %cst_327 {dimension_numbers = #tpu.dot_dimension_numbers<[1], [0], [0], [1], [0, 0, 1, 1], [], []>} : vector<8x16xf32>, vector<16x32xf32>, vector<8x32xf32> -> vector<8x32xf32>
    %292 = arith.addf %287, %291 : vector<8x32xf32>
    %c6_328 = arith.constant 6 : index
    %c0_329 = arith.constant 0 : index
    %293 = tpu.strided_load %arg25[%c6_328, %c0_329] {strides = array<i32: 2, 1>} : memref<72x16xf32, #tpu.memory_space<vmem>>, vector<8x16xf32>
    %c3_330 = arith.constant 3 : index
    %c0_331 = arith.constant 0 : index
    %c0_332 = arith.constant 0 : index
    %294 = vector.load %arg6[%c3_330, %c0_331, %c0_332] : memref<9x16x32xf32, #tpu.memory_space<vmem>>, vector<1x16x32xf32>
    %295 = vector.shape_cast %294 : vector<1x16x32xf32> to vector<16x32xf32>
    %cst_333 = arith.constant dense<0.000000e+00> : vector<8x32xf32>
    %296 = tpu.matmul %293, %295, %cst_333 {dimension_numbers = #tpu.dot_dimension_numbers<[1], [0], [0], [1], [0, 0, 1, 1], [], []>} : vector<8x16xf32>, vector<16x32xf32>, vector<8x32xf32> -> vector<8x32xf32>
    %297 = arith.addf %292, %296 : vector<8x32xf32>
    %c7_334 = arith.constant 7 : index
    %c0_335 = arith.constant 0 : index
    %298 = tpu.strided_load %arg25[%c7_334, %c0_335] {strides = array<i32: 2, 1>} : memref<72x16xf32, #tpu.memory_space<vmem>>, vector<8x16xf32>
    %c4_336 = arith.constant 4 : index
    %c0_337 = arith.constant 0 : index
    %c0_338 = arith.constant 0 : index
    %299 = vector.load %arg6[%c4_336, %c0_337, %c0_338] : memref<9x16x32xf32, #tpu.memory_space<vmem>>, vector<1x16x32xf32>
    %300 = vector.shape_cast %299 : vector<1x16x32xf32> to vector<16x32xf32>
    %cst_339 = arith.constant dense<0.000000e+00> : vector<8x32xf32>
    %301 = tpu.matmul %298, %300, %cst_339 {dimension_numbers = #tpu.dot_dimension_numbers<[1], [0], [0], [1], [0, 0, 1, 1], [], []>} : vector<8x16xf32>, vector<16x32xf32>, vector<8x32xf32> -> vector<8x32xf32>
    %302 = arith.addf %297, %301 : vector<8x32xf32>
    %c8_340 = arith.constant 8 : index
    %c0_341 = arith.constant 0 : index
    %303 = tpu.strided_load %arg25[%c8_340, %c0_341] {strides = array<i32: 2, 1>} : memref<72x16xf32, #tpu.memory_space<vmem>>, vector<8x16xf32>
    %c5_342 = arith.constant 5 : index
    %c0_343 = arith.constant 0 : index
    %c0_344 = arith.constant 0 : index
    %304 = vector.load %arg6[%c5_342, %c0_343, %c0_344] : memref<9x16x32xf32, #tpu.memory_space<vmem>>, vector<1x16x32xf32>
    %305 = vector.shape_cast %304 : vector<1x16x32xf32> to vector<16x32xf32>
    %cst_345 = arith.constant dense<0.000000e+00> : vector<8x32xf32>
    %306 = tpu.matmul %303, %305, %cst_345 {dimension_numbers = #tpu.dot_dimension_numbers<[1], [0], [0], [1], [0, 0, 1, 1], [], []>} : vector<8x16xf32>, vector<16x32xf32>, vector<8x32xf32> -> vector<8x32xf32>
    %307 = arith.addf %302, %306 : vector<8x32xf32>
    %c12_346 = arith.constant 12 : index
    %c0_347 = arith.constant 0 : index
    %308 = tpu.strided_load %arg25[%c12_346, %c0_347] {strides = array<i32: 2, 1>} : memref<72x16xf32, #tpu.memory_space<vmem>>, vector<8x16xf32>
    %c6_348 = arith.constant 6 : index
    %c0_349 = arith.constant 0 : index
    %c0_350 = arith.constant 0 : index
    %309 = vector.load %arg6[%c6_348, %c0_349, %c0_350] : memref<9x16x32xf32, #tpu.memory_space<vmem>>, vector<1x16x32xf32>
    %310 = vector.shape_cast %309 : vector<1x16x32xf32> to vector<16x32xf32>
    %cst_351 = arith.constant dense<0.000000e+00> : vector<8x32xf32>
    %311 = tpu.matmul %308, %310, %cst_351 {dimension_numbers = #tpu.dot_dimension_numbers<[1], [0], [0], [1], [0, 0, 1, 1], [], []>} : vector<8x16xf32>, vector<16x32xf32>, vector<8x32xf32> -> vector<8x32xf32>
    %312 = arith.addf %307, %311 : vector<8x32xf32>
    %c13_352 = arith.constant 13 : index
    %c0_353 = arith.constant 0 : index
    %313 = tpu.strided_load %arg25[%c13_352, %c0_353] {strides = array<i32: 2, 1>} : memref<72x16xf32, #tpu.memory_space<vmem>>, vector<8x16xf32>
    %c7_354 = arith.constant 7 : index
    %c0_355 = arith.constant 0 : index
    %c0_356 = arith.constant 0 : index
    %314 = vector.load %arg6[%c7_354, %c0_355, %c0_356] : memref<9x16x32xf32, #tpu.memory_space<vmem>>, vector<1x16x32xf32>
    %315 = vector.shape_cast %314 : vector<1x16x32xf32> to vector<16x32xf32>
    %cst_357 = arith.constant dense<0.000000e+00> : vector<8x32xf32>
    %316 = tpu.matmul %313, %315, %cst_357 {dimension_numbers = #tpu.dot_dimension_numbers<[1], [0], [0], [1], [0, 0, 1, 1], [], []>} : vector<8x16xf32>, vector<16x32xf32>, vector<8x32xf32> -> vector<8x32xf32>
    %317 = arith.addf %312, %316 : vector<8x32xf32>
    %c14 = arith.constant 14 : index
    %c0_358 = arith.constant 0 : index
    %318 = tpu.strided_load %arg25[%c14, %c0_358] {strides = array<i32: 2, 1>} : memref<72x16xf32, #tpu.memory_space<vmem>>, vector<8x16xf32>
    %c8_359 = arith.constant 8 : index
    %c0_360 = arith.constant 0 : index
    %c0_361 = arith.constant 0 : index
    %319 = vector.load %arg6[%c8_359, %c0_360, %c0_361] : memref<9x16x32xf32, #tpu.memory_space<vmem>>, vector<1x16x32xf32>
    %320 = vector.shape_cast %319 : vector<1x16x32xf32> to vector<16x32xf32>
    %cst_362 = arith.constant dense<0.000000e+00> : vector<8x32xf32>
    %321 = tpu.matmul %318, %320, %cst_362 {dimension_numbers = #tpu.dot_dimension_numbers<[1], [0], [0], [1], [0, 0, 1, 1], [], []>} : vector<8x16xf32>, vector<16x32xf32>, vector<8x32xf32> -> vector<8x32xf32>
    %322 = arith.addf %317, %321 : vector<8x32xf32>
    %323 = vector.broadcast %278 : vector<1x32xf32> to vector<8x32xf32>
    %324 = arith.addf %322, %323 : vector<8x32xf32>
    %cst_363 = arith.constant 2.000000e-01 : f32
    %325 = vector.broadcast %cst_363 : f32 to vector<8x32xf32>
    %326 = arith.mulf %325, %324 : vector<8x32xf32>
    %327 = arith.maximumf %324, %326 : vector<8x32xf32>
    %c0_364 = arith.constant 0 : index
    %c0_365 = arith.constant 0 : index
    %328 = vector.load %arg28[%c0_364, %c0_365] : memref<8x32xf32, #tpu.memory_space<vmem>>, vector<8x32xf32>
    tpu.vector_store %arg28[%c0_364, %c0_365], %327 {strides = array<i32>} : memref<8x32xf32, #tpu.memory_space<vmem>>, vector<8x32xf32>,
    %c0_366 = arith.constant 0 : index
    %c0_367 = arith.constant 0 : index
    %329 = vector.load %arg28[%c0_366, %c0_367] : memref<8x32xf32, #tpu.memory_space<vmem>>, vector<2x32xf32>
    %c0_368 = arith.constant 0 : index
    %c0_369 = arith.constant 0 : index
    %330 = vector.load %arg21[%c0_368, %c0_369] : memref<8x40xf32, #tpu.memory_space<vmem>>, vector<2x32xf32>
    tpu.vector_store %arg21[%c0_368, %c0_369], %329 {strides = array<i32>} : memref<8x40xf32, #tpu.memory_space<vmem>>, vector<2x32xf32>,
    %c6_370 = arith.constant 6 : index
    %c0_371 = arith.constant 0 : index
    %331 = vector.load %arg28[%c6_370, %c0_371] : memref<8x32xf32, #tpu.memory_space<vmem>>, vector<2x32xf32>
    %c2_372 = arith.constant 2 : index
    %c0_373 = arith.constant 0 : index
    %332 = vector.load %arg21[%c2_372, %c0_373] : memref<8x40xf32, #tpu.memory_space<vmem>>, vector<2x32xf32>
    tpu.vector_store %arg21[%c2_372, %c0_373], %331 {strides = array<i32>} : memref<8x40xf32, #tpu.memory_space<vmem>>, vector<2x32xf32>,
    %c36_374 = arith.constant 36 : index
    %c0_375 = arith.constant 0 : index
    %333 = tpu.strided_load %arg25[%c36_374, %c0_375] {strides = array<i32: 2, 1>} : memref<72x16xf32, #tpu.memory_space<vmem>>, vector<8x16xf32>
    %c0_376 = arith.constant 0 : index
    %c0_377 = arith.constant 0 : index
    %c0_378 = arith.constant 0 : index
    %334 = vector.load %arg6[%c0_376, %c0_377, %c0_378] : memref<9x16x32xf32, #tpu.memory_space<vmem>>, vector<1x16x32xf32>
    %335 = vector.shape_cast %334 : vector<1x16x32xf32> to vector<16x32xf32>
    %cst_379 = arith.constant dense<0.000000e+00> : vector<8x32xf32>
    %336 = tpu.matmul %333, %335, %cst_379 {dimension_numbers = #tpu.dot_dimension_numbers<[1], [0], [0], [1], [0, 0, 1, 1], [], []>} : vector<8x16xf32>, vector<16x32xf32>, vector<8x32xf32> -> vector<8x32xf32>
    %c37_380 = arith.constant 37 : index
    %c0_381 = arith.constant 0 : index
    %337 = tpu.strided_load %arg25[%c37_380, %c0_381] {strides = array<i32: 2, 1>} : memref<72x16xf32, #tpu.memory_space<vmem>>, vector<8x16xf32>
    %c1_382 = arith.constant 1 : index
    %c0_383 = arith.constant 0 : index
    %c0_384 = arith.constant 0 : index
    %338 = vector.load %arg6[%c1_382, %c0_383, %c0_384] : memref<9x16x32xf32, #tpu.memory_space<vmem>>, vector<1x16x32xf32>
    %339 = vector.shape_cast %338 : vector<1x16x32xf32> to vector<16x32xf32>
    %cst_385 = arith.constant dense<0.000000e+00> : vector<8x32xf32>
    %340 = tpu.matmul %337, %339, %cst_385 {dimension_numbers = #tpu.dot_dimension_numbers<[1], [0], [0], [1], [0, 0, 1, 1], [], []>} : vector<8x16xf32>, vector<16x32xf32>, vector<8x32xf32> -> vector<8x32xf32>
    %341 = arith.addf %336, %340 : vector<8x32xf32>
    %c38_386 = arith.constant 38 : index
    %c0_387 = arith.constant 0 : index
    %342 = tpu.strided_load %arg25[%c38_386, %c0_387] {strides = array<i32: 2, 1>} : memref<72x16xf32, #tpu.memory_space<vmem>>, vector<8x16xf32>
    %c2_388 = arith.constant 2 : index
    %c0_389 = arith.constant 0 : index
    %c0_390 = arith.constant 0 : index
    %343 = vector.load %arg6[%c2_388, %c0_389, %c0_390] : memref<9x16x32xf32, #tpu.memory_space<vmem>>, vector<1x16x32xf32>
    %344 = vector.shape_cast %343 : vector<1x16x32xf32> to vector<16x32xf32>
    %cst_391 = arith.constant dense<0.000000e+00> : vector<8x32xf32>
    %345 = tpu.matmul %342, %344, %cst_391 {dimension_numbers = #tpu.dot_dimension_numbers<[1], [0], [0], [1], [0, 0, 1, 1], [], []>} : vector<8x16xf32>, vector<16x32xf32>, vector<8x32xf32> -> vector<8x32xf32>
    %346 = arith.addf %341, %345 : vector<8x32xf32>
    %c42 = arith.constant 42 : index
    %c0_392 = arith.constant 0 : index
    %347 = tpu.strided_load %arg25[%c42, %c0_392] {strides = array<i32: 2, 1>} : memref<72x16xf32, #tpu.memory_space<vmem>>, vector<8x16xf32>
    %c3_393 = arith.constant 3 : index
    %c0_394 = arith.constant 0 : index
    %c0_395 = arith.constant 0 : index
    %348 = vector.load %arg6[%c3_393, %c0_394, %c0_395] : memref<9x16x32xf32, #tpu.memory_space<vmem>>, vector<1x16x32xf32>
    %349 = vector.shape_cast %348 : vector<1x16x32xf32> to vector<16x32xf32>
    %cst_396 = arith.constant dense<0.000000e+00> : vector<8x32xf32>
    %350 = tpu.matmul %347, %349, %cst_396 {dimension_numbers = #tpu.dot_dimension_numbers<[1], [0], [0], [1], [0, 0, 1, 1], [], []>} : vector<8x16xf32>, vector<16x32xf32>, vector<8x32xf32> -> vector<8x32xf32>
    %351 = arith.addf %346, %350 : vector<8x32xf32>
    %c43_397 = arith.constant 43 : index
    %c0_398 = arith.constant 0 : index
    %352 = tpu.strided_load %arg25[%c43_397, %c0_398] {strides = array<i32: 2, 1>} : memref<72x16xf32, #tpu.memory_space<vmem>>, vector<8x16xf32>
    %c4_399 = arith.constant 4 : index
    %c0_400 = arith.constant 0 : index
    %c0_401 = arith.constant 0 : index
    %353 = vector.load %arg6[%c4_399, %c0_400, %c0_401] : memref<9x16x32xf32, #tpu.memory_space<vmem>>, vector<1x16x32xf32>
    %354 = vector.shape_cast %353 : vector<1x16x32xf32> to vector<16x32xf32>
    %cst_402 = arith.constant dense<0.000000e+00> : vector<8x32xf32>
    %355 = tpu.matmul %352, %354, %cst_402 {dimension_numbers = #tpu.dot_dimension_numbers<[1], [0], [0], [1], [0, 0, 1, 1], [], []>} : vector<8x16xf32>, vector<16x32xf32>, vector<8x32xf32> -> vector<8x32xf32>
    %356 = arith.addf %351, %355 : vector<8x32xf32>
    %c44 = arith.constant 44 : index
    %c0_403 = arith.constant 0 : index
    %357 = tpu.strided_load %arg25[%c44, %c0_403] {strides = array<i32: 2, 1>} : memref<72x16xf32, #tpu.memory_space<vmem>>, vector<8x16xf32>
    %c5_404 = arith.constant 5 : index
    %c0_405 = arith.constant 0 : index
    %c0_406 = arith.constant 0 : index
    %358 = vector.load %arg6[%c5_404, %c0_405, %c0_406] : memref<9x16x32xf32, #tpu.memory_space<vmem>>, vector<1x16x32xf32>
    %359 = vector.shape_cast %358 : vector<1x16x32xf32> to vector<16x32xf32>
    %cst_407 = arith.constant dense<0.000000e+00> : vector<8x32xf32>
    %360 = tpu.matmul %357, %359, %cst_407 {dimension_numbers = #tpu.dot_dimension_numbers<[1], [0], [0], [1], [0, 0, 1, 1], [], []>} : vector<8x16xf32>, vector<16x32xf32>, vector<8x32xf32> -> vector<8x32xf32>
    %361 = arith.addf %356, %360 : vector<8x32xf32>
    %c48_408 = arith.constant 48 : index
    %c0_409 = arith.constant 0 : index
    %362 = tpu.strided_load %arg25[%c48_408, %c0_409] {strides = array<i32: 2, 1>} : memref<72x16xf32, #tpu.memory_space<vmem>>, vector<8x16xf32>
    %c6_410 = arith.constant 6 : index
    %c0_411 = arith.constant 0 : index
    %c0_412 = arith.constant 0 : index
    %363 = vector.load %arg6[%c6_410, %c0_411, %c0_412] : memref<9x16x32xf32, #tpu.memory_space<vmem>>, vector<1x16x32xf32>
    %364 = vector.shape_cast %363 : vector<1x16x32xf32> to vector<16x32xf32>
    %cst_413 = arith.constant dense<0.000000e+00> : vector<8x32xf32>
    %365 = tpu.matmul %362, %364, %cst_413 {dimension_numbers = #tpu.dot_dimension_numbers<[1], [0], [0], [1], [0, 0, 1, 1], [], []>} : vector<8x16xf32>, vector<16x32xf32>, vector<8x32xf32> -> vector<8x32xf32>
    %366 = arith.addf %361, %365 : vector<8x32xf32>
    %c49_414 = arith.constant 49 : index
    %c0_415 = arith.constant 0 : index
    %367 = tpu.strided_load %arg25[%c49_414, %c0_415] {strides = array<i32: 2, 1>} : memref<72x16xf32, #tpu.memory_space<vmem>>, vector<8x16xf32>
    %c7_416 = arith.constant 7 : index
    %c0_417 = arith.constant 0 : index
    %c0_418 = arith.constant 0 : index
    %368 = vector.load %arg6[%c7_416, %c0_417, %c0_418] : memref<9x16x32xf32, #tpu.memory_space<vmem>>, vector<1x16x32xf32>
    %369 = vector.shape_cast %368 : vector<1x16x32xf32> to vector<16x32xf32>
    %cst_419 = arith.constant dense<0.000000e+00> : vector<8x32xf32>
    %370 = tpu.matmul %367, %369, %cst_419 {dimension_numbers = #tpu.dot_dimension_numbers<[1], [0], [0], [1], [0, 0, 1, 1], [], []>} : vector<8x16xf32>, vector<16x32xf32>, vector<8x32xf32> -> vector<8x32xf32>
    %371 = arith.addf %366, %370 : vector<8x32xf32>
    %c50 = arith.constant 50 : index
    %c0_420 = arith.constant 0 : index
    %372 = tpu.strided_load %arg25[%c50, %c0_420] {strides = array<i32: 2, 1>} : memref<72x16xf32, #tpu.memory_space<vmem>>, vector<8x16xf32>
    %c8_421 = arith.constant 8 : index
    %c0_422 = arith.constant 0 : index
    %c0_423 = arith.constant 0 : index
    %373 = vector.load %arg6[%c8_421, %c0_422, %c0_423] : memref<9x16x32xf32, #tpu.memory_space<vmem>>, vector<1x16x32xf32>
    %374 = vector.shape_cast %373 : vector<1x16x32xf32> to vector<16x32xf32>
    %cst_424 = arith.constant dense<0.000000e+00> : vector<8x32xf32>
    %375 = tpu.matmul %372, %374, %cst_424 {dimension_numbers = #tpu.dot_dimension_numbers<[1], [0], [0], [1], [0, 0, 1, 1], [], []>} : vector<8x16xf32>, vector<16x32xf32>, vector<8x32xf32> -> vector<8x32xf32>
    %376 = arith.addf %371, %375 : vector<8x32xf32>
    %377 = vector.broadcast %278 : vector<1x32xf32> to vector<8x32xf32>
    %378 = arith.addf %376, %377 : vector<8x32xf32>
    %cst_425 = arith.constant 2.000000e-01 : f32
    %379 = vector.broadcast %cst_425 : f32 to vector<8x32xf32>
    %380 = arith.mulf %379, %378 : vector<8x32xf32>
    %381 = arith.maximumf %378, %380 : vector<8x32xf32>
    %c0_426 = arith.constant 0 : index
    %c0_427 = arith.constant 0 : index
    %382 = vector.load %arg28[%c0_426, %c0_427] : memref<8x32xf32, #tpu.memory_space<vmem>>, vector<8x32xf32>
    tpu.vector_store %arg28[%c0_426, %c0_427], %381 {strides = array<i32>} : memref<8x32xf32, #tpu.memory_space<vmem>>, vector<8x32xf32>,
    %c0_428 = arith.constant 0 : index
    %c0_429 = arith.constant 0 : index
    %383 = vector.load %arg28[%c0_428, %c0_429] : memref<8x32xf32, #tpu.memory_space<vmem>>, vector<2x32xf32>
    %c4_430 = arith.constant 4 : index
    %c0_431 = arith.constant 0 : index
    %384 = vector.load %arg21[%c4_430, %c0_431] : memref<8x40xf32, #tpu.memory_space<vmem>>, vector<2x32xf32>
    tpu.vector_store %arg21[%c4_430, %c0_431], %383 {strides = array<i32>} : memref<8x40xf32, #tpu.memory_space<vmem>>, vector<2x32xf32>,
    %c6_432 = arith.constant 6 : index
    %c0_433 = arith.constant 0 : index
    %385 = vector.load %arg28[%c6_432, %c0_433] : memref<8x32xf32, #tpu.memory_space<vmem>>, vector<2x32xf32>
    %c6_434 = arith.constant 6 : index
    %c0_435 = arith.constant 0 : index
    %386 = vector.load %arg21[%c6_434, %c0_435] : memref<8x40xf32, #tpu.memory_space<vmem>>, vector<2x32xf32>
    tpu.vector_store %arg21[%c6_434, %c0_435], %385 {strides = array<i32>} : memref<8x40xf32, #tpu.memory_space<vmem>>, vector<2x32xf32>,
    %c0_436 = arith.constant 0 : index
    %c0_437 = arith.constant 0 : index
    %387 = vector.load %arg21[%c0_436, %c0_437] : memref<8x40xf32, #tpu.memory_space<vmem>>, vector<8x32xf32>
    %c0_438 = arith.constant 0 : index
    %c0_439 = arith.constant 0 : index
    %388 = vector.load %arg8[%c0_438, %c0_439] : memref<32x8xf32, #tpu.memory_space<vmem>>, vector<32x8xf32>
    %cst_440 = arith.constant dense<0.000000e+00> : vector<8x8xf32>
    %389 = tpu.matmul %387, %388, %cst_440 {dimension_numbers = #tpu.dot_dimension_numbers<[1], [0], [0], [1], [0, 0, 1, 1], [], []>} : vector<8x32xf32>, vector<32x8xf32>, vector<8x8xf32> -> vector<8x8xf32>
    %c0_441 = arith.constant 0 : index
    %c0_442 = arith.constant 0 : index
    %390 = vector.load %arg9[%c0_441, %c0_442] : memref<1x8xf32, #tpu.memory_space<vmem>>, vector<1x8xf32>
    %391 = vector.broadcast %390 : vector<1x8xf32> to vector<8x8xf32>
    %392 = arith.addf %389, %391 : vector<8x8xf32>
    %c0_443 = arith.constant 0 : index
    %c32_444 = arith.constant 32 : index
    %393 = vector.load %arg21[%c0_443, %c32_444] : memref<8x40xf32, #tpu.memory_space<vmem>>, vector<8x8xf32>
    tpu.vector_store %arg21[%c0_443, %c32_444], %392 {strides = array<i32>} : memref<8x40xf32, #tpu.memory_space<vmem>>, vector<8x8xf32>,
    %c0_445 = arith.constant 0 : index
    %c0_446 = arith.constant 0 : index
    %394 = vector.load %arg21[%c0_445, %c0_446] : memref<8x40xf32, #tpu.memory_space<vmem>>, vector<8x40xf32>
    %c0_447 = arith.constant 0 : index
    %c0_448 = arith.constant 0 : index
    %395 = vector.load %arg10[%c0_447, %c0_448] : memref<40x128xf32, #tpu.memory_space<vmem>>, vector<40x128xf32>
    %cst_449 = arith.constant dense<0.000000e+00> : vector<8x128xf32>
    %396 = tpu.matmul %394, %395, %cst_449 {dimension_numbers = #tpu.dot_dimension_numbers<[1], [0], [0], [1], [0, 0, 1, 1], [], []>} : vector<8x40xf32>, vector<40x128xf32>, vector<8x128xf32> -> vector<8x128xf32>
    %c0_450 = arith.constant 0 : index
    %c0_451 = arith.constant 0 : index
    %397 = vector.load %arg11[%c0_450, %c0_451] : memref<1x128xf32, #tpu.memory_space<vmem>>, vector<1x128xf32>
    %398 = vector.broadcast %397 : vector<1x128xf32> to vector<8x128xf32>
    %399 = arith.addf %396, %398 : vector<8x128xf32>
    %cst_452 = arith.constant 0.000000e+00 : f32
    %400 = vector.broadcast %cst_452 : f32 to vector<8x128xf32>
    %401 = arith.maximumf %399, %400 : vector<8x128xf32>
    %402 = vector.extract_strided_slice %401 {offsets = [0, 0], sizes = [2, 128], strides = [1, 1]} : vector<8x128xf32> to vector<2x128xf32>
    %403 = vector.extract_strided_slice %402 {offsets = [0, 0], sizes = [2, 32], strides = [1, 1]} : vector<2x128xf32> to vector<2x32xf32>
    %c0_453 = arith.constant 0 : index
    %c0_454 = arith.constant 0 : index
    %404 = tpu.strided_load %arg29[%c0_453, %c0_454] {strides = array<i32: 2, 1>} : memref<32x32xf32, #tpu.memory_space<vmem>>, vector<2x32xf32>
    tpu.strided_store %arg29[%c0_453, %c0_454], %403 {strides = array<i32: 2, 1>} : memref<32x32xf32, #tpu.memory_space<vmem>>, vector<2x32xf32>
    %405 = vector.extract_strided_slice %402 {offsets = [0, 32], sizes = [2, 32], strides = [1, 1]} : vector<2x128xf32> to vector<2x32xf32>
    %c1_455 = arith.constant 1 : index
    %c0_456 = arith.constant 0 : index
    %406 = tpu.strided_load %arg29[%c1_455, %c0_456] {strides = array<i32: 2, 1>} : memref<32x32xf32, #tpu.memory_space<vmem>>, vector<2x32xf32>
    tpu.strided_store %arg29[%c1_455, %c0_456], %405 {strides = array<i32: 2, 1>} : memref<32x32xf32, #tpu.memory_space<vmem>>, vector<2x32xf32>
    %407 = vector.extract_strided_slice %402 {offsets = [0, 64], sizes = [2, 32], strides = [1, 1]} : vector<2x128xf32> to vector<2x32xf32>
    %c4_457 = arith.constant 4 : index
    %c0_458 = arith.constant 0 : index
    %408 = tpu.strided_load %arg29[%c4_457, %c0_458] {strides = array<i32: 2, 1>} : memref<32x32xf32, #tpu.memory_space<vmem>>, vector<2x32xf32>
    tpu.strided_store %arg29[%c4_457, %c0_458], %407 {strides = array<i32: 2, 1>} : memref<32x32xf32, #tpu.memory_space<vmem>>, vector<2x32xf32>
    %409 = vector.extract_strided_slice %402 {offsets = [0, 96], sizes = [2, 32], strides = [1, 1]} : vector<2x128xf32> to vector<2x32xf32>
    %c5_459 = arith.constant 5 : index
    %c0_460 = arith.constant 0 : index
    %410 = tpu.strided_load %arg29[%c5_459, %c0_460] {strides = array<i32: 2, 1>} : memref<32x32xf32, #tpu.memory_space<vmem>>, vector<2x32xf32>
    tpu.strided_store %arg29[%c5_459, %c0_460], %409 {strides = array<i32: 2, 1>} : memref<32x32xf32, #tpu.memory_space<vmem>>, vector<2x32xf32>
    %411 = vector.extract_strided_slice %401 {offsets = [2, 0], sizes = [2, 128], strides = [1, 1]} : vector<8x128xf32> to vector<2x128xf32>
    %412 = vector.extract_strided_slice %411 {offsets = [0, 0], sizes = [2, 32], strides = [1, 1]} : vector<2x128xf32> to vector<2x32xf32>
    %c8_461 = arith.constant 8 : index
    %c0_462 = arith.constant 0 : index
    %413 = tpu.strided_load %arg29[%c8_461, %c0_462] {strides = array<i32: 2, 1>} : memref<32x32xf32, #tpu.memory_space<vmem>>, vector<2x32xf32>
    tpu.strided_store %arg29[%c8_461, %c0_462], %412 {strides = array<i32: 2, 1>} : memref<32x32xf32, #tpu.memory_space<vmem>>, vector<2x32xf32>
    %414 = vector.extract_strided_slice %411 {offsets = [0, 32], sizes = [2, 32], strides = [1, 1]} : vector<2x128xf32> to vector<2x32xf32>
    %c9 = arith.constant 9 : index
    %c0_463 = arith.constant 0 : index
    %415 = tpu.strided_load %arg29[%c9, %c0_463] {strides = array<i32: 2, 1>} : memref<32x32xf32, #tpu.memory_space<vmem>>, vector<2x32xf32>
    tpu.strided_store %arg29[%c9, %c0_463], %414 {strides = array<i32: 2, 1>} : memref<32x32xf32, #tpu.memory_space<vmem>>, vector<2x32xf32>
    %416 = vector.extract_strided_slice %411 {offsets = [0, 64], sizes = [2, 32], strides = [1, 1]} : vector<2x128xf32> to vector<2x32xf32>
    %c12_464 = arith.constant 12 : index
    %c0_465 = arith.constant 0 : index
    %417 = tpu.strided_load %arg29[%c12_464, %c0_465] {strides = array<i32: 2, 1>} : memref<32x32xf32, #tpu.memory_space<vmem>>, vector<2x32xf32>
    tpu.strided_store %arg29[%c12_464, %c0_465], %416 {strides = array<i32: 2, 1>} : memref<32x32xf32, #tpu.memory_space<vmem>>, vector<2x32xf32>
    %418 = vector.extract_strided_slice %411 {offsets = [0, 96], sizes = [2, 32], strides = [1, 1]} : vector<2x128xf32> to vector<2x32xf32>
    %c13_466 = arith.constant 13 : index
    %c0_467 = arith.constant 0 : index
    %419 = tpu.strided_load %arg29[%c13_466, %c0_467] {strides = array<i32: 2, 1>} : memref<32x32xf32, #tpu.memory_space<vmem>>, vector<2x32xf32>
    tpu.strided_store %arg29[%c13_466, %c0_467], %418 {strides = array<i32: 2, 1>} : memref<32x32xf32, #tpu.memory_space<vmem>>, vector<2x32xf32>
    %420 = vector.extract_strided_slice %401 {offsets = [4, 0], sizes = [2, 128], strides = [1, 1]} : vector<8x128xf32> to vector<2x128xf32>
    %421 = vector.extract_strided_slice %420 {offsets = [0, 0], sizes = [2, 32], strides = [1, 1]} : vector<2x128xf32> to vector<2x32xf32>
    %c16_468 = arith.constant 16 : index
    %c0_469 = arith.constant 0 : index
    %422 = tpu.strided_load %arg29[%c16_468, %c0_469] {strides = array<i32: 2, 1>} : memref<32x32xf32, #tpu.memory_space<vmem>>, vector<2x32xf32>
    tpu.strided_store %arg29[%c16_468, %c0_469], %421 {strides = array<i32: 2, 1>} : memref<32x32xf32, #tpu.memory_space<vmem>>, vector<2x32xf32>
    %423 = vector.extract_strided_slice %420 {offsets = [0, 32], sizes = [2, 32], strides = [1, 1]} : vector<2x128xf32> to vector<2x32xf32>
    %c17 = arith.constant 17 : index
    %c0_470 = arith.constant 0 : index
    %424 = tpu.strided_load %arg29[%c17, %c0_470] {strides = array<i32: 2, 1>} : memref<32x32xf32, #tpu.memory_space<vmem>>, vector<2x32xf32>
    tpu.strided_store %arg29[%c17, %c0_470], %423 {strides = array<i32: 2, 1>} : memref<32x32xf32, #tpu.memory_space<vmem>>, vector<2x32xf32>
    %425 = vector.extract_strided_slice %420 {offsets = [0, 64], sizes = [2, 32], strides = [1, 1]} : vector<2x128xf32> to vector<2x32xf32>
    %c20_471 = arith.constant 20 : index
    %c0_472 = arith.constant 0 : index
    %426 = tpu.strided_load %arg29[%c20_471, %c0_472] {strides = array<i32: 2, 1>} : memref<32x32xf32, #tpu.memory_space<vmem>>, vector<2x32xf32>
    tpu.strided_store %arg29[%c20_471, %c0_472], %425 {strides = array<i32: 2, 1>} : memref<32x32xf32, #tpu.memory_space<vmem>>, vector<2x32xf32>
    %427 = vector.extract_strided_slice %420 {offsets = [0, 96], sizes = [2, 32], strides = [1, 1]} : vector<2x128xf32> to vector<2x32xf32>
    %c21_473 = arith.constant 21 : index
    %c0_474 = arith.constant 0 : index
    %428 = tpu.strided_load %arg29[%c21_473, %c0_474] {strides = array<i32: 2, 1>} : memref<32x32xf32, #tpu.memory_space<vmem>>, vector<2x32xf32>
    tpu.strided_store %arg29[%c21_473, %c0_474], %427 {strides = array<i32: 2, 1>} : memref<32x32xf32, #tpu.memory_space<vmem>>, vector<2x32xf32>
    %429 = vector.extract_strided_slice %401 {offsets = [6, 0], sizes = [2, 128], strides = [1, 1]} : vector<8x128xf32> to vector<2x128xf32>
    %430 = vector.extract_strided_slice %429 {offsets = [0, 0], sizes = [2, 32], strides = [1, 1]} : vector<2x128xf32> to vector<2x32xf32>
    %c24_475 = arith.constant 24 : index
    %c0_476 = arith.constant 0 : index
    %431 = tpu.strided_load %arg29[%c24_475, %c0_476] {strides = array<i32: 2, 1>} : memref<32x32xf32, #tpu.memory_space<vmem>>, vector<2x32xf32>
    tpu.strided_store %arg29[%c24_475, %c0_476], %430 {strides = array<i32: 2, 1>} : memref<32x32xf32, #tpu.memory_space<vmem>>, vector<2x32xf32>
    %432 = vector.extract_strided_slice %429 {offsets = [0, 32], sizes = [2, 32], strides = [1, 1]} : vector<2x128xf32> to vector<2x32xf32>
    %c25_477 = arith.constant 25 : index
    %c0_478 = arith.constant 0 : index
    %433 = tpu.strided_load %arg29[%c25_477, %c0_478] {strides = array<i32: 2, 1>} : memref<32x32xf32, #tpu.memory_space<vmem>>, vector<2x32xf32>
    tpu.strided_store %arg29[%c25_477, %c0_478], %432 {strides = array<i32: 2, 1>} : memref<32x32xf32, #tpu.memory_space<vmem>>, vector<2x32xf32>
    %434 = vector.extract_strided_slice %429 {offsets = [0, 64], sizes = [2, 32], strides = [1, 1]} : vector<2x128xf32> to vector<2x32xf32>
    %c28_479 = arith.constant 28 : index
    %c0_480 = arith.constant 0 : index
    %435 = tpu.strided_load %arg29[%c28_479, %c0_480] {strides = array<i32: 2, 1>} : memref<32x32xf32, #tpu.memory_space<vmem>>, vector<2x32xf32>
    tpu.strided_store %arg29[%c28_479, %c0_480], %434 {strides = array<i32: 2, 1>} : memref<32x32xf32, #tpu.memory_space<vmem>>, vector<2x32xf32>
    %436 = vector.extract_strided_slice %429 {offsets = [0, 96], sizes = [2, 32], strides = [1, 1]} : vector<2x128xf32> to vector<2x32xf32>
    %c29 = arith.constant 29 : index
    %c0_481 = arith.constant 0 : index
    %437 = tpu.strided_load %arg29[%c29, %c0_481] {strides = array<i32: 2, 1>} : memref<32x32xf32, #tpu.memory_space<vmem>>, vector<2x32xf32>
    tpu.strided_store %arg29[%c29, %c0_481], %436 {strides = array<i32: 2, 1>} : memref<32x32xf32, #tpu.memory_space<vmem>>, vector<2x32xf32>
    %c0_482 = arith.constant 0 : index
    %c0_483 = arith.constant 0 : index
    %438 = vector.load %arg29[%c0_482, %c0_483] : memref<32x32xf32, #tpu.memory_space<vmem>>, vector<32x32xf32>
    %c0_484 = arith.constant 0 : index
    %c16_485 = arith.constant 16 : index
    %439 = vector.load %arg22[%c0_484, %c16_485] : memref<32x48xf32, #tpu.memory_space<vmem>>, vector<32x32xf32>
    tpu.vector_store %arg22[%c0_484, %c16_485], %438 {strides = array<i32>} : memref<32x48xf32, #tpu.memory_space<vmem>>, vector<32x32xf32>,
    %c0_486 = arith.constant 0 : index
    %c0_487 = arith.constant 0 : index
    %440 = vector.load %arg22[%c0_486, %c0_487] : memref<32x48xf32, #tpu.memory_space<vmem>>, vector<32x48xf32>
    %c0_488 = arith.constant 0 : index
    %c0_489 = arith.constant 0 : index
    %441 = vector.load %arg12[%c0_488, %c0_489] : memref<48x32xf32, #tpu.memory_space<vmem>>, vector<48x32xf32>
    %cst_490 = arith.constant dense<0.000000e+00> : vector<32x32xf32>
    %442 = tpu.matmul %440, %441, %cst_490 {dimension_numbers = #tpu.dot_dimension_numbers<[1], [0], [0], [1], [0, 0, 1, 1], [], []>} : vector<32x48xf32>, vector<48x32xf32>, vector<32x32xf32> -> vector<32x32xf32>
    %c0_491 = arith.constant 0 : index
    %c0_492 = arith.constant 0 : index
    %443 = vector.load %arg13[%c0_491, %c0_492] : memref<1x32xf32, #tpu.memory_space<vmem>>, vector<1x32xf32>
    %444 = vector.broadcast %443 : vector<1x32xf32> to vector<32x32xf32>
    %445 = arith.addf %442, %444 : vector<32x32xf32>
    %c0_493 = arith.constant 0 : index
    %c0_494 = arith.constant 0 : index
    %446 = vector.load %arg14[%c0_493, %c0_494] : memref<32x64xf32, #tpu.memory_space<vmem>>, vector<32x64xf32>
    %cst_495 = arith.constant dense<0.000000e+00> : vector<32x64xf32>
    %447 = tpu.matmul %445, %446, %cst_495 {dimension_numbers = #tpu.dot_dimension_numbers<[1], [0], [0], [1], [0, 0, 1, 1], [], []>} : vector<32x32xf32>, vector<32x64xf32>, vector<32x64xf32> -> vector<32x64xf32>
    %c0_496 = arith.constant 0 : index
    %c0_497 = arith.constant 0 : index
    %448 = vector.load %arg15[%c0_496, %c0_497] : memref<1x64xf32, #tpu.memory_space<vmem>>, vector<1x64xf32>
    %449 = vector.broadcast %448 : vector<1x64xf32> to vector<32x64xf32>
    %450 = arith.addf %447, %449 : vector<32x64xf32>
    %cst_498 = arith.constant 0.000000e+00 : f32
    %451 = vector.broadcast %cst_498 : f32 to vector<32x64xf32>
    %452 = arith.maximumf %450, %451 : vector<32x64xf32>
    %453 = vector.extract_strided_slice %452 {offsets = [0, 0], sizes = [4, 64], strides = [1, 1]} : vector<32x64xf32> to vector<4x64xf32>
    %454 = vector.extract_strided_slice %453 {offsets = [0, 0], sizes = [4, 16], strides = [1, 1]} : vector<4x64xf32> to vector<4x16xf32>
    %c0_499 = arith.constant 0 : index
    %c0_500 = arith.constant 0 : index
    %455 = tpu.strided_load %arg30[%c0_499, %c0_500] {strides = array<i32: 2, 1>} : memref<128x16xf32, #tpu.memory_space<vmem>>, vector<4x16xf32>
    tpu.strided_store %arg30[%c0_499, %c0_500], %454 {strides = array<i32: 2, 1>} : memref<128x16xf32, #tpu.memory_space<vmem>>, vector<4x16xf32>
    %456 = vector.extract_strided_slice %453 {offsets = [0, 16], sizes = [4, 16], strides = [1, 1]} : vector<4x64xf32> to vector<4x16xf32>
    %c1_501 = arith.constant 1 : index
    %c0_502 = arith.constant 0 : index
    %457 = tpu.strided_load %arg30[%c1_501, %c0_502] {strides = array<i32: 2, 1>} : memref<128x16xf32, #tpu.memory_space<vmem>>, vector<4x16xf32>
    tpu.strided_store %arg30[%c1_501, %c0_502], %456 {strides = array<i32: 2, 1>} : memref<128x16xf32, #tpu.memory_space<vmem>>, vector<4x16xf32>
    %458 = vector.extract_strided_slice %453 {offsets = [0, 32], sizes = [4, 16], strides = [1, 1]} : vector<4x64xf32> to vector<4x16xf32>
    %c8_503 = arith.constant 8 : index
    %c0_504 = arith.constant 0 : index
    %459 = tpu.strided_load %arg30[%c8_503, %c0_504] {strides = array<i32: 2, 1>} : memref<128x16xf32, #tpu.memory_space<vmem>>, vector<4x16xf32>
    tpu.strided_store %arg30[%c8_503, %c0_504], %458 {strides = array<i32: 2, 1>} : memref<128x16xf32, #tpu.memory_space<vmem>>, vector<4x16xf32>
    %460 = vector.extract_strided_slice %453 {offsets = [0, 48], sizes = [4, 16], strides = [1, 1]} : vector<4x64xf32> to vector<4x16xf32>
    %c9_505 = arith.constant 9 : index
    %c0_506 = arith.constant 0 : index
    %461 = tpu.strided_load %arg30[%c9_505, %c0_506] {strides = array<i32: 2, 1>} : memref<128x16xf32, #tpu.memory_space<vmem>>, vector<4x16xf32>
    tpu.strided_store %arg30[%c9_505, %c0_506], %460 {strides = array<i32: 2, 1>} : memref<128x16xf32, #tpu.memory_space<vmem>>, vector<4x16xf32>
    %462 = vector.extract_strided_slice %452 {offsets = [4, 0], sizes = [4, 64], strides = [1, 1]} : vector<32x64xf32> to vector<4x64xf32>
    %463 = vector.extract_strided_slice %462 {offsets = [0, 0], sizes = [4, 16], strides = [1, 1]} : vector<4x64xf32> to vector<4x16xf32>
    %c16_507 = arith.constant 16 : index
    %c0_508 = arith.constant 0 : index
    %464 = tpu.strided_load %arg30[%c16_507, %c0_508] {strides = array<i32: 2, 1>} : memref<128x16xf32, #tpu.memory_space<vmem>>, vector<4x16xf32>
    tpu.strided_store %arg30[%c16_507, %c0_508], %463 {strides = array<i32: 2, 1>} : memref<128x16xf32, #tpu.memory_space<vmem>>, vector<4x16xf32>
    %465 = vector.extract_strided_slice %462 {offsets = [0, 16], sizes = [4, 16], strides = [1, 1]} : vector<4x64xf32> to vector<4x16xf32>
    %c17_509 = arith.constant 17 : index
    %c0_510 = arith.constant 0 : index
    %466 = tpu.strided_load %arg30[%c17_509, %c0_510] {strides = array<i32: 2, 1>} : memref<128x16xf32, #tpu.memory_space<vmem>>, vector<4x16xf32>
    tpu.strided_store %arg30[%c17_509, %c0_510], %465 {strides = array<i32: 2, 1>} : memref<128x16xf32, #tpu.memory_space<vmem>>, vector<4x16xf32>
    %467 = vector.extract_strided_slice %462 {offsets = [0, 32], sizes = [4, 16], strides = [1, 1]} : vector<4x64xf32> to vector<4x16xf32>
    %c24_511 = arith.constant 24 : index
    %c0_512 = arith.constant 0 : index
    %468 = tpu.strided_load %arg30[%c24_511, %c0_512] {strides = array<i32: 2, 1>} : memref<128x16xf32, #tpu.memory_space<vmem>>, vector<4x16xf32>
    tpu.strided_store %arg30[%c24_511, %c0_512], %467 {strides = array<i32: 2, 1>} : memref<128x16xf32, #tpu.memory_space<vmem>>, vector<4x16xf32>
    %469 = vector.extract_strided_slice %462 {offsets = [0, 48], sizes = [4, 16], strides = [1, 1]} : vector<4x64xf32> to vector<4x16xf32>
    %c25_513 = arith.constant 25 : index
    %c0_514 = arith.constant 0 : index
    %470 = tpu.strided_load %arg30[%c25_513, %c0_514] {strides = array<i32: 2, 1>} : memref<128x16xf32, #tpu.memory_space<vmem>>, vector<4x16xf32>
    tpu.strided_store %arg30[%c25_513, %c0_514], %469 {strides = array<i32: 2, 1>} : memref<128x16xf32, #tpu.memory_space<vmem>>, vector<4x16xf32>
    %471 = vector.extract_strided_slice %452 {offsets = [8, 0], sizes = [4, 64], strides = [1, 1]} : vector<32x64xf32> to vector<4x64xf32>
    %472 = vector.extract_strided_slice %471 {offsets = [0, 0], sizes = [4, 16], strides = [1, 1]} : vector<4x64xf32> to vector<4x16xf32>
    %c32_515 = arith.constant 32 : index
    %c0_516 = arith.constant 0 : index
    %473 = tpu.strided_load %arg30[%c32_515, %c0_516] {strides = array<i32: 2, 1>} : memref<128x16xf32, #tpu.memory_space<vmem>>, vector<4x16xf32>
    tpu.strided_store %arg30[%c32_515, %c0_516], %472 {strides = array<i32: 2, 1>} : memref<128x16xf32, #tpu.memory_space<vmem>>, vector<4x16xf32>
    %474 = vector.extract_strided_slice %471 {offsets = [0, 16], sizes = [4, 16], strides = [1, 1]} : vector<4x64xf32> to vector<4x16xf32>
    %c33 = arith.constant 33 : index
    %c0_517 = arith.constant 0 : index
    %475 = tpu.strided_load %arg30[%c33, %c0_517] {strides = array<i32: 2, 1>} : memref<128x16xf32, #tpu.memory_space<vmem>>, vector<4x16xf32>
    tpu.strided_store %arg30[%c33, %c0_517], %474 {strides = array<i32: 2, 1>} : memref<128x16xf32, #tpu.memory_space<vmem>>, vector<4x16xf32>
    %476 = vector.extract_strided_slice %471 {offsets = [0, 32], sizes = [4, 16], strides = [1, 1]} : vector<4x64xf32> to vector<4x16xf32>
    %c40_518 = arith.constant 40 : index
    %c0_519 = arith.constant 0 : index
    %477 = tpu.strided_load %arg30[%c40_518, %c0_519] {strides = array<i32: 2, 1>} : memref<128x16xf32, #tpu.memory_space<vmem>>, vector<4x16xf32>
    tpu.strided_store %arg30[%c40_518, %c0_519], %476 {strides = array<i32: 2, 1>} : memref<128x16xf32, #tpu.memory_space<vmem>>, vector<4x16xf32>
    %478 = vector.extract_strided_slice %471 {offsets = [0, 48], sizes = [4, 16], strides = [1, 1]} : vector<4x64xf32> to vector<4x16xf32>
    %c41_520 = arith.constant 41 : index
    %c0_521 = arith.constant 0 : index
    %479 = tpu.strided_load %arg30[%c41_520, %c0_521] {strides = array<i32: 2, 1>} : memref<128x16xf32, #tpu.memory_space<vmem>>, vector<4x16xf32>
    tpu.strided_store %arg30[%c41_520, %c0_521], %478 {strides = array<i32: 2, 1>} : memref<128x16xf32, #tpu.memory_space<vmem>>, vector<4x16xf32>
    %480 = vector.extract_strided_slice %452 {offsets = [12, 0], sizes = [4, 64], strides = [1, 1]} : vector<32x64xf32> to vector<4x64xf32>
    %481 = vector.extract_strided_slice %480 {offsets = [0, 0], sizes = [4, 16], strides = [1, 1]} : vector<4x64xf32> to vector<4x16xf32>
    %c48_522 = arith.constant 48 : index
    %c0_523 = arith.constant 0 : index
    %482 = tpu.strided_load %arg30[%c48_522, %c0_523] {strides = array<i32: 2, 1>} : memref<128x16xf32, #tpu.memory_space<vmem>>, vector<4x16xf32>
    tpu.strided_store %arg30[%c48_522, %c0_523], %481 {strides = array<i32: 2, 1>} : memref<128x16xf32, #tpu.memory_space<vmem>>, vector<4x16xf32>
    %483 = vector.extract_strided_slice %480 {offsets = [0, 16], sizes = [4, 16], strides = [1, 1]} : vector<4x64xf32> to vector<4x16xf32>
    %c49_524 = arith.constant 49 : index
    %c0_525 = arith.constant 0 : index
    %484 = tpu.strided_load %arg30[%c49_524, %c0_525] {strides = array<i32: 2, 1>} : memref<128x16xf32, #tpu.memory_space<vmem>>, vector<4x16xf32>
    tpu.strided_store %arg30[%c49_524, %c0_525], %483 {strides = array<i32: 2, 1>} : memref<128x16xf32, #tpu.memory_space<vmem>>, vector<4x16xf32>
    %485 = vector.extract_strided_slice %480 {offsets = [0, 32], sizes = [4, 16], strides = [1, 1]} : vector<4x64xf32> to vector<4x16xf32>
    %c56_526 = arith.constant 56 : index
    %c0_527 = arith.constant 0 : index
    %486 = tpu.strided_load %arg30[%c56_526, %c0_527] {strides = array<i32: 2, 1>} : memref<128x16xf32, #tpu.memory_space<vmem>>, vector<4x16xf32>
    tpu.strided_store %arg30[%c56_526, %c0_527], %485 {strides = array<i32: 2, 1>} : memref<128x16xf32, #tpu.memory_space<vmem>>, vector<4x16xf32>
    %487 = vector.extract_strided_slice %480 {offsets = [0, 48], sizes = [4, 16], strides = [1, 1]} : vector<4x64xf32> to vector<4x16xf32>
    %c57 = arith.constant 57 : index
    %c0_528 = arith.constant 0 : index
    %488 = tpu.strided_load %arg30[%c57, %c0_528] {strides = array<i32: 2, 1>} : memref<128x16xf32, #tpu.memory_space<vmem>>, vector<4x16xf32>
    tpu.strided_store %arg30[%c57, %c0_528], %487 {strides = array<i32: 2, 1>} : memref<128x16xf32, #tpu.memory_space<vmem>>, vector<4x16xf32>
    %489 = vector.extract_strided_slice %452 {offsets = [16, 0], sizes = [4, 64], strides = [1, 1]} : vector<32x64xf32> to vector<4x64xf32>
    %490 = vector.extract_strided_slice %489 {offsets = [0, 0], sizes = [4, 16], strides = [1, 1]} : vector<4x64xf32> to vector<4x16xf32>
    %c64_529 = arith.constant 64 : index
    %c0_530 = arith.constant 0 : index
    %491 = tpu.strided_load %arg30[%c64_529, %c0_530] {strides = array<i32: 2, 1>} : memref<128x16xf32, #tpu.memory_space<vmem>>, vector<4x16xf32>
    tpu.strided_store %arg30[%c64_529, %c0_530], %490 {strides = array<i32: 2, 1>} : memref<128x16xf32, #tpu.memory_space<vmem>>, vector<4x16xf32>
    %492 = vector.extract_strided_slice %489 {offsets = [0, 16], sizes = [4, 16], strides = [1, 1]} : vector<4x64xf32> to vector<4x16xf32>
    %c65 = arith.constant 65 : index
    %c0_531 = arith.constant 0 : index
    %493 = tpu.strided_load %arg30[%c65, %c0_531] {strides = array<i32: 2, 1>} : memref<128x16xf32, #tpu.memory_space<vmem>>, vector<4x16xf32>
    tpu.strided_store %arg30[%c65, %c0_531], %492 {strides = array<i32: 2, 1>} : memref<128x16xf32, #tpu.memory_space<vmem>>, vector<4x16xf32>
    %494 = vector.extract_strided_slice %489 {offsets = [0, 32], sizes = [4, 16], strides = [1, 1]} : vector<4x64xf32> to vector<4x16xf32>
    %c72_532 = arith.constant 72 : index
    %c0_533 = arith.constant 0 : index
    %495 = tpu.strided_load %arg30[%c72_532, %c0_533] {strides = array<i32: 2, 1>} : memref<128x16xf32, #tpu.memory_space<vmem>>, vector<4x16xf32>
    tpu.strided_store %arg30[%c72_532, %c0_533], %494 {strides = array<i32: 2, 1>} : memref<128x16xf32, #tpu.memory_space<vmem>>, vector<4x16xf32>
    %496 = vector.extract_strided_slice %489 {offsets = [0, 48], sizes = [4, 16], strides = [1, 1]} : vector<4x64xf32> to vector<4x16xf32>
    %c73 = arith.constant 73 : index
    %c0_534 = arith.constant 0 : index
    %497 = tpu.strided_load %arg30[%c73, %c0_534] {strides = array<i32: 2, 1>} : memref<128x16xf32, #tpu.memory_space<vmem>>, vector<4x16xf32>
    tpu.strided_store %arg30[%c73, %c0_534], %496 {strides = array<i32: 2, 1>} : memref<128x16xf32, #tpu.memory_space<vmem>>, vector<4x16xf32>
    %498 = vector.extract_strided_slice %452 {offsets = [20, 0], sizes = [4, 64], strides = [1, 1]} : vector<32x64xf32> to vector<4x64xf32>
    %499 = vector.extract_strided_slice %498 {offsets = [0, 0], sizes = [4, 16], strides = [1, 1]} : vector<4x64xf32> to vector<4x16xf32>
    %c80_535 = arith.constant 80 : index
    %c0_536 = arith.constant 0 : index
    %500 = tpu.strided_load %arg30[%c80_535, %c0_536] {strides = array<i32: 2, 1>} : memref<128x16xf32, #tpu.memory_space<vmem>>, vector<4x16xf32>
    tpu.strided_store %arg30[%c80_535, %c0_536], %499 {strides = array<i32: 2, 1>} : memref<128x16xf32, #tpu.memory_space<vmem>>, vector<4x16xf32>
    %501 = vector.extract_strided_slice %498 {offsets = [0, 16], sizes = [4, 16], strides = [1, 1]} : vector<4x64xf32> to vector<4x16xf32>
    %c81_537 = arith.constant 81 : index
    %c0_538 = arith.constant 0 : index
    %502 = tpu.strided_load %arg30[%c81_537, %c0_538] {strides = array<i32: 2, 1>} : memref<128x16xf32, #tpu.memory_space<vmem>>, vector<4x16xf32>
    tpu.strided_store %arg30[%c81_537, %c0_538], %501 {strides = array<i32: 2, 1>} : memref<128x16xf32, #tpu.memory_space<vmem>>, vector<4x16xf32>
    %503 = vector.extract_strided_slice %498 {offsets = [0, 32], sizes = [4, 16], strides = [1, 1]} : vector<4x64xf32> to vector<4x16xf32>
    %c88_539 = arith.constant 88 : index
    %c0_540 = arith.constant 0 : index
    %504 = tpu.strided_load %arg30[%c88_539, %c0_540] {strides = array<i32: 2, 1>} : memref<128x16xf32, #tpu.memory_space<vmem>>, vector<4x16xf32>
    tpu.strided_store %arg30[%c88_539, %c0_540], %503 {strides = array<i32: 2, 1>} : memref<128x16xf32, #tpu.memory_space<vmem>>, vector<4x16xf32>
    %505 = vector.extract_strided_slice %498 {offsets = [0, 48], sizes = [4, 16], strides = [1, 1]} : vector<4x64xf32> to vector<4x16xf32>
    %c89 = arith.constant 89 : index
    %c0_541 = arith.constant 0 : index
    %506 = tpu.strided_load %arg30[%c89, %c0_541] {strides = array<i32: 2, 1>} : memref<128x16xf32, #tpu.memory_space<vmem>>, vector<4x16xf32>
    tpu.strided_store %arg30[%c89, %c0_541], %505 {strides = array<i32: 2, 1>} : memref<128x16xf32, #tpu.memory_space<vmem>>, vector<4x16xf32>
    %507 = vector.extract_strided_slice %452 {offsets = [24, 0], sizes = [4, 64], strides = [1, 1]} : vector<32x64xf32> to vector<4x64xf32>
    %508 = vector.extract_strided_slice %507 {offsets = [0, 0], sizes = [4, 16], strides = [1, 1]} : vector<4x64xf32> to vector<4x16xf32>
    %c96_542 = arith.constant 96 : index
    %c0_543 = arith.constant 0 : index
    %509 = tpu.strided_load %arg30[%c96_542, %c0_543] {strides = array<i32: 2, 1>} : memref<128x16xf32, #tpu.memory_space<vmem>>, vector<4x16xf32>
    tpu.strided_store %arg30[%c96_542, %c0_543], %508 {strides = array<i32: 2, 1>} : memref<128x16xf32, #tpu.memory_space<vmem>>, vector<4x16xf32>
    %510 = vector.extract_strided_slice %507 {offsets = [0, 16], sizes = [4, 16], strides = [1, 1]} : vector<4x64xf32> to vector<4x16xf32>
    %c97 = arith.constant 97 : index
    %c0_544 = arith.constant 0 : index
    %511 = tpu.strided_load %arg30[%c97, %c0_544] {strides = array<i32: 2, 1>} : memref<128x16xf32, #tpu.memory_space<vmem>>, vector<4x16xf32>
    tpu.strided_store %arg30[%c97, %c0_544], %510 {strides = array<i32: 2, 1>} : memref<128x16xf32, #tpu.memory_space<vmem>>, vector<4x16xf32>
    %512 = vector.extract_strided_slice %507 {offsets = [0, 32], sizes = [4, 16], strides = [1, 1]} : vector<4x64xf32> to vector<4x16xf32>
    %c104_545 = arith.constant 104 : index
    %c0_546 = arith.constant 0 : index
    %513 = tpu.strided_load %arg30[%c104_545, %c0_546] {strides = array<i32: 2, 1>} : memref<128x16xf32, #tpu.memory_space<vmem>>, vector<4x16xf32>
    tpu.strided_store %arg30[%c104_545, %c0_546], %512 {strides = array<i32: 2, 1>} : memref<128x16xf32, #tpu.memory_space<vmem>>, vector<4x16xf32>
    %514 = vector.extract_strided_slice %507 {offsets = [0, 48], sizes = [4, 16], strides = [1, 1]} : vector<4x64xf32> to vector<4x16xf32>
    %c105 = arith.constant 105 : index
    %c0_547 = arith.constant 0 : index
    %515 = tpu.strided_load %arg30[%c105, %c0_547] {strides = array<i32: 2, 1>} : memref<128x16xf32, #tpu.memory_space<vmem>>, vector<4x16xf32>
    tpu.strided_store %arg30[%c105, %c0_547], %514 {strides = array<i32: 2, 1>} : memref<128x16xf32, #tpu.memory_space<vmem>>, vector<4x16xf32>
    %516 = vector.extract_strided_slice %452 {offsets = [28, 0], sizes = [4, 64], strides = [1, 1]} : vector<32x64xf32> to vector<4x64xf32>
    %517 = vector.extract_strided_slice %516 {offsets = [0, 0], sizes = [4, 16], strides = [1, 1]} : vector<4x64xf32> to vector<4x16xf32>
    %c112_548 = arith.constant 112 : index
    %c0_549 = arith.constant 0 : index
    %518 = tpu.strided_load %arg30[%c112_548, %c0_549] {strides = array<i32: 2, 1>} : memref<128x16xf32, #tpu.memory_space<vmem>>, vector<4x16xf32>
    tpu.strided_store %arg30[%c112_548, %c0_549], %517 {strides = array<i32: 2, 1>} : memref<128x16xf32, #tpu.memory_space<vmem>>, vector<4x16xf32>
    %519 = vector.extract_strided_slice %516 {offsets = [0, 16], sizes = [4, 16], strides = [1, 1]} : vector<4x64xf32> to vector<4x16xf32>
    %c113 = arith.constant 113 : index
    %c0_550 = arith.constant 0 : index
    %520 = tpu.strided_load %arg30[%c113, %c0_550] {strides = array<i32: 2, 1>} : memref<128x16xf32, #tpu.memory_space<vmem>>, vector<4x16xf32>
    tpu.strided_store %arg30[%c113, %c0_550], %519 {strides = array<i32: 2, 1>} : memref<128x16xf32, #tpu.memory_space<vmem>>, vector<4x16xf32>
    %521 = vector.extract_strided_slice %516 {offsets = [0, 32], sizes = [4, 16], strides = [1, 1]} : vector<4x64xf32> to vector<4x16xf32>
    %c120_551 = arith.constant 120 : index
    %c0_552 = arith.constant 0 : index
    %522 = tpu.strided_load %arg30[%c120_551, %c0_552] {strides = array<i32: 2, 1>} : memref<128x16xf32, #tpu.memory_space<vmem>>, vector<4x16xf32>
    tpu.strided_store %arg30[%c120_551, %c0_552], %521 {strides = array<i32: 2, 1>} : memref<128x16xf32, #tpu.memory_space<vmem>>, vector<4x16xf32>
    %523 = vector.extract_strided_slice %516 {offsets = [0, 48], sizes = [4, 16], strides = [1, 1]} : vector<4x64xf32> to vector<4x16xf32>
    %c121_553 = arith.constant 121 : index
    %c0_554 = arith.constant 0 : index
    %524 = tpu.strided_load %arg30[%c121_553, %c0_554] {strides = array<i32: 2, 1>} : memref<128x16xf32, #tpu.memory_space<vmem>>, vector<4x16xf32>
    tpu.strided_store %arg30[%c121_553, %c0_554], %523 {strides = array<i32: 2, 1>} : memref<128x16xf32, #tpu.memory_space<vmem>>, vector<4x16xf32>
    %c0_555 = arith.constant 0 : index
    %c0_556 = arith.constant 0 : index
    %525 = vector.load %arg30[%c0_555, %c0_556] : memref<128x16xf32, #tpu.memory_space<vmem>>, vector<128x16xf32>
    %c0_557 = arith.constant 0 : index
    %c8_558 = arith.constant 8 : index
    %526 = vector.load %arg23[%c0_557, %c8_558] : memref<128x24xf32, #tpu.memory_space<vmem>>, vector<128x16xf32>
    tpu.vector_store %arg23[%c0_557, %c8_558], %525 {strides = array<i32>} : memref<128x24xf32, #tpu.memory_space<vmem>>, vector<128x16xf32>,
    %c0_559 = arith.constant 0 : index
    %c0_560 = arith.constant 0 : index
    %527 = vector.load %arg23[%c0_559, %c0_560] : memref<128x24xf32, #tpu.memory_space<vmem>>, vector<128x24xf32>
    %c0_561 = arith.constant 0 : index
    %c0_562 = arith.constant 0 : index
    %528 = vector.load %arg16[%c0_561, %c0_562] : memref<24x32xf32, #tpu.memory_space<vmem>>, vector<24x32xf32>
    %cst_563 = arith.constant dense<0.000000e+00> : vector<128x32xf32>
    %529 = tpu.matmul %527, %528, %cst_563 {dimension_numbers = #tpu.dot_dimension_numbers<[1], [0], [0], [1], [0, 0, 1, 1], [], []>} : vector<128x24xf32>, vector<24x32xf32>, vector<128x32xf32> -> vector<128x32xf32>
    %c0_564 = arith.constant 0 : index
    %c0_565 = arith.constant 0 : index
    %530 = vector.load %arg17[%c0_564, %c0_565] : memref<1x32xf32, #tpu.memory_space<vmem>>, vector<1x32xf32>
    %531 = vector.broadcast %530 : vector<1x32xf32> to vector<128x32xf32>
    %532 = arith.addf %529, %531 : vector<128x32xf32>
    %cst_566 = arith.constant 0.000000e+00 : f32
    %533 = vector.broadcast %cst_566 : f32 to vector<128x32xf32>
    %534 = arith.maximumf %532, %533 : vector<128x32xf32>
    %c0_567 = arith.constant 0 : index
    %c0_568 = arith.constant 0 : index
    %535 = vector.load %arg18[%c0_567, %c0_568] : memref<32x16xf32, #tpu.memory_space<vmem>>, vector<32x16xf32>
    %cst_569 = arith.constant dense<0.000000e+00> : vector<128x16xf32>
    %536 = tpu.matmul %534, %535, %cst_569 {dimension_numbers = #tpu.dot_dimension_numbers<[1], [0], [0], [1], [0, 0, 1, 1], [], []>} : vector<128x32xf32>, vector<32x16xf32>, vector<128x16xf32> -> vector<128x16xf32>
    %c0_570 = arith.constant 0 : index
    %c0_571 = arith.constant 0 : index
    %537 = vector.load %arg19[%c0_570, %c0_571] : memref<1x16xf32, #tpu.memory_space<vmem>>, vector<1x16xf32>
    %538 = vector.broadcast %537 : vector<1x16xf32> to vector<128x16xf32>
    %539 = arith.addf %536, %538 : vector<128x16xf32>
    %540 = vector.extract_strided_slice %539 {offsets = [0, 0], sizes = [8, 16], strides = [1, 1]} : vector<128x16xf32> to vector<8x16xf32>
    %541 = vector.extract_strided_slice %540 {offsets = [0, 0], sizes = [8, 4], strides = [1, 1]} : vector<8x16xf32> to vector<8x4xf32>
    %c0_572 = arith.constant 0 : index
    %c0_573 = arith.constant 0 : index
    %542 = tpu.strided_load %arg20[%c0_572, %c0_573] {strides = array<i32: 2, 1>} : memref<512x4xf32, #tpu.memory_space<vmem>>, vector<8x4xf32>
    tpu.strided_store %arg20[%c0_572, %c0_573], %541 {strides = array<i32: 2, 1>} : memref<512x4xf32, #tpu.memory_space<vmem>>, vector<8x4xf32>
    %543 = vector.extract_strided_slice %540 {offsets = [0, 4], sizes = [8, 4], strides = [1, 1]} : vector<8x16xf32> to vector<8x4xf32>
    %c1_574 = arith.constant 1 : index
    %c0_575 = arith.constant 0 : index
    %544 = tpu.strided_load %arg20[%c1_574, %c0_575] {strides = array<i32: 2, 1>} : memref<512x4xf32, #tpu.memory_space<vmem>>, vector<8x4xf32>
    tpu.strided_store %arg20[%c1_574, %c0_575], %543 {strides = array<i32: 2, 1>} : memref<512x4xf32, #tpu.memory_space<vmem>>, vector<8x4xf32>
    %545 = vector.extract_strided_slice %540 {offsets = [0, 8], sizes = [8, 4], strides = [1, 1]} : vector<8x16xf32> to vector<8x4xf32>
    %c16_576 = arith.constant 16 : index
    %c0_577 = arith.constant 0 : index
    %546 = tpu.strided_load %arg20[%c16_576, %c0_577] {strides = array<i32: 2, 1>} : memref<512x4xf32, #tpu.memory_space<vmem>>, vector<8x4xf32>
    tpu.strided_store %arg20[%c16_576, %c0_577], %545 {strides = array<i32: 2, 1>} : memref<512x4xf32, #tpu.memory_space<vmem>>, vector<8x4xf32>
    %547 = vector.extract_strided_slice %540 {offsets = [0, 12], sizes = [8, 4], strides = [1, 1]} : vector<8x16xf32> to vector<8x4xf32>
    %c17_578 = arith.constant 17 : index
    %c0_579 = arith.constant 0 : index
    %548 = tpu.strided_load %arg20[%c17_578, %c0_579] {strides = array<i32: 2, 1>} : memref<512x4xf32, #tpu.memory_space<vmem>>, vector<8x4xf32>
    tpu.strided_store %arg20[%c17_578, %c0_579], %547 {strides = array<i32: 2, 1>} : memref<512x4xf32, #tpu.memory_space<vmem>>, vector<8x4xf32>
    %549 = vector.extract_strided_slice %539 {offsets = [8, 0], sizes = [8, 16], strides = [1, 1]} : vector<128x16xf32> to vector<8x16xf32>
    %550 = vector.extract_strided_slice %549 {offsets = [0, 0], sizes = [8, 4], strides = [1, 1]} : vector<8x16xf32> to vector<8x4xf32>
    %c32_580 = arith.constant 32 : index
    %c0_581 = arith.constant 0 : index
    %551 = tpu.strided_load %arg20[%c32_580, %c0_581] {strides = array<i32: 2, 1>} : memref<512x4xf32, #tpu.memory_space<vmem>>, vector<8x4xf32>
    tpu.strided_store %arg20[%c32_580, %c0_581], %550 {strides = array<i32: 2, 1>} : memref<512x4xf32, #tpu.memory_space<vmem>>, vector<8x4xf32>
    %552 = vector.extract_strided_slice %549 {offsets = [0, 4], sizes = [8, 4], strides = [1, 1]} : vector<8x16xf32> to vector<8x4xf32>
    %c33_582 = arith.constant 33 : index
    %c0_583 = arith.constant 0 : index
    %553 = tpu.strided_load %arg20[%c33_582, %c0_583] {strides = array<i32: 2, 1>} : memref<512x4xf32, #tpu.memory_space<vmem>>, vector<8x4xf32>
    tpu.strided_store %arg20[%c33_582, %c0_583], %552 {strides = array<i32: 2, 1>} : memref<512x4xf32, #tpu.memory_space<vmem>>, vector<8x4xf32>
    %554 = vector.extract_strided_slice %549 {offsets = [0, 8], sizes = [8, 4], strides = [1, 1]} : vector<8x16xf32> to vector<8x4xf32>
    %c48_584 = arith.constant 48 : index
    %c0_585 = arith.constant 0 : index
    %555 = tpu.strided_load %arg20[%c48_584, %c0_585] {strides = array<i32: 2, 1>} : memref<512x4xf32, #tpu.memory_space<vmem>>, vector<8x4xf32>
    tpu.strided_store %arg20[%c48_584, %c0_585], %554 {strides = array<i32: 2, 1>} : memref<512x4xf32, #tpu.memory_space<vmem>>, vector<8x4xf32>
    %556 = vector.extract_strided_slice %549 {offsets = [0, 12], sizes = [8, 4], strides = [1, 1]} : vector<8x16xf32> to vector<8x4xf32>
    %c49_586 = arith.constant 49 : index
    %c0_587 = arith.constant 0 : index
    %557 = tpu.strided_load %arg20[%c49_586, %c0_587] {strides = array<i32: 2, 1>} : memref<512x4xf32, #tpu.memory_space<vmem>>, vector<8x4xf32>
    tpu.strided_store %arg20[%c49_586, %c0_587], %556 {strides = array<i32: 2, 1>} : memref<512x4xf32, #tpu.memory_space<vmem>>, vector<8x4xf32>
    %558 = vector.extract_strided_slice %539 {offsets = [16, 0], sizes = [8, 16], strides = [1, 1]} : vector<128x16xf32> to vector<8x16xf32>
    %559 = vector.extract_strided_slice %558 {offsets = [0, 0], sizes = [8, 4], strides = [1, 1]} : vector<8x16xf32> to vector<8x4xf32>
    %c64_588 = arith.constant 64 : index
    %c0_589 = arith.constant 0 : index
    %560 = tpu.strided_load %arg20[%c64_588, %c0_589] {strides = array<i32: 2, 1>} : memref<512x4xf32, #tpu.memory_space<vmem>>, vector<8x4xf32>
    tpu.strided_store %arg20[%c64_588, %c0_589], %559 {strides = array<i32: 2, 1>} : memref<512x4xf32, #tpu.memory_space<vmem>>, vector<8x4xf32>
    %561 = vector.extract_strided_slice %558 {offsets = [0, 4], sizes = [8, 4], strides = [1, 1]} : vector<8x16xf32> to vector<8x4xf32>
    %c65_590 = arith.constant 65 : index
    %c0_591 = arith.constant 0 : index
    %562 = tpu.strided_load %arg20[%c65_590, %c0_591] {strides = array<i32: 2, 1>} : memref<512x4xf32, #tpu.memory_space<vmem>>, vector<8x4xf32>
    tpu.strided_store %arg20[%c65_590, %c0_591], %561 {strides = array<i32: 2, 1>} : memref<512x4xf32, #tpu.memory_space<vmem>>, vector<8x4xf32>
    %563 = vector.extract_strided_slice %558 {offsets = [0, 8], sizes = [8, 4], strides = [1, 1]} : vector<8x16xf32> to vector<8x4xf32>
    %c80_592 = arith.constant 80 : index
    %c0_593 = arith.constant 0 : index
    %564 = tpu.strided_load %arg20[%c80_592, %c0_593] {strides = array<i32: 2, 1>} : memref<512x4xf32, #tpu.memory_space<vmem>>, vector<8x4xf32>
    tpu.strided_store %arg20[%c80_592, %c0_593], %563 {strides = array<i32: 2, 1>} : memref<512x4xf32, #tpu.memory_space<vmem>>, vector<8x4xf32>
    %565 = vector.extract_strided_slice %558 {offsets = [0, 12], sizes = [8, 4], strides = [1, 1]} : vector<8x16xf32> to vector<8x4xf32>
    %c81_594 = arith.constant 81 : index
    %c0_595 = arith.constant 0 : index
    %566 = tpu.strided_load %arg20[%c81_594, %c0_595] {strides = array<i32: 2, 1>} : memref<512x4xf32, #tpu.memory_space<vmem>>, vector<8x4xf32>
    tpu.strided_store %arg20[%c81_594, %c0_595], %565 {strides = array<i32: 2, 1>} : memref<512x4xf32, #tpu.memory_space<vmem>>, vector<8x4xf32>
    %567 = vector.extract_strided_slice %539 {offsets = [24, 0], sizes = [8, 16], strides = [1, 1]} : vector<128x16xf32> to vector<8x16xf32>
    %568 = vector.extract_strided_slice %567 {offsets = [0, 0], sizes = [8, 4], strides = [1, 1]} : vector<8x16xf32> to vector<8x4xf32>
    %c96_596 = arith.constant 96 : index
    %c0_597 = arith.constant 0 : index
    %569 = tpu.strided_load %arg20[%c96_596, %c0_597] {strides = array<i32: 2, 1>} : memref<512x4xf32, #tpu.memory_space<vmem>>, vector<8x4xf32>
    tpu.strided_store %arg20[%c96_596, %c0_597], %568 {strides = array<i32: 2, 1>} : memref<512x4xf32, #tpu.memory_space<vmem>>, vector<8x4xf32>
    %570 = vector.extract_strided_slice %567 {offsets = [0, 4], sizes = [8, 4], strides = [1, 1]} : vector<8x16xf32> to vector<8x4xf32>
    %c97_598 = arith.constant 97 : index
    %c0_599 = arith.constant 0 : index
    %571 = tpu.strided_load %arg20[%c97_598, %c0_599] {strides = array<i32: 2, 1>} : memref<512x4xf32, #tpu.memory_space<vmem>>, vector<8x4xf32>
    tpu.strided_store %arg20[%c97_598, %c0_599], %570 {strides = array<i32: 2, 1>} : memref<512x4xf32, #tpu.memory_space<vmem>>, vector<8x4xf32>
    %572 = vector.extract_strided_slice %567 {offsets = [0, 8], sizes = [8, 4], strides = [1, 1]} : vector<8x16xf32> to vector<8x4xf32>
    %c112_600 = arith.constant 112 : index
    %c0_601 = arith.constant 0 : index
    %573 = tpu.strided_load %arg20[%c112_600, %c0_601] {strides = array<i32: 2, 1>} : memref<512x4xf32, #tpu.memory_space<vmem>>, vector<8x4xf32>
    tpu.strided_store %arg20[%c112_600, %c0_601], %572 {strides = array<i32: 2, 1>} : memref<512x4xf32, #tpu.memory_space<vmem>>, vector<8x4xf32>
    %574 = vector.extract_strided_slice %567 {offsets = [0, 12], sizes = [8, 4], strides = [1, 1]} : vector<8x16xf32> to vector<8x4xf32>
    %c113_602 = arith.constant 113 : index
    %c0_603 = arith.constant 0 : index
    %575 = tpu.strided_load %arg20[%c113_602, %c0_603] {strides = array<i32: 2, 1>} : memref<512x4xf32, #tpu.memory_space<vmem>>, vector<8x4xf32>
    tpu.strided_store %arg20[%c113_602, %c0_603], %574 {strides = array<i32: 2, 1>} : memref<512x4xf32, #tpu.memory_space<vmem>>, vector<8x4xf32>
    %576 = vector.extract_strided_slice %539 {offsets = [32, 0], sizes = [8, 16], strides = [1, 1]} : vector<128x16xf32> to vector<8x16xf32>
    %577 = vector.extract_strided_slice %576 {offsets = [0, 0], sizes = [8, 4], strides = [1, 1]} : vector<8x16xf32> to vector<8x4xf32>
    %c128 = arith.constant 128 : index
    %c0_604 = arith.constant 0 : index
    %578 = tpu.strided_load %arg20[%c128, %c0_604] {strides = array<i32: 2, 1>} : memref<512x4xf32, #tpu.memory_space<vmem>>, vector<8x4xf32>
    tpu.strided_store %arg20[%c128, %c0_604], %577 {strides = array<i32: 2, 1>} : memref<512x4xf32, #tpu.memory_space<vmem>>, vector<8x4xf32>
    %579 = vector.extract_strided_slice %576 {offsets = [0, 4], sizes = [8, 4], strides = [1, 1]} : vector<8x16xf32> to vector<8x4xf32>
    %c129 = arith.constant 129 : index
    %c0_605 = arith.constant 0 : index
    %580 = tpu.strided_load %arg20[%c129, %c0_605] {strides = array<i32: 2, 1>} : memref<512x4xf32, #tpu.memory_space<vmem>>, vector<8x4xf32>
    tpu.strided_store %arg20[%c129, %c0_605], %579 {strides = array<i32: 2, 1>} : memref<512x4xf32, #tpu.memory_space<vmem>>, vector<8x4xf32>
    %581 = vector.extract_strided_slice %576 {offsets = [0, 8], sizes = [8, 4], strides = [1, 1]} : vector<8x16xf32> to vector<8x4xf32>
    %c144 = arith.constant 144 : index
    %c0_606 = arith.constant 0 : index
    %582 = tpu.strided_load %arg20[%c144, %c0_606] {strides = array<i32: 2, 1>} : memref<512x4xf32, #tpu.memory_space<vmem>>, vector<8x4xf32>
    tpu.strided_store %arg20[%c144, %c0_606], %581 {strides = array<i32: 2, 1>} : memref<512x4xf32, #tpu.memory_space<vmem>>, vector<8x4xf32>
    %583 = vector.extract_strided_slice %576 {offsets = [0, 12], sizes = [8, 4], strides = [1, 1]} : vector<8x16xf32> to vector<8x4xf32>
    %c145 = arith.constant 145 : index
    %c0_607 = arith.constant 0 : index
    %584 = tpu.strided_load %arg20[%c145, %c0_607] {strides = array<i32: 2, 1>} : memref<512x4xf32, #tpu.memory_space<vmem>>, vector<8x4xf32>
    tpu.strided_store %arg20[%c145, %c0_607], %583 {strides = array<i32: 2, 1>} : memref<512x4xf32, #tpu.memory_space<vmem>>, vector<8x4xf32>
    %585 = vector.extract_strided_slice %539 {offsets = [40, 0], sizes = [8, 16], strides = [1, 1]} : vector<128x16xf32> to vector<8x16xf32>
    %586 = vector.extract_strided_slice %585 {offsets = [0, 0], sizes = [8, 4], strides = [1, 1]} : vector<8x16xf32> to vector<8x4xf32>
    %c160 = arith.constant 160 : index
    %c0_608 = arith.constant 0 : index
    %587 = tpu.strided_load %arg20[%c160, %c0_608] {strides = array<i32: 2, 1>} : memref<512x4xf32, #tpu.memory_space<vmem>>, vector<8x4xf32>
    tpu.strided_store %arg20[%c160, %c0_608], %586 {strides = array<i32: 2, 1>} : memref<512x4xf32, #tpu.memory_space<vmem>>, vector<8x4xf32>
    %588 = vector.extract_strided_slice %585 {offsets = [0, 4], sizes = [8, 4], strides = [1, 1]} : vector<8x16xf32> to vector<8x4xf32>
    %c161_609 = arith.constant 161 : index
    %c0_610 = arith.constant 0 : index
    %589 = tpu.strided_load %arg20[%c161_609, %c0_610] {strides = array<i32: 2, 1>} : memref<512x4xf32, #tpu.memory_space<vmem>>, vector<8x4xf32>
    tpu.strided_store %arg20[%c161_609, %c0_610], %588 {strides = array<i32: 2, 1>} : memref<512x4xf32, #tpu.memory_space<vmem>>, vector<8x4xf32>
    %590 = vector.extract_strided_slice %585 {offsets = [0, 8], sizes = [8, 4], strides = [1, 1]} : vector<8x16xf32> to vector<8x4xf32>
    %c176 = arith.constant 176 : index
    %c0_611 = arith.constant 0 : index
    %591 = tpu.strided_load %arg20[%c176, %c0_611] {strides = array<i32: 2, 1>} : memref<512x4xf32, #tpu.memory_space<vmem>>, vector<8x4xf32>
    tpu.strided_store %arg20[%c176, %c0_611], %590 {strides = array<i32: 2, 1>} : memref<512x4xf32, #tpu.memory_space<vmem>>, vector<8x4xf32>
    %592 = vector.extract_strided_slice %585 {offsets = [0, 12], sizes = [8, 4], strides = [1, 1]} : vector<8x16xf32> to vector<8x4xf32>
    %c177 = arith.constant 177 : index
    %c0_612 = arith.constant 0 : index
    %593 = tpu.strided_load %arg20[%c177, %c0_612] {strides = array<i32: 2, 1>} : memref<512x4xf32, #tpu.memory_space<vmem>>, vector<8x4xf32>
    tpu.strided_store %arg20[%c177, %c0_612], %592 {strides = array<i32: 2, 1>} : memref<512x4xf32, #tpu.memory_space<vmem>>, vector<8x4xf32>
    %594 = vector.extract_strided_slice %539 {offsets = [48, 0], sizes = [8, 16], strides = [1, 1]} : vector<128x16xf32> to vector<8x16xf32>
    %595 = vector.extract_strided_slice %594 {offsets = [0, 0], sizes = [8, 4], strides = [1, 1]} : vector<8x16xf32> to vector<8x4xf32>
    %c192 = arith.constant 192 : index
    %c0_613 = arith.constant 0 : index
    %596 = tpu.strided_load %arg20[%c192, %c0_613] {strides = array<i32: 2, 1>} : memref<512x4xf32, #tpu.memory_space<vmem>>, vector<8x4xf32>
    tpu.strided_store %arg20[%c192, %c0_613], %595 {strides = array<i32: 2, 1>} : memref<512x4xf32, #tpu.memory_space<vmem>>, vector<8x4xf32>
    %597 = vector.extract_strided_slice %594 {offsets = [0, 4], sizes = [8, 4], strides = [1, 1]} : vector<8x16xf32> to vector<8x4xf32>
    %c193 = arith.constant 193 : index
    %c0_614 = arith.constant 0 : index
    %598 = tpu.strided_load %arg20[%c193, %c0_614] {strides = array<i32: 2, 1>} : memref<512x4xf32, #tpu.memory_space<vmem>>, vector<8x4xf32>
    tpu.strided_store %arg20[%c193, %c0_614], %597 {strides = array<i32: 2, 1>} : memref<512x4xf32, #tpu.memory_space<vmem>>, vector<8x4xf32>
    %599 = vector.extract_strided_slice %594 {offsets = [0, 8], sizes = [8, 4], strides = [1, 1]} : vector<8x16xf32> to vector<8x4xf32>
    %c208 = arith.constant 208 : index
    %c0_615 = arith.constant 0 : index
    %600 = tpu.strided_load %arg20[%c208, %c0_615] {strides = array<i32: 2, 1>} : memref<512x4xf32, #tpu.memory_space<vmem>>, vector<8x4xf32>
    tpu.strided_store %arg20[%c208, %c0_615], %599 {strides = array<i32: 2, 1>} : memref<512x4xf32, #tpu.memory_space<vmem>>, vector<8x4xf32>
    %601 = vector.extract_strided_slice %594 {offsets = [0, 12], sizes = [8, 4], strides = [1, 1]} : vector<8x16xf32> to vector<8x4xf32>
    %c209 = arith.constant 209 : index
    %c0_616 = arith.constant 0 : index
    %602 = tpu.strided_load %arg20[%c209, %c0_616] {strides = array<i32: 2, 1>} : memref<512x4xf32, #tpu.memory_space<vmem>>, vector<8x4xf32>
    tpu.strided_store %arg20[%c209, %c0_616], %601 {strides = array<i32: 2, 1>} : memref<512x4xf32, #tpu.memory_space<vmem>>, vector<8x4xf32>
    %603 = vector.extract_strided_slice %539 {offsets = [56, 0], sizes = [8, 16], strides = [1, 1]} : vector<128x16xf32> to vector<8x16xf32>
    %604 = vector.extract_strided_slice %603 {offsets = [0, 0], sizes = [8, 4], strides = [1, 1]} : vector<8x16xf32> to vector<8x4xf32>
    %c224 = arith.constant 224 : index
    %c0_617 = arith.constant 0 : index
    %605 = tpu.strided_load %arg20[%c224, %c0_617] {strides = array<i32: 2, 1>} : memref<512x4xf32, #tpu.memory_space<vmem>>, vector<8x4xf32>
    tpu.strided_store %arg20[%c224, %c0_617], %604 {strides = array<i32: 2, 1>} : memref<512x4xf32, #tpu.memory_space<vmem>>, vector<8x4xf32>
    %606 = vector.extract_strided_slice %603 {offsets = [0, 4], sizes = [8, 4], strides = [1, 1]} : vector<8x16xf32> to vector<8x4xf32>
    %c225 = arith.constant 225 : index
    %c0_618 = arith.constant 0 : index
    %607 = tpu.strided_load %arg20[%c225, %c0_618] {strides = array<i32: 2, 1>} : memref<512x4xf32, #tpu.memory_space<vmem>>, vector<8x4xf32>
    tpu.strided_store %arg20[%c225, %c0_618], %606 {strides = array<i32: 2, 1>} : memref<512x4xf32, #tpu.memory_space<vmem>>, vector<8x4xf32>
    %608 = vector.extract_strided_slice %603 {offsets = [0, 8], sizes = [8, 4], strides = [1, 1]} : vector<8x16xf32> to vector<8x4xf32>
    %c240 = arith.constant 240 : index
    %c0_619 = arith.constant 0 : index
    %609 = tpu.strided_load %arg20[%c240, %c0_619] {strides = array<i32: 2, 1>} : memref<512x4xf32, #tpu.memory_space<vmem>>, vector<8x4xf32>
    tpu.strided_store %arg20[%c240, %c0_619], %608 {strides = array<i32: 2, 1>} : memref<512x4xf32, #tpu.memory_space<vmem>>, vector<8x4xf32>
    %610 = vector.extract_strided_slice %603 {offsets = [0, 12], sizes = [8, 4], strides = [1, 1]} : vector<8x16xf32> to vector<8x4xf32>
    %c241 = arith.constant 241 : index
    %c0_620 = arith.constant 0 : index
    %611 = tpu.strided_load %arg20[%c241, %c0_620] {strides = array<i32: 2, 1>} : memref<512x4xf32, #tpu.memory_space<vmem>>, vector<8x4xf32>
    tpu.strided_store %arg20[%c241, %c0_620], %610 {strides = array<i32: 2, 1>} : memref<512x4xf32, #tpu.memory_space<vmem>>, vector<8x4xf32>
    %612 = vector.extract_strided_slice %539 {offsets = [64, 0], sizes = [8, 16], strides = [1, 1]} : vector<128x16xf32> to vector<8x16xf32>
    %613 = vector.extract_strided_slice %612 {offsets = [0, 0], sizes = [8, 4], strides = [1, 1]} : vector<8x16xf32> to vector<8x4xf32>
    %c256 = arith.constant 256 : index
    %c0_621 = arith.constant 0 : index
    %614 = tpu.strided_load %arg20[%c256, %c0_621] {strides = array<i32: 2, 1>} : memref<512x4xf32, #tpu.memory_space<vmem>>, vector<8x4xf32>
    tpu.strided_store %arg20[%c256, %c0_621], %613 {strides = array<i32: 2, 1>} : memref<512x4xf32, #tpu.memory_space<vmem>>, vector<8x4xf32>
    %615 = vector.extract_strided_slice %612 {offsets = [0, 4], sizes = [8, 4], strides = [1, 1]} : vector<8x16xf32> to vector<8x4xf32>
    %c257 = arith.constant 257 : index
    %c0_622 = arith.constant 0 : index
    %616 = tpu.strided_load %arg20[%c257, %c0_622] {strides = array<i32: 2, 1>} : memref<512x4xf32, #tpu.memory_space<vmem>>, vector<8x4xf32>
    tpu.strided_store %arg20[%c257, %c0_622], %615 {strides = array<i32: 2, 1>} : memref<512x4xf32, #tpu.memory_space<vmem>>, vector<8x4xf32>
    %617 = vector.extract_strided_slice %612 {offsets = [0, 8], sizes = [8, 4], strides = [1, 1]} : vector<8x16xf32> to vector<8x4xf32>
    %c272 = arith.constant 272 : index
    %c0_623 = arith.constant 0 : index
    %618 = tpu.strided_load %arg20[%c272, %c0_623] {strides = array<i32: 2, 1>} : memref<512x4xf32, #tpu.memory_space<vmem>>, vector<8x4xf32>
    tpu.strided_store %arg20[%c272, %c0_623], %617 {strides = array<i32: 2, 1>} : memref<512x4xf32, #tpu.memory_space<vmem>>, vector<8x4xf32>
    %619 = vector.extract_strided_slice %612 {offsets = [0, 12], sizes = [8, 4], strides = [1, 1]} : vector<8x16xf32> to vector<8x4xf32>
    %c273 = arith.constant 273 : index
    %c0_624 = arith.constant 0 : index
    %620 = tpu.strided_load %arg20[%c273, %c0_624] {strides = array<i32: 2, 1>} : memref<512x4xf32, #tpu.memory_space<vmem>>, vector<8x4xf32>
    tpu.strided_store %arg20[%c273, %c0_624], %619 {strides = array<i32: 2, 1>} : memref<512x4xf32, #tpu.memory_space<vmem>>, vector<8x4xf32>
    %621 = vector.extract_strided_slice %539 {offsets = [72, 0], sizes = [8, 16], strides = [1, 1]} : vector<128x16xf32> to vector<8x16xf32>
    %622 = vector.extract_strided_slice %621 {offsets = [0, 0], sizes = [8, 4], strides = [1, 1]} : vector<8x16xf32> to vector<8x4xf32>
    %c288 = arith.constant 288 : index
    %c0_625 = arith.constant 0 : index
    %623 = tpu.strided_load %arg20[%c288, %c0_625] {strides = array<i32: 2, 1>} : memref<512x4xf32, #tpu.memory_space<vmem>>, vector<8x4xf32>
    tpu.strided_store %arg20[%c288, %c0_625], %622 {strides = array<i32: 2, 1>} : memref<512x4xf32, #tpu.memory_space<vmem>>, vector<8x4xf32>
    %624 = vector.extract_strided_slice %621 {offsets = [0, 4], sizes = [8, 4], strides = [1, 1]} : vector<8x16xf32> to vector<8x4xf32>
    %c289 = arith.constant 289 : index
    %c0_626 = arith.constant 0 : index
    %625 = tpu.strided_load %arg20[%c289, %c0_626] {strides = array<i32: 2, 1>} : memref<512x4xf32, #tpu.memory_space<vmem>>, vector<8x4xf32>
    tpu.strided_store %arg20[%c289, %c0_626], %624 {strides = array<i32: 2, 1>} : memref<512x4xf32, #tpu.memory_space<vmem>>, vector<8x4xf32>
    %626 = vector.extract_strided_slice %621 {offsets = [0, 8], sizes = [8, 4], strides = [1, 1]} : vector<8x16xf32> to vector<8x4xf32>
    %c304 = arith.constant 304 : index
    %c0_627 = arith.constant 0 : index
    %627 = tpu.strided_load %arg20[%c304, %c0_627] {strides = array<i32: 2, 1>} : memref<512x4xf32, #tpu.memory_space<vmem>>, vector<8x4xf32>
    tpu.strided_store %arg20[%c304, %c0_627], %626 {strides = array<i32: 2, 1>} : memref<512x4xf32, #tpu.memory_space<vmem>>, vector<8x4xf32>
    %628 = vector.extract_strided_slice %621 {offsets = [0, 12], sizes = [8, 4], strides = [1, 1]} : vector<8x16xf32> to vector<8x4xf32>
    %c305 = arith.constant 305 : index
    %c0_628 = arith.constant 0 : index
    %629 = tpu.strided_load %arg20[%c305, %c0_628] {strides = array<i32: 2, 1>} : memref<512x4xf32, #tpu.memory_space<vmem>>, vector<8x4xf32>
    tpu.strided_store %arg20[%c305, %c0_628], %628 {strides = array<i32: 2, 1>} : memref<512x4xf32, #tpu.memory_space<vmem>>, vector<8x4xf32>
    %630 = vector.extract_strided_slice %539 {offsets = [80, 0], sizes = [8, 16], strides = [1, 1]} : vector<128x16xf32> to vector<8x16xf32>
    %631 = vector.extract_strided_slice %630 {offsets = [0, 0], sizes = [8, 4], strides = [1, 1]} : vector<8x16xf32> to vector<8x4xf32>
    %c320 = arith.constant 320 : index
    %c0_629 = arith.constant 0 : index
    %632 = tpu.strided_load %arg20[%c320, %c0_629] {strides = array<i32: 2, 1>} : memref<512x4xf32, #tpu.memory_space<vmem>>, vector<8x4xf32>
    tpu.strided_store %arg20[%c320, %c0_629], %631 {strides = array<i32: 2, 1>} : memref<512x4xf32, #tpu.memory_space<vmem>>, vector<8x4xf32>
    %633 = vector.extract_strided_slice %630 {offsets = [0, 4], sizes = [8, 4], strides = [1, 1]} : vector<8x16xf32> to vector<8x4xf32>
    %c321 = arith.constant 321 : index
    %c0_630 = arith.constant 0 : index
    %634 = tpu.strided_load %arg20[%c321, %c0_630] {strides = array<i32: 2, 1>} : memref<512x4xf32, #tpu.memory_space<vmem>>, vector<8x4xf32>
    tpu.strided_store %arg20[%c321, %c0_630], %633 {strides = array<i32: 2, 1>} : memref<512x4xf32, #tpu.memory_space<vmem>>, vector<8x4xf32>
    %635 = vector.extract_strided_slice %630 {offsets = [0, 8], sizes = [8, 4], strides = [1, 1]} : vector<8x16xf32> to vector<8x4xf32>
    %c336 = arith.constant 336 : index
    %c0_631 = arith.constant 0 : index
    %636 = tpu.strided_load %arg20[%c336, %c0_631] {strides = array<i32: 2, 1>} : memref<512x4xf32, #tpu.memory_space<vmem>>, vector<8x4xf32>
    tpu.strided_store %arg20[%c336, %c0_631], %635 {strides = array<i32: 2, 1>} : memref<512x4xf32, #tpu.memory_space<vmem>>, vector<8x4xf32>
    %637 = vector.extract_strided_slice %630 {offsets = [0, 12], sizes = [8, 4], strides = [1, 1]} : vector<8x16xf32> to vector<8x4xf32>
    %c337 = arith.constant 337 : index
    %c0_632 = arith.constant 0 : index
    %638 = tpu.strided_load %arg20[%c337, %c0_632] {strides = array<i32: 2, 1>} : memref<512x4xf32, #tpu.memory_space<vmem>>, vector<8x4xf32>
    tpu.strided_store %arg20[%c337, %c0_632], %637 {strides = array<i32: 2, 1>} : memref<512x4xf32, #tpu.memory_space<vmem>>, vector<8x4xf32>
    %639 = vector.extract_strided_slice %539 {offsets = [88, 0], sizes = [8, 16], strides = [1, 1]} : vector<128x16xf32> to vector<8x16xf32>
    %640 = vector.extract_strided_slice %639 {offsets = [0, 0], sizes = [8, 4], strides = [1, 1]} : vector<8x16xf32> to vector<8x4xf32>
    %c352 = arith.constant 352 : index
    %c0_633 = arith.constant 0 : index
    %641 = tpu.strided_load %arg20[%c352, %c0_633] {strides = array<i32: 2, 1>} : memref<512x4xf32, #tpu.memory_space<vmem>>, vector<8x4xf32>
    tpu.strided_store %arg20[%c352, %c0_633], %640 {strides = array<i32: 2, 1>} : memref<512x4xf32, #tpu.memory_space<vmem>>, vector<8x4xf32>
    %642 = vector.extract_strided_slice %639 {offsets = [0, 4], sizes = [8, 4], strides = [1, 1]} : vector<8x16xf32> to vector<8x4xf32>
    %c353 = arith.constant 353 : index
    %c0_634 = arith.constant 0 : index
    %643 = tpu.strided_load %arg20[%c353, %c0_634] {strides = array<i32: 2, 1>} : memref<512x4xf32, #tpu.memory_space<vmem>>, vector<8x4xf32>
    tpu.strided_store %arg20[%c353, %c0_634], %642 {strides = array<i32: 2, 1>} : memref<512x4xf32, #tpu.memory_space<vmem>>, vector<8x4xf32>
    %644 = vector.extract_strided_slice %639 {offsets = [0, 8], sizes = [8, 4], strides = [1, 1]} : vector<8x16xf32> to vector<8x4xf32>
    %c368 = arith.constant 368 : index
    %c0_635 = arith.constant 0 : index
    %645 = tpu.strided_load %arg20[%c368, %c0_635] {strides = array<i32: 2, 1>} : memref<512x4xf32, #tpu.memory_space<vmem>>, vector<8x4xf32>
    tpu.strided_store %arg20[%c368, %c0_635], %644 {strides = array<i32: 2, 1>} : memref<512x4xf32, #tpu.memory_space<vmem>>, vector<8x4xf32>
    %646 = vector.extract_strided_slice %639 {offsets = [0, 12], sizes = [8, 4], strides = [1, 1]} : vector<8x16xf32> to vector<8x4xf32>
    %c369 = arith.constant 369 : index
    %c0_636 = arith.constant 0 : index
    %647 = tpu.strided_load %arg20[%c369, %c0_636] {strides = array<i32: 2, 1>} : memref<512x4xf32, #tpu.memory_space<vmem>>, vector<8x4xf32>
    tpu.strided_store %arg20[%c369, %c0_636], %646 {strides = array<i32: 2, 1>} : memref<512x4xf32, #tpu.memory_space<vmem>>, vector<8x4xf32>
    %648 = vector.extract_strided_slice %539 {offsets = [96, 0], sizes = [8, 16], strides = [1, 1]} : vector<128x16xf32> to vector<8x16xf32>
    %649 = vector.extract_strided_slice %648 {offsets = [0, 0], sizes = [8, 4], strides = [1, 1]} : vector<8x16xf32> to vector<8x4xf32>
    %c384 = arith.constant 384 : index
    %c0_637 = arith.constant 0 : index
    %650 = tpu.strided_load %arg20[%c384, %c0_637] {strides = array<i32: 2, 1>} : memref<512x4xf32, #tpu.memory_space<vmem>>, vector<8x4xf32>
    tpu.strided_store %arg20[%c384, %c0_637], %649 {strides = array<i32: 2, 1>} : memref<512x4xf32, #tpu.memory_space<vmem>>, vector<8x4xf32>
    %651 = vector.extract_strided_slice %648 {offsets = [0, 4], sizes = [8, 4], strides = [1, 1]} : vector<8x16xf32> to vector<8x4xf32>
    %c385 = arith.constant 385 : index
    %c0_638 = arith.constant 0 : index
    %652 = tpu.strided_load %arg20[%c385, %c0_638] {strides = array<i32: 2, 1>} : memref<512x4xf32, #tpu.memory_space<vmem>>, vector<8x4xf32>
    tpu.strided_store %arg20[%c385, %c0_638], %651 {strides = array<i32: 2, 1>} : memref<512x4xf32, #tpu.memory_space<vmem>>, vector<8x4xf32>
    %653 = vector.extract_strided_slice %648 {offsets = [0, 8], sizes = [8, 4], strides = [1, 1]} : vector<8x16xf32> to vector<8x4xf32>
    %c400 = arith.constant 400 : index
    %c0_639 = arith.constant 0 : index
    %654 = tpu.strided_load %arg20[%c400, %c0_639] {strides = array<i32: 2, 1>} : memref<512x4xf32, #tpu.memory_space<vmem>>, vector<8x4xf32>
    tpu.strided_store %arg20[%c400, %c0_639], %653 {strides = array<i32: 2, 1>} : memref<512x4xf32, #tpu.memory_space<vmem>>, vector<8x4xf32>
    %655 = vector.extract_strided_slice %648 {offsets = [0, 12], sizes = [8, 4], strides = [1, 1]} : vector<8x16xf32> to vector<8x4xf32>
    %c401 = arith.constant 401 : index
    %c0_640 = arith.constant 0 : index
    %656 = tpu.strided_load %arg20[%c401, %c0_640] {strides = array<i32: 2, 1>} : memref<512x4xf32, #tpu.memory_space<vmem>>, vector<8x4xf32>
    tpu.strided_store %arg20[%c401, %c0_640], %655 {strides = array<i32: 2, 1>} : memref<512x4xf32, #tpu.memory_space<vmem>>, vector<8x4xf32>
    %657 = vector.extract_strided_slice %539 {offsets = [104, 0], sizes = [8, 16], strides = [1, 1]} : vector<128x16xf32> to vector<8x16xf32>
    %658 = vector.extract_strided_slice %657 {offsets = [0, 0], sizes = [8, 4], strides = [1, 1]} : vector<8x16xf32> to vector<8x4xf32>
    %c416 = arith.constant 416 : index
    %c0_641 = arith.constant 0 : index
    %659 = tpu.strided_load %arg20[%c416, %c0_641] {strides = array<i32: 2, 1>} : memref<512x4xf32, #tpu.memory_space<vmem>>, vector<8x4xf32>
    tpu.strided_store %arg20[%c416, %c0_641], %658 {strides = array<i32: 2, 1>} : memref<512x4xf32, #tpu.memory_space<vmem>>, vector<8x4xf32>
    %660 = vector.extract_strided_slice %657 {offsets = [0, 4], sizes = [8, 4], strides = [1, 1]} : vector<8x16xf32> to vector<8x4xf32>
    %c417 = arith.constant 417 : index
    %c0_642 = arith.constant 0 : index
    %661 = tpu.strided_load %arg20[%c417, %c0_642] {strides = array<i32: 2, 1>} : memref<512x4xf32, #tpu.memory_space<vmem>>, vector<8x4xf32>
    tpu.strided_store %arg20[%c417, %c0_642], %660 {strides = array<i32: 2, 1>} : memref<512x4xf32, #tpu.memory_space<vmem>>, vector<8x4xf32>
    %662 = vector.extract_strided_slice %657 {offsets = [0, 8], sizes = [8, 4], strides = [1, 1]} : vector<8x16xf32> to vector<8x4xf32>
    %c432 = arith.constant 432 : index
    %c0_643 = arith.constant 0 : index
    %663 = tpu.strided_load %arg20[%c432, %c0_643] {strides = array<i32: 2, 1>} : memref<512x4xf32, #tpu.memory_space<vmem>>, vector<8x4xf32>
    tpu.strided_store %arg20[%c432, %c0_643], %662 {strides = array<i32: 2, 1>} : memref<512x4xf32, #tpu.memory_space<vmem>>, vector<8x4xf32>
    %664 = vector.extract_strided_slice %657 {offsets = [0, 12], sizes = [8, 4], strides = [1, 1]} : vector<8x16xf32> to vector<8x4xf32>
    %c433 = arith.constant 433 : index
    %c0_644 = arith.constant 0 : index
    %665 = tpu.strided_load %arg20[%c433, %c0_644] {strides = array<i32: 2, 1>} : memref<512x4xf32, #tpu.memory_space<vmem>>, vector<8x4xf32>
    tpu.strided_store %arg20[%c433, %c0_644], %664 {strides = array<i32: 2, 1>} : memref<512x4xf32, #tpu.memory_space<vmem>>, vector<8x4xf32>
    %666 = vector.extract_strided_slice %539 {offsets = [112, 0], sizes = [8, 16], strides = [1, 1]} : vector<128x16xf32> to vector<8x16xf32>
    %667 = vector.extract_strided_slice %666 {offsets = [0, 0], sizes = [8, 4], strides = [1, 1]} : vector<8x16xf32> to vector<8x4xf32>
    %c448 = arith.constant 448 : index
    %c0_645 = arith.constant 0 : index
    %668 = tpu.strided_load %arg20[%c448, %c0_645] {strides = array<i32: 2, 1>} : memref<512x4xf32, #tpu.memory_space<vmem>>, vector<8x4xf32>
    tpu.strided_store %arg20[%c448, %c0_645], %667 {strides = array<i32: 2, 1>} : memref<512x4xf32, #tpu.memory_space<vmem>>, vector<8x4xf32>
    %669 = vector.extract_strided_slice %666 {offsets = [0, 4], sizes = [8, 4], strides = [1, 1]} : vector<8x16xf32> to vector<8x4xf32>
    %c449 = arith.constant 449 : index
    %c0_646 = arith.constant 0 : index
    %670 = tpu.strided_load %arg20[%c449, %c0_646] {strides = array<i32: 2, 1>} : memref<512x4xf32, #tpu.memory_space<vmem>>, vector<8x4xf32>
    tpu.strided_store %arg20[%c449, %c0_646], %669 {strides = array<i32: 2, 1>} : memref<512x4xf32, #tpu.memory_space<vmem>>, vector<8x4xf32>
    %671 = vector.extract_strided_slice %666 {offsets = [0, 8], sizes = [8, 4], strides = [1, 1]} : vector<8x16xf32> to vector<8x4xf32>
    %c464 = arith.constant 464 : index
    %c0_647 = arith.constant 0 : index
    %672 = tpu.strided_load %arg20[%c464, %c0_647] {strides = array<i32: 2, 1>} : memref<512x4xf32, #tpu.memory_space<vmem>>, vector<8x4xf32>
    tpu.strided_store %arg20[%c464, %c0_647], %671 {strides = array<i32: 2, 1>} : memref<512x4xf32, #tpu.memory_space<vmem>>, vector<8x4xf32>
    %673 = vector.extract_strided_slice %666 {offsets = [0, 12], sizes = [8, 4], strides = [1, 1]} : vector<8x16xf32> to vector<8x4xf32>
    %c465 = arith.constant 465 : index
    %c0_648 = arith.constant 0 : index
    %674 = tpu.strided_load %arg20[%c465, %c0_648] {strides = array<i32: 2, 1>} : memref<512x4xf32, #tpu.memory_space<vmem>>, vector<8x4xf32>
    tpu.strided_store %arg20[%c465, %c0_648], %673 {strides = array<i32: 2, 1>} : memref<512x4xf32, #tpu.memory_space<vmem>>, vector<8x4xf32>
    %675 = vector.extract_strided_slice %539 {offsets = [120, 0], sizes = [8, 16], strides = [1, 1]} : vector<128x16xf32> to vector<8x16xf32>
    %676 = vector.extract_strided_slice %675 {offsets = [0, 0], sizes = [8, 4], strides = [1, 1]} : vector<8x16xf32> to vector<8x4xf32>
    %c480 = arith.constant 480 : index
    %c0_649 = arith.constant 0 : index
    %677 = tpu.strided_load %arg20[%c480, %c0_649] {strides = array<i32: 2, 1>} : memref<512x4xf32, #tpu.memory_space<vmem>>, vector<8x4xf32>
    tpu.strided_store %arg20[%c480, %c0_649], %676 {strides = array<i32: 2, 1>} : memref<512x4xf32, #tpu.memory_space<vmem>>, vector<8x4xf32>
    %678 = vector.extract_strided_slice %675 {offsets = [0, 4], sizes = [8, 4], strides = [1, 1]} : vector<8x16xf32> to vector<8x4xf32>
    %c481 = arith.constant 481 : index
    %c0_650 = arith.constant 0 : index
    %679 = tpu.strided_load %arg20[%c481, %c0_650] {strides = array<i32: 2, 1>} : memref<512x4xf32, #tpu.memory_space<vmem>>, vector<8x4xf32>
    tpu.strided_store %arg20[%c481, %c0_650], %678 {strides = array<i32: 2, 1>} : memref<512x4xf32, #tpu.memory_space<vmem>>, vector<8x4xf32>
    %680 = vector.extract_strided_slice %675 {offsets = [0, 8], sizes = [8, 4], strides = [1, 1]} : vector<8x16xf32> to vector<8x4xf32>
    %c496 = arith.constant 496 : index
    %c0_651 = arith.constant 0 : index
    %681 = tpu.strided_load %arg20[%c496, %c0_651] {strides = array<i32: 2, 1>} : memref<512x4xf32, #tpu.memory_space<vmem>>, vector<8x4xf32>
    tpu.strided_store %arg20[%c496, %c0_651], %680 {strides = array<i32: 2, 1>} : memref<512x4xf32, #tpu.memory_space<vmem>>, vector<8x4xf32>
    %682 = vector.extract_strided_slice %675 {offsets = [0, 12], sizes = [8, 4], strides = [1, 1]} : vector<8x16xf32> to vector<8x4xf32>
    %c497 = arith.constant 497 : index
    %c0_652 = arith.constant 0 : index
    %683 = tpu.strided_load %arg20[%c497, %c0_652] {strides = array<i32: 2, 1>} : memref<512x4xf32, #tpu.memory_space<vmem>>, vector<8x4xf32>
    tpu.strided_store %arg20[%c497, %c0_652], %682 {strides = array<i32: 2, 1>} : memref<512x4xf32, #tpu.memory_space<vmem>>, vector<8x4xf32>
    return
  }
  func.func @transform_0(%arg0: i32) -> (i32, i32) {
    %c0_i32 = arith.constant 0 : i32
    %c0_i32_0 = arith.constant 0 : i32
    %c0_i32_1 = arith.constant 0 : i32
    return %c0_i32, %c0_i32_0 : i32, i32
  }
  func.func @transform_1(%arg0: i32) -> (i32, i32, i32) {
    %c0_i32 = arith.constant 0 : i32
    %c0_i32_0 = arith.constant 0 : i32
    %c0_i32_1 = arith.constant 0 : i32
    %c0_i32_2 = arith.constant 0 : i32
    return %c0_i32, %c0_i32_0, %c0_i32_1 : i32, i32, i32
  }
  func.func @transform_2(%arg0: i32) -> (i32, i32) {
    %c0_i32 = arith.constant 0 : i32
    %c0_i32_0 = arith.constant 0 : i32
    %c0_i32_1 = arith.constant 0 : i32
    return %c0_i32, %c0_i32_0 : i32, i32
  }
  func.func @transform_3(%arg0: i32) -> (i32, i32, i32) {
    %c0_i32 = arith.constant 0 : i32
    %c0_i32_0 = arith.constant 0 : i32
    %c0_i32_1 = arith.constant 0 : i32
    %c0_i32_2 = arith.constant 0 : i32
    return %c0_i32, %c0_i32_0, %c0_i32_1 : i32, i32, i32
  }
  func.func @transform_4(%arg0: i32) -> (i32, i32) {
    %c0_i32 = arith.constant 0 : i32
    %c0_i32_0 = arith.constant 0 : i32
    %c0_i32_1 = arith.constant 0 : i32
    return %c0_i32, %c0_i32_0 : i32, i32
  }
  func.func @transform_5(%arg0: i32) -> (i32, i32, i32) {
    %c0_i32 = arith.constant 0 : i32
    %c0_i32_0 = arith.constant 0 : i32
    %c0_i32_1 = arith.constant 0 : i32
    %c0_i32_2 = arith.constant 0 : i32
    return %c0_i32, %c0_i32_0, %c0_i32_1 : i32, i32, i32
  }
  func.func @transform_6(%arg0: i32) -> (i32, i32) {
    %c0_i32 = arith.constant 0 : i32
    %c0_i32_0 = arith.constant 0 : i32
    %c0_i32_1 = arith.constant 0 : i32
    return %c0_i32, %c0_i32_0 : i32, i32
  }
  func.func @transform_7(%arg0: i32) -> (i32, i32) {
    %c0_i32 = arith.constant 0 : i32
    %c0_i32_0 = arith.constant 0 : i32
    %c0_i32_1 = arith.constant 0 : i32
    return %c0_i32, %c0_i32_0 : i32, i32
  }
  func.func @transform_8(%arg0: i32) -> (i32, i32) {
    %c0_i32 = arith.constant 0 : i32
    %c0_i32_0 = arith.constant 0 : i32
    %c0_i32_1 = arith.constant 0 : i32
    return %c0_i32, %c0_i32_0 : i32, i32
  }
  func.func @transform_9(%arg0: i32) -> (i32, i32) {
    %c0_i32 = arith.constant 0 : i32
    %c0_i32_0 = arith.constant 0 : i32
    %c0_i32_1 = arith.constant 0 : i32
    return %c0_i32, %c0_i32_0 : i32, i32
  }
  func.func @transform_10(%arg0: i32) -> (i32, i32) {
    %c0_i32 = arith.constant 0 : i32
    %c0_i32_0 = arith.constant 0 : i32
    %c0_i32_1 = arith.constant 0 : i32
    return %c0_i32, %c0_i32_0 : i32, i32
  }
  func.func @transform_11(%arg0: i32) -> (i32, i32) {
    %c0_i32 = arith.constant 0 : i32
    %c0_i32_0 = arith.constant 0 : i32
    %c0_i32_1 = arith.constant 0 : i32
    return %c0_i32, %c0_i32_0 : i32, i32
  }
  func.func @transform_12(%arg0: i32) -> (i32, i32) {
    %c0_i32 = arith.constant 0 : i32
    %c0_i32_0 = arith.constant 0 : i32
    %c0_i32_1 = arith.constant 0 : i32
    return %c0_i32, %c0_i32_0 : i32, i32
  }
  func.func @transform_13(%arg0: i32) -> (i32, i32) {
    %c0_i32 = arith.constant 0 : i32
    %c0_i32_0 = arith.constant 0 : i32
    %c0_i32_1 = arith.constant 0 : i32
    return %c0_i32, %c0_i32_0 : i32, i32
  }
  func.func @transform_14(%arg0: i32) -> (i32, i32) {
    %c0_i32 = arith.constant 0 : i32
    %c0_i32_0 = arith.constant 0 : i32
    %c0_i32_1 = arith.constant 0 : i32
    return %c0_i32, %c0_i32_0 : i32, i32
  }
  func.func @transform_15(%arg0: i32) -> (i32, i32) {
    %c0_i32 = arith.constant 0 : i32
    %c0_i32_0 = arith.constant 0 : i32
    %c0_i32_1 = arith.constant 0 : i32
    return %c0_i32, %c0_i32_0 : i32, i32
  }
  func.func @transform_16(%arg0: i32) -> (i32, i32) {
    %c0_i32 = arith.constant 0 : i32
    %c0_i32_0 = arith.constant 0 : i32
    %c0_i32_1 = arith.constant 0 : i32
    return %c0_i32, %c0_i32_0 : i32, i32
  }
  func.func @transform_17(%arg0: i32) -> (i32, i32) {
    %c0_i32 = arith.constant 0 : i32
    %c0_i32_0 = arith.constant 0 : i32
    %c0_i32_1 = arith.constant 0 : i32
    return %c0_i32, %c0_i32_0 : i32, i32
  }
  func.func @transform_18(%arg0: i32) -> (i32, i32) {
    %c0_i32 = arith.constant 0 : i32
    %c0_i32_0 = arith.constant 0 : i32
    %c0_i32_1 = arith.constant 0 : i32
    return %c0_i32, %c0_i32_0 : i32, i32
  }
  func.func @transform_19(%arg0: i32) -> (i32, i32) {
    %c0_i32 = arith.constant 0 : i32
    %c0_i32_0 = arith.constant 0 : i32
    %c0_i32_1 = arith.constant 0 : i32
    return %c0_i32, %c0_i32_0 : i32, i32
  }
  func.func @transform_20(%arg0: i32) -> (i32, i32) {
    %c0_i32 = arith.constant 0 : i32
    %c0_i32_0 = arith.constant 0 : i32
    %c0_i32_1 = arith.constant 0 : i32
    return %c0_i32, %c0_i32_0 : i32, i32
  }
  func.func @transform_21(%arg0: i32) -> (i32, i32) {
    %c0_i32 = arith.constant 0 : i32
    %c0_i32_0 = arith.constant 0 : i32
    %c0_i32_1 = arith.constant 0 : i32
    return %c0_i32, %c0_i32_0 : i32, i32
  }
  func.func @transform_22(%arg0: i32) -> (i32, i32) {
    %c0_i32 = arith.constant 0 : i32
    %c0_i32_0 = arith.constant 0 : i32
    %c0_i32_1 = arith.constant 0 : i32
    return %c0_i32, %c0_i32_0 : i32, i32
  }
}

</mosaic_0001>

<bundles_post_ra>
// kernel: tile.43
= control target key start
LH: loop header
LB: loop body
LE: loop exit
PB: predicated region body
PF: predicated region fallthrough
CT: control target
= control target key end

     0   :  { %s22_s0 = inlined_call_operand.vmem [shape: f32[32], index: 0, kind: input, shape index: {}]   ;;  %s23_s1 = inlined_call_operand.vmem [shape: f32[4,32], index: 1, kind: output, shape index: {}]  }
   0x1   :  { %v4_v0 = vld [vmem:[%s22_s0] ss:$0 sm:$0xff] }
   0x2   :  { %5 = vst [vmem:[%s23_s1] sm:$0xf] %v4_v0 }

// kernel: tile.44
= control target key start
LH: loop header
LB: loop body
LE: loop exit
PB: predicated region body
PF: predicated region fallthrough
CT: control target
= control target key end

     0   :  { %vm7_vm0 = vcmask 261120   ;;  %s37_s8 = smov 32   ;;  %s38_s9 = smov 64   ;;  %vm13_vm1 = vcmask 1048320   ;;  %vm19_vm2 = vcmask 785920   ;;  %vm25_vm3 = vcmask 523520   ;;  %s55_s0 = inlined_call_operand.vmem [shape: f32[4,32], index: 0, kind: input, shape index: {}]   ;;  %s56_s1 = inlined_call_operand.vmem [shape: f32[1,128], index: 1, kind: output, shape index: {}]  }
   0x1   :  { %v4_v0 = vld [vmem:[%s55_s0] sm:$0xf]  ;;  %s36_s0 = smov 96  }
   0x2   :  { %5 = vst [vmem:[#allocation1] sm:$0xf] %v4_v0 }
   0x9   :  { %v10_v1 = vld [vmem:[#allocation1 + $0x3] sm:$0x1]   ;;  %v22_v2 = vld [vmem:[#allocation1 + $0x1] sm:$0x1]   ;;  %v6_v3 = vld [vmem:[#allocation1] sm:$0x1]  }
   0xa   :  { %11 = vrot.lane.b32.xlu0 %v10_v1, %s36_s0  ;;  %23 = vrot.lane.b32.xlu1 %v22_v2, %s37_s8  ;;  %v16_v4 = vld [vmem:[#allocation1 + $0x2] sm:$0x1]   ;;  %8 = vst.msk [vmem:[#allocation0] sm:$0x1] %vm7_vm0, %v6_v3  }
   0xe   :  { %17 = vrot.lane.b32.xlu0 %v16_v4, %s38_s9 }
  0x7c   :  { %v12_v5 = vpop.permute.xlu0 %11   ;;  %v24_v6 = vpop.permute.xlu1 %23  }
  0x7d   :  { %14 = vst.msk [vmem:[#allocation0] sm:$0x1] %vm13_vm1, %v12_v5  }
  0x80   :  { %v18_v7 = vpop.permute.xlu0 %17  }
  0x81   :  { %20 = vst.msk [vmem:[#allocation0] sm:$0x1] %vm19_vm2, %v18_v7  }
  0x82   :  { %26 = vst.msk [vmem:[#allocation0] sm:$0x1] %vm25_vm3, %v24_v6  }
  0x89   :  { %v30_v8 = vld [vmem:[#allocation0] sm:$0x1] }
  0x8a   :  { %32 = vst [vmem:[%s56_s1] sm:$0x1] %v30_v8 }

// kernel: tile.53
= control target key start
LH: loop header
LB: loop body
LE: loop exit
PB: predicated region body
PF: predicated region fallthrough
CT: control target
= control target key end

     0   :  { %s22_s0 = inlined_call_operand.vmem [shape: f32[16], index: 0, kind: input, shape index: {}]   ;;  %s23_s1 = inlined_call_operand.vmem [shape: f32[4,16], index: 1, kind: output, shape index: {}]  }
   0x1   :  { %v4_v0 = vld [vmem:[%s22_s0] ss:$0 sm:$0xff] }
   0x2   :  { %5 = vst [vmem:[%s23_s1] sm:$0xf] %v4_v0 }

// kernel: tile.63
= control target key start
LH: loop header
LB: loop body
LE: loop exit
PB: predicated region body
PF: predicated region fallthrough
CT: control target
= control target key end

     0   :  { %s22_s0 = inlined_call_operand.vmem [shape: f32[8], index: 0, kind: input, shape index: {}]   ;;  %s23_s1 = inlined_call_operand.vmem [shape: f32[4,8], index: 1, kind: output, shape index: {}]  }
   0x1   :  { %v4_v0 = vld [vmem:[%s22_s0] ss:$0 sm:$0xff] }
   0x2   :  { %5 = vst [vmem:[%s23_s1] sm:$0xf] %v4_v0 }

// kernel: tile.54
= control target key start
LH: loop header
LB: loop body
LE: loop exit
PB: predicated region body
PF: predicated region fallthrough
CT: control target
= control target key end

     0   :  { %vm7_vm0 = vcmask 130048   ;;  %s37_s8 = smov 16   ;;  %s38_s9 = smov 32   ;;  %vm13_vm1 = vcmask 523648   ;;  %vm19_vm2 = vcmask 392448   ;;  %vm25_vm3 = vcmask 261248   ;;  %s55_s0 = inlined_call_operand.vmem [shape: f32[4,16], index: 0, kind: input, shape index: {}]   ;;  %s56_s1 = inlined_call_operand.vmem [shape: f32[1,64], index: 1, kind: output, shape index: {}]  }
   0x1   :  { %v4_v0 = vld [vmem:[%s55_s0] sm:$0xf]  ;;  %s36_s0 = smov 48  }
   0x2   :  { %5 = vst [vmem:[#allocation1] sm:$0xf] %v4_v0 }
   0x9   :  { %v10_v1 = vld [vmem:[#allocation1 + $0x3] sm:$0x1]   ;;  %v22_v2 = vld [vmem:[#allocation1 + $0x1] sm:$0x1]   ;;  %v6_v3 = vld [vmem:[#allocation1] sm:$0x1]  }
   0xa   :  { %11 = vrot.lane.b32.xlu0 %v10_v1, %s36_s0  ;;  %23 = vrot.lane.b32.xlu1 %v22_v2, %s37_s8  ;;  %v16_v4 = vld [vmem:[#allocation1 + $0x2] sm:$0x1]   ;;  %8 = vst.msk [vmem:[#allocation0] sm:$0x1] %vm7_vm0, %v6_v3  }
   0xe   :  { %17 = vrot.lane.b32.xlu0 %v16_v4, %s38_s9 }
  0x7c   :  { %v12_v5 = vpop.permute.xlu0 %11   ;;  %v24_v6 = vpop.permute.xlu1 %23  }
  0x7d   :  { %14 = vst.msk [vmem:[#allocation0] sm:$0x1] %vm13_vm1, %v12_v5  }
  0x80   :  { %v18_v7 = vpop.permute.xlu0 %17  }
  0x81   :  { %20 = vst.msk [vmem:[#allocation0] sm:$0x1] %vm19_vm2, %v18_v7  }
  0x82   :  { %26 = vst.msk [vmem:[#allocation0] sm:$0x1] %vm25_vm3, %v24_v6  }
  0x89   :  { %v30_v8 = vld [vmem:[#allocation0] sm:$0x1] }
  0x8a   :  { %32 = vst [vmem:[%s56_s1] sm:$0x1] %v30_v8 }

// kernel: tile.64
= control target key start
LH: loop header
LB: loop body
LE: loop exit
PB: predicated region body
PF: predicated region fallthrough
CT: control target
= control target key end

     0   :  { %vm7_vm0 = vcmask 64512   ;;  %s37_s8 = smov 8   ;;  %s38_s9 = smov 16   ;;  %vm13_vm1 = vcmask 261312   ;;  %vm19_vm2 = vcmask 195712   ;;  %vm25_vm3 = vcmask 130112   ;;  %s55_s0 = inlined_call_operand.vmem [shape: f32[4,8], index: 0, kind: input, shape index: {}]   ;;  %s56_s1 = inlined_call_operand.vmem [shape: f32[1,32], index: 1, kind: output, shape index: {}]  }
   0x1   :  { %v4_v0 = vld [vmem:[%s55_s0] sm:$0xf]  ;;  %s36_s0 = smov 24  }
   0x2   :  { %5 = vst [vmem:[#allocation1] sm:$0xf] %v4_v0 }
   0x9   :  { %v10_v1 = vld [vmem:[#allocation1 + $0x3] sm:$0x1]   ;;  %v22_v2 = vld [vmem:[#allocation1 + $0x1] sm:$0x1]   ;;  %v6_v3 = vld [vmem:[#allocation1] sm:$0x1]  }
   0xa   :  { %11 = vrot.lane.b32.xlu0 %v10_v1, %s36_s0  ;;  %23 = vrot.lane.b32.xlu1 %v22_v2, %s37_s8  ;;  %v16_v4 = vld [vmem:[#allocation1 + $0x2] sm:$0x1]   ;;  %8 = vst.msk [vmem:[#allocation0] sm:$0x1] %vm7_vm0, %v6_v3  }
   0xe   :  { %17 = vrot.lane.b32.xlu0 %v16_v4, %s38_s9 }
  0x7c   :  { %v12_v5 = vpop.permute.xlu0 %11   ;;  %v24_v6 = vpop.permute.xlu1 %23  }
  0x7d   :  { %14 = vst.msk [vmem:[#allocation0] sm:$0x1] %vm13_vm1, %v12_v5  }
  0x80   :  { %v18_v7 = vpop.permute.xlu0 %17  }
  0x81   :  { %20 = vst.msk [vmem:[#allocation0] sm:$0x1] %vm19_vm2, %v18_v7  }
  0x82   :  { %26 = vst.msk [vmem:[#allocation0] sm:$0x1] %vm25_vm3, %v24_v6  }
  0x89   :  { %v30_v8 = vld [vmem:[#allocation0] sm:$0x1] }
  0x8a   :  { %32 = vst [vmem:[%s56_s1] sm:$0x1] %v30_v8 }

// kernel: mul.80
= control target key start
LH: loop header
LB: loop body
LE: loop exit
PB: predicated region body
PF: predicated region fallthrough
CT: control target
= control target key end

     0   :  { %vm7_vm0 = vcmask 261120   ;;  %s37_s8 = smov 32   ;;  %s38_s9 = smov 64   ;;  %vm13_vm1 = vcmask 1048320   ;;  %vm19_vm2 = vcmask 785920   ;;  %vm25_vm3 = vcmask 523520   ;;  %s55_s0 = inlined_call_operand.vmem [shape: f32[4,32], index: 0, kind: input, shape index: {}]   ;;  %s56_s1 = inlined_call_operand.vmem [shape: f32[128], index: 1, kind: output, shape index: {}]  }
   0x1   :  { %v4_v0 = vld [vmem:[%s55_s0] sm:$0xf]  ;;  %s36_s0 = smov 96  }
   0x2   :  { %5 = vst [vmem:[#allocation1] sm:$0xf] %v4_v0 }
   0x9   :  { %v10_v1 = vld [vmem:[#allocation1 + $0x3] sm:$0x1]   ;;  %v22_v2 = vld [vmem:[#allocation1 + $0x1] sm:$0x1]   ;;  %v6_v3 = vld [vmem:[#allocation1] sm:$0x1]  }
   0xa   :  { %11 = vrot.lane.b32.xlu0 %v10_v1, %s36_s0  ;;  %23 = vrot.lane.b32.xlu1 %v22_v2, %s37_s8  ;;  %v16_v4 = vld [vmem:[#allocation1 + $0x2] sm:$0x1]   ;;  %8 = vst.msk [vmem:[#allocation0] sm:$0x1] %vm7_vm0, %v6_v3  }
   0xe   :  { %17 = vrot.lane.b32.xlu0 %v16_v4, %s38_s9 }
  0x7c   :  { %v12_v5 = vpop.permute.xlu0 %11   ;;  %v24_v6 = vpop.permute.xlu1 %23  }
  0x7d   :  { %14 = vst.msk [vmem:[#allocation0] sm:$0x1] %vm13_vm1, %v12_v5  }
  0x80   :  { %v18_v7 = vpop.permute.xlu0 %17  }
  0x81   :  { %20 = vst.msk [vmem:[#allocation0] sm:$0x1] %vm19_vm2, %v18_v7  }
  0x82   :  { %26 = vst.msk [vmem:[#allocation0] sm:$0x1] %vm25_vm3, %v24_v6  }
  0x89   :  { %v30_v8 = vld [vmem:[#allocation0] sm:$0x1] }
  0x8a   :  { %32 = vst [vmem:[%s56_s1] sm:$0x1] %v30_v8 }

// kernel: mul.87
= control target key start
LH: loop header
LB: loop body
LE: loop exit
PB: predicated region body
PF: predicated region fallthrough
CT: control target
= control target key end

     0   :  { %vm7_vm0 = vcmask 130048   ;;  %s37_s8 = smov 16   ;;  %s38_s9 = smov 32   ;;  %vm13_vm1 = vcmask 523648   ;;  %vm19_vm2 = vcmask 392448   ;;  %vm25_vm3 = vcmask 261248   ;;  %s55_s0 = inlined_call_operand.vmem [shape: f32[4,16], index: 0, kind: input, shape index: {}]   ;;  %s56_s1 = inlined_call_operand.vmem [shape: f32[64], index: 1, kind: output, shape index: {}]  }
   0x1   :  { %v4_v0 = vld [vmem:[%s55_s0] sm:$0xf]  ;;  %s36_s0 = smov 48  }
   0x2   :  { %5 = vst [vmem:[#allocation1] sm:$0xf] %v4_v0 }
   0x9   :  { %v10_v1 = vld [vmem:[#allocation1 + $0x3] sm:$0x1]   ;;  %v22_v2 = vld [vmem:[#allocation1 + $0x1] sm:$0x1]   ;;  %v6_v3 = vld [vmem:[#allocation1] sm:$0x1]  }
   0xa   :  { %11 = vrot.lane.b32.xlu0 %v10_v1, %s36_s0  ;;  %23 = vrot.lane.b32.xlu1 %v22_v2, %s37_s8  ;;  %v16_v4 = vld [vmem:[#allocation1 + $0x2] sm:$0x1]   ;;  %8 = vst.msk [vmem:[#allocation0] sm:$0x1] %vm7_vm0, %v6_v3  }
   0xe   :  { %17 = vrot.lane.b32.xlu0 %v16_v4, %s38_s9 }
  0x7c   :  { %v12_v5 = vpop.permute.xlu0 %11   ;;  %v24_v6 = vpop.permute.xlu1 %23  }
  0x7d   :  { %14 = vst.msk [vmem:[#allocation0] sm:$0x1] %vm13_vm1, %v12_v5  }
  0x80   :  { %v18_v7 = vpop.permute.xlu0 %17  }
  0x81   :  { %20 = vst.msk [vmem:[#allocation0] sm:$0x1] %vm19_vm2, %v18_v7  }
  0x82   :  { %26 = vst.msk [vmem:[#allocation0] sm:$0x1] %vm25_vm3, %v24_v6  }
  0x89   :  { %v30_v8 = vld [vmem:[#allocation0] sm:$0x1] }
  0x8a   :  { %32 = vst [vmem:[%s56_s1] sm:$0x1] %v30_v8 }

// kernel: mul.94
= control target key start
LH: loop header
LB: loop body
LE: loop exit
PB: predicated region body
PF: predicated region fallthrough
CT: control target
= control target key end

     0   :  { %vm7_vm0 = vcmask 64512   ;;  %s37_s8 = smov 8   ;;  %s38_s9 = smov 16   ;;  %vm13_vm1 = vcmask 261312   ;;  %vm19_vm2 = vcmask 195712   ;;  %vm25_vm3 = vcmask 130112   ;;  %s55_s0 = inlined_call_operand.vmem [shape: f32[4,8], index: 0, kind: input, shape index: {}]   ;;  %s56_s1 = inlined_call_operand.vmem [shape: f32[32], index: 1, kind: output, shape index: {}]  }
   0x1   :  { %v4_v0 = vld [vmem:[%s55_s0] sm:$0xf]  ;;  %s36_s0 = smov 24  }
   0x2   :  { %5 = vst [vmem:[#allocation1] sm:$0xf] %v4_v0 }
   0x9   :  { %v10_v1 = vld [vmem:[#allocation1 + $0x3] sm:$0x1]   ;;  %v22_v2 = vld [vmem:[#allocation1 + $0x1] sm:$0x1]   ;;  %v6_v3 = vld [vmem:[#allocation1] sm:$0x1]  }
   0xa   :  { %11 = vrot.lane.b32.xlu0 %v10_v1, %s36_s0  ;;  %23 = vrot.lane.b32.xlu1 %v22_v2, %s37_s8  ;;  %v16_v4 = vld [vmem:[#allocation1 + $0x2] sm:$0x1]   ;;  %8 = vst.msk [vmem:[#allocation0] sm:$0x1] %vm7_vm0, %v6_v3  }
   0xe   :  { %17 = vrot.lane.b32.xlu0 %v16_v4, %s38_s9 }
  0x7c   :  { %v12_v5 = vpop.permute.xlu0 %11   ;;  %v24_v6 = vpop.permute.xlu1 %23  }
  0x7d   :  { %14 = vst.msk [vmem:[#allocation0] sm:$0x1] %vm13_vm1, %v12_v5  }
  0x80   :  { %v18_v7 = vpop.permute.xlu0 %17  }
  0x81   :  { %20 = vst.msk [vmem:[#allocation0] sm:$0x1] %vm19_vm2, %v18_v7  }
  0x82   :  { %26 = vst.msk [vmem:[#allocation0] sm:$0x1] %vm25_vm3, %v24_v6  }
  0x89   :  { %v30_v8 = vld [vmem:[#allocation0] sm:$0x1] }
  0x8a   :  { %32 = vst [vmem:[%s56_s1] sm:$0x1] %v30_v8 }

// kernel: tile.68
= control target key start
LH: loop header
LB: loop body
LE: loop exit
PB: predicated region body
PF: predicated region fallthrough
CT: control target
= control target key end

     0   :  { %s22_s0 = inlined_call_operand.vmem [shape: f32[4], index: 0, kind: input, shape index: {}]   ;;  %s23_s1 = inlined_call_operand.vmem [shape: f32[4,4], index: 1, kind: output, shape index: {}]  }
   0x1   :  { %v4_v0 = vld [vmem:[%s22_s0] ss:$0 sm:$0xff] }
   0x2   :  { %5 = vst [vmem:[%s23_s1] sm:$0xf] %v4_v0 }

// kernel: tile.69
= control target key start
LH: loop header
LB: loop body
LE: loop exit
PB: predicated region body
PF: predicated region fallthrough
CT: control target
= control target key end

     0   :  { %vm7_vm0 = vcmask 31744   ;;  %s37_s8 = smov 4   ;;  %s38_s9 = smov 8   ;;  %vm13_vm1 = vcmask 130144   ;;  %vm19_vm2 = vcmask 97344   ;;  %vm25_vm3 = vcmask 64544   ;;  %s55_s0 = inlined_call_operand.vmem [shape: f32[4,4], index: 0, kind: input, shape index: {}]   ;;  %s56_s1 = inlined_call_operand.vmem [shape: f32[1,16], index: 1, kind: output, shape index: {}]  }
   0x1   :  { %v4_v0 = vld [vmem:[%s55_s0] sm:$0xf]  ;;  %s36_s0 = smov 12  }
   0x2   :  { %5 = vst [vmem:[#allocation1] sm:$0xf] %v4_v0 }
   0x9   :  { %v10_v1 = vld [vmem:[#allocation1 + $0x3] sm:$0x1]   ;;  %v22_v2 = vld [vmem:[#allocation1 + $0x1] sm:$0x1]   ;;  %v6_v3 = vld [vmem:[#allocation1] sm:$0x1]  }
   0xa   :  { %11 = vrot.lane.b32.xlu0 %v10_v1, %s36_s0  ;;  %23 = vrot.lane.b32.xlu1 %v22_v2, %s37_s8  ;;  %v16_v4 = vld [vmem:[#allocation1 + $0x2] sm:$0x1]   ;;  %8 = vst.msk [vmem:[#allocation0] sm:$0x1] %vm7_vm0, %v6_v3  }
   0xe   :  { %17 = vrot.lane.b32.xlu0 %v16_v4, %s38_s9 }
  0x7c   :  { %v12_v5 = vpop.permute.xlu0 %11   ;;  %v24_v6 = vpop.permute.xlu1 %23  }
  0x7d   :  { %14 = vst.msk [vmem:[#allocation0] sm:$0x1] %vm13_vm1, %v12_v5  }
  0x80   :  { %v18_v7 = vpop.permute.xlu0 %17  }
  0x81   :  { %20 = vst.msk [vmem:[#allocation0] sm:$0x1] %vm19_vm2, %v18_v7  }
  0x82   :  { %26 = vst.msk [vmem:[#allocation0] sm:$0x1] %vm25_vm3, %v24_v6  }
  0x89   :  { %v30_v8 = vld [vmem:[#allocation0] sm:$0x1] }
  0x8a   :  { %32 = vst [vmem:[%s56_s1] sm:$0x1] %v30_v8 }

// kernel: cresblock_forward_pallas.1
= control target key start
LH: loop header
LB: loop body
LE: loop exit
PB: predicated region body
PF: predicated region fallthrough
CT: control target
= control target key end

     0   :  { %s16799_s0 = inlined_call_operand.vmem [shape: f32[648,4], index: 0, kind: input, shape index: {}]   ;;  %s16800_s1 = inlined_call_operand.vmem [shape: f32[9,4,8], index: 1, kind: input, shape index: {}]   ;;  %s16801_s2 = inlined_call_operand.vmem [shape: f32[1,8], index: 2, kind: input, shape index: {}]   ;;  %s16802_s3 = inlined_call_operand.vmem [shape: f32[9,8,16], index: 3, kind: input, shape index: {}]   ;;  %s16803_s4 = inlined_call_operand.vmem [shape: f32[1,16], index: 4, kind: input, shape index: {}]   ;;  %s16804_s5 = inlined_call_operand.vmem [shape: f32[9,16,32], index: 5, kind: input, shape index: {}]   ;;  %s16805_s6 = inlined_call_operand.vmem [shape: f32[1,32], index: 6, kind: input, shape index: {}]   ;;  %s16806_s7 = inlined_call_operand.vmem [shape: f32[32,8], index: 7, kind: input, shape index: {}]   ;;  %s16807_s8 = inlined_call_operand.vmem [shape: f32[1,8], index: 8, kind: input, shape index: {}]   ;;  %s16808_s9 = inlined_call_operand.vmem [shape: f32[40,128], index: 9, kind: input, shape index: {}]   ;;  %s16809_s10 = inlined_call_operand.vmem [shape: f32[1,128], index: 10, kind: input, shape index: {}]   ;;  %s16810_s11 = inlined_call_operand.vmem [shape: f32[48,32], index: 11, kind: input, shape index: {}]   ;;  %s16811_s12 = inlined_call_operand.vmem [shape: f32[1,32], index: 12, kind: input, shape index: {}]   ;;  %s16812_s13 = inlined_call_operand.vmem [shape: f32[32,64], index: 13, kind: input, shape index: {}]   ;;  %s16813_s14 = inlined_call_operand.vmem [shape: f32[1,64], index: 14, kind: input, shape index: {}]   ;;  %s16814_s15 = inlined_call_operand.vmem [shape: f32[24,32], index: 15, kind: input, shape index: {}]   ;;  %s16815_s16 = inlined_call_operand.vmem [shape: f32[1,32], index: 16, kind: input, shape index: {}]   ;;  %s16816_s17 = inlined_call_operand.vmem [shape: f32[32,16], index: 17, kind: input, shape index: {}]   ;;  %s16817_s18 = inlined_call_operand.vmem [shape: f32[1,16], index: 18, kind: input, shape index: {}]   ;;  %s16818_s19 = inlined_call_operand.vmem [shape: f32[512,4], index: 19, kind: output, shape index: {0}]   ;;  %s16819_s20 = inlined_call_operand.hbm [shape: f32[8,40], index: 20, kind: output, shape index: {1}]   ;;  %s16820_s21 = inlined_call_operand.hbm [shape: f32[32,48], index: 21, kind: output, shape index: {2}]   ;;  %s16821_s22 = inlined_call_operand.hbm [shape: f32[128,24], index: 22, kind: output, shape index: {3}]  }
   0x1   :  { %16827 = sst [smem:[#allocation16_spill]] %s16799_s0 }
   0x2   :  { %16828 = sst [smem:[#allocation17_spill]] %s16800_s1 }
   0x3   :  { %16829 = sst [smem:[#allocation18_spill]] %s16801_s2 }
   0x4   :  { %16830 = sst [smem:[#allocation19_spill]] %s16802_s3 }
   0x5   :  { %16831 = sst [smem:[#allocation20_spill]] %s16803_s4 }
   0x6   :  { %16832 = sst [smem:[#allocation21_spill]] %s16804_s5 }
   0x7   :  { %16833 = sst [smem:[#allocation22_spill]] %s16805_s6 }
   0x8   :  { %28 = vsyncpa [#allocation10], 0  ;;  %s16834_s29 = sld [smem:[#allocation17_spill]]  ;;  %vm227_vm0 = vcmask 1043456   ;;  %vm175_vm1 = vcmask 31744   ;;  %v13138_v1 = vmov 0.0  }
   0x9   :  { %11445 = vmatprep.subr.mxu0 %v13138_v1  ;;  %11498 = vmatprep.subr.mxu1 %v13138_v1  ;;  %s16835_s1 = sld [smem:[#allocation16_spill]]  ;;  %vm13139_vm2 = vmmov 0  }
   0xa   :  { %11447 = vmatprep.mubr.msk.f32.mxu0 %vm13139_vm2, %v13138_v1  ;;  %11500 = vmatprep.mubr.msk.f32.mxu1 %vm13139_vm2, %v13138_v1 }
   0xe   :  { %v10009_v0 = vld [vmem:[%s16834_s29 + $0x4] sm:$0xf]  ;;  %v138_v2 = vld [vmem:[%s16834_s29] sm:$0xf]  ;;  %v10063_v5 = vld [vmem:[%s16834_s29 + $0x8] sm:$0xf] }
   0xf   :  { %v9992_v3 = vld [vmem:[%s16835_s1 + $0x1] ss:$2 sm:$0xff]  ;;  %v105_v4 = vld [vmem:[%s16835_s1] ss:$2 sm:$0xff]  ;;  %11446 = vmatpush3.msk.msra.mxu0 %vm227_vm0, %v10009_v0  ;;  %11499 = vmatpush3.msk.msra.mxu1 %vm227_vm0, %v138_v2  ;;  %v9993_v7 = vld [vmem:[%s16835_s1 + $0x11] ss:$2 sm:$0xff] }
  0x10   :  { %11448 = vmatmul.mubr.msk.f32.vlgmr.msra.gmra.mrb[0].mxu0 %vm175_vm1, %v9992_v3  ;;  %11501 = vmatmul.mubr.msk.f32.vlgmr.msra.gmra.mrb[0].mxu1 %vm175_vm1, %v105_v4  ;;  %v10099_v6 = vld [vmem:[%s16834_s29 + $0xc] sm:$0xf]  ;;  %v9976_v8 = vld [vmem:[%s16835_s1 + $0x10] ss:$2 sm:$0xff]  ;;  %v9995_v11 = vld [vmem:[%s16835_s1 + $0x31] ss:$2 sm:$0xff] }
  0x11   :  { %11551 = vmatprep.subr.mxu0 %v13138_v1  ;;  %11604 = vmatprep.subr.mxu1 %v13138_v1  ;;  %v9994_v9 = vld [vmem:[%s16835_s1 + $0x21] ss:$2 sm:$0xff]  ;;  %v9977_v10 = vld [vmem:[%s16835_s1 + $0x20] ss:$2 sm:$0xff]  ;;  %v9978_v12 = vld [vmem:[%s16835_s1 + $0x30] ss:$2 sm:$0xff] }
  0x12   :  { %11552 = vmatpush3.msk.msra.mxu0 %vm227_vm0, %v10063_v5  ;;  %11450 = vmatprep.mubr.msk.f32.mxu0 %vm13139_vm2, %v13138_v1  ;;  %v9996_v13 = vld [vmem:[%s16835_s1 + $0x41] ss:$2 sm:$0xff]  ;;  %v9979_v14 = vld [vmem:[%s16835_s1 + $0x40] ss:$2 sm:$0xff]  ;;  %v9997_v15 = vld [vmem:[%s16835_s1 + $0x51] ss:$2 sm:$0xff] }
  0x13   :  { %11503 = vmatprep.mubr.msk.f32.mxu1 %vm13139_vm2, %v13138_v1  ;;  %11605 = vmatpush3.msk.msra.mxu1 %vm227_vm0, %v10099_v6  ;;  %v9980_v16 = vld [vmem:[%s16835_s1 + $0x50] ss:$2 sm:$0xff]  ;;  %v9998_v17 = vld [vmem:[%s16835_s1 + $0x61] ss:$2 sm:$0xff]  ;;  %v9981_v18 = vld [vmem:[%s16835_s1 + $0x60] ss:$2 sm:$0xff] }
  0x14   :  { %11451 = vmatmul.mubr.msk.f32.gmra.mrb[2].mxu0 %vm175_vm1, %v9993_v7  ;;  %11504 = vmatmul.mubr.msk.f32.gmra.mrb[2].mxu1 %vm175_vm1, %v9976_v8  ;;  %v9999_v19 = vld [vmem:[%s16835_s1 + $0x71] ss:$2 sm:$0xff]  ;;  %v9982_v20 = vld [vmem:[%s16835_s1 + $0x70] ss:$2 sm:$0xff] }
  0x15   :  { %11453 = vmatprep.mubr.msk.f32.mxu0 %vm13139_vm2, %v13138_v1  ;;  %11506 = vmatprep.mubr.msk.f32.mxu1 %vm13139_vm2, %v13138_v1 }
  0x16   :  { %11657 = vmatprep.subr.mxu0 %v13138_v1  ;;  %11710 = vmatprep.subr.mxu1 %v13138_v1 }
  0x18   :  { %11454 = vmatmul.mubr.msk.f32.gmra.mrb[4].mxu0 %vm175_vm1, %v9994_v9  ;;  %11507 = vmatmul.mubr.msk.f32.gmra.mrb[4].mxu1 %vm175_vm1, %v9977_v10 }
  0x19   :  { %11456 = vmatprep.mubr.msk.f32.mxu0 %vm13139_vm2, %v13138_v1  ;;  %11509 = vmatprep.mubr.msk.f32.mxu1 %vm13139_vm2, %v13138_v1 }
  0x1c   :  { %11457 = vmatmul.mubr.msk.f32.gmra.mrb[6].mxu0 %vm175_vm1, %v9995_v11  ;;  %11510 = vmatmul.mubr.msk.f32.gmra.mrb[6].mxu1 %vm175_vm1, %v9978_v12 }
  0x1d   :  { %11459 = vmatprep.mubr.msk.f32.mxu0 %vm13139_vm2, %v13138_v1  ;;  %11512 = vmatprep.mubr.msk.f32.mxu1 %vm13139_vm2, %v13138_v1 }
  0x20   :  { %11460 = vmatmul.mubr.msk.f32.gmra.mrb[8].mxu0 %vm175_vm1, %v9996_v13  ;;  %11513 = vmatmul.mubr.msk.f32.gmra.mrb[8].mxu1 %vm175_vm1, %v9979_v14 }
  0x21   :  { %11462 = vmatprep.mubr.msk.f32.mxu0 %vm13139_vm2, %v13138_v1  ;;  %11515 = vmatprep.mubr.msk.f32.mxu1 %vm13139_vm2, %v13138_v1 }
  0x24   :  { %11463 = vmatmul.mubr.msk.f32.gmra.mrb[10].mxu0 %vm175_vm1, %v9997_v15  ;;  %11516 = vmatmul.mubr.msk.f32.gmra.mrb[10].mxu1 %vm175_vm1, %v9980_v16 }
  0x25   :  { %11465 = vmatprep.mubr.msk.f32.mxu0 %vm13139_vm2, %v13138_v1  ;;  %11518 = vmatprep.mubr.msk.f32.mxu1 %vm13139_vm2, %v13138_v1 }
  0x28   :  { %11466 = vmatmul.mubr.msk.f32.gmra.mrb[12].mxu0 %vm175_vm1, %v9998_v17  ;;  %11519 = vmatmul.mubr.msk.f32.gmra.mrb[12].mxu1 %vm175_vm1, %v9981_v18 }
  0x29   :  { %11468 = vmatprep.mubr.msk.f32.mxu0 %vm13139_vm2, %v13138_v1  ;;  %11521 = vmatprep.mubr.msk.f32.mxu1 %vm13139_vm2, %v13138_v1 }
  0x2a   :  { %29 = vsyncpa [#allocation12], 0  ;;  %v10000_v21 = vld [vmem:[%s16835_s1 + $0x81] ss:$2 sm:$0xff]  ;;  %v9983_v22 = vld [vmem:[%s16835_s1 + $0x80] ss:$2 sm:$0xff] }
  0x2b   :  { %v10001_v23 = vld [vmem:[%s16835_s1 + $0x91] ss:$2 sm:$0xff]  ;;  %v9984_v24 = vld [vmem:[%s16835_s1 + $0x90] ss:$2 sm:$0xff]  ;;  %v10002_v25 = vld [vmem:[%s16835_s1 + $0xa1] ss:$2 sm:$0xff] }
  0x2c   :  { %11469 = vmatmul.mubr.msk.f32.gmra.mrb[14].mxu0 %vm175_vm1, %v9999_v19  ;;  %11522 = vmatmul.mubr.msk.f32.gmra.mrb[14].mxu1 %vm175_vm1, %v9982_v20  ;;  %v9985_v26 = vld [vmem:[%s16835_s1 + $0xa0] ss:$2 sm:$0xff]  ;;  %v10003_v27 = vld [vmem:[%s16835_s1 + $0xb1] ss:$2 sm:$0xff]  ;;  %v9986_v28 = vld [vmem:[%s16835_s1 + $0xb0] ss:$2 sm:$0xff] }
  0x2d   :  { %11471 = vmatprep.mubr.msk.f32.mxu0 %vm13139_vm2, %v13138_v1  ;;  %11524 = vmatprep.mubr.msk.f32.mxu1 %vm13139_vm2, %v13138_v1  ;;  %v10004_v29 = vld [vmem:[%s16835_s1 + $0xc1] ss:$2 sm:$0xff]  ;;  %v9987_v30 = vld [vmem:[%s16835_s1 + $0xc0] ss:$2 sm:$0xff]  ;;  %v10005_v31 = vld [vmem:[%s16835_s1 + $0xd1] ss:$2 sm:$0xff] }
  0x2e   :  { %v9988_v32 = vld [vmem:[%s16835_s1 + $0xd0] ss:$2 sm:$0xff]  ;;  %v10006_v33 = vld [vmem:[%s16835_s1 + $0xe1] ss:$2 sm:$0xff]  ;;  %v9989_v34 = vld [vmem:[%s16835_s1 + $0xe0] ss:$2 sm:$0xff] }
  0x2f   :  { %v10007_v35 = vld [vmem:[%s16835_s1 + $0xf1] ss:$2 sm:$0xff]  ;;  %v9990_v36 = vld [vmem:[%s16835_s1 + $0xf0] ss:$2 sm:$0xff]  ;;  %vm68_vm3 = vcmask 64512   ;;  %s16836_s23 = sld [smem:[#allocation18_spill]] }
  0x30   :  { %11472 = vmatmul.mubr.msk.f32.gmra.mrb[16].mxu0 %vm175_vm1, %v10000_v21  ;;  %11525 = vmatmul.mubr.msk.f32.gmra.mrb[16].mxu1 %vm175_vm1, %v9983_v22  ;;  %v10008_v37 = vld [vmem:[%s16835_s1 + $0x101] ss:$2 sm:$0x3f]  ;;  %v9991_v38 = vld [vmem:[%s16835_s1 + $0x100] ss:$2 sm:$0x3f] }
  0x31   :  { %11474 = vmatprep.mubr.msk.f32.mxu0 %vm13139_vm2, %v13138_v1  ;;  %11527 = vmatprep.mubr.msk.f32.mxu1 %vm13139_vm2, %v13138_v1  ;;  %v10046_v39 = vld [vmem:[%s16835_s1 + $0x2] ss:$2 sm:$0xff]  ;;  %v10082_v40 = vld [vmem:[%s16835_s1 + $0x12] ss:$2 sm:$0xff]  ;;  %v10118_v12 = vld [vmem:[%s16835_s1 + $0x13] ss:$2 sm:$0xff] }
  0x32   :  { %v10135_v41 = vld [vmem:[%s16834_s29 + $0x10] sm:$0xf]  ;;  %v10171_v42 = vld [vmem:[%s16834_s29 + $0x14] sm:$0xf]  ;;  %v10207_v14 = vld [vmem:[%s16834_s29 + $0x18] sm:$0xf] }
  0x33   :  { %v10047_v43 = vld [vmem:[%s16835_s1 + $0x12] ss:$2 sm:$0xff]  ;;  %v10083_v44 = vld [vmem:[%s16835_s1 + $0x22] ss:$2 sm:$0xff]  ;;  %v10119_v16 = vld [vmem:[%s16835_s1 + $0x23] ss:$2 sm:$0xff] }
  0x34   :  { %11475 = vmatmul.mubr.msk.f32.gmra.mrb[18].mxu0 %vm175_vm1, %v10001_v23  ;;  %11528 = vmatmul.mubr.msk.f32.gmra.mrb[18].mxu1 %vm175_vm1, %v9984_v24  ;;  %v10048_v45 = vld [vmem:[%s16835_s1 + $0x22] ss:$2 sm:$0xff]  ;;  %v10084_v46 = vld [vmem:[%s16835_s1 + $0x32] ss:$2 sm:$0xff]  ;;  %v10120_v18 = vld [vmem:[%s16835_s1 + $0x33] ss:$2 sm:$0xff] }
  0x35   :  { %11477 = vmatprep.mubr.msk.f32.mxu0 %vm13139_vm2, %v13138_v1  ;;  %11530 = vmatprep.mubr.msk.f32.mxu1 %vm13139_vm2, %v13138_v1  ;;  %v10049_v47 = vld [vmem:[%s16835_s1 + $0x32] ss:$2 sm:$0xff]  ;;  %v10085_v48 = vld [vmem:[%s16835_s1 + $0x42] ss:$2 sm:$0xff]  ;;  %v10121_v20 = vld [vmem:[%s16835_s1 + $0x43] ss:$2 sm:$0xff] }
  0x36   :  { %v10050_v49 = vld [vmem:[%s16835_s1 + $0x42] ss:$2 sm:$0xff]  ;;  %v10086_v50 = vld [vmem:[%s16835_s1 + $0x52] ss:$2 sm:$0xff]  ;;  %v10122_v22 = vld [vmem:[%s16835_s1 + $0x53] ss:$2 sm:$0xff] }
  0x37   :  { %v10051_v51 = vld [vmem:[%s16835_s1 + $0x52] ss:$2 sm:$0xff]  ;;  %v10087_v52 = vld [vmem:[%s16835_s1 + $0x62] ss:$2 sm:$0xff]  ;;  %v10123_v24 = vld [vmem:[%s16835_s1 + $0x63] ss:$2 sm:$0xff] }
  0x38   :  { %11478 = vmatmul.mubr.msk.f32.gmra.mrb[20].mxu0 %vm175_vm1, %v10002_v25  ;;  %11531 = vmatmul.mubr.msk.f32.gmra.mrb[20].mxu1 %vm175_vm1, %v9985_v26  ;;  %v10052_v53 = vld [vmem:[%s16835_s1 + $0x62] ss:$2 sm:$0xff]  ;;  %v10088_v54 = vld [vmem:[%s16835_s1 + $0x72] ss:$2 sm:$0xff]  ;;  %v10124_v26 = vld [vmem:[%s16835_s1 + $0x73] ss:$2 sm:$0xff] }
  0x39   :  { %11480 = vmatprep.mubr.msk.f32.mxu0 %vm13139_vm2, %v13138_v1  ;;  %11533 = vmatprep.mubr.msk.f32.mxu1 %vm13139_vm2, %v13138_v1  ;;  %v10053_v55 = vld [vmem:[%s16835_s1 + $0x72] ss:$2 sm:$0xff]  ;;  %v10089_v56 = vld [vmem:[%s16835_s1 + $0x82] ss:$2 sm:$0xff]  ;;  %70 = vst.msk [vmem:[#allocation2 + $0x8] sm:$0xff] %vm68_vm3, %v13138_v1  ;;  %71 = vst.msk [vmem:[#allocation2 + $0x10] sm:$0xff] %vm68_vm3, %v13138_v1 }
  0x3a   :  { %v10054_v57 = vld [vmem:[%s16835_s1 + $0x82] ss:$2 sm:$0xff]  ;;  %v10090_v58 = vld [vmem:[%s16835_s1 + $0x92] ss:$2 sm:$0xff]  ;;  %69 = vst.msk [vmem:[#allocation2] sm:$0xff] %vm68_vm3, %v13138_v1  ;;  %72 = vst.msk [vmem:[#allocation2 + $0x18] sm:$0xff] %vm68_vm3, %v13138_v1 }
  0x3b   :  { %v10055_v59 = vld [vmem:[%s16835_s1 + $0x92] ss:$2 sm:$0xff]  ;;  %v10091_v60 = vld [vmem:[%s16835_s1 + $0xa2] ss:$2 sm:$0xff]  ;;  %73 = vst.msk [vmem:[#allocation2 + $0x20] sm:$0xff] %vm68_vm3, %v13138_v1  ;;  %74 = vst.msk [vmem:[#allocation2 + $0x28] sm:$0xff] %vm68_vm3, %v13138_v1 }
  0x3c   :  { %11481 = vmatmul.mubr.msk.f32.gmra.mrb[22].mxu0 %vm175_vm1, %v10003_v27  ;;  %11534 = vmatmul.mubr.msk.f32.gmra.mrb[22].mxu1 %vm175_vm1, %v9986_v28  ;;  %v10056_v61 = vld [vmem:[%s16835_s1 + $0xa2] ss:$2 sm:$0xff]  ;;  %v10092_v62 = vld [vmem:[%s16835_s1 + $0xb2] ss:$2 sm:$0xff]  ;;  %v10125_v28 = vld [vmem:[%s16835_s1 + $0x83] ss:$2 sm:$0xff] }
  0x3d   :  { %11483 = vmatprep.mubr.msk.f32.mxu0 %vm13139_vm2, %v13138_v1  ;;  %11536 = vmatprep.mubr.msk.f32.mxu1 %vm13139_vm2, %v13138_v1  ;;  %v10057_v63 = vld [vmem:[%s16835_s1 + $0xb2] ss:$2 sm:$0xff]  ;;  %v10093_v0 = vld [vmem:[%s16835_s1 + $0xc2] ss:$2 sm:$0xff]  ;;  %75 = vst.msk [vmem:[#allocation2 + $0x30] sm:$0xff] %vm68_vm3, %v13138_v1  ;;  %76 = vst.msk [vmem:[#allocation2 + $0x38] sm:$0xff] %vm68_vm3, %v13138_v1 }
  0x3e   :  { %v10058_v2 = vld [vmem:[%s16835_s1 + $0xc2] ss:$2 sm:$0xff]  ;;  %v10094_v3 = vld [vmem:[%s16835_s1 + $0xd2] ss:$2 sm:$0xff]  ;;  %77 = vst.msk [vmem:[#allocation2 + $0x40] sm:$0xff] %vm68_vm3, %v13138_v1  ;;  %78 = vst.msk [vmem:[#allocation2 + $0x48] sm:$0xff] %vm68_vm3, %v13138_v1 }
  0x3f   :  { %v10059_v4 = vld [vmem:[%s16835_s1 + $0xd2] ss:$2 sm:$0xff]  ;;  %v10095_v5 = vld [vmem:[%s16835_s1 + $0xe2] ss:$2 sm:$0xff]  ;;  %79 = vst.msk [vmem:[#allocation2 + $0x50] sm:$0xff] %vm68_vm3, %v13138_v1  ;;  %80 = vst.msk [vmem:[#allocation2 + $0x58] sm:$0xff] %vm68_vm3, %v13138_v1 }
  0x40   :  { %11484 = vmatmul.mubr.msk.f32.gmra.mrb[24].mxu0 %vm175_vm1, %v10004_v29  ;;  %11537 = vmatmul.mubr.msk.f32.gmra.mrb[24].mxu1 %vm175_vm1, %v9987_v30  ;;  %v10060_v6 = vld [vmem:[%s16835_s1 + $0xe2] ss:$2 sm:$0xff]  ;;  %v10096_v7 = vld [vmem:[%s16835_s1 + $0xf2] ss:$2 sm:$0xff]  ;;  %v10126_v30 = vld [vmem:[%s16835_s1 + $0x93] ss:$2 sm:$0xff] }
  0x41   :  { %11486 = vmatprep.mubr.msk.f32.mxu0 %vm13139_vm2, %v13138_v1  ;;  %11539 = vmatprep.mubr.msk.f32.mxu1 %vm13139_vm2, %v13138_v1  ;;  %v10061_v8 = vld [vmem:[%s16835_s1 + $0xf2] ss:$2 sm:$0xff]  ;;  %v10097_v9 = vld [vmem:[%s16835_s1 + $0x102] ss:$2 sm:$0xff]  ;;  %81 = vst.msk [vmem:[#allocation2 + $0x60] sm:$0xff] %vm68_vm3, %v13138_v1  ;;  %82 = vst.msk [vmem:[#allocation2 + $0x68] sm:$0xff] %vm68_vm3, %v13138_v1 }
  0x42   :  { %v10062_v10 = vld [vmem:[%s16835_s1 + $0x102] ss:$2 sm:$0x3f]  ;;  %v10098_v11 = vld [vmem:[%s16835_s1 + $0x112] ss:$2 sm:$0x3f] }
  0x43   :  { %v10154_v13 = vld [vmem:[%s16835_s1 + $0x14] ss:$2 sm:$0xff]  ;;  %v10155_v17 = vld [vmem:[%s16835_s1 + $0x24] ss:$2 sm:$0xff]  ;;  %83 = vst.msk [vmem:[#allocation2 + $0x70] sm:$0xff] %vm68_vm3, %v13138_v1  ;;  %84 = vst.msk [vmem:[#allocation2 + $0x78] sm:$0xff] %vm68_vm3, %v13138_v1 }
  0x44   :  { %11487 = vmatmul.mubr.msk.f32.gmra.mrb[26].mxu0 %vm175_vm1, %v10005_v31  ;;  %11540 = vmatmul.mubr.msk.f32.gmra.mrb[26].mxu1 %vm175_vm1, %v9988_v32  ;;  %v10243_v15 = vld [vmem:[%s16834_s29 + $0x1c] sm:$0xf]  ;;  %v10157_v21 = vld [vmem:[%s16835_s1 + $0x44] ss:$2 sm:$0xff]  ;;  %v10127_v32 = vld [vmem:[%s16835_s1 + $0xa3] ss:$2 sm:$0xff] }
  0x45   :  { %11489 = vmatprep.mubr.msk.f32.mxu0 %vm13139_vm2, %v13138_v1  ;;  %11542 = vmatprep.mubr.msk.f32.mxu1 %vm13139_vm2, %v13138_v1  ;;  %v10156_v19 = vld [vmem:[%s16835_s1 + $0x34] ss:$2 sm:$0xff]  ;;  %v10159_v25 = vld [vmem:[%s16835_s1 + $0x64] ss:$2 sm:$0xff]  ;;  %85 = vst.msk [vmem:[#allocation2 + $0x80] sm:$0xff] %vm68_vm3, %v13138_v1  ;;  %86 = vst.msk [vmem:[#allocation2 + $0x88] sm:$0xff] %vm68_vm3, %v13138_v1 }
  0x46   :  { %v10158_v23 = vld [vmem:[%s16835_s1 + $0x54] ss:$2 sm:$0xff]  ;;  %v10161_v29 = vld [vmem:[%s16835_s1 + $0x84] ss:$2 sm:$0xff]  ;;  %87 = vst.msk [vmem:[#allocation2 + $0x90] sm:$0xff] %vm68_vm3, %v13138_v1  ;;  %88 = vst.msk [vmem:[#allocation2 + $0x98] sm:$0xff] %vm68_vm3, %v13138_v1 }
  0x47   :  { %v10160_v27 = vld [vmem:[%s16835_s1 + $0x74] ss:$2 sm:$0xff]  ;;  %89 = vst.msk [vmem:[#allocation2 + $0xa0] sm:$0xff] %vm68_vm3, %v13138_v1  ;;  %90 = vst.msk [vmem:[#allocation2 + $0xa8] sm:$0xff] %vm68_vm3, %v13138_v1  ;;  %s16837_s30 = sld [smem:[#allocation19_spill]]  ;;  %vm2425_vm4 = vcmask 62464  }
  0x48   :  { %11490 = vmatmul.mubr.msk.f32.gmra.mrb[28].mxu0 %vm175_vm1, %v10006_v33  ;;  %11543 = vmatmul.mubr.msk.f32.gmra.mrb[28].mxu1 %vm175_vm1, %v9989_v34  ;;  %v10162_v31 = vld [vmem:[%s16835_s1 + $0x94] ss:$2 sm:$0xff]  ;;  %v10163_v33 = vld [vmem:[%s16835_s1 + $0xa4] ss:$2 sm:$0xff]  ;;  %v10128_v34 = vld [vmem:[%s16835_s1 + $0xb3] ss:$2 sm:$0xff] }
  0x49   :  { %11492 = vmatprep.mubr.msk.f32.mxu0 %vm13139_vm2, %v13138_v1  ;;  %11545 = vmatprep.mubr.msk.f32.mxu1 %vm13139_vm2, %v13138_v1  ;;  %91 = vst.msk [vmem:[#allocation2 + $0xb0] sm:$0xff] %vm68_vm3, %v13138_v1  ;;  %92 = vst.msk [vmem:[#allocation2 + $0xb8] sm:$0xff] %vm68_vm3, %v13138_v1  ;;  %vm94_vm5 = vcmask 130048   ;;  %s16838_s26 = sld [smem:[#allocation21_spill]]  ;;  %s16839_s24 = sld [smem:[#allocation20_spill]]  ;;  %vm5896_vm6 = vcmask 125952  }
  0x4a   :  { %95 = vst.msk [vmem:[#allocation3] sm:$0xff] %vm94_vm5, %v13138_v1  ;;  %96 = vst.msk [vmem:[#allocation3 + $0x8] sm:$0xff] %vm94_vm5, %v13138_v1  ;;  %vm5893_vm7 = vcmask 123904   ;;  %s16840_s25 = sld [smem:[#allocation22_spill]]  ;;  %vm7736_vm8 = vcmask 261120   ;;  %vm7739_vm9 = vcmask 254976  }
  0x4b   :  { %97 = vst.msk [vmem:[#allocation3 + $0x10] sm:$0xff] %vm94_vm5, %v13138_v1  ;;  %98 = vst.msk [vmem:[#allocation3 + $0x18] sm:$0xff] %vm94_vm5, %v13138_v1  ;;  %vm8540_vm10 = vcmask 326912   ;;  %vm8555_vm11 = vcmask 326656   ;;  %vm8724_vm12 = vcmask 392320   ;;  %vm8746_vm13 = vcmask 392192  }
  0x4c   :  { %11493 = vmatmul.mubr.msk.f32.gmra.mrb[30].mxu0 %vm175_vm1, %v10007_v35  ;;  %11546 = vmatmul.mubr.msk.f32.gmra.mrb[30].mxu1 %vm175_vm1, %v9990_v36  ;;  %v10164_v35 = vld [vmem:[%s16835_s1 + $0xb4] ss:$2 sm:$0xff]  ;;  %v10129_v36 = vld [vmem:[%s16835_s1 + $0xc3] ss:$2 sm:$0xff]  ;;  %99 = vst.msk [vmem:[#allocation3 + $0x20] sm:$0xff] %vm94_vm5, %v13138_v1  ;;  %100 = vst.msk [vmem:[#allocation3 + $0x28] sm:$0xff] %vm94_vm5, %v13138_v1 }
  0x4d   :  { %11495 = vmatprep.mubr.msk.f32.mxu0 %vm13139_vm2, %v13138_v1  ;;  %11548 = vmatprep.mubr.msk.f32.mxu1 %vm13139_vm2, %v13138_v1  ;;  %101 = vst.msk [vmem:[#allocation3 + $0x30] sm:$0xff] %vm94_vm5, %v13138_v1  ;;  %102 = vst.msk [vmem:[#allocation3 + $0x38] sm:$0xff] %vm94_vm5, %v13138_v1  ;;  %s13146_s5 = smov 80   ;;  %vm9183_vm14 = vcmask 195648   ;;  %vm9226_vm15 = vcmask 195584   ;;  %s13148_s4 = smov 120  }
  0x4e   :  { %103 = vst.msk [vmem:[#allocation3 + $0x40] sm:$0xff] %vm94_vm5, %v13138_v1 }
  0x50   :  { %11496 = vmatmul.mubr.msk.f32.gmra.mrb[32].mxu0 %vm175_vm1, %v10008_v37  ;;  %11549 = vmatmul.mubr.msk.f32.gmra.mrb[32].mxu1 %vm175_vm1, %v9991_v38  ;;  %v10165_v37 = vld [vmem:[%s16835_s1 + $0xc4] ss:$2 sm:$0xff]  ;;  %v10130_v38 = vld [vmem:[%s16835_s1 + $0xd3] ss:$2 sm:$0xff] }
  0x51   :  { %11553 = vmatprep.mubr.msk.f32.mxu0 %vm13139_vm2, %v13138_v1  ;;  %11606 = vmatprep.mubr.msk.f32.mxu1 %vm13139_vm2, %v13138_v1 }
  0x54   :  { %11554 = vmatmul.mubr.msk.f32.vlgmr.msra.gmra.mrb[34].mxu0 %vm175_vm1, %v10046_v39  ;;  %11607 = vmatmul.mubr.msk.f32.vlgmr.msra.gmra.mrb[34].mxu1 %vm175_vm1, %v10082_v40  ;;  %v10166_v39 = vld [vmem:[%s16835_s1 + $0xd4] ss:$2 sm:$0xff]  ;;  %v10131_v40 = vld [vmem:[%s16835_s1 + $0xe3] ss:$2 sm:$0xff] }
  0x55   :  { %11658 = vmatpush3.msk.msra.mxu0 %vm227_vm0, %v10135_v41  ;;  %11556 = vmatprep.mubr.msk.f32.mxu0 %vm13139_vm2, %v13138_v1  ;;  %v10167_v41 = vld [vmem:[%s16835_s1 + $0xe4] ss:$2 sm:$0xff] }
  0x56   :  { %11609 = vmatprep.mubr.msk.f32.mxu1 %vm13139_vm2, %v13138_v1  ;;  %11711 = vmatpush3.msk.msra.mxu1 %vm227_vm0, %v10171_v42  ;;  %v10132_v42 = vld [vmem:[%s16835_s1 + $0xf3] ss:$2 sm:$0xff] }
  0x57   :  { %11763 = vmatprep.subr.mxu0 %v13138_v1  ;;  %11816 = vmatprep.subr.mxu1 %v13138_v1 }
  0x58   :  { %11557 = vmatmul.mubr.msk.f32.gmra.mrb[36].mxu0 %vm175_vm1, %v10047_v43  ;;  %11610 = vmatmul.mubr.msk.f32.gmra.mrb[36].mxu1 %vm175_vm1, %v10083_v44  ;;  %v10168_v43 = vld [vmem:[%s16835_s1 + $0xf4] ss:$2 sm:$0xff]  ;;  %v10133_v44 = vld [vmem:[%s16835_s1 + $0x103] ss:$2 sm:$0xff] }
  0x59   :  { %11559 = vmatprep.mubr.msk.f32.mxu0 %vm13139_vm2, %v13138_v1  ;;  %11612 = vmatprep.mubr.msk.f32.mxu1 %vm13139_vm2, %v13138_v1 }
  0x5c   :  { %11560 = vmatmul.mubr.msk.f32.gmra.mrb[38].mxu0 %vm175_vm1, %v10048_v45  ;;  %11613 = vmatmul.mubr.msk.f32.gmra.mrb[38].mxu1 %vm175_vm1, %v10084_v46  ;;  %v10169_v45 = vld [vmem:[%s16835_s1 + $0x104] ss:$2 sm:$0xff]  ;;  %v10134_v46 = vld [vmem:[%s16835_s1 + $0x113] ss:$2 sm:$0x3f] }
  0x5d   :  { %11562 = vmatprep.mubr.msk.f32.mxu0 %vm13139_vm2, %v13138_v1  ;;  %11615 = vmatprep.mubr.msk.f32.mxu1 %vm13139_vm2, %v13138_v1 }
  0x60   :  { %11563 = vmatmul.mubr.msk.f32.gmra.mrb[40].mxu0 %vm175_vm1, %v10049_v47  ;;  %11616 = vmatmul.mubr.msk.f32.gmra.mrb[40].mxu1 %vm175_vm1, %v10085_v48  ;;  %v10170_v47 = vld [vmem:[%s16835_s1 + $0x114] ss:$2 sm:$0x3f]  ;;  %v10190_v48 = vld [vmem:[%s16835_s1 + $0x24] ss:$2 sm:$0xff] }
  0x61   :  { %11565 = vmatprep.mubr.msk.f32.mxu0 %vm13139_vm2, %v13138_v1  ;;  %11618 = vmatprep.mubr.msk.f32.mxu1 %vm13139_vm2, %v13138_v1 }
  0x64   :  { %11566 = vmatmul.mubr.msk.f32.gmra.mrb[42].mxu0 %vm175_vm1, %v10050_v49  ;;  %11619 = vmatmul.mubr.msk.f32.gmra.mrb[42].mxu1 %vm175_vm1, %v10086_v50  ;;  %v10226_v49 = vld [vmem:[%s16835_s1 + $0x25] ss:$2 sm:$0xff]  ;;  %v10279_v50 = vld [vmem:[%s16834_s29 + $0x20] sm:$0xf] }
  0x65   :  { %11568 = vmatprep.mubr.msk.f32.mxu0 %vm13139_vm2, %v13138_v1  ;;  %11621 = vmatprep.mubr.msk.f32.mxu1 %vm13139_vm2, %v13138_v1 }
  0x68   :  { %11569 = vmatmul.mubr.msk.f32.gmra.mrb[44].mxu0 %vm175_vm1, %v10051_v51  ;;  %11622 = vmatmul.mubr.msk.f32.gmra.mrb[44].mxu1 %vm175_vm1, %v10087_v52  ;;  %v10333_v51 = vld [vmem:[%s16834_s29 + $0x4] sm:$0xf]  ;;  %v10191_v52 = vld [vmem:[%s16835_s1 + $0x34] ss:$2 sm:$0xff] }
  0x69   :  { %11571 = vmatprep.mubr.msk.f32.mxu0 %vm13139_vm2, %v13138_v1  ;;  %11624 = vmatprep.mubr.msk.f32.mxu1 %vm13139_vm2, %v13138_v1 }
  0x6c   :  { %11572 = vmatmul.mubr.msk.f32.gmra.mrb[46].mxu0 %vm175_vm1, %v10052_v53  ;;  %11625 = vmatmul.mubr.msk.f32.gmra.mrb[46].mxu1 %vm175_vm1, %v10088_v54  ;;  %v10227_v53 = vld [vmem:[%s16835_s1 + $0x35] ss:$2 sm:$0xff]  ;;  %v10192_v54 = vld [vmem:[%s16835_s1 + $0x44] ss:$2 sm:$0xff] }
  0x6d   :  { %11574 = vmatprep.mubr.msk.f32.mxu0 %vm13139_vm2, %v13138_v1  ;;  %11627 = vmatprep.mubr.msk.f32.mxu1 %vm13139_vm2, %v13138_v1 }
  0x70   :  { %11575 = vmatmul.mubr.msk.f32.gmra.mrb[48].mxu0 %vm175_vm1, %v10053_v55  ;;  %11628 = vmatmul.mubr.msk.f32.gmra.mrb[48].mxu1 %vm175_vm1, %v10089_v56  ;;  %v10228_v55 = vld [vmem:[%s16835_s1 + $0x45] ss:$2 sm:$0xff] }
  0x71   :  { %11577 = vmatprep.mubr.msk.f32.mxu0 %vm13139_vm2, %v13138_v1  ;;  %11630 = vmatprep.mubr.msk.f32.mxu1 %vm13139_vm2, %v13138_v1 }
  0x74   :  { %11578 = vmatmul.mubr.msk.f32.gmra.mrb[50].mxu0 %vm175_vm1, %v10054_v57  ;;  %11631 = vmatmul.mubr.msk.f32.gmra.mrb[50].mxu1 %vm175_vm1, %v10090_v58 }
  0x75   :  { %11580 = vmatprep.mubr.msk.f32.mxu0 %vm13139_vm2, %v13138_v1  ;;  %11633 = vmatprep.mubr.msk.f32.mxu1 %vm13139_vm2, %v13138_v1 }
  0x78   :  { %11581 = vmatmul.mubr.msk.f32.gmra.mrb[52].mxu0 %vm175_vm1, %v10055_v59  ;;  %11634 = vmatmul.mubr.msk.f32.gmra.mrb[52].mxu1 %vm175_vm1, %v10091_v60 }
  0x79   :  { %11583 = vmatprep.mubr.msk.f32.mxu0 %vm13139_vm2, %v13138_v1  ;;  %11636 = vmatprep.mubr.msk.f32.mxu1 %vm13139_vm2, %v13138_v1 }
  0x7c   :  { %11584 = vmatmul.mubr.msk.f32.gmra.mrb[54].mxu0 %vm175_vm1, %v10056_v61  ;;  %11637 = vmatmul.mubr.msk.f32.gmra.mrb[54].mxu1 %vm175_vm1, %v10092_v62  ;;  %v10193_v61 = vld [vmem:[%s16835_s1 + $0x54] ss:$2 sm:$0xff]  ;;  %v10229_v62 = vld [vmem:[%s16835_s1 + $0x55] ss:$2 sm:$0xff] }
  0x7d   :  { %11586 = vmatprep.mubr.msk.f32.mxu0 %vm13139_vm2, %v13138_v1  ;;  %11639 = vmatprep.mubr.msk.f32.mxu1 %vm13139_vm2, %v13138_v1 }
  0x80   :  { %11587 = vmatmul.mubr.msk.f32.gmra.mrb[56].mxu0 %vm175_vm1, %v10057_v63  ;;  %11640 = vmatmul.mubr.msk.f32.gmra.mrb[56].mxu1 %vm175_vm1, %v10093_v0 }
  0x81   :  { %11589 = vmatprep.mubr.msk.f32.mxu0 %vm13139_vm2, %v13138_v1  ;;  %11642 = vmatprep.mubr.msk.f32.mxu1 %vm13139_vm2, %v13138_v1 }
  0x84   :  { %11590 = vmatmul.mubr.msk.f32.gmra.mrb[58].mxu0 %vm175_vm1, %v10058_v2  ;;  %11643 = vmatmul.mubr.msk.f32.gmra.mrb[58].mxu1 %vm175_vm1, %v10094_v3 }
  0x85   :  { %11592 = vmatprep.mubr.msk.f32.mxu0 %vm13139_vm2, %v13138_v1  ;;  %11645 = vmatprep.mubr.msk.f32.mxu1 %vm13139_vm2, %v13138_v1 }
  0x88   :  { %11593 = vmatmul.mubr.msk.f32.gmra.mrb[60].mxu0 %vm175_vm1, %v10059_v4  ;;  %11646 = vmatmul.mubr.msk.f32.gmra.mrb[60].mxu1 %vm175_vm1, %v10095_v5  ;;  %v10194_v4 = vld [vmem:[%s16835_s1 + $0x64] ss:$2 sm:$0xff]  ;;  %v10230_v5 = vld [vmem:[%s16835_s1 + $0x65] ss:$2 sm:$0xff] }
  0x89   :  { %11595 = vmatprep.mubr.msk.f32.mxu0 %vm13139_vm2, %v13138_v1  ;;  %11648 = vmatprep.mubr.msk.f32.mxu1 %vm13139_vm2, %v13138_v1 }
  0x8c   :  { %11596 = vmatmul.mubr.msk.f32.gmra.mrb[62].mxu0 %vm175_vm1, %v10060_v6  ;;  %11649 = vmatmul.mubr.msk.f32.gmra.mrb[62].mxu1 %vm175_vm1, %v10096_v7 }
  0x8d   :  { %11598 = vmatprep.mubr.msk.f32.mxu0 %vm13139_vm2, %v13138_v1  ;;  %11651 = vmatprep.mubr.msk.f32.mxu1 %vm13139_vm2, %v13138_v1 }
  0x90   :  { %11599 = vmatmul.mubr.msk.f32.gmra.mrb[64].mxu0 %vm175_vm1, %v10061_v8  ;;  %11652 = vmatmul.mubr.msk.f32.gmra.mrb[64].mxu1 %vm175_vm1, %v10097_v9 }
  0x91   :  { %11601 = vmatprep.mubr.msk.f32.mxu0 %vm13139_vm2, %v13138_v1  ;;  %11654 = vmatprep.mubr.msk.f32.mxu1 %vm13139_vm2, %v13138_v1 }
  0x94   :  { %11602 = vmatmul.mubr.msk.f32.gmra.mrb[66].mxu0 %vm175_vm1, %v10062_v10  ;;  %11655 = vmatmul.mubr.msk.f32.gmra.mrb[66].mxu1 %vm175_vm1, %v10098_v11  ;;  %v10195_v11 = vld [vmem:[%s16835_s1 + $0x74] ss:$2 sm:$0xff] }
  0x95   :  { %11659 = vmatprep.mubr.msk.f32.mxu0 %vm13139_vm2, %v13138_v1  ;;  %11712 = vmatprep.mubr.msk.f32.mxu1 %vm13139_vm2, %v13138_v1 }
  0x98   :  { %11660 = vmatmul.mubr.msk.f32.vlgmr.msra.gmra.mrb[68].mxu0 %vm175_vm1, %v10118_v12  ;;  %11713 = vmatmul.mubr.msk.f32.vlgmr.msra.gmra.mrb[68].mxu1 %vm175_vm1, %v10154_v13  ;;  %v10231_v12 = vld [vmem:[%s16835_s1 + $0x75] ss:$2 sm:$0xff] }
  0x99   :  { %11764 = vmatpush3.msk.msra.mxu0 %vm227_vm0, %v10207_v14  ;;  %11662 = vmatprep.mubr.msk.f32.mxu0 %vm13139_vm2, %v13138_v1 }
  0x9a   :  { %11715 = vmatprep.mubr.msk.f32.mxu1 %vm13139_vm2, %v13138_v1  ;;  %11817 = vmatpush3.msk.msra.mxu1 %vm227_vm0, %v10243_v15 }
  0x9b   :  { %11869 = vmatprep.subr.mxu0 %v13138_v1  ;;  %11922 = vmatprep.subr.mxu1 %v13138_v1 }
  0x9c   :  { %11663 = vmatmul.mubr.msk.f32.gmra.mrb[70].mxu0 %vm175_vm1, %v10119_v16  ;;  %11716 = vmatmul.mubr.msk.f32.gmra.mrb[70].mxu1 %vm175_vm1, %v10155_v17 }
  0x9d   :  { %11665 = vmatprep.mubr.msk.f32.mxu0 %vm13139_vm2, %v13138_v1  ;;  %11718 = vmatprep.mubr.msk.f32.mxu1 %vm13139_vm2, %v13138_v1 }
  0xa0   :  { %11666 = vmatmul.mubr.msk.f32.gmra.mrb[72].mxu0 %vm175_vm1, %v10120_v18  ;;  %11719 = vmatmul.mubr.msk.f32.gmra.mrb[72].mxu1 %vm175_vm1, %v10156_v19  ;;  %v10196_v18 = vld [vmem:[%s16835_s1 + $0x84] ss:$2 sm:$0xff]  ;;  %v10232_v19 = vld [vmem:[%s16835_s1 + $0x85] ss:$2 sm:$0xff] }
  0xa1   :  { %11668 = vmatprep.mubr.msk.f32.mxu0 %vm13139_vm2, %v13138_v1  ;;  %11721 = vmatprep.mubr.msk.f32.mxu1 %vm13139_vm2, %v13138_v1 }
  0xa4   :  { %11669 = vmatmul.mubr.msk.f32.gmra.mrb[74].mxu0 %vm175_vm1, %v10121_v20  ;;  %11722 = vmatmul.mubr.msk.f32.gmra.mrb[74].mxu1 %vm175_vm1, %v10157_v21 }
  0xa5   :  { %11671 = vmatprep.mubr.msk.f32.mxu0 %vm13139_vm2, %v13138_v1  ;;  %11724 = vmatprep.mubr.msk.f32.mxu1 %vm13139_vm2, %v13138_v1 }
  0xa8   :  { %11672 = vmatmul.mubr.msk.f32.gmra.mrb[76].mxu0 %vm175_vm1, %v10122_v22  ;;  %11725 = vmatmul.mubr.msk.f32.gmra.mrb[76].mxu1 %vm175_vm1, %v10158_v23 }
  0xa9   :  { %11674 = vmatprep.mubr.msk.f32.mxu0 %vm13139_vm2, %v13138_v1  ;;  %11727 = vmatprep.mubr.msk.f32.mxu1 %vm13139_vm2, %v13138_v1 }
  0xac   :  { %11675 = vmatmul.mubr.msk.f32.gmra.mrb[78].mxu0 %vm175_vm1, %v10123_v24  ;;  %11728 = vmatmul.mubr.msk.f32.gmra.mrb[78].mxu1 %vm175_vm1, %v10159_v25  ;;  %v10197_v25 = vld [vmem:[%s16835_s1 + $0x94] ss:$2 sm:$0xff] }
  0xad   :  { %11677 = vmatprep.mubr.msk.f32.mxu0 %vm13139_vm2, %v13138_v1  ;;  %11730 = vmatprep.mubr.msk.f32.mxu1 %vm13139_vm2, %v13138_v1 }
  0xb0   :  { %11678 = vmatmul.mubr.msk.f32.gmra.mrb[80].mxu0 %vm175_vm1, %v10124_v26  ;;  %11731 = vmatmul.mubr.msk.f32.gmra.mrb[80].mxu1 %vm175_vm1, %v10160_v27  ;;  %v10233_v26 = vld [vmem:[%s16835_s1 + $0x95] ss:$2 sm:$0xff] }
  0xb1   :  { %11680 = vmatprep.mubr.msk.f32.mxu0 %vm13139_vm2, %v13138_v1  ;;  %11733 = vmatprep.mubr.msk.f32.mxu1 %vm13139_vm2, %v13138_v1 }
  0xb4   :  { %11681 = vmatmul.mubr.msk.f32.gmra.mrb[82].mxu0 %vm175_vm1, %v10125_v28  ;;  %11734 = vmatmul.mubr.msk.f32.gmra.mrb[82].mxu1 %vm175_vm1, %v10161_v29 }
  0xb5   :  { %11683 = vmatprep.mubr.msk.f32.mxu0 %vm13139_vm2, %v13138_v1  ;;  %11736 = vmatprep.mubr.msk.f32.mxu1 %vm13139_vm2, %v13138_v1 }
  0xb8   :  { %11684 = vmatmul.mubr.msk.f32.gmra.mrb[84].mxu0 %vm175_vm1, %v10126_v30  ;;  %11737 = vmatmul.mubr.msk.f32.gmra.mrb[84].mxu1 %vm175_vm1, %v10162_v31 }
  0xb9   :  { %11686 = vmatprep.mubr.msk.f32.mxu0 %vm13139_vm2, %v13138_v1  ;;  %11739 = vmatprep.mubr.msk.f32.mxu1 %vm13139_vm2, %v13138_v1 }
  0xbc   :  { %11687 = vmatmul.mubr.msk.f32.gmra.mrb[86].mxu0 %vm175_vm1, %v10127_v32  ;;  %11740 = vmatmul.mubr.msk.f32.gmra.mrb[86].mxu1 %vm175_vm1, %v10163_v33  ;;  %v10198_v32 = vld [vmem:[%s16835_s1 + $0xa4] ss:$2 sm:$0xff]  ;;  %v10234_v33 = vld [vmem:[%s16835_s1 + $0xa5] ss:$2 sm:$0xff] }
  0xbd   :  { %11689 = vmatprep.mubr.msk.f32.mxu0 %vm13139_vm2, %v13138_v1  ;;  %11742 = vmatprep.mubr.msk.f32.mxu1 %vm13139_vm2, %v13138_v1 }
  0xc0   :  { %11690 = vmatmul.mubr.msk.f32.gmra.mrb[88].mxu0 %vm175_vm1, %v10128_v34  ;;  %11743 = vmatmul.mubr.msk.f32.gmra.mrb[88].mxu1 %vm175_vm1, %v10164_v35 }
  0xc1   :  { %11692 = vmatprep.mubr.msk.f32.mxu0 %vm13139_vm2, %v13138_v1  ;;  %11745 = vmatprep.mubr.msk.f32.mxu1 %vm13139_vm2, %v13138_v1 }
  0xc4   :  { %11693 = vmatmul.mubr.msk.f32.gmra.mrb[90].mxu0 %vm175_vm1, %v10129_v36  ;;  %11746 = vmatmul.mubr.msk.f32.gmra.mrb[90].mxu1 %vm175_vm1, %v10165_v37 }
  0xc5   :  { %11695 = vmatprep.mubr.msk.f32.mxu0 %vm13139_vm2, %v13138_v1  ;;  %11748 = vmatprep.mubr.msk.f32.mxu1 %vm13139_vm2, %v13138_v1 }
  0xc8   :  { %11696 = vmatmul.mubr.msk.f32.gmra.mrb[92].mxu0 %vm175_vm1, %v10130_v38  ;;  %11749 = vmatmul.mubr.msk.f32.gmra.mrb[92].mxu1 %vm175_vm1, %v10166_v39  ;;  %v10199_v39 = vld [vmem:[%s16835_s1 + $0xb4] ss:$2 sm:$0xff] }
  0xc9   :  { %11698 = vmatprep.mubr.msk.f32.mxu0 %vm13139_vm2, %v13138_v1  ;;  %11751 = vmatprep.mubr.msk.f32.mxu1 %vm13139_vm2, %v13138_v1 }
  0xcc   :  { %11699 = vmatmul.mubr.msk.f32.gmra.mrb[94].mxu0 %vm175_vm1, %v10131_v40  ;;  %11752 = vmatmul.mubr.msk.f32.gmra.mrb[94].mxu1 %vm175_vm1, %v10167_v41  ;;  %v10235_v40 = vld [vmem:[%s16835_s1 + $0xb5] ss:$2 sm:$0xff] }
  0xcd   :  { %11701 = vmatprep.mubr.msk.f32.mxu0 %vm13139_vm2, %v13138_v1  ;;  %11754 = vmatprep.mubr.msk.f32.mxu1 %vm13139_vm2, %v13138_v1 }
  0xd0   :  { %11702 = vmatmul.mubr.msk.f32.gmra.mrb[96].mxu0 %vm175_vm1, %v10132_v42  ;;  %11755 = vmatmul.mubr.msk.f32.gmra.mrb[96].mxu1 %vm175_vm1, %v10168_v43 }
  0xd1   :  { %11704 = vmatprep.mubr.msk.f32.mxu0 %vm13139_vm2, %v13138_v1  ;;  %11757 = vmatprep.mubr.msk.f32.mxu1 %vm13139_vm2, %v13138_v1 }
  0xd4   :  { %11705 = vmatmul.mubr.msk.f32.gmra.mrb[98].mxu0 %vm175_vm1, %v10133_v44  ;;  %11758 = vmatmul.mubr.msk.f32.gmra.mrb[98].mxu1 %vm175_vm1, %v10169_v45 }
  0xd5   :  { %11707 = vmatprep.mubr.msk.f32.mxu0 %vm13139_vm2, %v13138_v1  ;;  %11760 = vmatprep.mubr.msk.f32.mxu1 %vm13139_vm2, %v13138_v1 }
  0xd8   :  { %11708 = vmatmul.mubr.msk.f32.gmra.mrb[100].mxu0 %vm175_vm1, %v10134_v46  ;;  %11761 = vmatmul.mubr.msk.f32.gmra.mrb[100].mxu1 %vm175_vm1, %v10170_v47  ;;  %v10200_v46 = vld [vmem:[%s16835_s1 + $0xc4] ss:$2 sm:$0xff]  ;;  %v10236_v47 = vld [vmem:[%s16835_s1 + $0xc5] ss:$2 sm:$0xff] }
  0xd9   :  { %11765 = vmatprep.mubr.msk.f32.mxu0 %vm13139_vm2, %v13138_v1  ;;  %11818 = vmatprep.mubr.msk.f32.mxu1 %vm13139_vm2, %v13138_v1 }
  0xdc   :  { %11766 = vmatmul.mubr.msk.f32.vlgmr.msra.gmra.mrb[102].mxu0 %vm175_vm1, %v10190_v48  ;;  %11819 = vmatmul.mubr.msk.f32.vlgmr.msra.gmra.mrb[102].mxu1 %vm175_vm1, %v10226_v49 }
  0xdd   :  { %11870 = vmatpush3.msk.msra.mxu0 %vm227_vm0, %v10279_v50  ;;  %11768 = vmatprep.mubr.msk.f32.mxu0 %vm13139_vm2, %v13138_v1 }
  0xde   :  { %11821 = vmatprep.mubr.msk.f32.mxu1 %vm13139_vm2, %v13138_v1  ;;  %11923 = vmatpush3.msk.msra.mxu1 %vm227_vm0, %v10333_v51 }
  0xdf   :  { %11975 = vmatprep.subr.mxu0 %v13138_v1  ;;  %12028 = vmatprep.subr.mxu1 %v13138_v1 }
  0xe0   :  { %11769 = vmatmul.mubr.msk.f32.gmra.mrb[104].mxu0 %vm175_vm1, %v10191_v52  ;;  %11822 = vmatmul.mubr.msk.f32.gmra.mrb[104].mxu1 %vm175_vm1, %v10227_v53  ;;  %v10201_v52 = vld [vmem:[%s16835_s1 + $0xd4] ss:$2 sm:$0xff]  ;;  %v10237_v53 = vld [vmem:[%s16835_s1 + $0xd5] ss:$2 sm:$0xff] }
  0xe1   :  { %11771 = vmatprep.mubr.msk.f32.mxu0 %vm13139_vm2, %v13138_v1  ;;  %11824 = vmatprep.mubr.msk.f32.mxu1 %vm13139_vm2, %v13138_v1 }
  0xe3   :  { %v297_v56 = vpop.f32.mrb[0].mxu0  ;;  %v501_v57 = vpop.f32.mrb[0].mxu1 }
  0xe4   :  { %v11449_v58 = vpop.f32.mrb[1].mxu0  ;;  %v13968_v59 = vadd.f32 %v501_v57, %v297_v56  ;;  %11772 = vmatmul.mubr.msk.f32.gmra.mrb[106].mxu0 %vm175_vm1, %v10192_v54  ;;  %11825 = vmatmul.mubr.msk.f32.gmra.mrb[106].mxu1 %vm175_vm1, %v10228_v55  ;;  %v11502_v60 = vpop.f32.mrb[1].mxu1 }
  0xe5   :  { %11774 = vmatprep.mubr.msk.f32.mxu0 %vm13139_vm2, %v13138_v1  ;;  %11827 = vmatprep.mubr.msk.f32.mxu1 %vm13139_vm2, %v13138_v1  ;;  %v10202_v60 = vld [vmem:[%s16835_s1 + $0xe4] ss:$2 sm:$0xff] }
  0xe7   :  { %v302_v63 = vpop.f32.mrb[2].mxu0  ;;  %v506_v0 = vpop.f32.mrb[2].mxu1 }
  0xe8   :  { %v11452_v2 = vpop.f32.mrb[3].mxu0  ;;  %11775 = vmatmul.mubr.msk.f32.gmra.mrb[108].mxu0 %vm175_vm1, %v10193_v61  ;;  %11828 = vmatmul.mubr.msk.f32.gmra.mrb[108].mxu1 %vm175_vm1, %v10229_v62  ;;  %v11505_v3 = vpop.f32.mrb[3].mxu1  ;;  %v10238_v61 = vld [vmem:[%s16835_s1 + $0xe5] ss:$2 sm:$0xff] }
  0xe9   :  { %11777 = vmatprep.mubr.msk.f32.mxu0 %vm13139_vm2, %v13138_v1  ;;  %11830 = vmatprep.mubr.msk.f32.mxu1 %vm13139_vm2, %v13138_v1  ;;  %v10203_v3 = vld [vmem:[%s16835_s1 + $0xf4] ss:$2 sm:$0xff] }
  0xeb   :  { %v307_v6 = vpop.f32.mrb[4].mxu0  ;;  %v511_v7 = vpop.f32.mrb[4].mxu1 }
  0xec   :  { %v11455_v8 = vpop.f32.mrb[5].mxu0  ;;  %v13994_v9 = vadd.f32 %v511_v7, %v307_v6  ;;  %11778 = vmatmul.mubr.msk.f32.gmra.mrb[110].mxu0 %vm175_vm1, %v10194_v4  ;;  %11831 = vmatmul.mubr.msk.f32.gmra.mrb[110].mxu1 %vm175_vm1, %v10230_v5  ;;  %v11508_v10 = vpop.f32.mrb[5].mxu1  ;;  %v10239_v4 = vld [vmem:[%s16835_s1 + $0xf5] ss:$2 sm:$0xff] }
  0xed   :  { %11780 = vmatprep.mubr.msk.f32.mxu0 %vm13139_vm2, %v13138_v1  ;;  %11833 = vmatprep.mubr.msk.f32.mxu1 %vm13139_vm2, %v13138_v1 }
  0xef   :  { %v312_v13 = vpop.f32.mrb[6].mxu0  ;;  %v516_v14 = vpop.f32.mrb[6].mxu1 }
  0xf0   :  { %v11458_v15 = vpop.f32.mrb[7].mxu0  ;;  %v14008_v16 = vadd.f32 %v516_v14, %v312_v13  ;;  %11781 = vmatmul.mubr.msk.f32.gmra.mrb[112].mxu0 %vm175_vm1, %v10195_v11  ;;  %11834 = vmatmul.mubr.msk.f32.gmra.mrb[112].mxu1 %vm175_vm1, %v10231_v12  ;;  %v11511_v17 = vpop.f32.mrb[7].mxu1  ;;  %v10204_v11 = vld [vmem:[%s16835_s1 + $0x104] ss:$2 sm:$0xff]  ;;  %v10240_v12 = vld [vmem:[%s16835_s1 + $0x105] ss:$2 sm:$0xff] }
  0xf1   :  { %11783 = vmatprep.mubr.msk.f32.mxu0 %vm13139_vm2, %v13138_v1  ;;  %11836 = vmatprep.mubr.msk.f32.mxu1 %vm13139_vm2, %v13138_v1 }
  0xf3   :  { %v317_v20 = vpop.f32.mrb[8].mxu0  ;;  %v521_v21 = vpop.f32.mrb[8].mxu1 }
  0xf4   :  { %v11461_v22 = vpop.f32.mrb[9].mxu0  ;;  %v14022_v23 = vadd.f32 %v521_v21, %v317_v20  ;;  %11784 = vmatmul.mubr.msk.f32.gmra.mrb[114].mxu0 %vm175_vm1, %v10196_v18  ;;  %11837 = vmatmul.mubr.msk.f32.gmra.mrb[114].mxu1 %vm175_vm1, %v10232_v19  ;;  %v11514_v24 = vpop.f32.mrb[9].mxu1  ;;  %v10205_v19 = vld [vmem:[%s16835_s1 + $0x114] ss:$2 sm:$0xff]  ;;  %v10241_v20 = vld [vmem:[%s16835_s1 + $0x115] ss:$2 sm:$0xff] }
  0xf5   :  { %11786 = vmatprep.mubr.msk.f32.mxu0 %vm13139_vm2, %v13138_v1  ;;  %11839 = vmatprep.mubr.msk.f32.mxu1 %vm13139_vm2, %v13138_v1 }
  0xf7   :  { %v322_v27 = vpop.f32.mrb[10].mxu0  ;;  %v526_v28 = vpop.f32.mrb[10].mxu1 }
  0xf8   :  { %v11464_v29 = vpop.f32.mrb[11].mxu0  ;;  %v14036_v30 = vadd.f32 %v526_v28, %v322_v27  ;;  %11787 = vmatmul.mubr.msk.f32.gmra.mrb[116].mxu0 %vm175_vm1, %v10197_v25  ;;  %11840 = vmatmul.mubr.msk.f32.gmra.mrb[116].mxu1 %vm175_vm1, %v10233_v26  ;;  %v11517_v31 = vpop.f32.mrb[11].mxu1  ;;  %v10206_v27 = vld [vmem:[%s16835_s1 + $0x124] ss:$2 sm:$0x3f] }
  0xf9   :  { %11789 = vmatprep.mubr.msk.f32.mxu0 %vm13139_vm2, %v13138_v1  ;;  %11842 = vmatprep.mubr.msk.f32.mxu1 %vm13139_vm2, %v13138_v1  ;;  %v10242_v28 = vld [vmem:[%s16835_s1 + $0x125] ss:$2 sm:$0x3f] }
  0xfb   :  { %v327_v34 = vpop.f32.mrb[12].mxu0  ;;  %v531_v35 = vpop.f32.mrb[12].mxu1 }
  0xfc   :  { %v11467_v36 = vpop.f32.mrb[13].mxu0  ;;  %v14050_v37 = vadd.f32 %v531_v35, %v327_v34  ;;  %11790 = vmatmul.mubr.msk.f32.gmra.mrb[118].mxu0 %vm175_vm1, %v10198_v32  ;;  %11843 = vmatmul.mubr.msk.f32.gmra.mrb[118].mxu1 %vm175_vm1, %v10234_v33  ;;  %v11520_v38 = vpop.f32.mrb[13].mxu1  ;;  %v10262_v35 = vld [vmem:[%s16835_s1 + $0x26] ss:$2 sm:$0xff] }
  0xfd   :  { %11792 = vmatprep.mubr.msk.f32.mxu0 %vm13139_vm2, %v13138_v1  ;;  %11845 = vmatprep.mubr.msk.f32.mxu1 %vm13139_vm2, %v13138_v1  ;;  %v10316_v36 = vld [vmem:[%s16835_s1 + $0x145] ss:$2 sm:$0xff]  ;;  %v2485_v38 = vld [vmem:[%s16834_s29] sm:$0xf] }
  0xff   :  { %v332_v41 = vpop.f32.mrb[14].mxu0  ;;  %v536_v42 = vpop.f32.mrb[14].mxu1 }
 0x100   :  { %v11470_v43 = vpop.f32.mrb[15].mxu0  ;;  %v14064_v44 = vadd.f32 %v536_v42, %v332_v41  ;;  %11793 = vmatmul.mubr.msk.f32.gmra.mrb[120].mxu0 %vm175_vm1, %v10199_v39  ;;  %11846 = vmatmul.mubr.msk.f32.gmra.mrb[120].mxu1 %vm175_vm1, %v10235_v40  ;;  %v11523_v45 = vpop.f32.mrb[15].mxu1  ;;  %v10387_v41 = vld [vmem:[%s16834_s29 + $0x8] sm:$0xf] }
 0x101   :  { %11795 = vmatprep.mubr.msk.f32.mxu0 %vm13139_vm2, %v13138_v1  ;;  %11848 = vmatprep.mubr.msk.f32.mxu1 %vm13139_vm2, %v13138_v1 }
 0x103   :  { %v337_v48 = vpop.f32.mrb[16].mxu0  ;;  %v541_v49 = vpop.f32.mrb[16].mxu1 }
 0x104   :  { %v11473_v50 = vpop.f32.mrb[17].mxu0  ;;  %11796 = vmatmul.mubr.msk.f32.gmra.mrb[122].mxu0 %vm175_vm1, %v10200_v46  ;;  %11849 = vmatmul.mubr.msk.f32.gmra.mrb[122].mxu1 %vm175_vm1, %v10236_v47  ;;  %v11526_v51 = vpop.f32.mrb[17].mxu1  ;;  %v10263_v46 = vld [vmem:[%s16835_s1 + $0x36] ss:$2 sm:$0xff]  ;;  %v10317_v47 = vld [vmem:[%s16835_s1 + $0x155] ss:$2 sm:$0xff] }
 0x105   :  { %11798 = vmatprep.mubr.msk.f32.mxu0 %vm13139_vm2, %v13138_v1  ;;  %11851 = vmatprep.mubr.msk.f32.mxu1 %vm13139_vm2, %v13138_v1 }
 0x107   :  { %v342_v54 = vpop.f32.mrb[18].mxu0  ;;  %v546_v55 = vpop.f32.mrb[18].mxu1 }
 0x108   :  { %v11476_v56 = vpop.f32.mrb[19].mxu0  ;;  %v14090_v57 = vadd.f32 %v546_v55, %v342_v54  ;;  %11799 = vmatmul.mubr.msk.f32.gmra.mrb[124].mxu0 %vm175_vm1, %v10201_v52  ;;  %11852 = vmatmul.mubr.msk.f32.gmra.mrb[124].mxu1 %vm175_vm1, %v10237_v53  ;;  %v11529_v58 = vpop.f32.mrb[19].mxu1  ;;  %v10264_v53 = vld [vmem:[%s16835_s1 + $0x46] ss:$2 sm:$0xff]  ;;  %v10318_v54 = vld [vmem:[%s16835_s1 + $0x165] ss:$2 sm:$0xff] }
 0x109   :  { %11801 = vmatprep.mubr.msk.f32.mxu0 %vm13139_vm2, %v13138_v1  ;;  %11854 = vmatprep.mubr.msk.f32.mxu1 %vm13139_vm2, %v13138_v1 }
 0x10b   :  { %v347_v62 = vpop.f32.mrb[20].mxu0  ;;  %v551_v63 = vpop.f32.mrb[20].mxu1 }
 0x10c   :  { %v11479_v0 = vpop.f32.mrb[21].mxu0  ;;  %11802 = vmatmul.mubr.msk.f32.gmra.mrb[126].mxu0 %vm175_vm1, %v10202_v60  ;;  %11855 = vmatmul.mubr.msk.f32.gmra.mrb[126].mxu1 %vm175_vm1, %v10238_v61  ;;  %v11532_v2 = vpop.f32.mrb[21].mxu1  ;;  %v10265_v62 = vld [vmem:[%s16835_s1 + $0x56] ss:$2 sm:$0xff] }
 0x10d   :  { %11804 = vmatprep.mubr.msk.f32.mxu0 %vm13139_vm2, %v13138_v1  ;;  %11857 = vmatprep.mubr.msk.f32.mxu1 %vm13139_vm2, %v13138_v1 }
 0x10f   :  { %v352_v5 = vpop.f32.mrb[22].mxu0  ;;  %v556_v6 = vpop.f32.mrb[22].mxu1 }
 0x110   :  { %v11482_v7 = vpop.f32.mrb[23].mxu0  ;;  %v14116_v8 = vadd.f32 %v556_v6, %v352_v5  ;;  %11805 = vmatmul.mubr.msk.f32.gmra.mrb[128].mxu0 %vm175_vm1, %v10203_v3  ;;  %11858 = vmatmul.mubr.msk.f32.gmra.mrb[128].mxu1 %vm175_vm1, %v10239_v4  ;;  %v11535_v10 = vpop.f32.mrb[23].mxu1  ;;  %v10266_v5 = vld [vmem:[%s16835_s1 + $0x66] ss:$2 sm:$0xff]  ;;  %v10320_v6 = vld [vmem:[%s16835_s1 + $0x185] ss:$2 sm:$0xff] }
 0x111   :  { %11807 = vmatprep.mubr.msk.f32.mxu0 %vm13139_vm2, %v13138_v1  ;;  %11860 = vmatprep.mubr.msk.f32.mxu1 %vm13139_vm2, %v13138_v1 }
 0x113   :  { %v357_v13 = vpop.f32.mrb[24].mxu0  ;;  %v561_v14 = vpop.f32.mrb[24].mxu1 }
 0x114   :  { %v11485_v15 = vpop.f32.mrb[25].mxu0  ;;  %v14130_v17 = vadd.f32 %v561_v14, %v357_v13  ;;  %11808 = vmatmul.mubr.msk.f32.gmra.mrb[130].mxu0 %vm175_vm1, %v10204_v11  ;;  %11861 = vmatmul.mubr.msk.f32.gmra.mrb[130].mxu1 %vm175_vm1, %v10240_v12  ;;  %v11538_v18 = vpop.f32.mrb[25].mxu1  ;;  %v10267_v14 = vld [vmem:[%s16835_s1 + $0x76] ss:$2 sm:$0xff] }
 0x115   :  { %11810 = vmatprep.mubr.msk.f32.mxu0 %vm13139_vm2, %v13138_v1  ;;  %11863 = vmatprep.mubr.msk.f32.mxu1 %vm13139_vm2, %v13138_v1 }
 0x117   :  { %v362_v21 = vpop.f32.mrb[26].mxu0  ;;  %v566_v22 = vpop.f32.mrb[26].mxu1 }
 0x118   :  { %v11488_v24 = vpop.f32.mrb[27].mxu0  ;;  %v14144_v25 = vadd.f32 %v566_v22, %v362_v21  ;;  %11811 = vmatmul.mubr.msk.f32.gmra.mrb[132].mxu0 %vm175_vm1, %v10205_v19  ;;  %11864 = vmatmul.mubr.msk.f32.gmra.mrb[132].mxu1 %vm175_vm1, %v10241_v20  ;;  %v11541_v26 = vpop.f32.mrb[27].mxu1 }
 0x119   :  { %11813 = vmatprep.mubr.msk.f32.mxu0 %vm13139_vm2, %v13138_v1  ;;  %11866 = vmatprep.mubr.msk.f32.mxu1 %vm13139_vm2, %v13138_v1  ;;  %v10268_v24 = vld [vmem:[%s16835_s1 + $0x86] ss:$2 sm:$0xff] }
 0x11b   :  { %v367_v29 = vpop.f32.mrb[28].mxu0  ;;  %v571_v31 = vpop.f32.mrb[28].mxu1 }
 0x11c   :  { %v11491_v32 = vpop.f32.mrb[29].mxu0  ;;  %v14158_v33 = vadd.f32 %v571_v31, %v367_v29  ;;  %11814 = vmatmul.mubr.msk.f32.gmra.mrb[134].mxu0 %vm175_vm1, %v10206_v27  ;;  %11867 = vmatmul.mubr.msk.f32.gmra.mrb[134].mxu1 %vm175_vm1, %v10242_v28  ;;  %v11544_v34 = vpop.f32.mrb[29].mxu1 }
 0x11d   :  { %11871 = vmatprep.mubr.msk.f32.mxu0 %vm13139_vm2, %v13138_v1  ;;  %11924 = vmatprep.mubr.msk.f32.mxu1 %vm13139_vm2, %v13138_v1  ;;  %v10269_v34 = vld [vmem:[%s16835_s1 + $0x96] ss:$2 sm:$0xff] }
 0x11f   :  { %v372_v39 = vpop.f32.mrb[30].mxu0  ;;  %v576_v40 = vpop.f32.mrb[30].mxu1 }
 0x120   :  { %v11494_v42 = vpop.f32.mrb[31].mxu0  ;;  %v14178_v43 = vadd.f32 %v576_v40, %v372_v39  ;;  %11872 = vmatmul.mubr.msk.f32.vlgmr.msra.gmra.mrb[136].mxu0 %vm175_vm1, %v10262_v35  ;;  %11925 = vmatmul.mubr.msk.f32.vlgmr.msra.gmra.mrb[136].mxu1 %vm175_vm1, %v10316_v36  ;;  %v11547_v45 = vpop.f32.mrb[31].mxu1 }
 0x121   :  { %11976 = vmatpush3.msk.msra.mxu0 %vm227_vm0, %v2485_v38  ;;  %11874 = vmatprep.mubr.msk.f32.mxu0 %vm13139_vm2, %v13138_v1  ;;  %v10270_v42 = vld [vmem:[%s16835_s1 + $0xa6] ss:$2 sm:$0xff] }
 0x122   :  { %11927 = vmatprep.mubr.msk.f32.mxu1 %vm13139_vm2, %v13138_v1  ;;  %12029 = vmatpush3.msk.msra.mxu1 %vm227_vm0, %v10387_v41 }
 0x123   :  { %v377_v48 = vpop.f32.mrb[32].mxu0  ;;  %v581_v49 = vpop.f32.mrb[32].mxu1  ;;  %12081 = vmatprep.subr.mxu0 %v13138_v1  ;;  %12134 = vmatprep.subr.mxu1 %v13138_v1 }
 0x124   :  { %v11497_v50 = vpop.f32.mrb[33].mxu0  ;;  %v14196_v51 = vadd.f32 %v581_v49, %v377_v48  ;;  %11875 = vmatmul.mubr.msk.f32.gmra.mrb[138].mxu0 %vm175_vm1, %v10263_v46  ;;  %11928 = vmatmul.mubr.msk.f32.gmra.mrb[138].mxu1 %vm175_vm1, %v10317_v47  ;;  %v11550_v52 = vpop.f32.mrb[33].mxu1 }
 0x125   :  { %11877 = vmatprep.mubr.msk.f32.mxu0 %vm13139_vm2, %v13138_v1  ;;  %11930 = vmatprep.mubr.msk.f32.mxu1 %vm13139_vm2, %v13138_v1  ;;  %v10271_v52 = vld [vmem:[%s16835_s1 + $0xb6] ss:$2 sm:$0xff] }
 0x127   :  { %v741_v55 = vpop.f32.mrb[34].mxu0  ;;  %v982_v56 = vpop.f32.mrb[34].mxu1 }
 0x128   :  { %v825_v58 = vadd.f32 %v741_v55, %v13968_v59  ;;  %v11555_v60 = vpop.f32.mrb[35].mxu0  ;;  %11878 = vmatmul.mubr.msk.f32.gmra.mrb[140].mxu0 %vm175_vm1, %v10264_v53  ;;  %11931 = vmatmul.mubr.msk.f32.gmra.mrb[140].mxu1 %vm175_vm1, %v10318_v54  ;;  %v11608_v61 = vpop.f32.mrb[35].mxu1  ;;  %v10319_v59 = vld [vmem:[%s16835_s1 + $0x175] ss:$2 sm:$0xff] }
 0x129   :  { %11880 = vmatprep.mubr.msk.f32.mxu0 %vm13139_vm2, %v13138_v1  ;;  %11933 = vmatprep.mubr.msk.f32.mxu1 %vm13139_vm2, %v13138_v1  ;;  %v10272_v61 = vld [vmem:[%s16835_s1 + $0xc6] ss:$2 sm:$0xff] }
 0x12a   :  { %v14223_v63 = vadd.f32 %v982_v56, %v825_v58 }
 0x12b   :  { %v746_v0 = vpop.f32.mrb[36].mxu0  ;;  %v987_v2 = vpop.f32.mrb[36].mxu1 }
 0x12c   :  { %v11558_v3 = vpop.f32.mrb[37].mxu0  ;;  %11881 = vmatmul.mubr.msk.f32.gmra.mrb[142].mxu0 %vm175_vm1, %v10265_v62  ;;  %11934 = vmatmul.mubr.msk.f32.gmra.mrb[142].mxu1 %vm175_vm1, %v10319_v59  ;;  %v11611_v4 = vpop.f32.mrb[37].mxu1 }
 0x12d   :  { %11883 = vmatprep.mubr.msk.f32.mxu0 %vm13139_vm2, %v13138_v1  ;;  %11936 = vmatprep.mubr.msk.f32.mxu1 %vm13139_vm2, %v13138_v1  ;;  %v10273_v4 = vld [vmem:[%s16835_s1 + $0xd6] ss:$2 sm:$0xff] }
 0x12f   :  { %v751_v7 = vpop.f32.mrb[38].mxu0  ;;  %v992_v10 = vpop.f32.mrb[38].mxu1 }
 0x130   :  { %v827_v11 = vadd.f32 %v751_v7, %v13994_v9  ;;  %v11561_v12 = vpop.f32.mrb[39].mxu0  ;;  %11884 = vmatmul.mubr.msk.f32.gmra.mrb[144].mxu0 %vm175_vm1, %v10266_v5  ;;  %11937 = vmatmul.mubr.msk.f32.gmra.mrb[144].mxu1 %vm175_vm1, %v10320_v6  ;;  %v11614_v13 = vpop.f32.mrb[39].mxu1  ;;  %v10321_v9 = vld [vmem:[%s16835_s1 + $0x195] ss:$2 sm:$0xff] }
 0x131   :  { %11886 = vmatprep.mubr.msk.f32.mxu0 %vm13139_vm2, %v13138_v1  ;;  %11939 = vmatprep.mubr.msk.f32.mxu1 %vm13139_vm2, %v13138_v1  ;;  %v10327_v5 = vld [vmem:[%s16835_s1 + $0x1f5] ss:$2 sm:$0xff]  ;;  %v10274_v13 = vld [vmem:[%s16835_s1 + $0xe6] ss:$2 sm:$0xff] }
 0x132   :  { %v14250_v15 = vadd.f32 %v992_v10, %v827_v11 }
 0x133   :  { %v756_v18 = vpop.f32.mrb[40].mxu0  ;;  %v997_v19 = vpop.f32.mrb[40].mxu1 }
 0x134   :  { %v828_v20 = vadd.f32 %v756_v18, %v14008_v16  ;;  %v11564_v21 = vpop.f32.mrb[41].mxu0  ;;  %11887 = vmatmul.mubr.msk.f32.gmra.mrb[146].mxu0 %vm175_vm1, %v10267_v14  ;;  %11940 = vmatmul.mubr.msk.f32.gmra.mrb[146].mxu1 %vm175_vm1, %v10321_v9  ;;  %v11617_v22 = vpop.f32.mrb[41].mxu1  ;;  %v10322_v16 = vld [vmem:[%s16835_s1 + $0x1a5] ss:$2 sm:$0xff] }
 0x135   :  { %11889 = vmatprep.mubr.msk.f32.mxu0 %vm13139_vm2, %v13138_v1  ;;  %11942 = vmatprep.mubr.msk.f32.mxu1 %vm13139_vm2, %v13138_v1  ;;  %v10275_v21 = vld [vmem:[%s16835_s1 + $0xf6] ss:$2 sm:$0xff]  ;;  %v10329_v22 = vld [vmem:[%s16835_s1 + $0x215] ss:$2 sm:$0xff] }
 0x136   :  { %v14265_v26 = vadd.f32 %v997_v19, %v828_v20 }
 0x137   :  { %v761_v27 = vpop.f32.mrb[42].mxu0  ;;  %v1002_v28 = vpop.f32.mrb[42].mxu1 }
 0x138   :  { %v829_v29 = vadd.f32 %v761_v27, %v14022_v23  ;;  %v11567_v31 = vpop.f32.mrb[43].mxu0  ;;  %11890 = vmatmul.mubr.msk.f32.gmra.mrb[148].mxu0 %vm175_vm1, %v10268_v24  ;;  %11943 = vmatmul.mubr.msk.f32.gmra.mrb[148].mxu1 %vm175_vm1, %v10322_v16  ;;  %v11620_v32 = vpop.f32.mrb[43].mxu1  ;;  %v10323_v23 = vld [vmem:[%s16835_s1 + $0x1b5] ss:$2 sm:$0xff] }
 0x139   :  { %11892 = vmatprep.mubr.msk.f32.mxu0 %vm13139_vm2, %v13138_v1  ;;  %11945 = vmatprep.mubr.msk.f32.mxu1 %vm13139_vm2, %v13138_v1  ;;  %v10276_v31 = vld [vmem:[%s16835_s1 + $0x106] ss:$2 sm:$0xff] }
 0x13a   :  { %v14280_v35 = vadd.f32 %v1002_v28, %v829_v29 }
 0x13b   :  { %v766_v36 = vpop.f32.mrb[44].mxu0  ;;  %v1007_v38 = vpop.f32.mrb[44].mxu1 }
 0x13c   :  { %v830_v39 = vadd.f32 %v766_v36, %v14036_v30  ;;  %v11570_v40 = vpop.f32.mrb[45].mxu0  ;;  %11893 = vmatmul.mubr.msk.f32.gmra.mrb[150].mxu0 %vm175_vm1, %v10269_v34  ;;  %11946 = vmatmul.mubr.msk.f32.gmra.mrb[150].mxu1 %vm175_vm1, %v10323_v23  ;;  %v11623_v41 = vpop.f32.mrb[45].mxu1  ;;  %v10324_v30 = vld [vmem:[%s16835_s1 + $0x1c5] ss:$2 sm:$0xff] }
 0x13d   :  { %11895 = vmatprep.mubr.msk.f32.mxu0 %vm13139_vm2, %v13138_v1  ;;  %11948 = vmatprep.mubr.msk.f32.mxu1 %vm13139_vm2, %v13138_v1  ;;  %v10277_v40 = vld [vmem:[%s16835_s1 + $0x116] ss:$2 sm:$0xff] }
 0x13e   :  { %v14295_v45 = vadd.f32 %v1007_v38, %v830_v39 }
 0x13f   :  { %v771_v46 = vpop.f32.mrb[46].mxu0  ;;  %v1012_v47 = vpop.f32.mrb[46].mxu1 }
 0x140   :  { %v831_v48 = vadd.f32 %v771_v46, %v14050_v37  ;;  %v11573_v49 = vpop.f32.mrb[47].mxu0  ;;  %11896 = vmatmul.mubr.msk.f32.gmra.mrb[152].mxu0 %vm175_vm1, %v10270_v42  ;;  %11949 = vmatmul.mubr.msk.f32.gmra.mrb[152].mxu1 %vm175_vm1, %v10324_v30  ;;  %v11626_v50 = vpop.f32.mrb[47].mxu1  ;;  %v10325_v37 = vld [vmem:[%s16835_s1 + $0x1d5] ss:$2 sm:$0xff] }
 0x141   :  { %11898 = vmatprep.mubr.msk.f32.mxu0 %vm13139_vm2, %v13138_v1  ;;  %11951 = vmatprep.mubr.msk.f32.mxu1 %vm13139_vm2, %v13138_v1  ;;  %v10278_v49 = vld [vmem:[%s16835_s1 + $0x126] ss:$2 sm:$0x3f] }
 0x142   :  { %v14310_v53 = vadd.f32 %v1012_v47, %v831_v48 }
 0x143   :  { %v776_v54 = vpop.f32.mrb[48].mxu0  ;;  %v1017_v55 = vpop.f32.mrb[48].mxu1 }
 0x144   :  { %v832_v56 = vadd.f32 %v776_v54, %v14064_v44  ;;  %v11576_v58 = vpop.f32.mrb[49].mxu0  ;;  %11899 = vmatmul.mubr.msk.f32.gmra.mrb[154].mxu0 %vm175_vm1, %v10271_v52  ;;  %11952 = vmatmul.mubr.msk.f32.gmra.mrb[154].mxu1 %vm175_vm1, %v10325_v37  ;;  %v11629_v60 = vpop.f32.mrb[49].mxu1  ;;  %v10326_v44 = vld [vmem:[%s16835_s1 + $0x1e5] ss:$2 sm:$0xff] }
 0x145   :  { %11901 = vmatprep.mubr.msk.f32.mxu0 %vm13139_vm2, %v13138_v1  ;;  %11954 = vmatprep.mubr.msk.f32.mxu1 %vm13139_vm2, %v13138_v1  ;;  %v10299_v58 = vld [vmem:[%s16835_s1 + $0x144] ss:$2 sm:$0xff] }
 0x146   :  { %v14325_v62 = vadd.f32 %v1017_v55, %v832_v56 }
 0x147   :  { %v781_v59 = vpop.f32.mrb[50].mxu0  ;;  %v1022_v0 = vpop.f32.mrb[50].mxu1 }
 0x148   :  { %v11579_v2 = vpop.f32.mrb[51].mxu0  ;;  %11902 = vmatmul.mubr.msk.f32.gmra.mrb[156].mxu0 %vm175_vm1, %v10272_v61  ;;  %11955 = vmatmul.mubr.msk.f32.gmra.mrb[156].mxu1 %vm175_vm1, %v10326_v44  ;;  %v11632_v3 = vpop.f32.mrb[51].mxu1  ;;  %v10423_v61 = vld [vmem:[%s16834_s29 + $0xc] sm:$0xf]  ;;  %v10459_v0 = vld [vmem:[%s16834_s29 + $0x10] sm:$0xf] }
 0x149   :  { %11904 = vmatprep.mubr.msk.f32.mxu0 %vm13139_vm2, %v13138_v1  ;;  %11957 = vmatprep.mubr.msk.f32.mxu1 %vm13139_vm2, %v13138_v1 }
 0x14b   :  { %v786_v6 = vpop.f32.mrb[52].mxu0  ;;  %v1027_v7 = vpop.f32.mrb[52].mxu1 }
 0x14c   :  { %v834_v10 = vadd.f32 %v786_v6, %v14090_v57  ;;  %v11582_v11 = vpop.f32.mrb[53].mxu0  ;;  %11905 = vmatmul.mubr.msk.f32.gmra.mrb[158].mxu0 %vm175_vm1, %v10273_v4  ;;  %11958 = vmatmul.mubr.msk.f32.gmra.mrb[158].mxu1 %vm175_vm1, %v10327_v5  ;;  %v11635_v12 = vpop.f32.mrb[53].mxu1  ;;  %v10328_v57 = vld [vmem:[%s16835_s1 + $0x205] ss:$2 sm:$0xff]  ;;  %v10300_v5 = vld [vmem:[%s16835_s1 + $0x154] ss:$2 sm:$0xff] }
 0x14d   :  { %11907 = vmatprep.mubr.msk.f32.mxu0 %vm13139_vm2, %v13138_v1  ;;  %11960 = vmatprep.mubr.msk.f32.mxu1 %vm13139_vm2, %v13138_v1  ;;  %v10371_v6 = vld [vmem:[%s16835_s1 + $0x156] ss:$2 sm:$0xff] }
 0x14e   :  { %v14352_v14 = vadd.f32 %v1027_v7, %v834_v10 }
 0x14f   :  { %v791_v9 = vpop.f32.mrb[54].mxu0  ;;  %v1032_v18 = vpop.f32.mrb[54].mxu1 }
 0x150   :  { %v11585_v19 = vpop.f32.mrb[55].mxu0  ;;  %11908 = vmatmul.mubr.msk.f32.gmra.mrb[160].mxu0 %vm175_vm1, %v10274_v13  ;;  %11961 = vmatmul.mubr.msk.f32.gmra.mrb[160].mxu1 %vm175_vm1, %v10328_v57  ;;  %v11638_v20 = vpop.f32.mrb[55].mxu1  ;;  %v10301_v57 = vld [vmem:[%s16835_s1 + $0x164] ss:$2 sm:$0xff] }
 0x151   :  { %11910 = vmatprep.mubr.msk.f32.mxu0 %vm13139_vm2, %v13138_v1  ;;  %11963 = vmatprep.mubr.msk.f32.mxu1 %vm13139_vm2, %v13138_v1 }
 0x153   :  { %v796_v24 = vpop.f32.mrb[56].mxu0  ;;  %v1037_v16 = vpop.f32.mrb[56].mxu1 }
 0x154   :  { %v836_v27 = vadd.f32 %v796_v24, %v14116_v8  ;;  %v11588_v28 = vpop.f32.mrb[57].mxu0  ;;  %11911 = vmatmul.mubr.msk.f32.gmra.mrb[162].mxu0 %vm175_vm1, %v10275_v21  ;;  %11964 = vmatmul.mubr.msk.f32.gmra.mrb[162].mxu1 %vm175_vm1, %v10329_v22  ;;  %v11641_v29 = vpop.f32.mrb[57].mxu1  ;;  %v10330_v8 = vld [vmem:[%s16835_s1 + $0x225] ss:$2 sm:$0xff]  ;;  %v10302_v24 = vld [vmem:[%s16835_s1 + $0x174] ss:$2 sm:$0xff] }
 0x155   :  { %11913 = vmatprep.mubr.msk.f32.mxu0 %vm13139_vm2, %v13138_v1  ;;  %11966 = vmatprep.mubr.msk.f32.mxu1 %vm13139_vm2, %v13138_v1 }
 0x156   :  { %v14379_v32 = vadd.f32 %v1037_v16, %v836_v27 }
 0x157   :  { %v801_v34 = vpop.f32.mrb[58].mxu0  ;;  %v1042_v23 = vpop.f32.mrb[58].mxu1 }
 0x158   :  { %v837_v36 = vadd.f32 %v801_v34, %v14130_v17  ;;  %v11591_v38 = vpop.f32.mrb[59].mxu0  ;;  %11914 = vmatmul.mubr.msk.f32.gmra.mrb[164].mxu0 %vm175_vm1, %v10276_v31  ;;  %11967 = vmatmul.mubr.msk.f32.gmra.mrb[164].mxu1 %vm175_vm1, %v10330_v8  ;;  %v11644_v39 = vpop.f32.mrb[59].mxu1  ;;  %v10331_v17 = vld [vmem:[%s16835_s1 + $0x235] ss:$2 sm:$0xff]  ;;  %v10303_v8 = vld [vmem:[%s16835_s1 + $0x184] ss:$2 sm:$0xff] }
 0x159   :  { %11916 = vmatprep.mubr.msk.f32.mxu0 %vm13139_vm2, %v13138_v1  ;;  %11969 = vmatprep.mubr.msk.f32.mxu1 %vm13139_vm2, %v13138_v1  ;;  %v10374_v34 = vld [vmem:[%s16835_s1 + $0x186] ss:$2 sm:$0xff] }
 0x15a   :  { %v14394_v41 = vadd.f32 %v1042_v23, %v837_v36 }
 0x15b   :  { %v806_v42 = vpop.f32.mrb[60].mxu0  ;;  %v1047_v30 = vpop.f32.mrb[60].mxu1 }
 0x15c   :  { %v838_v46 = vadd.f32 %v806_v42, %v14144_v25  ;;  %v11594_v47 = vpop.f32.mrb[61].mxu0  ;;  %11917 = vmatmul.mubr.msk.f32.gmra.mrb[166].mxu0 %vm175_vm1, %v10277_v40  ;;  %11970 = vmatmul.mubr.msk.f32.gmra.mrb[166].mxu1 %vm175_vm1, %v10331_v17  ;;  %v11647_v48 = vpop.f32.mrb[61].mxu1  ;;  %v10332_v25 = vld [vmem:[%s16835_s1 + $0x245] ss:$2 sm:$0x3f] }
 0x15d   :  { %11919 = vmatprep.mubr.msk.f32.mxu0 %vm13139_vm2, %v13138_v1  ;;  %11972 = vmatprep.mubr.msk.f32.mxu1 %vm13139_vm2, %v13138_v1  ;;  %v10304_v17 = vld [vmem:[%s16835_s1 + $0x194] ss:$2 sm:$0xff] }
 0x15e   :  { %v14409_v50 = vadd.f32 %v1047_v30, %v838_v46 }
 0x15f   :  { %v811_v52 = vpop.f32.mrb[62].mxu0  ;;  %v1052_v37 = vpop.f32.mrb[62].mxu1 }
 0x160   :  { %v839_v54 = vadd.f32 %v811_v52, %v14158_v33  ;;  %v11597_v55 = vpop.f32.mrb[63].mxu0  ;;  %11920 = vmatmul.mubr.msk.f32.gmra.mrb[168].mxu0 %vm175_vm1, %v10278_v49  ;;  %11973 = vmatmul.mubr.msk.f32.gmra.mrb[168].mxu1 %vm175_vm1, %v10332_v25  ;;  %v11650_v56 = vpop.f32.mrb[63].mxu1  ;;  %v10370_v33 = vld [vmem:[%s16835_s1 + $0x146] ss:$2 sm:$0xff] }
 0x161   :  { %11977 = vmatprep.mubr.msk.f32.mxu0 %vm13139_vm2, %v13138_v1  ;;  %12030 = vmatprep.mubr.msk.f32.mxu1 %vm13139_vm2, %v13138_v1  ;;  %v10305_v25 = vld [vmem:[%s16835_s1 + $0x1a4] ss:$2 sm:$0xff] }
 0x162   :  { %v14424_v60 = vadd.f32 %v1052_v37, %v839_v54 }
 0x163   :  { %v816_v44 = vpop.f32.mrb[64].mxu0  ;;  %v1057_v59 = vpop.f32.mrb[64].mxu1 }
 0x164   :  { %v840_v2 = vadd.f32 %v816_v44, %v14178_v43  ;;  %v11600_v3 = vpop.f32.mrb[65].mxu0  ;;  %11978 = vmatmul.mubr.msk.f32.vlgmr.msra.gmra.mrb[170].mxu0 %vm175_vm1, %v10299_v58  ;;  %12031 = vmatmul.mubr.msk.f32.vlgmr.msra.gmra.mrb[170].mxu1 %vm175_vm1, %v10370_v33  ;;  %v11653_v4 = vpop.f32.mrb[65].mxu1  ;;  %v10306_v33 = vld [vmem:[%s16835_s1 + $0x1b4] ss:$2 sm:$0xff] }
 0x165   :  { %12082 = vmatpush3.msk.msra.mxu0 %vm227_vm0, %v10423_v61  ;;  %11980 = vmatprep.mubr.msk.f32.mxu0 %vm13139_vm2, %v13138_v1  ;;  %v10307_v4 = vld [vmem:[%s16835_s1 + $0x1c4] ss:$2 sm:$0xff] }
 0x166   :  { %v14444_v43 = vadd.f32 %v1057_v59, %v840_v2  ;;  %12033 = vmatprep.mubr.msk.f32.mxu1 %vm13139_vm2, %v13138_v1  ;;  %12135 = vmatpush3.msk.msra.mxu1 %vm227_vm0, %v10459_v0 }
 0x167   :  { %v821_v7 = vpop.f32.mrb[66].mxu0  ;;  %v1062_v10 = vpop.f32.mrb[66].mxu1  ;;  %12187 = vmatprep.subr.mxu0 %v13138_v1  ;;  %12240 = vmatprep.subr.mxu1 %v13138_v1 }
 0x168   :  { %v841_v11 = vadd.f32 %v821_v7, %v14196_v51  ;;  %v11603_v12 = vpop.f32.mrb[67].mxu0  ;;  %11981 = vmatmul.mubr.msk.f32.gmra.mrb[172].mxu0 %vm175_vm1, %v10300_v5  ;;  %12034 = vmatmul.mubr.msk.f32.gmra.mrb[172].mxu1 %vm175_vm1, %v10371_v6  ;;  %v11656_v13 = vpop.f32.mrb[67].mxu1  ;;  %v10372_v51 = vld [vmem:[%s16835_s1 + $0x166] ss:$2 sm:$0xff] }
 0x169   :  { %11983 = vmatprep.mubr.msk.f32.mxu0 %vm13139_vm2, %v13138_v1  ;;  %12036 = vmatprep.mubr.msk.f32.mxu1 %vm13139_vm2, %v13138_v1  ;;  %v10308_v13 = vld [vmem:[%s16835_s1 + $0x1d4] ss:$2 sm:$0xff] }
 0x16a   :  { %v14464_v9 = vadd.f32 %v1062_v10, %v841_v11 }
 0x16b   :  { %v1239_v18 = vpop.f32.mrb[68].mxu0  ;;  %v1496_v19 = vpop.f32.mrb[68].mxu1 }
 0x16c   :  { %v1323_v20 = vadd.f32 %v1239_v18, %v14223_v63  ;;  %v11661_v21 = vpop.f32.mrb[69].mxu0  ;;  %11984 = vmatmul.mubr.msk.f32.gmra.mrb[174].mxu0 %vm175_vm1, %v10301_v57  ;;  %12037 = vmatmul.mubr.msk.f32.gmra.mrb[174].mxu1 %vm175_vm1, %v10372_v51  ;;  %v11714_v22 = vpop.f32.mrb[69].mxu1  ;;  %v10373_v63 = vld [vmem:[%s16835_s1 + $0x176] ss:$2 sm:$0xff] }
 0x16d   :  { %11986 = vmatprep.mubr.msk.f32.mxu0 %vm13139_vm2, %v13138_v1  ;;  %12039 = vmatprep.mubr.msk.f32.mxu1 %vm13139_vm2, %v13138_v1  ;;  %v10309_v22 = vld [vmem:[%s16835_s1 + $0x1e4] ss:$2 sm:$0xff] }
 0x16e   :  { %v14479_v16 = vadd.f32 %v1496_v19, %v1323_v20 }
 0x16f   :  { %v1244_v27 = vpop.f32.mrb[70].mxu0  ;;  %v1501_v28 = vpop.f32.mrb[70].mxu1 }
 0x170   :  { %v11664_v29 = vpop.f32.mrb[71].mxu0  ;;  %11987 = vmatmul.mubr.msk.f32.gmra.mrb[176].mxu0 %vm175_vm1, %v10302_v24  ;;  %12040 = vmatmul.mubr.msk.f32.gmra.mrb[176].mxu1 %vm175_vm1, %v10373_v63  ;;  %v11717_v31 = vpop.f32.mrb[71].mxu1 }
 0x171   :  { %11989 = vmatprep.mubr.msk.f32.mxu0 %vm13139_vm2, %v13138_v1  ;;  %12042 = vmatprep.mubr.msk.f32.mxu1 %vm13139_vm2, %v13138_v1  ;;  %v10310_v31 = vld [vmem:[%s16835_s1 + $0x1f4] ss:$2 sm:$0xff] }
 0x173   :  { %v1249_v23 = vpop.f32.mrb[72].mxu0  ;;  %v1506_v36 = vpop.f32.mrb[72].mxu1 }
 0x174   :  { %v1325_v38 = vadd.f32 %v1249_v23, %v14250_v15  ;;  %v11667_v39 = vpop.f32.mrb[73].mxu0  ;;  %11990 = vmatmul.mubr.msk.f32.gmra.mrb[178].mxu0 %vm175_vm1, %v10303_v8  ;;  %12043 = vmatmul.mubr.msk.f32.gmra.mrb[178].mxu1 %vm175_vm1, %v10374_v34  ;;  %v11720_v40 = vpop.f32.mrb[73].mxu1  ;;  %v10375_v15 = vld [vmem:[%s16835_s1 + $0x196] ss:$2 sm:$0xff] }
 0x175   :  { %11992 = vmatprep.mubr.msk.f32.mxu0 %vm13139_vm2, %v13138_v1  ;;  %12045 = vmatprep.mubr.msk.f32.mxu1 %vm13139_vm2, %v13138_v1  ;;  %v10381_v8 = vld [vmem:[%s16835_s1 + $0x1f6] ss:$2 sm:$0xff] }
 0x176   :  { %v14554_v42 = vadd.f32 %v1506_v36, %v1325_v38  ;;  %v10311_v40 = vld [vmem:[%s16835_s1 + $0x204] ss:$2 sm:$0xff] }
 0x177   :  { %v1254_v30 = vpop.f32.mrb[74].mxu0  ;;  %v1511_v46 = vpop.f32.mrb[74].mxu1 }
 0x178   :  { %v1326_v47 = vadd.f32 %v1254_v30, %v14265_v26  ;;  %v11670_v48 = vpop.f32.mrb[75].mxu0  ;;  %11993 = vmatmul.mubr.msk.f32.gmra.mrb[180].mxu0 %vm175_vm1, %v10304_v17  ;;  %12046 = vmatmul.mubr.msk.f32.gmra.mrb[180].mxu1 %vm175_vm1, %v10375_v15  ;;  %v11723_v49 = vpop.f32.mrb[75].mxu1  ;;  %v10376_v26 = vld [vmem:[%s16835_s1 + $0x1a6] ss:$2 sm:$0xff] }
 0x179   :  { %11995 = vmatprep.mubr.msk.f32.mxu0 %vm13139_vm2, %v13138_v1  ;;  %12048 = vmatprep.mubr.msk.f32.mxu1 %vm13139_vm2, %v13138_v1  ;;  %v10312_v48 = vld [vmem:[%s16835_s1 + $0x214] ss:$2 sm:$0xff] }
 0x17a   :  { %v14569_v52 = vadd.f32 %v1511_v46, %v1326_v47  ;;  %v10383_v49 = vld [vmem:[%s16835_s1 + $0x216] ss:$2 sm:$0xff] }
 0x17b   :  { %v1259_v37 = vpop.f32.mrb[76].mxu0  ;;  %v1516_v54 = vpop.f32.mrb[76].mxu1 }
 0x17c   :  { %v1327_v55 = vadd.f32 %v1259_v37, %v14280_v35  ;;  %v11673_v56 = vpop.f32.mrb[77].mxu0  ;;  %11996 = vmatmul.mubr.msk.f32.gmra.mrb[182].mxu0 %vm175_vm1, %v10305_v25  ;;  %12049 = vmatmul.mubr.msk.f32.gmra.mrb[182].mxu1 %vm175_vm1, %v10376_v26  ;;  %v11726_v58 = vpop.f32.mrb[77].mxu1  ;;  %v10377_v35 = vld [vmem:[%s16835_s1 + $0x1b6] ss:$2 sm:$0xff] }
 0x17d   :  { %11998 = vmatprep.mubr.msk.f32.mxu0 %vm13139_vm2, %v13138_v1  ;;  %12051 = vmatprep.mubr.msk.f32.mxu1 %vm13139_vm2, %v13138_v1  ;;  %v10313_v56 = vld [vmem:[%s16835_s1 + $0x224] ss:$2 sm:$0xff] }
 0x17e   :  { %v14584_v61 = vadd.f32 %v1516_v54, %v1327_v55 }
 0x17f   :  { %v1264_v44 = vpop.f32.mrb[78].mxu0  ;;  %v1521_v59 = vpop.f32.mrb[78].mxu1 }
 0x180   :  { %v1328_v0 = vadd.f32 %v1264_v44, %v14295_v45  ;;  %v11676_v2 = vpop.f32.mrb[79].mxu0  ;;  %11999 = vmatmul.mubr.msk.f32.gmra.mrb[184].mxu0 %vm175_vm1, %v10306_v33  ;;  %12052 = vmatmul.mubr.msk.f32.gmra.mrb[184].mxu1 %vm175_vm1, %v10377_v35  ;;  %v11729_v3 = vpop.f32.mrb[79].mxu1  ;;  %v10378_v45 = vld [vmem:[%s16835_s1 + $0x1c6] ss:$2 sm:$0xff] }
 0x181   :  { %12001 = vmatprep.mubr.msk.f32.mxu0 %vm13139_vm2, %v13138_v1  ;;  %12054 = vmatprep.mubr.msk.f32.mxu1 %vm13139_vm2, %v13138_v1  ;;  %v10314_v2 = vld [vmem:[%s16835_s1 + $0x234] ss:$2 sm:$0xff] }
 0x182   :  { %v14599_v5 = vadd.f32 %v1521_v59, %v1328_v0 }
 0x183   :  { %v1269_v6 = vpop.f32.mrb[80].mxu0  ;;  %v1526_v7 = vpop.f32.mrb[80].mxu1 }
 0x184   :  { %v1329_v10 = vadd.f32 %v1269_v6, %v14310_v53  ;;  %v11679_v11 = vpop.f32.mrb[81].mxu0  ;;  %12002 = vmatmul.mubr.msk.f32.gmra.mrb[186].mxu0 %vm175_vm1, %v10307_v4  ;;  %12055 = vmatmul.mubr.msk.f32.gmra.mrb[186].mxu1 %vm175_vm1, %v10378_v45  ;;  %v11732_v12 = vpop.f32.mrb[81].mxu1  ;;  %v10379_v53 = vld [vmem:[%s16835_s1 + $0x1d6] ss:$2 sm:$0xff] }
 0x185   :  { %12004 = vmatprep.mubr.msk.f32.mxu0 %vm13139_vm2, %v13138_v1  ;;  %12057 = vmatprep.mubr.msk.f32.mxu1 %vm13139_vm2, %v13138_v1  ;;  %v10315_v11 = vld [vmem:[%s16835_s1 + $0x244] ss:$2 sm:$0x3f] }
 0x186   :  { %v14614_v57 = vadd.f32 %v1526_v7, %v1329_v10 }
 0x187   :  { %v1274_v51 = vpop.f32.mrb[82].mxu0  ;;  %v1531_v18 = vpop.f32.mrb[82].mxu1 }
 0x188   :  { %v1330_v19 = vadd.f32 %v1274_v51, %v14325_v62  ;;  %v11682_v20 = vpop.f32.mrb[83].mxu0  ;;  %12005 = vmatmul.mubr.msk.f32.gmra.mrb[188].mxu0 %vm175_vm1, %v10308_v13  ;;  %12058 = vmatmul.mubr.msk.f32.gmra.mrb[188].mxu1 %vm175_vm1, %v10379_v53  ;;  %v11735_v21 = vpop.f32.mrb[83].mxu1  ;;  %v10380_v62 = vld [vmem:[%s16835_s1 + $0x1e6] ss:$2 sm:$0xff] }
 0x189   :  { %12007 = vmatprep.mubr.msk.f32.mxu0 %vm13139_vm2, %v13138_v1  ;;  %12060 = vmatprep.mubr.msk.f32.mxu1 %vm13139_vm2, %v13138_v1  ;;  %v10406_v20 = vld [vmem:[%s16835_s1 + $0x156] ss:$2 sm:$0xff] }
 0x18a   :  { %v14629_v24 = vadd.f32 %v1531_v18, %v1330_v19 }
 0x18b   :  { %v1279_v63 = vpop.f32.mrb[84].mxu0  ;;  %v1536_v27 = vpop.f32.mrb[84].mxu1 }
 0x18c   :  { %v11685_v28 = vpop.f32.mrb[85].mxu0  ;;  %12008 = vmatmul.mubr.msk.f32.gmra.mrb[190].mxu0 %vm175_vm1, %v10309_v22  ;;  %12061 = vmatmul.mubr.msk.f32.gmra.mrb[190].mxu1 %vm175_vm1, %v10380_v62  ;;  %v11738_v29 = vpop.f32.mrb[85].mxu1  ;;  %v10495_v22 = vld [vmem:[%s16834_s29 + $0x14] sm:$0xf]  ;;  %v10531_v27 = vld [vmem:[%s16834_s29 + $0x18] sm:$0xf] }
 0x18d   :  { %12010 = vmatprep.mubr.msk.f32.mxu0 %vm13139_vm2, %v13138_v1  ;;  %12063 = vmatprep.mubr.msk.f32.mxu1 %vm13139_vm2, %v13138_v1 }
 0x18f   :  { %v1284_v34 = vpop.f32.mrb[86].mxu0  ;;  %v1541_v23 = vpop.f32.mrb[86].mxu1 }
 0x190   :  { %v1332_v36 = vadd.f32 %v1284_v34, %v14352_v14  ;;  %v11688_v38 = vpop.f32.mrb[87].mxu0  ;;  %12011 = vmatmul.mubr.msk.f32.gmra.mrb[192].mxu0 %vm175_vm1, %v10310_v31  ;;  %12064 = vmatmul.mubr.msk.f32.gmra.mrb[192].mxu1 %vm175_vm1, %v10381_v8  ;;  %v11741_v39 = vpop.f32.mrb[87].mxu1  ;;  %v10382_v14 = vld [vmem:[%s16835_s1 + $0x206] ss:$2 sm:$0xff]  ;;  %v10443_v34 = vld [vmem:[%s16835_s1 + $0x167] ss:$2 sm:$0xff] }
 0x191   :  { %12013 = vmatprep.mubr.msk.f32.mxu0 %vm13139_vm2, %v13138_v1  ;;  %12066 = vmatprep.mubr.msk.f32.mxu1 %vm13139_vm2, %v13138_v1  ;;  %v10407_v8 = vld [vmem:[%s16835_s1 + $0x166] ss:$2 sm:$0xff] }
 0x192   :  { %v14656_v17 = vadd.f32 %v1541_v23, %v1332_v36 }
 0x193   :  { %v1289_v15 = vpop.f32.mrb[88].mxu0  ;;  %v1546_v30 = vpop.f32.mrb[88].mxu1 }
 0x194   :  { %v11691_v46 = vpop.f32.mrb[89].mxu0  ;;  %12014 = vmatmul.mubr.msk.f32.gmra.mrb[194].mxu0 %vm175_vm1, %v10311_v40  ;;  %12067 = vmatmul.mubr.msk.f32.gmra.mrb[194].mxu1 %vm175_vm1, %v10382_v14  ;;  %v11744_v47 = vpop.f32.mrb[89].mxu1  ;;  %v10408_v14 = vld [vmem:[%s16835_s1 + $0x176] ss:$2 sm:$0xff] }
 0x195   :  { %12016 = vmatprep.mubr.msk.f32.mxu0 %vm13139_vm2, %v13138_v1  ;;  %12069 = vmatprep.mubr.msk.f32.mxu1 %vm13139_vm2, %v13138_v1 }
 0x197   :  { %v1294_v25 = vpop.f32.mrb[90].mxu0  ;;  %v1551_v26 = vpop.f32.mrb[90].mxu1 }
 0x198   :  { %v1334_v37 = vadd.f32 %v1294_v25, %v14379_v32  ;;  %v11694_v54 = vpop.f32.mrb[91].mxu0  ;;  %12017 = vmatmul.mubr.msk.f32.gmra.mrb[196].mxu0 %vm175_vm1, %v10312_v48  ;;  %12070 = vmatmul.mubr.msk.f32.gmra.mrb[196].mxu1 %vm175_vm1, %v10383_v49  ;;  %v11747_v55 = vpop.f32.mrb[91].mxu1  ;;  %v10384_v32 = vld [vmem:[%s16835_s1 + $0x226] ss:$2 sm:$0xff] }
 0x199   :  { %12019 = vmatprep.mubr.msk.f32.mxu0 %vm13139_vm2, %v13138_v1  ;;  %12072 = vmatprep.mubr.msk.f32.mxu1 %vm13139_vm2, %v13138_v1  ;;  %v10409_v25 = vld [vmem:[%s16835_s1 + $0x186] ss:$2 sm:$0xff] }
 0x19a   :  { %v14683_v58 = vadd.f32 %v1551_v26, %v1334_v37 }
 0x19b   :  { %v1299_v33 = vpop.f32.mrb[92].mxu0  ;;  %v1556_v35 = vpop.f32.mrb[92].mxu1 }
 0x19c   :  { %v1335_v44 = vadd.f32 %v1299_v33, %v14394_v41  ;;  %v11697_v59 = vpop.f32.mrb[93].mxu0  ;;  %12020 = vmatmul.mubr.msk.f32.gmra.mrb[198].mxu0 %vm175_vm1, %v10313_v56  ;;  %12073 = vmatmul.mubr.msk.f32.gmra.mrb[198].mxu1 %vm175_vm1, %v10384_v32  ;;  %v11750_v0 = vpop.f32.mrb[93].mxu1  ;;  %v10385_v41 = vld [vmem:[%s16835_s1 + $0x236] ss:$2 sm:$0xff]  ;;  %v10446_v33 = vld [vmem:[%s16835_s1 + $0x197] ss:$2 sm:$0xff] }
 0x19d   :  { %12022 = vmatprep.mubr.msk.f32.mxu0 %vm13139_vm2, %v13138_v1  ;;  %12075 = vmatprep.mubr.msk.f32.mxu1 %vm13139_vm2, %v13138_v1  ;;  %v10410_v32 = vld [vmem:[%s16835_s1 + $0x196] ss:$2 sm:$0xff] }
 0x19e   :  { %v14698_v3 = vadd.f32 %v1556_v35, %v1335_v44 }
 0x19f   :  { %v1304_v4 = vpop.f32.mrb[94].mxu0  ;;  %v1561_v45 = vpop.f32.mrb[94].mxu1 }
 0x1a0   :  { %v1336_v6 = vadd.f32 %v1304_v4, %v14409_v50  ;;  %v11700_v7 = vpop.f32.mrb[95].mxu0  ;;  %12023 = vmatmul.mubr.msk.f32.gmra.mrb[200].mxu0 %vm175_vm1, %v10314_v2  ;;  %12076 = vmatmul.mubr.msk.f32.gmra.mrb[200].mxu1 %vm175_vm1, %v10385_v41  ;;  %v11753_v10 = vpop.f32.mrb[95].mxu1  ;;  %v10386_v50 = vld [vmem:[%s16835_s1 + $0x246] ss:$2 sm:$0x3f] }
 0x1a1   :  { %12025 = vmatprep.mubr.msk.f32.mxu0 %vm13139_vm2, %v13138_v1  ;;  %12078 = vmatprep.mubr.msk.f32.mxu1 %vm13139_vm2, %v13138_v1  ;;  %v10411_v41 = vld [vmem:[%s16835_s1 + $0x1a6] ss:$2 sm:$0xff] }
 0x1a2   :  { %v14713_v12 = vadd.f32 %v1561_v45, %v1336_v6 }
 0x1a3   :  { %v1309_v13 = vpop.f32.mrb[96].mxu0  ;;  %v1566_v53 = vpop.f32.mrb[96].mxu1 }
 0x1a4   :  { %v1337_v51 = vadd.f32 %v1309_v13, %v14424_v60  ;;  %v11703_v18 = vpop.f32.mrb[97].mxu0  ;;  %12026 = vmatmul.mubr.msk.f32.gmra.mrb[202].mxu0 %vm175_vm1, %v10315_v11  ;;  %12079 = vmatmul.mubr.msk.f32.gmra.mrb[202].mxu1 %vm175_vm1, %v10386_v50  ;;  %v11756_v19 = vpop.f32.mrb[97].mxu1  ;;  %v10442_v60 = vld [vmem:[%s16835_s1 + $0x157] ss:$2 sm:$0xff]  ;;  %v10412_v50 = vld [vmem:[%s16835_s1 + $0x1b6] ss:$2 sm:$0xff] }
 0x1a5   :  { %12083 = vmatprep.mubr.msk.f32.mxu0 %vm13139_vm2, %v13138_v1  ;;  %12136 = vmatprep.mubr.msk.f32.mxu1 %vm13139_vm2, %v13138_v1 }
 0x1a6   :  { %v14728_v21 = vadd.f32 %v1566_v53, %v1337_v51 }
 0x1a7   :  { %v1314_v62 = vpop.f32.mrb[98].mxu0  ;;  %v1571_v63 = vpop.f32.mrb[98].mxu1 }
 0x1a8   :  { %v1338_v28 = vadd.f32 %v1314_v62, %v14444_v43  ;;  %v11706_v29 = vpop.f32.mrb[99].mxu0  ;;  %12084 = vmatmul.mubr.msk.f32.vlgmr.msra.gmra.mrb[204].mxu0 %vm175_vm1, %v10406_v20  ;;  %12137 = vmatmul.mubr.msk.f32.vlgmr.msra.gmra.mrb[204].mxu1 %vm175_vm1, %v10442_v60  ;;  %v11759_v31 = vpop.f32.mrb[99].mxu1  ;;  %v10413_v60 = vld [vmem:[%s16835_s1 + $0x1c6] ss:$2 sm:$0xff] }
 0x1a9   :  { %12188 = vmatpush3.msk.msra.mxu0 %vm227_vm0, %v10495_v22  ;;  %12086 = vmatprep.mubr.msk.f32.mxu0 %vm13139_vm2, %v13138_v1  ;;  %v10414_v31 = vld [vmem:[%s16835_s1 + $0x1d6] ss:$2 sm:$0xff] }
 0x1aa   :  { %v14748_v43 = vadd.f32 %v1571_v63, %v1338_v28  ;;  %12139 = vmatprep.mubr.msk.f32.mxu1 %vm13139_vm2, %v13138_v1  ;;  %12241 = vmatpush3.msk.msra.mxu1 %vm227_vm0, %v10531_v27 }
 0x1ab   :  { %v1319_v23 = vpop.f32.mrb[100].mxu0  ;;  %v1576_v36 = vpop.f32.mrb[100].mxu1  ;;  %12293 = vmatprep.subr.mxu0 %v13138_v1  ;;  %12346 = vmatprep.subr.mxu1 %v13138_v1 }
 0x1ac   :  { %v1339_v38 = vadd.f32 %v1319_v23, %v14464_v9  ;;  %v11709_v39 = vpop.f32.mrb[101].mxu0  ;;  %12087 = vmatmul.mubr.msk.f32.gmra.mrb[206].mxu0 %vm175_vm1, %v10407_v8  ;;  %12140 = vmatmul.mubr.msk.f32.gmra.mrb[206].mxu1 %vm175_vm1, %v10443_v34  ;;  %v11762_v40 = vpop.f32.mrb[101].mxu1  ;;  %v10444_v9 = vld [vmem:[%s16835_s1 + $0x177] ss:$2 sm:$0xff] }
 0x1ad   :  { %12089 = vmatprep.mubr.msk.f32.mxu0 %vm13139_vm2, %v13138_v1  ;;  %12142 = vmatprep.mubr.msk.f32.mxu1 %vm13139_vm2, %v13138_v1  ;;  %v10415_v40 = vld [vmem:[%s16835_s1 + $0x1e6] ss:$2 sm:$0xff] }
 0x1ae   :  { %v14768_v15 = vadd.f32 %v1576_v36, %v1339_v38 }
 0x1af   :  { %v1737_v30 = vpop.f32.mrb[102].mxu0  ;;  %v1994_v46 = vpop.f32.mrb[102].mxu1 }
 0x1b0   :  { %v1821_v47 = vadd.f32 %v1737_v30, %v14479_v16  ;;  %v11767_v48 = vpop.f32.mrb[103].mxu0  ;;  %12090 = vmatmul.mubr.msk.f32.gmra.mrb[208].mxu0 %vm175_vm1, %v10408_v14  ;;  %12143 = vmatmul.mubr.msk.f32.gmra.mrb[208].mxu1 %vm175_vm1, %v10444_v9  ;;  %v11820_v49 = vpop.f32.mrb[103].mxu1  ;;  %v10445_v16 = vld [vmem:[%s16835_s1 + $0x187] ss:$2 sm:$0xff] }
 0x1b1   :  { %12092 = vmatprep.mubr.msk.f32.mxu0 %vm13139_vm2, %v13138_v1  ;;  %12145 = vmatprep.mubr.msk.f32.mxu1 %vm13139_vm2, %v13138_v1  ;;  %v10416_v49 = vld [vmem:[%s16835_s1 + $0x1f6] ss:$2 sm:$0xff] }
 0x1b2   :  { %v14783_v26 = vadd.f32 %v1994_v46, %v1821_v47 }
 0x1b3   :  { %v1742_v37 = vpop.f32.mrb[104].mxu0  ;;  %v1999_v54 = vpop.f32.mrb[104].mxu1 }
 0x1b4   :  { %v11770_v55 = vpop.f32.mrb[105].mxu0  ;;  %12093 = vmatmul.mubr.msk.f32.gmra.mrb[210].mxu0 %vm175_vm1, %v10409_v25  ;;  %12146 = vmatmul.mubr.msk.f32.gmra.mrb[210].mxu1 %vm175_vm1, %v10445_v16  ;;  %v11823_v56 = vpop.f32.mrb[105].mxu1 }
 0x1b5   :  { %12095 = vmatprep.mubr.msk.f32.mxu0 %vm13139_vm2, %v13138_v1  ;;  %12148 = vmatprep.mubr.msk.f32.mxu1 %vm13139_vm2, %v13138_v1  ;;  %v10417_v56 = vld [vmem:[%s16835_s1 + $0x206] ss:$2 sm:$0xff] }
 0x1b7   :  { %v1747_v35 = vpop.f32.mrb[106].mxu0  ;;  %v2004_v44 = vpop.f32.mrb[106].mxu1 }
 0x1b8   :  { %v1823_v59 = vadd.f32 %v1747_v35, %v14554_v42  ;;  %v11773_v0 = vpop.f32.mrb[107].mxu0  ;;  %12096 = vmatmul.mubr.msk.f32.gmra.mrb[212].mxu0 %vm175_vm1, %v10410_v32  ;;  %12149 = vmatmul.mubr.msk.f32.gmra.mrb[212].mxu1 %vm175_vm1, %v10446_v33  ;;  %v11826_v2 = vpop.f32.mrb[107].mxu1  ;;  %v10447_v42 = vld [vmem:[%s16835_s1 + $0x1a7] ss:$2 sm:$0xff] }
 0x1b9   :  { %12098 = vmatprep.mubr.msk.f32.mxu0 %vm13139_vm2, %v13138_v1  ;;  %12151 = vmatprep.mubr.msk.f32.mxu1 %vm13139_vm2, %v13138_v1  ;;  %v10453_v32 = vld [vmem:[%s16835_s1 + $0x207] ss:$2 sm:$0xff]  ;;  %v10418_v2 = vld [vmem:[%s16835_s1 + $0x216] ss:$2 sm:$0xff] }
 0x1ba   :  { %v14810_v4 = vadd.f32 %v2004_v44, %v1823_v59 }
 0x1bb   :  { %v1752_v45 = vpop.f32.mrb[108].mxu0  ;;  %v2009_v6 = vpop.f32.mrb[108].mxu1 }
 0x1bc   :  { %v1824_v7 = vadd.f32 %v1752_v45, %v14569_v52  ;;  %v11776_v10 = vpop.f32.mrb[109].mxu0  ;;  %12099 = vmatmul.mubr.msk.f32.gmra.mrb[214].mxu0 %vm175_vm1, %v10411_v41  ;;  %12152 = vmatmul.mubr.msk.f32.gmra.mrb[214].mxu1 %vm175_vm1, %v10447_v42  ;;  %v11829_v11 = vpop.f32.mrb[109].mxu1  ;;  %v10448_v52 = vld [vmem:[%s16835_s1 + $0x1b7] ss:$2 sm:$0xff] }
 0x1bd   :  { %12101 = vmatprep.mubr.msk.f32.mxu0 %vm13139_vm2, %v13138_v1  ;;  %12154 = vmatprep.mubr.msk.f32.mxu1 %vm13139_vm2, %v13138_v1  ;;  %v10419_v10 = vld [vmem:[%s16835_s1 + $0x226] ss:$2 sm:$0xff]  ;;  %v10455_v11 = vld [vmem:[%s16835_s1 + $0x227] ss:$2 sm:$0xff] }
 0x1be   :  { %v14825_v13 = vadd.f32 %v2009_v6, %v1824_v7 }
 0x1bf   :  { %v1757_v53 = vpop.f32.mrb[110].mxu0  ;;  %v2014_v51 = vpop.f32.mrb[110].mxu1 }
 0x1c0   :  { %v1825_v18 = vadd.f32 %v1757_v53, %v14584_v61  ;;  %v11779_v19 = vpop.f32.mrb[111].mxu0  ;;  %12102 = vmatmul.mubr.msk.f32.gmra.mrb[216].mxu0 %vm175_vm1, %v10412_v50  ;;  %12155 = vmatmul.mubr.msk.f32.gmra.mrb[216].mxu1 %vm175_vm1, %v10448_v52  ;;  %v11832_v20 = vpop.f32.mrb[111].mxu1  ;;  %v10449_v61 = vld [vmem:[%s16835_s1 + $0x1c7] ss:$2 sm:$0xff] }
 0x1c1   :  { %12104 = vmatprep.mubr.msk.f32.mxu0 %vm13139_vm2, %v13138_v1  ;;  %12157 = vmatprep.mubr.msk.f32.mxu1 %vm13139_vm2, %v13138_v1  ;;  %v10420_v19 = vld [vmem:[%s16835_s1 + $0x236] ss:$2 sm:$0xff] }
 0x1c2   :  { %v14840_v22 = vadd.f32 %v2014_v51, %v1825_v18 }
 0x1c3   :  { %v1762_v62 = vpop.f32.mrb[112].mxu0  ;;  %v2019_v63 = vpop.f32.mrb[112].mxu1 }
 0x1c4   :  { %v1826_v27 = vadd.f32 %v1762_v62, %v14599_v5  ;;  %v11782_v28 = vpop.f32.mrb[113].mxu0  ;;  %12105 = vmatmul.mubr.msk.f32.gmra.mrb[218].mxu0 %vm175_vm1, %v10413_v60  ;;  %12158 = vmatmul.mubr.msk.f32.gmra.mrb[218].mxu1 %vm175_vm1, %v10449_v61  ;;  %v11835_v29 = vpop.f32.mrb[113].mxu1  ;;  %v10450_v5 = vld [vmem:[%s16835_s1 + $0x1d7] ss:$2 sm:$0xff] }
 0x1c5   :  { %12107 = vmatprep.mubr.msk.f32.mxu0 %vm13139_vm2, %v13138_v1  ;;  %12160 = vmatprep.mubr.msk.f32.mxu1 %vm13139_vm2, %v13138_v1  ;;  %v10421_v28 = vld [vmem:[%s16835_s1 + $0x246] ss:$2 sm:$0xff] }
 0x1c6   :  { %v14855_v8 = vadd.f32 %v2019_v63, %v1826_v27 }
 0x1c7   :  { %v1767_v34 = vpop.f32.mrb[114].mxu0  ;;  %v2024_v23 = vpop.f32.mrb[114].mxu1 }
 0x1c8   :  { %v1827_v36 = vadd.f32 %v1767_v34, %v14614_v57  ;;  %v11785_v38 = vpop.f32.mrb[115].mxu0  ;;  %12108 = vmatmul.mubr.msk.f32.gmra.mrb[220].mxu0 %vm175_vm1, %v10414_v31  ;;  %12161 = vmatmul.mubr.msk.f32.gmra.mrb[220].mxu1 %vm175_vm1, %v10450_v5  ;;  %v11838_v39 = vpop.f32.mrb[115].mxu1  ;;  %v10451_v57 = vld [vmem:[%s16835_s1 + $0x1e7] ss:$2 sm:$0xff] }
 0x1c9   :  { %12110 = vmatprep.mubr.msk.f32.mxu0 %vm13139_vm2, %v13138_v1  ;;  %12163 = vmatprep.mubr.msk.f32.mxu1 %vm13139_vm2, %v13138_v1  ;;  %v10422_v38 = vld [vmem:[%s16835_s1 + $0x256] ss:$2 sm:$0x3f] }
 0x1ca   :  { %v14870_v14 = vadd.f32 %v2024_v23, %v1827_v36 }
 0x1cb   :  { %v1772_v9 = vpop.f32.mrb[116].mxu0  ;;  %v2029_v30 = vpop.f32.mrb[116].mxu1 }
 0x1cc   :  { %v1828_v46 = vadd.f32 %v1772_v9, %v14629_v24  ;;  %v11788_v47 = vpop.f32.mrb[117].mxu0  ;;  %12111 = vmatmul.mubr.msk.f32.gmra.mrb[222].mxu0 %vm175_vm1, %v10415_v40  ;;  %12164 = vmatmul.mubr.msk.f32.gmra.mrb[222].mxu1 %vm175_vm1, %v10451_v57  ;;  %v11841_v48 = vpop.f32.mrb[117].mxu1  ;;  %v10452_v24 = vld [vmem:[%s16835_s1 + $0x1f7] ss:$2 sm:$0xff] }
 0x1cd   :  { %12113 = vmatprep.mubr.msk.f32.mxu0 %vm13139_vm2, %v13138_v1  ;;  %12166 = vmatprep.mubr.msk.f32.mxu1 %vm13139_vm2, %v13138_v1  ;;  %v10478_v47 = vld [vmem:[%s16835_s1 + $0x158] ss:$2 sm:$0xff] }
 0x1ce   :  { %v14885_v25 = vadd.f32 %v2029_v30, %v1828_v46 }
 0x1cf   :  { %v1777_v16 = vpop.f32.mrb[118].mxu0  ;;  %v2034_v37 = vpop.f32.mrb[118].mxu1 }
 0x1d0   :  { %v11791_v54 = vpop.f32.mrb[119].mxu0  ;;  %12114 = vmatmul.mubr.msk.f32.gmra.mrb[224].mxu0 %vm175_vm1, %v10416_v49  ;;  %12167 = vmatmul.mubr.msk.f32.gmra.mrb[224].mxu1 %vm175_vm1, %v10452_v24  ;;  %v11844_v55 = vpop.f32.mrb[119].mxu1  ;;  %v10567_v49 = vld [vmem:[%s16834_s29 + $0x1c] sm:$0xf]  ;;  %v10603_v37 = vld [vmem:[%s16834_s29 + $0x20] sm:$0xf] }
 0x1d1   :  { %12116 = vmatprep.mubr.msk.f32.mxu0 %vm13139_vm2, %v13138_v1  ;;  %12169 = vmatprep.mubr.msk.f32.mxu1 %vm13139_vm2, %v13138_v1  ;;  %s13141_s29 = smov 32  }
 0x1d3   :  { %v1782_v33 = vpop.f32.mrb[120].mxu0  ;;  %v2039_v35 = vpop.f32.mrb[120].mxu1 }
 0x1d4   :  { %v1830_v44 = vadd.f32 %v1782_v33, %v14656_v17  ;;  %v11794_v59 = vpop.f32.mrb[121].mxu0  ;;  %12117 = vmatmul.mubr.msk.f32.gmra.mrb[226].mxu0 %vm175_vm1, %v10417_v56  ;;  %12170 = vmatmul.mubr.msk.f32.gmra.mrb[226].mxu1 %vm175_vm1, %v10453_v32  ;;  %v11847_v0 = vpop.f32.mrb[121].mxu1  ;;  %v10454_v17 = vld [vmem:[%s16835_s1 + $0x217] ss:$2 sm:$0xff]  ;;  %v10479_v32 = vld [vmem:[%s16835_s1 + $0x168] ss:$2 sm:$0xff] }
 0x1d5   :  { %12119 = vmatprep.mubr.msk.f32.mxu0 %vm13139_vm2, %v13138_v1  ;;  %12172 = vmatprep.mubr.msk.f32.mxu1 %vm13139_vm2, %v13138_v1  ;;  %v10515_v33 = vld [vmem:[%s16835_s1 + $0x178] ss:$2 sm:$0xff] }
 0x1d6   :  { %v14912_v41 = vadd.f32 %v2039_v35, %v1830_v44 }
 0x1d7   :  { %v1787_v42 = vpop.f32.mrb[122].mxu0  ;;  %v2044_v45 = vpop.f32.mrb[122].mxu1 }
 0x1d8   :  { %v11797_v6 = vpop.f32.mrb[123].mxu0  ;;  %12120 = vmatmul.mubr.msk.f32.gmra.mrb[228].mxu0 %vm175_vm1, %v10418_v2  ;;  %12173 = vmatmul.mubr.msk.f32.gmra.mrb[228].mxu1 %vm175_vm1, %v10454_v17  ;;  %v11850_v7 = vpop.f32.mrb[123].mxu1  ;;  %v10480_v17 = vld [vmem:[%s16835_s1 + $0x178] ss:$2 sm:$0xff] }
 0x1d9   :  { %12122 = vmatprep.mubr.msk.f32.mxu0 %vm13139_vm2, %v13138_v1  ;;  %12175 = vmatprep.mubr.msk.f32.mxu1 %vm13139_vm2, %v13138_v1  ;;  %v15029_v45 = vld [vmem:[%s16836_s23] ss:$0 sm:$0xff] }
 0x1db   :  { %v1792_v50 = vpop.f32.mrb[124].mxu0  ;;  %v2049_v52 = vpop.f32.mrb[124].mxu1 }
 0x1dc   :  { %v1832_v53 = vadd.f32 %v1792_v50, %v14683_v58  ;;  %v11800_v51 = vpop.f32.mrb[125].mxu0  ;;  %12123 = vmatmul.mubr.msk.f32.gmra.mrb[230].mxu0 %vm175_vm1, %v10419_v10  ;;  %12176 = vmatmul.mubr.msk.f32.gmra.mrb[230].mxu1 %vm175_vm1, %v10455_v11  ;;  %v11853_v18 = vpop.f32.mrb[125].mxu1  ;;  %v10456_v58 = vld [vmem:[%s16835_s1 + $0x237] ss:$2 sm:$0xff] }
 0x1dd   :  { %12125 = vmatprep.mubr.msk.f32.mxu0 %vm13139_vm2, %v13138_v1  ;;  %12178 = vmatprep.mubr.msk.f32.mxu1 %vm13139_vm2, %v13138_v1 }
 0x1de   :  { %v14939_v20 = vadd.f32 %v2049_v52, %v1832_v53  ;;  %v10481_v52 = vld [vmem:[%s16835_s1 + $0x188] ss:$2 sm:$0xff] }
 0x1df   :  { %v1797_v60 = vpop.f32.mrb[126].mxu0  ;;  %v2054_v61 = vpop.f32.mrb[126].mxu1 }
 0x1e0   :  { %v1833_v62 = vadd.f32 %v1797_v60, %v14698_v3  ;;  %v11803_v63 = vpop.f32.mrb[127].mxu0  ;;  %12126 = vmatmul.mubr.msk.f32.gmra.mrb[232].mxu0 %vm175_vm1, %v10420_v19  ;;  %12179 = vmatmul.mubr.msk.f32.gmra.mrb[232].mxu1 %vm175_vm1, %v10456_v58  ;;  %v11856_v27 = vpop.f32.mrb[127].mxu1  ;;  %v10457_v3 = vld [vmem:[%s16835_s1 + $0x247] ss:$2 sm:$0xff] }
 0x1e1   :  { %12128 = vmatprep.mubr.msk.f32.mxu0 %vm13139_vm2, %v13138_v1  ;;  %12181 = vmatprep.mubr.msk.f32.mxu1 %vm13139_vm2, %v13138_v1 }
 0x1e2   :  { %v14954_v29 = vadd.f32 %v2054_v61, %v1833_v62  ;;  %v10482_v61 = vld [vmem:[%s16835_s1 + $0x198] ss:$2 sm:$0xff]  ;;  %v10518_v62 = vld [vmem:[%s16835_s1 + $0x1a8] ss:$2 sm:$0xff] }
 0x1e3   :  { %v1802_v31 = vpop.f32.mrb[128].mxu0  ;;  %v2059_v5 = vpop.f32.mrb[128].mxu1 }
 0x1e4   :  { %v1834_v34 = vadd.f32 %v1802_v31, %v14713_v12  ;;  %v11806_v23 = vpop.f32.mrb[129].mxu0  ;;  %12129 = vmatmul.mubr.msk.f32.gmra.mrb[234].mxu0 %vm175_vm1, %v10421_v28  ;;  %12182 = vmatmul.mubr.msk.f32.gmra.mrb[234].mxu1 %vm175_vm1, %v10457_v3  ;;  %v11859_v36 = vpop.f32.mrb[129].mxu1  ;;  %v10458_v12 = vld [vmem:[%s16835_s1 + $0x257] ss:$2 sm:$0x3f] }
 0x1e5   :  { %12131 = vmatprep.mubr.msk.f32.mxu0 %vm13139_vm2, %v13138_v1  ;;  %12184 = vmatprep.mubr.msk.f32.mxu1 %vm13139_vm2, %v13138_v1 }
 0x1e6   :  { %v14969_v39 = vadd.f32 %v2059_v5, %v1834_v34  ;;  %v10483_v34 = vld [vmem:[%s16835_s1 + $0x1a8] ss:$2 sm:$0xff] }
 0x1e7   :  { %v1807_v40 = vpop.f32.mrb[130].mxu0  ;;  %v2064_v57 = vpop.f32.mrb[130].mxu1 }
 0x1e8   :  { %v1835_v9 = vadd.f32 %v1807_v40, %v14728_v21  ;;  %v11809_v30 = vpop.f32.mrb[131].mxu0  ;;  %12132 = vmatmul.mubr.msk.f32.gmra.mrb[236].mxu0 %vm175_vm1, %v10422_v38  ;;  %12185 = vmatmul.mubr.msk.f32.gmra.mrb[236].mxu1 %vm175_vm1, %v10458_v12  ;;  %v11862_v46 = vpop.f32.mrb[131].mxu1  ;;  %v10514_v21 = vld [vmem:[%s16835_s1 + $0x168] ss:$2 sm:$0xff] }
 0x1e9   :  { %12189 = vmatprep.mubr.msk.f32.mxu0 %vm13139_vm2, %v13138_v1  ;;  %12242 = vmatprep.mubr.msk.f32.mxu1 %vm13139_vm2, %v13138_v1  ;;  %v10484_v30 = vld [vmem:[%s16835_s1 + $0x1b8] ss:$2 sm:$0xff] }
 0x1ea   :  { %v14984_v48 = vadd.f32 %v2064_v57, %v1835_v9 }
 0x1eb   :  { %v1812_v24 = vpop.f32.mrb[132].mxu0  ;;  %v2069_v16 = vpop.f32.mrb[132].mxu1 }
 0x1ec   :  { %v1836_v54 = vadd.f32 %v1812_v24, %v14748_v43  ;;  %v11812_v55 = vpop.f32.mrb[133].mxu0  ;;  %12190 = vmatmul.mubr.msk.f32.vlgmr.msra.gmra.mrb[238].mxu0 %vm175_vm1, %v10478_v47  ;;  %12243 = vmatmul.mubr.msk.f32.vlgmr.msra.gmra.mrb[238].mxu1 %vm175_vm1, %v10514_v21  ;;  %v11865_v56 = vpop.f32.mrb[133].mxu1 }
 0x1ed   :  { %12294 = vmatpush3.msk.msra.mxu0 %vm227_vm0, %v10567_v49  ;;  %12192 = vmatprep.mubr.msk.f32.mxu0 %vm13139_vm2, %v13138_v1  ;;  %v10485_v56 = vld [vmem:[%s16835_s1 + $0x1c8] ss:$2 sm:$0xff] }
 0x1ee   :  { %v15004_v43 = vadd.f32 %v2069_v16, %v1836_v54  ;;  %12245 = vmatprep.mubr.msk.f32.mxu1 %vm13139_vm2, %v13138_v1  ;;  %12347 = vmatpush3.msk.msra.mxu1 %vm227_vm0, %v10603_v37 }
 0x1ef   :  { %v1817_v35 = vpop.f32.mrb[134].mxu0  ;;  %v2074_v44 = vpop.f32.mrb[134].mxu1  ;;  %12399 = vmatprep.subr.mxu0 %v13138_v1  ;;  %12416 = vmatprep.subr.mxu1 %v13138_v1 }
 0x1f0   :  { %v1837_v59 = vadd.f32 %v1817_v35, %v14768_v15  ;;  %v11815_v0 = vpop.f32.mrb[135].mxu0  ;;  %12193 = vmatmul.mubr.msk.f32.gmra.mrb[240].mxu0 %vm175_vm1, %v10479_v32  ;;  %12246 = vmatmul.mubr.msk.f32.gmra.mrb[240].mxu1 %vm175_vm1, %v10515_v33  ;;  %v11868_v2 = vpop.f32.mrb[135].mxu1  ;;  %v10516_v15 = vld [vmem:[%s16835_s1 + $0x188] ss:$2 sm:$0xff] }
 0x1f1   :  { %12195 = vmatprep.mubr.msk.f32.mxu0 %vm13139_vm2, %v13138_v1  ;;  %12248 = vmatprep.mubr.msk.f32.mxu1 %vm13139_vm2, %v13138_v1 }
 0x1f2   :  { %v15024_v42 = vadd.f32 %v2074_v44, %v1837_v59 }
 0x1f3   :  { %v2251_v6 = vpop.f32.mrb[136].mxu0  ;;  %v15031_v7 = vpop.f32.mrb[136].mxu1 }
 0x1f4   :  { %v2335_v10 = vadd.f32 %v2251_v6, %v14783_v26  ;;  %v11873_v11 = vpop.f32.mrb[137].mxu0  ;;  %12196 = vmatmul.mubr.msk.f32.gmra.mrb[242].mxu0 %vm175_vm1, %v10480_v17  ;;  %12249 = vmatmul.mubr.msk.f32.gmra.mrb[242].mxu1 %vm175_vm1, %v10516_v15  ;;  %v11926_v50 = vpop.f32.mrb[137].mxu1  ;;  %v10517_v26 = vld [vmem:[%s16835_s1 + $0x198] ss:$2 sm:$0xff] }
 0x1f5   :  { %12198 = vmatprep.mubr.msk.f32.mxu0 %vm13139_vm2, %v13138_v1  ;;  %12251 = vmatprep.mubr.msk.f32.mxu1 %vm13139_vm2, %v13138_v1  ;;  %v10486_v15 = vld [vmem:[%s16835_s1 + $0x1d8] ss:$2 sm:$0xff] }
 0x1f6   :  { %v2358_v53 = vadd.f32 %v15029_v45, %v2335_v10 }
 0x1f7   :  { %v2256_v51 = vpop.f32.mrb[138].mxu0  ;;  %v2646_v18 = vpop.f32.mrb[138].mxu1 }
 0x1f8   :  { %v2375_v19 = vmul.f32 0.2, %v2358_v53  ;;  %v11876_v58 = vpop.f32.mrb[139].mxu0  ;;  %12199 = vmatmul.mubr.msk.f32.gmra.mrb[244].mxu0 %vm175_vm1, %v10481_v52  ;;  %12252 = vmatmul.mubr.msk.f32.gmra.mrb[244].mxu1 %vm175_vm1, %v10517_v26  ;;  %v11929_v60 = vpop.f32.mrb[139].mxu1  ;;  %v10487_v18 = vld [vmem:[%s16835_s1 + $0x1e8] ss:$2 sm:$0xff] }
 0x1f9   :  { %12201 = vmatprep.mubr.msk.f32.mxu0 %vm13139_vm2, %v13138_v1  ;;  %12254 = vmatprep.mubr.msk.f32.mxu1 %vm13139_vm2, %v13138_v1 }
 0x1fa   :  { %v2392_v63 = vmax.f32 %v2358_v53, %v2375_v19 }
 0x1fb   :  { %v2261_v27 = vpop.f32.mrb[140].mxu0  ;;  %v15059_v28 = vpop.f32.mrb[140].mxu1 }
 0x1fc   :  { %2409 = vst.msk [vmem:[#allocation4] sm:$0xff] %vm68_vm3, %v2392_v63  ;;  %v2337_v3 = vadd.f32 %v2261_v27, %v14810_v4  ;;  %v11879_v31 = vpop.f32.mrb[141].mxu0  ;;  %12202 = vmatmul.mubr.msk.f32.gmra.mrb[246].mxu0 %vm175_vm1, %v10482_v61  ;;  %12255 = vmatmul.mubr.msk.f32.gmra.mrb[246].mxu1 %vm175_vm1, %v10518_v62  ;;  %v11932_v5 = vpop.f32.mrb[141].mxu1  ;;  %v10519_v4 = vld [vmem:[%s16835_s1 + $0x1b8] ss:$2 sm:$0xff] }
 0x1fd   :  { %12204 = vmatprep.mubr.msk.f32.mxu0 %vm13139_vm2, %v13138_v1  ;;  %12257 = vmatprep.mubr.msk.f32.mxu1 %vm13139_vm2, %v13138_v1  ;;  %v10488_v5 = vld [vmem:[%s16835_s1 + $0x1f8] ss:$2 sm:$0xff] }
 0x1fe   :  { %v2360_v23 = vadd.f32 %v15029_v45, %v2337_v3 }
 0x1ff   :  { %v2266_v36 = vpop.f32.mrb[142].mxu0  ;;  %v15076_v38 = vpop.f32.mrb[142].mxu1 }
 0x200   :  { %v2377_v12 = vmul.f32 0.2, %v2360_v23  ;;  %v2338_v40 = vadd.f32 %v2266_v36, %v14825_v13  ;;  %v11882_v57 = vpop.f32.mrb[143].mxu0  ;;  %12205 = vmatmul.mubr.msk.f32.gmra.mrb[248].mxu0 %vm175_vm1, %v10483_v34  ;;  %12258 = vmatmul.mubr.msk.f32.gmra.mrb[248].mxu1 %vm175_vm1, %v10519_v4  ;;  %v11935_v9 = vpop.f32.mrb[143].mxu1  ;;  %v10520_v13 = vld [vmem:[%s16835_s1 + $0x1c8] ss:$2 sm:$0xff] }
 0x201   :  { %12207 = vmatprep.mubr.msk.f32.mxu0 %vm13139_vm2, %v13138_v1  ;;  %12260 = vmatprep.mubr.msk.f32.mxu1 %vm13139_vm2, %v13138_v1  ;;  %v10489_v9 = vld [vmem:[%s16835_s1 + $0x208] ss:$2 sm:$0xff] }
 0x202   :  { %v2394_v46 = vmax.f32 %v2360_v23, %v2377_v12  ;;  %v2361_v47 = vadd.f32 %v15029_v45, %v2338_v40 }
 0x203   :  { %v2427_v21 = vld [vmem:[#allocation4] sm:$0xff]  ;;  %v2271_v49 = vpop.f32.mrb[144].mxu0  ;;  %v15092_v24 = vpop.f32.mrb[144].mxu1 }
 0x204   :  { %2428 = vst.msk [vmem:[#allocation2 + $0xb] sm:$0xff] %vm68_vm3, %v2427_v21  ;;  %2429 = vst.msk [vmem:[#allocation13] sm:$0xff] %vm68_vm3, %v2427_v21  ;;  %v2378_v16 = vmul.f32 0.2, %v2361_v47  ;;  %v2339_v37 = vadd.f32 %v2271_v49, %v14840_v22  ;;  %v11885_v54 = vpop.f32.mrb[145].mxu0  ;;  %12208 = vmatmul.mubr.msk.f32.gmra.mrb[250].mxu0 %vm175_vm1, %v10484_v30  ;;  %12261 = vmatmul.mubr.msk.f32.gmra.mrb[250].mxu1 %vm175_vm1, %v10520_v13  ;;  %v11938_v55 = vpop.f32.mrb[145].mxu1 }
 0x205   :  { %2411 = vst.msk [vmem:[#allocation4 + $0x10] sm:$0xff] %vm68_vm3, %v2394_v46  ;;  %12210 = vmatprep.mubr.msk.f32.mxu0 %vm13139_vm2, %v13138_v1  ;;  %12263 = vmatprep.mubr.msk.f32.mxu1 %vm13139_vm2, %v13138_v1  ;;  %v10521_v22 = vld [vmem:[%s16835_s1 + $0x1d8] ss:$2 sm:$0xff] }
 0x206   :  { %v2395_v32 = vmax.f32 %v2361_v47, %v2378_v16  ;;  %v2362_v33 = vadd.f32 %v15029_v45, %v2339_v37  ;;  %v10525_v30 = vld [vmem:[%s16835_s1 + $0x218] ss:$2 sm:$0xff] }
 0x207   :  { %v2276_v35 = vpop.f32.mrb[146].mxu0  ;;  %v15111_v44 = vpop.f32.mrb[146].mxu1  ;;  %v10490_v54 = vld [vmem:[%s16835_s1 + $0x218] ss:$2 sm:$0xff] }
 0x208   :  { %2412 = vst.msk [vmem:[#allocation4 + $0x18] sm:$0xff] %vm68_vm3, %v2395_v32  ;;  %v2379_v59 = vmul.f32 0.2, %v2362_v33  ;;  %v2340_v0 = vadd.f32 %v2276_v35, %v14855_v8  ;;  %v11888_v2 = vpop.f32.mrb[147].mxu0  ;;  %12211 = vmatmul.mubr.msk.f32.gmra.mrb[252].mxu0 %vm175_vm1, %v10485_v56  ;;  %12264 = vmatmul.mubr.msk.f32.gmra.mrb[252].mxu1 %vm175_vm1, %v10521_v22  ;;  %v11941_v17 = vpop.f32.mrb[147].mxu1 }
 0x209   :  { %12213 = vmatprep.mubr.msk.f32.mxu0 %vm13139_vm2, %v13138_v1  ;;  %12266 = vmatprep.mubr.msk.f32.mxu1 %vm13139_vm2, %v13138_v1  ;;  %v10522_v8 = vld [vmem:[%s16835_s1 + $0x1e8] ss:$2 sm:$0xff] }
 0x20a   :  { %v2396_v6 = vmax.f32 %v2362_v33, %v2379_v59  ;;  %v2363_v10 = vadd.f32 %v15029_v45, %v2340_v0  ;;  %v10491_v59 = vld [vmem:[%s16835_s1 + $0x228] ss:$2 sm:$0xff]  ;;  %v10527_v0 = vld [vmem:[%s16835_s1 + $0x238] ss:$2 sm:$0xff] }
 0x20b   :  { %v2281_v11 = vpop.f32.mrb[148].mxu0  ;;  %v15128_v50 = vpop.f32.mrb[148].mxu1 }
 0x20c   :  { %2413 = vst.msk [vmem:[#allocation4 + $0x20] sm:$0xff] %vm68_vm3, %v2396_v6  ;;  %v2380_v52 = vmul.f32 0.2, %v2363_v10  ;;  %v2341_v26 = vadd.f32 %v2281_v11, %v14870_v14  ;;  %v11891_v53 = vpop.f32.mrb[149].mxu0  ;;  %12214 = vmatmul.mubr.msk.f32.gmra.mrb[254].mxu0 %vm175_vm1, %v10486_v15  ;;  %12267 = vmatmul.mubr.msk.f32.gmra.mrb[254].mxu1 %vm175_vm1, %v10522_v8  ;;  %v11944_v51 = vpop.f32.mrb[149].mxu1 }
 0x20d   :  { %12216 = vmatprep.mubr.msk.f32.mxu0 %vm13139_vm2, %v13138_v1  ;;  %12269 = vmatprep.mubr.msk.f32.mxu1 %vm13139_vm2, %v13138_v1  ;;  %v10523_v14 = vld [vmem:[%s16835_s1 + $0x1f8] ss:$2 sm:$0xff] }
 0x20e   :  { %v2397_v19 = vmax.f32 %v2363_v10, %v2380_v52  ;;  %v2364_v58 = vadd.f32 %v15029_v45, %v2341_v26  ;;  %v10492_v52 = vld [vmem:[%s16835_s1 + $0x238] ss:$2 sm:$0xff] }
 0x20f   :  { %v2430_v60 = vld [vmem:[#allocation4 + $0x12] sm:$0xff]  ;;  %v2286_v61 = vpop.f32.mrb[150].mxu0  ;;  %v15145_v62 = vpop.f32.mrb[150].mxu1 }
 0x210   :  { %2431 = vst.msk [vmem:[#allocation2 + $0x15] sm:$0xff] %vm68_vm3, %v2430_v60  ;;  %2432 = vst.msk [vmem:[#allocation13 + $0x8] sm:$0xff] %vm68_vm3, %v2430_v60  ;;  %v2381_v63 = vmul.f32 0.2, %v2364_v58  ;;  %v2342_v27 = vadd.f32 %v2286_v61, %v14885_v25  ;;  %v11894_v3 = vpop.f32.mrb[151].mxu0  ;;  %12217 = vmatmul.mubr.msk.f32.gmra.mrb[0].mxu0 %vm175_vm1, %v10487_v18  ;;  %12270 = vmatmul.mubr.msk.f32.gmra.mrb[0].mxu1 %vm175_vm1, %v10523_v14  ;;  %v11947_v31 = vpop.f32.mrb[151].mxu1 }
 0x211   :  { %2414 = vst.msk [vmem:[#allocation4 + $0x28] sm:$0xff] %vm68_vm3, %v2397_v19  ;;  %12219 = vmatprep.mubr.msk.f32.mxu0 %vm13139_vm2, %v13138_v1  ;;  %12272 = vmatprep.mubr.msk.f32.mxu1 %vm13139_vm2, %v13138_v1  ;;  %v10524_v25 = vld [vmem:[%s16835_s1 + $0x208] ss:$2 sm:$0xff] }
 0x212   :  { %v2398_v34 = vmax.f32 %v2364_v58, %v2381_v63  ;;  %v2365_v4 = vadd.f32 %v15029_v45, %v2342_v27  ;;  %v10493_v60 = vld [vmem:[%s16835_s1 + $0x248] ss:$2 sm:$0xff] }
 0x213   :  { %v2291_v23 = vpop.f32.mrb[152].mxu0  ;;  %v2681_v36 = vpop.f32.mrb[152].mxu1 }
 0x214   :  { %2415 = vst.msk [vmem:[#allocation4 + $0x30] sm:$0xff] %vm68_vm3, %v2398_v34  ;;  %v2382_v12 = vmul.f32 0.2, %v2365_v4  ;;  %v11897_v40 = vpop.f32.mrb[153].mxu0  ;;  %12220 = vmatmul.mubr.msk.f32.gmra.mrb[2].mxu0 %vm175_vm1, %v10488_v5  ;;  %12273 = vmatmul.mubr.msk.f32.gmra.mrb[2].mxu1 %vm175_vm1, %v10524_v25  ;;  %v11950_v57 = vpop.f32.mrb[153].mxu1 }
 0x215   :  { %12222 = vmatprep.mubr.msk.f32.mxu0 %vm13139_vm2, %v13138_v1  ;;  %12275 = vmatprep.mubr.msk.f32.mxu1 %vm13139_vm2, %v13138_v1  ;;  %v10494_v23 = vld [vmem:[%s16835_s1 + $0x258] ss:$2 sm:$0x3f] }
 0x216   :  { %v2399_v13 = vmax.f32 %v2365_v4, %v2382_v12 }
 0x217   :  { %v2296_v47 = vpop.f32.mrb[154].mxu0  ;;  %v15177_v21 = vpop.f32.mrb[154].mxu1 }
 0x218   :  { %v2433_v46 = vld [vmem:[#allocation4 + $0x24] sm:$0xff]  ;;  %2416 = vst.msk [vmem:[#allocation4 + $0x38] sm:$0xff] %vm68_vm3, %v2399_v13  ;;  %v2344_v49 = vadd.f32 %v2296_v47, %v14912_v41  ;;  %v11900_v16 = vpop.f32.mrb[155].mxu0  ;;  %12223 = vmatmul.mubr.msk.f32.gmra.mrb[4].mxu0 %vm175_vm1, %v10489_v9  ;;  %12276 = vmatmul.mubr.msk.f32.gmra.mrb[4].mxu1 %vm175_vm1, %v10525_v30  ;;  %v11953_v37 = vpop.f32.mrb[155].mxu1 }
 0x219   :  { %2434 = vst.msk [vmem:[#allocation2 + $0x1f] sm:$0xff] %vm68_vm3, %v2433_v46  ;;  %2435 = vst.msk [vmem:[#allocation13 + $0x10] sm:$0xff] %vm68_vm3, %v2433_v46  ;;  %12225 = vmatprep.mubr.msk.f32.mxu0 %vm13139_vm2, %v13138_v1  ;;  %12278 = vmatprep.mubr.msk.f32.mxu1 %vm13139_vm2, %v13138_v1  ;;  %v10526_v41 = vld [vmem:[%s16835_s1 + $0x228] ss:$2 sm:$0xff]  ;;  %v10550_v47 = vld [vmem:[%s16835_s1 + $0x169] ss:$2 sm:$0xff] }
 0x21a   :  { %v2367_v55 = vadd.f32 %v15029_v45, %v2344_v49 }
 0x21b   :  { %v2301_v56 = vpop.f32.mrb[156].mxu0  ;;  %v2691_v22 = vpop.f32.mrb[156].mxu1 }
 0x21c   :  { %v2384_v32 = vmul.f32 0.2, %v2367_v55  ;;  %v11903_v33 = vpop.f32.mrb[157].mxu0  ;;  %12226 = vmatmul.mubr.msk.f32.gmra.mrb[6].mxu0 %vm175_vm1, %v10490_v54  ;;  %12279 = vmatmul.mubr.msk.f32.gmra.mrb[6].mxu1 %vm175_vm1, %v10526_v41  ;;  %v11956_v35 = vpop.f32.mrb[157].mxu1  ;;  %v15284_v41 = vld [vmem:[%s16837_s30 + $0x8] sm:$0xff] }
 0x21d   :  { %12228 = vmatprep.mubr.msk.f32.mxu0 %vm13139_vm2, %v13138_v1  ;;  %12281 = vmatprep.mubr.msk.f32.mxu1 %vm13139_vm2, %v13138_v1  ;;  %v10551_v35 = vld [vmem:[%s16835_s1 + $0x179] ss:$2 sm:$0xff] }
 0x21e   :  { %v2401_v2 = vmax.f32 %v2367_v55, %v2384_v32  ;;  %v15289_v55 = vld [vmem:[%s16837_s30] sm:$0xff] }
 0x21f   :  { %v2436_v17 = vld [vmem:[#allocation4 + $0x36] sm:$0xff]  ;;  %v2306_v15 = vpop.f32.mrb[158].mxu0  ;;  %v15208_v8 = vpop.f32.mrb[158].mxu1 }
 0x220   :  { %2437 = vst.msk [vmem:[#allocation2 + $0x29] sm:$0xff] %vm68_vm3, %v2436_v17  ;;  %2438 = vst.msk [vmem:[#allocation13 + $0x18] sm:$0xff] %vm68_vm3, %v2436_v17  ;;  %v2346_v6 = vadd.f32 %v2306_v15, %v14939_v20  ;;  %v11906_v10 = vpop.f32.mrb[159].mxu0  ;;  %12229 = vmatmul.mubr.msk.f32.gmra.mrb[8].mxu0 %vm175_vm1, %v10491_v59  ;;  %12282 = vmatmul.mubr.msk.f32.gmra.mrb[8].mxu1 %vm175_vm1, %v10527_v0  ;;  %v11959_v11 = vpop.f32.mrb[159].mxu1  ;;  %v10528_v20 = vld [vmem:[%s16835_s1 + $0x248] ss:$2 sm:$0xff] }
 0x221   :  { %2418 = vst.msk [vmem:[#allocation4 + $0x48] sm:$0xff] %vm68_vm3, %v2401_v2  ;;  %12231 = vmatprep.mubr.msk.f32.mxu0 %vm13139_vm2, %v13138_v1  ;;  %12284 = vmatprep.mubr.msk.f32.mxu1 %vm13139_vm2, %v13138_v1 }
 0x222   :  { %v2369_v26 = vadd.f32 %v15029_v45, %v2346_v6 }
 0x223   :  { %v2311_v53 = vpop.f32.mrb[160].mxu0  ;;  %v15227_v51 = vpop.f32.mrb[160].mxu1 }
 0x224   :  { %v2386_v18 = vmul.f32 0.2, %v2369_v26  ;;  %v2347_v14 = vadd.f32 %v2311_v53, %v14954_v29  ;;  %v11909_v19 = vpop.f32.mrb[161].mxu0  ;;  %12232 = vmatmul.mubr.msk.f32.gmra.mrb[10].mxu0 %vm175_vm1, %v10492_v52  ;;  %12285 = vmatmul.mubr.msk.f32.gmra.mrb[10].mxu1 %vm175_vm1, %v10528_v20  ;;  %v11962_v58 = vpop.f32.mrb[161].mxu1  ;;  %v10529_v29 = vld [vmem:[%s16835_s1 + $0x258] ss:$2 sm:$0xff] }
 0x225   :  { %12234 = vmatprep.mubr.msk.f32.mxu0 %vm13139_vm2, %v13138_v1  ;;  %12287 = vmatprep.mubr.msk.f32.mxu1 %vm13139_vm2, %v13138_v1  ;;  %v10552_v20 = vld [vmem:[%s16835_s1 + $0x189] ss:$2 sm:$0xff] }
 0x226   :  { %v2403_v61 = vmax.f32 %v2369_v26, %v2386_v18  ;;  %v2370_v63 = vadd.f32 %v15029_v45, %v2347_v14 }
 0x227   :  { %v2316_v3 = vpop.f32.mrb[162].mxu0  ;;  %v15243_v31 = vpop.f32.mrb[162].mxu1 }
 0x228   :  { %v2439_v27 = vld [vmem:[#allocation4 + $0x48] sm:$0xff]  ;;  %2420 = vst.msk [vmem:[#allocation4 + $0x58] sm:$0xff] %vm68_vm3, %v2403_v61  ;;  %v2387_v5 = vmul.f32 0.2, %v2370_v63  ;;  %v2348_v25 = vadd.f32 %v2316_v3, %v14969_v39  ;;  %v11912_v34 = vpop.f32.mrb[163].mxu0  ;;  %12235 = vmatmul.mubr.msk.f32.gmra.mrb[12].mxu0 %vm175_vm1, %v10493_v60  ;;  %12288 = vmatmul.mubr.msk.f32.gmra.mrb[12].mxu1 %vm175_vm1, %v10529_v29  ;;  %v11965_v4 = vpop.f32.mrb[163].mxu1 }
 0x229   :  { %2440 = vst.msk [vmem:[#allocation2 + $0x33] sm:$0xff] %vm68_vm3, %v2439_v27  ;;  %2441 = vst.msk [vmem:[#allocation13 + $0x20] sm:$0xff] %vm68_vm3, %v2439_v27  ;;  %12237 = vmatprep.mubr.msk.f32.mxu0 %vm13139_vm2, %v13138_v1  ;;  %12290 = vmatprep.mubr.msk.f32.mxu1 %vm13139_vm2, %v13138_v1  ;;  %v10530_v39 = vld [vmem:[%s16835_s1 + $0x268] ss:$2 sm:$0x3f] }
 0x22a   :  { %v2404_v36 = vmax.f32 %v2370_v63, %v2387_v5  ;;  %v2371_v12 = vadd.f32 %v15029_v45, %v2348_v25  ;;  %v10554_v4 = vld [vmem:[%s16835_s1 + $0x1a9] ss:$2 sm:$0xff] }
 0x22b   :  { %v2321_v40 = vpop.f32.mrb[164].mxu0  ;;  %v15262_v57 = vpop.f32.mrb[164].mxu1 }
 0x22c   :  { %2421 = vst.msk [vmem:[#allocation4 + $0x60] sm:$0xff] %vm68_vm3, %v2404_v36  ;;  %v2388_v9 = vmul.f32 0.2, %v2371_v12  ;;  %v2349_v30 = vadd.f32 %v2321_v40, %v14984_v48  ;;  %v11915_v13 = vpop.f32.mrb[165].mxu0  ;;  %12238 = vmatmul.mubr.msk.f32.gmra.mrb[14].mxu0 %vm175_vm1, %v10494_v23  ;;  %12291 = vmatmul.mubr.msk.f32.gmra.mrb[14].mxu1 %vm175_vm1, %v10530_v39  ;;  %v11968_v46 = vpop.f32.mrb[165].mxu1 }
 0x22d   :  { %12295 = vmatprep.mubr.msk.f32.mxu0 %vm13139_vm2, %v13138_v1  ;;  %12348 = vmatprep.mubr.msk.f32.mxu1 %vm13139_vm2, %v13138_v1  ;;  %v10586_v48 = vld [vmem:[%s16835_s1 + $0x16a] ss:$2 sm:$0xff] }
 0x22e   :  { %v2405_v49 = vmax.f32 %v2371_v12, %v2388_v9  ;;  %v2372_v16 = vadd.f32 %v15029_v45, %v2349_v30  ;;  %v10590_v23 = vld [vmem:[%s16835_s1 + $0x1aa] ss:$2 sm:$0xff]  ;;  %v10555_v30 = vld [vmem:[%s16835_s1 + $0x1b9] ss:$2 sm:$0xff] }
 0x22f   :  { %v2326_v37 = vpop.f32.mrb[166].mxu0  ;;  %v15279_v54 = vpop.f32.mrb[166].mxu1 }
 0x230   :  { %2422 = vst.msk [vmem:[#allocation4 + $0x68] sm:$0xff] %vm68_vm3, %v2405_v49  ;;  %v2389_v56 = vmul.f32 0.2, %v2372_v16  ;;  %v2350_v22 = vadd.f32 %v2326_v37, %v15004_v43  ;;  %v11918_v32 = vpop.f32.mrb[167].mxu0  ;;  %12296 = vmatmul.mubr.msk.f32.vlgmr.msra.gmra.mrb[16].mxu0 %vm175_vm1, %v10550_v47  ;;  %12349 = vmatmul.mubr.msk.f32.vlgmr.msra.gmra.mrb[16].mxu1 %vm175_vm1, %v10586_v48  ;;  %v11971_v33 = vpop.f32.mrb[167].mxu1 }
 0x231   :  { %12298 = vmatprep.mubr.msk.f32.mxu0 %vm13139_vm2, %v13138_v1  ;;  %12351 = vmatprep.mubr.msk.f32.mxu1 %vm13139_vm2, %v13138_v1  ;;  %v10587_v43 = vld [vmem:[%s16835_s1 + $0x17a] ss:$2 sm:$0xff] }
 0x232   :  { %v2406_v59 = vmax.f32 %v2372_v16, %v2389_v56  ;;  %v2373_v0 = vadd.f32 %v15029_v45, %v2350_v22  ;;  %12400 = vmatpush3.msra.mxu0 %v15284_v41  ;;  %12417 = vmatpush3.msra.mxu1 %v15289_v55  ;;  %v10556_v56 = vld [vmem:[%s16835_s1 + $0x1c9] ss:$2 sm:$0xff] }
 0x233   :  { %v2442_v2 = vld [vmem:[#allocation4 + $0x5a] sm:$0xff]  ;;  %v2331_v17 = vpop.f32.mrb[168].mxu0  ;;  %v15308_v15 = vpop.f32.mrb[168].mxu1  ;;  %12433 = vmatprep.subr.mxu0 %v13138_v1  ;;  %12450 = vmatprep.subr.mxu1 %v13138_v1 }
 0x234   :  { %2443 = vst.msk [vmem:[#allocation2 + $0x3d] sm:$0xff] %vm68_vm3, %v2442_v2  ;;  %2444 = vst.msk [vmem:[#allocation13 + $0x28] sm:$0xff] %vm68_vm3, %v2442_v2  ;;  %v2390_v6 = vmul.f32 0.2, %v2373_v0  ;;  %v2351_v10 = vadd.f32 %v2331_v17, %v15024_v42  ;;  %v11921_v11 = vpop.f32.mrb[169].mxu0  ;;  %12299 = vmatmul.mubr.msk.f32.gmra.mrb[18].mxu0 %vm175_vm1, %v10551_v35  ;;  %12352 = vmatmul.mubr.msk.f32.gmra.mrb[18].mxu1 %vm175_vm1, %v10587_v43  ;;  %v11974_v52 = vpop.f32.mrb[169].mxu1 }
 0x235   :  { %2423 = vst.msk [vmem:[#allocation4 + $0x70] sm:$0xff] %vm68_vm3, %v2406_v59  ;;  %12301 = vmatprep.mubr.msk.f32.mxu0 %vm13139_vm2, %v13138_v1  ;;  %12354 = vmatprep.mubr.msk.f32.mxu1 %vm13139_vm2, %v13138_v1  ;;  %v10588_v42 = vld [vmem:[%s16835_s1 + $0x18a] ss:$2 sm:$0xff] }
 0x236   :  { %v2407_v26 = vmax.f32 %v2373_v0, %v2390_v6  ;;  %v2374_v53 = vadd.f32 %v15029_v45, %v2351_v10  ;;  %v10553_v45 = vld [vmem:[%s16835_s1 + $0x199] ss:$2 sm:$0xff] }
 0x237   :  { %v2845_v18 = vpop.f32.mrb[170].mxu0  ;;  %v3084_v14 = vpop.f32.mrb[170].mxu1  ;;  %v10557_v0 = vld [vmem:[%s16835_s1 + $0x1d9] ss:$2 sm:$0xff] }
 0x238   :  { %2424 = vst.msk [vmem:[#allocation4 + $0x78] sm:$0xff] %vm68_vm3, %v2407_v26  ;;  %v2391_v19 = vmul.f32 0.2, %v2374_v53  ;;  %v2846_v58 = vadd.f32 %v2845_v18, %v15031_v7  ;;  %v11979_v60 = vpop.f32.mrb[171].mxu0  ;;  %12302 = vmatmul.mubr.msk.f32.gmra.mrb[20].mxu0 %vm175_vm1, %v10552_v20  ;;  %12355 = vmatmul.mubr.msk.f32.gmra.mrb[20].mxu1 %vm175_vm1, %v10588_v42  ;;  %v12032_v29 = vpop.f32.mrb[171].mxu1 }
 0x239   :  { %12304 = vmatprep.mubr.msk.f32.mxu0 %vm13139_vm2, %v13138_v1  ;;  %12357 = vmatprep.mubr.msk.f32.mxu1 %vm13139_vm2, %v13138_v1  ;;  %v10589_v7 = vld [vmem:[%s16835_s1 + $0x19a] ss:$2 sm:$0xff]  ;;  %v10558_v20 = vld [vmem:[%s16835_s1 + $0x1e9] ss:$2 sm:$0xff] }
 0x23a   :  { %v2408_v61 = vmax.f32 %v2374_v53, %v2391_v19  ;;  %v15343_v63 = vadd.f32 %v3084_v14, %v2846_v58  ;;  %v10559_v58 = vld [vmem:[%s16835_s1 + $0x1f9] ss:$2 sm:$0xff] }
 0x23b   :  { %v2850_v3 = vpop.f32.mrb[172].mxu0  ;;  %v3089_v5 = vpop.f32.mrb[172].mxu1 }
 0x23c   :  { %v2445_v27 = vld [vmem:[#allocation4 + $0x6c] sm:$0xff]  ;;  %2426 = vst.msk [vmem:[#allocation4 + $0x80] sm:$0x3f] %vm2425_vm4, %v2408_v61  ;;  %v11982_v25 = vpop.f32.mrb[173].mxu0  ;;  %12305 = vmatmul.mubr.msk.f32.gmra.mrb[22].mxu0 %vm175_vm1, %v10553_v45  ;;  %12358 = vmatmul.mubr.msk.f32.gmra.mrb[22].mxu1 %vm175_vm1, %v10589_v7  ;;  %v12035_v34 = vpop.f32.mrb[173].mxu1 }
 0x23d   :  { %2446 = vst.msk [vmem:[#allocation2 + $0x47] sm:$0xff] %vm68_vm3, %v2445_v27  ;;  %2447 = vst.msk [vmem:[#allocation13 + $0x30] sm:$0xff] %vm68_vm3, %v2445_v27  ;;  %12307 = vmatprep.mubr.msk.f32.mxu0 %vm13139_vm2, %v13138_v1  ;;  %12360 = vmatprep.mubr.msk.f32.mxu1 %vm13139_vm2, %v13138_v1  ;;  %v10560_v3 = vld [vmem:[%s16835_s1 + $0x209] ss:$2 sm:$0xff] }
 0x23f   :  { %v2855_v39 = vpop.f32.mrb[174].mxu0  ;;  %v3094_v36 = vpop.f32.mrb[174].mxu1 }
 0x240   :  { %v2856_v12 = vadd.f32 %v2855_v39, %v15059_v28  ;;  %v11985_v40 = vpop.f32.mrb[175].mxu0  ;;  %12308 = vmatmul.mubr.msk.f32.gmra.mrb[24].mxu0 %vm175_vm1, %v10554_v4  ;;  %12361 = vmatmul.mubr.msk.f32.gmra.mrb[24].mxu1 %vm175_vm1, %v10590_v23  ;;  %v12038_v9 = vpop.f32.mrb[175].mxu1  ;;  %v10591_v28 = vld [vmem:[%s16835_s1 + $0x1ba] ss:$2 sm:$0xff]  ;;  %v10561_v39 = vld [vmem:[%s16835_s1 + $0x219] ss:$2 sm:$0xff] }
 0x241   :  { %12310 = vmatprep.mubr.msk.f32.mxu0 %vm13139_vm2, %v13138_v1  ;;  %12363 = vmatprep.mubr.msk.f32.mxu1 %vm13139_vm2, %v13138_v1 }
 0x242   :  { %v15373_v13 = vadd.f32 %v3094_v36, %v2856_v12  ;;  %v10597_v36 = vld [vmem:[%s16835_s1 + $0x21a] ss:$2 sm:$0xff] }
 0x243   :  { %v2448_v46 = vld [vmem:[#allocation4 + $0x7e] sm:$0xff]  ;;  %v2860_v47 = vpop.f32.mrb[176].mxu0  ;;  %v3099_v48 = vpop.f32.mrb[176].mxu1 }
 0x244   :  { %2449 = vst.msk [vmem:[#allocation2 + $0x51] sm:$0xff] %vm68_vm3, %v2448_v46  ;;  %2450 = vst.msk [vmem:[#allocation13 + $0x38] sm:$0xff] %vm68_vm3, %v2448_v46  ;;  %v2861_v49 = vadd.f32 %v2860_v47, %v15076_v38  ;;  %v11988_v16 = vpop.f32.mrb[177].mxu0  ;;  %12311 = vmatmul.mubr.msk.f32.gmra.mrb[26].mxu0 %vm175_vm1, %v10555_v30  ;;  %12364 = vmatmul.mubr.msk.f32.gmra.mrb[26].mxu1 %vm175_vm1, %v10591_v28  ;;  %v12041_v37 = vpop.f32.mrb[177].mxu1  ;;  %v10592_v38 = vld [vmem:[%s16835_s1 + $0x1ca] ss:$2 sm:$0xff] }
 0x245   :  { %12313 = vmatprep.mubr.msk.f32.mxu0 %vm13139_vm2, %v13138_v1  ;;  %12366 = vmatprep.mubr.msk.f32.mxu1 %vm13139_vm2, %v13138_v1  ;;  %v10562_v46 = vld [vmem:[%s16835_s1 + $0x229] ss:$2 sm:$0xff] }
 0x246   :  { %v15390_v22 = vadd.f32 %v3099_v48, %v2861_v49 }
 0x247   :  { %v2865_v32 = vpop.f32.mrb[178].mxu0  ;;  %v3104_v33 = vpop.f32.mrb[178].mxu1 }
 0x248   :  { %v2866_v35 = vadd.f32 %v2865_v32, %v15092_v24  ;;  %v11991_v43 = vpop.f32.mrb[179].mxu0  ;;  %12314 = vmatmul.mubr.msk.f32.gmra.mrb[28].mxu0 %vm175_vm1, %v10556_v56  ;;  %12367 = vmatmul.mubr.msk.f32.gmra.mrb[28].mxu1 %vm175_vm1, %v10592_v38  ;;  %v12044_v59 = vpop.f32.mrb[179].mxu1  ;;  %v10593_v24 = vld [vmem:[%s16835_s1 + $0x1da] ss:$2 sm:$0xff]  ;;  %v10563_v56 = vld [vmem:[%s16835_s1 + $0x239] ss:$2 sm:$0xff] }
 0x249   :  { %12316 = vmatprep.mubr.msk.f32.mxu0 %vm13139_vm2, %v13138_v1  ;;  %12369 = vmatprep.mubr.msk.f32.mxu1 %vm13139_vm2, %v13138_v1  ;;  %v10599_v38 = vld [vmem:[%s16835_s1 + $0x23a] ss:$2 sm:$0xff] }
 0x24a   :  { %v15405_v2 = vadd.f32 %v3104_v33, %v2866_v35 }
 0x24b   :  { %v2870_v17 = vpop.f32.mrb[180].mxu0  ;;  %v3109_v6 = vpop.f32.mrb[180].mxu1 }
 0x24c   :  { %v2871_v10 = vadd.f32 %v2870_v17, %v15111_v44  ;;  %v11994_v11 = vpop.f32.mrb[181].mxu0  ;;  %12317 = vmatmul.mubr.msk.f32.gmra.mrb[30].mxu0 %vm175_vm1, %v10557_v0  ;;  %12370 = vmatmul.mubr.msk.f32.gmra.mrb[30].mxu1 %vm175_vm1, %v10593_v24  ;;  %v12047_v52 = vpop.f32.mrb[181].mxu1  ;;  %v10594_v44 = vld [vmem:[%s16835_s1 + $0x1ea] ss:$2 sm:$0xff]  ;;  %v10564_v0 = vld [vmem:[%s16835_s1 + $0x249] ss:$2 sm:$0xff] }
 0x24d   :  { %12319 = vmatprep.mubr.msk.f32.mxu0 %vm13139_vm2, %v13138_v1  ;;  %12372 = vmatprep.mubr.msk.f32.mxu1 %vm13139_vm2, %v13138_v1 }
 0x24e   :  { %v15420_v42 = vadd.f32 %v3109_v6, %v2871_v10 }
 0x24f   :  { %v2875_v26 = vpop.f32.mrb[182].mxu0  ;;  %v3114_v53 = vpop.f32.mrb[182].mxu1 }
 0x250   :  { %v2876_v18 = vadd.f32 %v2875_v26, %v15128_v50  ;;  %v11997_v14 = vpop.f32.mrb[183].mxu0  ;;  %12320 = vmatmul.mubr.msk.f32.gmra.mrb[32].mxu0 %vm175_vm1, %v10558_v20  ;;  %12373 = vmatmul.mubr.msk.f32.gmra.mrb[32].mxu1 %vm175_vm1, %v10594_v44  ;;  %v12050_v19 = vpop.f32.mrb[183].mxu1  ;;  %v10595_v50 = vld [vmem:[%s16835_s1 + $0x1fa] ss:$2 sm:$0xff]  ;;  %v10565_v20 = vld [vmem:[%s16835_s1 + $0x259] ss:$2 sm:$0xff] }
 0x251   :  { %12322 = vmatprep.mubr.msk.f32.mxu0 %vm13139_vm2, %v13138_v1  ;;  %12375 = vmatprep.mubr.msk.f32.mxu1 %vm13139_vm2, %v13138_v1 }
 0x252   :  { %v15435_v60 = vadd.f32 %v3114_v53, %v2876_v18 }
 0x253   :  { %v2880_v29 = vpop.f32.mrb[184].mxu0  ;;  %v3119_v45 = vpop.f32.mrb[184].mxu1 }
 0x254   :  { %v2881_v7 = vadd.f32 %v2880_v29, %v15145_v62  ;;  %v12000_v61 = vpop.f32.mrb[185].mxu0  ;;  %12323 = vmatmul.mubr.msk.f32.gmra.mrb[34].mxu0 %vm175_vm1, %v10559_v58  ;;  %12376 = vmatmul.mubr.msk.f32.gmra.mrb[34].mxu1 %vm175_vm1, %v10595_v50  ;;  %v12053_v27 = vpop.f32.mrb[185].mxu1  ;;  %v10596_v62 = vld [vmem:[%s16835_s1 + $0x20a] ss:$2 sm:$0xff] }
 0x255   :  { %12325 = vmatprep.mubr.msk.f32.mxu0 %vm13139_vm2, %v13138_v1  ;;  %12378 = vmatprep.mubr.msk.f32.mxu1 %vm13139_vm2, %v13138_v1  ;;  %v10566_v58 = vld [vmem:[%s16835_s1 + $0x269] ss:$2 sm:$0x3f] }
 0x256   :  { %v15450_v5 = vadd.f32 %v3119_v45, %v2881_v7 }
 0x257   :  { %v2885_v25 = vpop.f32.mrb[186].mxu0  ;;  %v3124_v34 = vpop.f32.mrb[186].mxu1 }
 0x258   :  { %v12003_v4 = vpop.f32.mrb[187].mxu0  ;;  %12326 = vmatmul.mubr.msk.f32.gmra.mrb[36].mxu0 %vm175_vm1, %v10560_v3  ;;  %12379 = vmatmul.mubr.msk.f32.gmra.mrb[36].mxu1 %vm175_vm1, %v10596_v62  ;;  %v12056_v23 = vpop.f32.mrb[187].mxu1  ;;  %v15548_v62 = vld [vmem:[%s16837_s30 + $0x10] sm:$0xff]  ;;  %v4793_v34 = vld [vmem:[#allocation2 + $0x1] ss:$2 sm:$0xff] }
 0x259   :  { %12328 = vmatprep.mubr.msk.f32.mxu0 %vm13139_vm2, %v13138_v1  ;;  %12381 = vmatprep.mubr.msk.f32.mxu1 %vm13139_vm2, %v13138_v1  ;;  %v4782_v4 = vld [vmem:[#allocation2] ss:$2 sm:$0xff] }
 0x25b   :  { %v2890_v12 = vpop.f32.mrb[188].mxu0  ;;  %v3129_v40 = vpop.f32.mrb[188].mxu1 }
 0x25c   :  { %v2891_v9 = vadd.f32 %v2890_v12, %v15177_v21  ;;  %v12006_v30 = vpop.f32.mrb[189].mxu0  ;;  %12329 = vmatmul.mubr.msk.f32.gmra.mrb[38].mxu0 %vm175_vm1, %v10561_v39  ;;  %12382 = vmatmul.mubr.msk.f32.gmra.mrb[38].mxu1 %vm175_vm1, %v10597_v36  ;;  %v12059_v28 = vpop.f32.mrb[189].mxu1  ;;  %v10598_v21 = vld [vmem:[%s16835_s1 + $0x22a] ss:$2 sm:$0xff] }
 0x25d   :  { %12331 = vmatprep.mubr.msk.f32.mxu0 %vm13139_vm2, %v13138_v1  ;;  %12384 = vmatprep.mubr.msk.f32.mxu1 %vm13139_vm2, %v13138_v1  ;;  %v4795_v30 = vld [vmem:[#allocation2 + $0x11] ss:$2 sm:$0xff] }
 0x25e   :  { %v15477_v47 = vadd.f32 %v3129_v40, %v2891_v9 }
 0x25f   :  { %v2895_v48 = vpop.f32.mrb[190].mxu0  ;;  %v3134_v49 = vpop.f32.mrb[190].mxu1 }
 0x260   :  { %v12009_v16 = vpop.f32.mrb[191].mxu0  ;;  %12332 = vmatmul.mubr.msk.f32.gmra.mrb[40].mxu0 %vm175_vm1, %v10562_v46  ;;  %12385 = vmatmul.mubr.msk.f32.gmra.mrb[40].mxu1 %vm175_vm1, %v10598_v21  ;;  %v12062_v37 = vpop.f32.mrb[191].mxu1 }
 0x261   :  { %12334 = vmatprep.mubr.msk.f32.mxu0 %vm13139_vm2, %v13138_v1  ;;  %12387 = vmatprep.mubr.msk.f32.mxu1 %vm13139_vm2, %v13138_v1  ;;  %v4797_v37 = vld [vmem:[#allocation2 + $0x21] ss:$2 sm:$0xff] }
 0x263   :  { %v2900_v32 = vpop.f32.mrb[192].mxu0  ;;  %v3139_v33 = vpop.f32.mrb[192].mxu1 }
 0x264   :  { %v2901_v35 = vadd.f32 %v2900_v32, %v15208_v8  ;;  %v12012_v43 = vpop.f32.mrb[193].mxu0  ;;  %12335 = vmatmul.mubr.msk.f32.gmra.mrb[42].mxu0 %vm175_vm1, %v10563_v56  ;;  %12388 = vmatmul.mubr.msk.f32.gmra.mrb[42].mxu1 %vm175_vm1, %v10599_v38  ;;  %v12065_v59 = vpop.f32.mrb[193].mxu1  ;;  %v10600_v8 = vld [vmem:[%s16835_s1 + $0x24a] ss:$2 sm:$0xff] }
 0x265   :  { %12337 = vmatprep.mubr.msk.f32.mxu0 %vm13139_vm2, %v13138_v1  ;;  %12390 = vmatprep.mubr.msk.f32.mxu1 %vm13139_vm2, %v13138_v1  ;;  %v4786_v56 = vld [vmem:[#allocation2 + $0x20] ss:$2 sm:$0xff]  ;;  %v4799_v59 = vld [vmem:[#allocation2 + $0x31] ss:$2 sm:$0xff] }
 0x266   :  { %v15504_v24 = vadd.f32 %v3139_v33, %v2901_v35 }
 0x267   :  { %v2905_v17 = vpop.f32.mrb[194].mxu0  ;;  %v3144_v6 = vpop.f32.mrb[194].mxu1 }
 0x268   :  { %v2906_v10 = vadd.f32 %v2905_v17, %v15227_v51  ;;  %v12015_v11 = vpop.f32.mrb[195].mxu0  ;;  %12338 = vmatmul.mubr.msk.f32.gmra.mrb[44].mxu0 %vm175_vm1, %v10564_v0  ;;  %12391 = vmatmul.mubr.msk.f32.gmra.mrb[44].mxu1 %vm175_vm1, %v10600_v8  ;;  %v12068_v52 = vpop.f32.mrb[195].mxu1  ;;  %v10601_v51 = vld [vmem:[%s16835_s1 + $0x25a] ss:$2 sm:$0xff] }
 0x269   :  { %12340 = vmatprep.mubr.msk.f32.mxu0 %vm13139_vm2, %v13138_v1  ;;  %12393 = vmatprep.mubr.msk.f32.mxu1 %vm13139_vm2, %v13138_v1  ;;  %v4788_v0 = vld [vmem:[#allocation2 + $0x30] ss:$2 sm:$0xff]  ;;  %v4790_v11 = vld [vmem:[#allocation2 + $0x40] ss:$2 sm:$0x3] }
 0x26a   :  { %v15519_v44 = vadd.f32 %v3144_v6, %v2906_v10  ;;  %v4801_v6 = vld [vmem:[#allocation2 + $0x41] ss:$2 sm:$0x3] }
 0x26b   :  { %v2910_v26 = vpop.f32.mrb[196].mxu0  ;;  %v3149_v53 = vpop.f32.mrb[196].mxu1 }
 0x26c   :  { %v2911_v18 = vadd.f32 %v2910_v26, %v15243_v31  ;;  %v12018_v14 = vpop.f32.mrb[197].mxu0  ;;  %12341 = vmatmul.mubr.msk.f32.gmra.mrb[46].mxu0 %vm175_vm1, %v10565_v20  ;;  %12394 = vmatmul.mubr.msk.f32.gmra.mrb[46].mxu1 %vm175_vm1, %v10601_v51  ;;  %v12071_v19 = vpop.f32.mrb[197].mxu1  ;;  %v10602_v31 = vld [vmem:[%s16835_s1 + $0x26a] ss:$2 sm:$0x3f]  ;;  %s13147_s1 = smov 8  }
 0x26d   :  { %12343 = vmatprep.mubr.msk.f32.mxu0 %vm13139_vm2, %v13138_v1  ;;  %12396 = vmatprep.mubr.msk.f32.mxu1 %vm13139_vm2, %v13138_v1  ;;  %v5137_v19 = vld [vmem:[#allocation2 + $0xa] ss:$2 sm:$0xff] }
 0x26e   :  { %v15534_v50 = vadd.f32 %v3149_v53, %v2911_v18  ;;  %v5015_v18 = vld [vmem:[#allocation2 + $0x2] ss:$2 sm:$0xff] }
 0x26f   :  { %v2915_v29 = vpop.f32.mrb[198].mxu0  ;;  %v3154_v45 = vpop.f32.mrb[198].mxu1 }
 0x270   :  { %v2916_v7 = vadd.f32 %v2915_v29, %v15262_v57  ;;  %v12021_v61 = vpop.f32.mrb[199].mxu0  ;;  %12344 = vmatmul.mubr.msk.f32.gmra.mrb[48].mxu0 %vm175_vm1, %v10566_v58  ;;  %12397 = vmatmul.mubr.msk.f32.gmra.mrb[48].mxu1 %vm175_vm1, %v10602_v31  ;;  %v12074_v27 = vpop.f32.mrb[199].mxu1  ;;  %v10639_v57 = vld [vmem:[%s16837_s30 + $0x18] sm:$0xff]  ;;  %v10651_v31 = vld [vmem:[%s16837_s30 + $0x28] sm:$0xff] }
 0x271   :  { %12401 = vmatprep.mubr.msk.f32.mxu0 %vm13139_vm2, %v13138_v1  ;;  %12418 = vmatprep.mubr.msk.f32.mxu1 %vm13139_vm2, %v13138_v1 }
 0x272   :  { %v15543_v3 = vadd.f32 %v3154_v45, %v2916_v7 }
 0x273   :  { %v2920_v25 = vpop.f32.mrb[200].mxu0  ;;  %v3159_v23 = vpop.f32.mrb[200].mxu1 }
 0x274   :  { %v2921_v39 = vadd.f32 %v2920_v25, %v15279_v54  ;;  %v12024_v36 = vpop.f32.mrb[201].mxu0  ;;  %12402 = vmatmul.mubr.msk.f32.vlgmr.msra.gmra.mrb[50].mxu0 %vm68_vm3, %v4793_v34  ;;  %12419 = vmatmul.mubr.msk.f32.vlgmr.msra.gmra.mrb[50].mxu1 %vm68_vm3, %v4782_v4  ;;  %v12077_v12 = vpop.f32.mrb[201].mxu1  ;;  %v4784_v54 = vld [vmem:[#allocation2 + $0x10] ss:$2 sm:$0xff] }
 0x275   :  { %12404 = vmatprep.mubr.msk.f32.mxu0 %vm13139_vm2, %v13138_v1  ;;  %12421 = vmatprep.mubr.msk.f32.mxu1 %vm13139_vm2, %v13138_v1  ;;  %v5139_v25 = vld [vmem:[#allocation2 + $0x1a] ss:$2 sm:$0xff] }
 0x276   :  { %v15560_v40 = vadd.f32 %v3159_v23, %v2921_v39  ;;  %12434 = vmatpush3.msra.mxu0 %v15548_v62  ;;  %12451 = vmatpush3.msra.mxu1 %v10639_v57  ;;  %v5017_v57 = vld [vmem:[#allocation2 + $0x12] ss:$2 sm:$0xff]  ;;  %v5019_v12 = vld [vmem:[#allocation2 + $0x22] ss:$2 sm:$0xff] }
 0x277   :  { %v2925_v9 = vpop.f32.mrb[202].mxu0  ;;  %v3164_v28 = vpop.f32.mrb[202].mxu1  ;;  %12467 = vmatprep.subr.mxu0 %v13138_v1  ;;  %12484 = vmatprep.subr.mxu1 %v13138_v1 }
 0x278   :  { %v2926_v46 = vadd.f32 %v2925_v9, %v15308_v15  ;;  %v12027_v21 = vpop.f32.mrb[203].mxu0  ;;  %12405 = vmatmul.mubr.msk.f32.gmra.mrb[52].mxu0 %vm68_vm3, %v4795_v30  ;;  %12422 = vmatmul.mubr.msk.f32.gmra.mrb[52].mxu1 %vm68_vm3, %v4784_v54  ;;  %v12080_v48 = vpop.f32.mrb[203].mxu1  ;;  %v5141_v9 = vld [vmem:[#allocation2 + $0x2a] ss:$2 sm:$0xff] }
 0x279   :  { %12407 = vmatprep.mubr.msk.f32.mxu0 %vm13139_vm2, %v13138_v1  ;;  %12424 = vmatprep.mubr.msk.f32.mxu1 %vm13139_vm2, %v13138_v1  ;;  %v5021_v48 = vld [vmem:[#allocation2 + $0x32] ss:$2 sm:$0xff] }
 0x27a   :  { %v15572_v49 = vadd.f32 %v3164_v28, %v2926_v46 }
 0x27b   :  { %v3324_v16 = vpop.f32.mrb[204].mxu0  ;;  %v3580_v38 = vpop.f32.mrb[204].mxu1 }
 0x27c   :  { %v3408_v15 = vadd.f32 %v3324_v16, %v15343_v63  ;;  %v12085_v32 = vpop.f32.mrb[205].mxu0  ;;  %12408 = vmatmul.mubr.msk.f32.gmra.mrb[54].mxu0 %vm68_vm3, %v4797_v37  ;;  %12425 = vmatmul.mubr.msk.f32.gmra.mrb[54].mxu1 %vm68_vm3, %v4786_v56  ;;  %v12138_v33 = vpop.f32.mrb[205].mxu1  ;;  %v5143_v16 = vld [vmem:[#allocation2 + $0x3a] ss:$2 sm:$0xff] }
 0x27d   :  { %12410 = vmatprep.mubr.msk.f32.mxu0 %vm13139_vm2, %v13138_v1  ;;  %12427 = vmatprep.mubr.msk.f32.mxu1 %vm13139_vm2, %v13138_v1  ;;  %v5023_v32 = vld [vmem:[#allocation2 + $0x42] ss:$2 sm:$0x3] }
 0x27e   :  { %v15581_v35 = vadd.f32 %v3580_v38, %v3408_v15 }
 0x27f   :  { %v3329_v43 = vpop.f32.mrb[206].mxu0  ;;  %v3585_v8 = vpop.f32.mrb[206].mxu1 }
 0x280   :  { %v12088_v17 = vpop.f32.mrb[207].mxu0  ;;  %12411 = vmatmul.mubr.msk.f32.gmra.mrb[56].mxu0 %vm68_vm3, %v4799_v59  ;;  %12428 = vmatmul.mubr.msk.f32.gmra.mrb[56].mxu1 %vm68_vm3, %v4788_v0  ;;  %v12141_v63 = vpop.f32.mrb[207].mxu1  ;;  %v5145_v43 = vld [vmem:[#allocation2 + $0x4a] ss:$2 sm:$0x3] }
 0x281   :  { %12413 = vmatprep.mubr.msk.f32.mxu0 %vm13139_vm2, %v13138_v1  ;;  %12430 = vmatprep.mubr.msk.f32.mxu1 %vm13139_vm2, %v13138_v1  ;;  %v5259_v63 = vld [vmem:[#allocation2 + $0xb] ss:$2 sm:$0xff] }
 0x283   :  { %v3334_v10 = vpop.f32.mrb[208].mxu0  ;;  %v3590_v52 = vpop.f32.mrb[208].mxu1 }
 0x284   :  { %v3410_v20 = vadd.f32 %v3334_v10, %v15373_v13  ;;  %v12091_v51 = vpop.f32.mrb[209].mxu0  ;;  %12414 = vmatmul.mubr.msk.f32.gmra.mrb[58].mxu0 %vm68_vm3, %v4801_v6  ;;  %12431 = vmatmul.mubr.msk.f32.gmra.mrb[58].mxu1 %vm68_vm3, %v4790_v11  ;;  %v12144_v26 = vpop.f32.mrb[209].mxu1  ;;  %v10645_v13 = vld [vmem:[%s16837_s30 + $0x20] sm:$0xff]  ;;  %v5381_v10 = vld [vmem:[#allocation2 + $0xc] ss:$2 sm:$0xff] }
 0x285   :  { %12435 = vmatprep.mubr.msk.f32.mxu0 %vm13139_vm2, %v13138_v1  ;;  %12452 = vmatprep.mubr.msk.f32.mxu1 %vm13139_vm2, %v13138_v1 }
 0x286   :  { %v15596_v53 = vadd.f32 %v3590_v52, %v3410_v20  ;;  %v10663_v52 = vld [vmem:[%s16837_s30 + $0x38] sm:$0xff] }
 0x287   :  { %v3339_v14 = vpop.f32.mrb[210].mxu0  ;;  %v3595_v58 = vpop.f32.mrb[210].mxu1 }
 0x288   :  { %v3411_v29 = vadd.f32 %v3339_v14, %v15390_v22  ;;  %v12094_v45 = vpop.f32.mrb[211].mxu0  ;;  %12436 = vmatmul.mubr.msk.f32.vlgmr.msra.gmra.mrb[60].mxu0 %vm68_vm3, %v5015_v18  ;;  %12453 = vmatmul.mubr.msk.f32.vlgmr.msra.gmra.mrb[60].mxu1 %vm68_vm3, %v5137_v19  ;;  %v12147_v7 = vpop.f32.mrb[211].mxu1  ;;  %v5261_v18 = vld [vmem:[#allocation2 + $0x1b] ss:$2 sm:$0xff]  ;;  %v5383_v14 = vld [vmem:[#allocation2 + $0x1c] ss:$2 sm:$0xff] }
 0x289   :  { %12438 = vmatprep.mubr.msk.f32.mxu0 %vm13139_vm2, %v13138_v1  ;;  %12455 = vmatprep.mubr.msk.f32.mxu1 %vm13139_vm2, %v13138_v1  ;;  %v5263_v7 = vld [vmem:[#allocation2 + $0x2b] ss:$2 sm:$0xff] }
 0x28a   :  { %v15611_v61 = vadd.f32 %v3595_v58, %v3411_v29  ;;  %12468 = vmatpush3.msra.mxu0 %v10645_v13  ;;  %12485 = vmatpush3.msra.mxu1 %v10651_v31 }
 0x28b   :  { %v3344_v27 = vpop.f32.mrb[212].mxu0  ;;  %v3600_v22 = vpop.f32.mrb[212].mxu1  ;;  %12501 = vmatprep.subr.mxu0 %v13138_v1  ;;  %12518 = vmatprep.subr.mxu1 %v13138_v1 }
 0x28c   :  { %v3412_v34 = vadd.f32 %v3344_v27, %v15405_v2  ;;  %v12097_v4 = vpop.f32.mrb[213].mxu0  ;;  %12439 = vmatmul.mubr.msk.f32.gmra.mrb[62].mxu0 %vm68_vm3, %v5017_v57  ;;  %12456 = vmatmul.mubr.msk.f32.gmra.mrb[62].mxu1 %vm68_vm3, %v5139_v25  ;;  %v12150_v23 = vpop.f32.mrb[213].mxu1  ;;  %v5385_v27 = vld [vmem:[#allocation2 + $0x2c] ss:$2 sm:$0xff] }
 0x28d   :  { %12441 = vmatprep.mubr.msk.f32.mxu0 %vm13139_vm2, %v13138_v1  ;;  %12458 = vmatprep.mubr.msk.f32.mxu1 %vm13139_vm2, %v13138_v1  ;;  %v5387_v4 = vld [vmem:[#allocation2 + $0x3c] ss:$2 sm:$0xff] }
 0x28e   :  { %v15622_v39 = vadd.f32 %v3600_v22, %v3412_v34  ;;  %v5265_v34 = vld [vmem:[#allocation2 + $0x3b] ss:$2 sm:$0xff] }
 0x28f   :  { %v3349_v36 = vpop.f32.mrb[214].mxu0  ;;  %v3605_v30 = vpop.f32.mrb[214].mxu1 }
 0x290   :  { %v3413_v2 = vadd.f32 %v3349_v36, %v15420_v42  ;;  %v12100_v54 = vpop.f32.mrb[215].mxu0  ;;  %12442 = vmatmul.mubr.msk.f32.gmra.mrb[64].mxu0 %vm68_vm3, %v5019_v12  ;;  %12459 = vmatmul.mubr.msk.f32.gmra.mrb[64].mxu1 %vm68_vm3, %v5141_v9  ;;  %v12153_v28 = vpop.f32.mrb[215].mxu1 }
 0x291   :  { %12444 = vmatprep.mubr.msk.f32.mxu0 %vm13139_vm2, %v13138_v1  ;;  %12461 = vmatprep.mubr.msk.f32.mxu1 %vm13139_vm2, %v13138_v1  ;;  %v5389_v28 = vld [vmem:[#allocation2 + $0x4c] ss:$2 sm:$0x3] }
 0x292   :  { %v15631_v46 = vadd.f32 %v3605_v30, %v3413_v2  ;;  %v5267_v2 = vld [vmem:[#allocation2 + $0x4b] ss:$2 sm:$0x3] }
 0x293   :  { %v3354_v21 = vpop.f32.mrb[216].mxu0  ;;  %v3610_v37 = vpop.f32.mrb[216].mxu1 }
 0x294   :  { %v3414_v42 = vadd.f32 %v3354_v21, %v15435_v60  ;;  %v12103_v56 = vpop.f32.mrb[217].mxu0  ;;  %12445 = vmatmul.mubr.msk.f32.gmra.mrb[66].mxu0 %vm68_vm3, %v5021_v48  ;;  %12462 = vmatmul.mubr.msk.f32.gmra.mrb[66].mxu1 %vm68_vm3, %v5143_v16  ;;  %v12156_v38 = vpop.f32.mrb[217].mxu1 }
 0x295   :  { %12447 = vmatprep.mubr.msk.f32.mxu0 %vm13139_vm2, %v13138_v1  ;;  %12464 = vmatprep.mubr.msk.f32.mxu1 %vm13139_vm2, %v13138_v1  ;;  %v5625_v38 = vld [vmem:[#allocation2 + $0x15] ss:$2 sm:$0xff] }
 0x296   :  { %v15640_v15 = vadd.f32 %v3610_v37, %v3414_v42  ;;  %v5503_v42 = vld [vmem:[#allocation2 + $0x14] ss:$2 sm:$0xff] }
 0x297   :  { %v3359_v33 = vpop.f32.mrb[218].mxu0  ;;  %v3615_v59 = vpop.f32.mrb[218].mxu1 }
 0x298   :  { %v3415_v60 = vadd.f32 %v3359_v33, %v15450_v5  ;;  %v12106_v0 = vpop.f32.mrb[219].mxu0  ;;  %12448 = vmatmul.mubr.msk.f32.gmra.mrb[68].mxu0 %vm68_vm3, %v5023_v32  ;;  %12465 = vmatmul.mubr.msk.f32.gmra.mrb[68].mxu1 %vm68_vm3, %v5145_v43  ;;  %v12159_v8 = vpop.f32.mrb[219].mxu1  ;;  %v10657_v5 = vld [vmem:[%s16837_s30 + $0x30] sm:$0xff] }
 0x299   :  { %12469 = vmatprep.mubr.msk.f32.mxu0 %vm13139_vm2, %v13138_v1  ;;  %12486 = vmatprep.mubr.msk.f32.mxu1 %vm13139_vm2, %v13138_v1  ;;  %v5505_v8 = vld [vmem:[#allocation2 + $0x24] ss:$2 sm:$0xff] }
 0x29a   :  { %v15649_v17 = vadd.f32 %v3615_v59, %v3415_v60 }
 0x29b   :  { %v3364_v6 = vpop.f32.mrb[220].mxu0  ;;  %v3620_v11 = vpop.f32.mrb[220].mxu1 }
 0x29c   :  { %v12109_v20 = vpop.f32.mrb[221].mxu0  ;;  %12470 = vmatmul.mubr.msk.f32.vlgmr.msra.gmra.mrb[70].mxu0 %vm68_vm3, %v5259_v63  ;;  %12487 = vmatmul.mubr.msk.f32.vlgmr.msra.gmra.mrb[70].mxu1 %vm68_vm3, %v5381_v10  ;;  %v12162_v51 = vpop.f32.mrb[221].mxu1 }
 0x29d   :  { %12472 = vmatprep.mubr.msk.f32.mxu0 %vm13139_vm2, %v13138_v1  ;;  %12489 = vmatprep.mubr.msk.f32.mxu1 %vm13139_vm2, %v13138_v1  ;;  %v5629_v20 = vld [vmem:[#allocation2 + $0x35] ss:$2 sm:$0xff] }
 0x29e   :  { %12502 = vmatpush3.msra.mxu0 %v10657_v5  ;;  %12519 = vmatpush3.msra.mxu1 %v10663_v52  ;;  %v5507_v52 = vld [vmem:[#allocation2 + $0x34] ss:$2 sm:$0xff] }
 0x29f   :  { %v3369_v26 = vpop.f32.mrb[222].mxu0  ;;  %v3625_v19 = vpop.f32.mrb[222].mxu1  ;;  %12535 = vmatprep.subr.mxu0 %v13138_v1  ;;  %12552 = vmatprep.subr.mxu1 %v13138_v1 }
 0x2a0   :  { %v3417_v58 = vadd.f32 %v3369_v26, %v15477_v47  ;;  %v12112_v13 = vpop.f32.mrb[223].mxu0  ;;  %12473 = vmatmul.mubr.msk.f32.gmra.mrb[72].mxu0 %vm68_vm3, %v5261_v18  ;;  %12490 = vmatmul.mubr.msk.f32.gmra.mrb[72].mxu1 %vm68_vm3, %v5383_v14  ;;  %v12165_v31 = vpop.f32.mrb[223].mxu1 }
 0x2a1   :  { %12475 = vmatprep.mubr.msk.f32.mxu0 %vm13139_vm2, %v13138_v1  ;;  %12492 = vmatprep.mubr.msk.f32.mxu1 %vm13139_vm2, %v13138_v1  ;;  %v5631_v13 = vld [vmem:[#allocation2 + $0x45] ss:$2 sm:$0xff] }
 0x2a2   :  { %v15672_v29 = vadd.f32 %v3625_v19, %v3417_v58  ;;  %v5509_v58 = vld [vmem:[#allocation2 + $0x44] ss:$2 sm:$0xff] }
 0x2a3   :  { %v3374_v45 = vpop.f32.mrb[224].mxu0  ;;  %v3630_v57 = vpop.f32.mrb[224].mxu1 }
 0x2a4   :  { %v12115_v25 = vpop.f32.mrb[225].mxu0  ;;  %12476 = vmatmul.mubr.msk.f32.gmra.mrb[74].mxu0 %vm68_vm3, %v5263_v7  ;;  %12493 = vmatmul.mubr.msk.f32.gmra.mrb[74].mxu1 %vm68_vm3, %v5385_v27  ;;  %v12168_v47 = vpop.f32.mrb[225].mxu1  ;;  %v5511_v57 = vld [vmem:[#allocation2 + $0x54] ss:$2 sm:$0x3] }
 0x2a5   :  { %12478 = vmatprep.mubr.msk.f32.mxu0 %vm13139_vm2, %v13138_v1  ;;  %12495 = vmatprep.mubr.msk.f32.mxu1 %vm13139_vm2, %v13138_v1  ;;  %v5633_v47 = vld [vmem:[#allocation2 + $0x55] ss:$2 sm:$0x3] }
 0x2a7   :  { %v3379_v22 = vpop.f32.mrb[226].mxu0  ;;  %v3635_v23 = vpop.f32.mrb[226].mxu1 }
 0x2a8   :  { %v3419_v36 = vadd.f32 %v3379_v22, %v15504_v24  ;;  %v12118_v12 = vpop.f32.mrb[227].mxu0  ;;  %12479 = vmatmul.mubr.msk.f32.gmra.mrb[76].mxu0 %vm68_vm3, %v5265_v34  ;;  %12496 = vmatmul.mubr.msk.f32.gmra.mrb[76].mxu1 %vm68_vm3, %v5387_v4  ;;  %v12171_v9 = vpop.f32.mrb[227].mxu1 }
 0x2a9   :  { %12481 = vmatprep.mubr.msk.f32.mxu0 %vm13139_vm2, %v13138_v1  ;;  %12498 = vmatprep.mubr.msk.f32.mxu1 %vm13139_vm2, %v13138_v1  ;;  %v5747_v12 = vld [vmem:[#allocation2 + $0x16] ss:$2 sm:$0xff] }
 0x2aa   :  { %v15687_v30 = vadd.f32 %v3635_v23, %v3419_v36 }
 0x2ab   :  { %v3384_v54 = vpop.f32.mrb[228].mxu0  ;;  %v3640_v21 = vpop.f32.mrb[228].mxu1 }
 0x2ac   :  { %v3420_v24 = vadd.f32 %v3384_v54, %v15519_v44  ;;  %v12121_v48 = vpop.f32.mrb[229].mxu0  ;;  %12482 = vmatmul.mubr.msk.f32.gmra.mrb[78].mxu0 %vm68_vm3, %v5267_v2  ;;  %12499 = vmatmul.mubr.msk.f32.gmra.mrb[78].mxu1 %vm68_vm3, %v5389_v28  ;;  %v12174_v16 = vpop.f32.mrb[229].mxu1  ;;  %v10669_v44 = vld [vmem:[%s16837_s30 + $0x40] sm:$0xff] }
 0x2ad   :  { %12503 = vmatprep.mubr.msk.f32.mxu0 %vm13139_vm2, %v13138_v1  ;;  %12520 = vmatprep.mubr.msk.f32.mxu1 %vm13139_vm2, %v13138_v1  ;;  %v5749_v28 = vld [vmem:[#allocation2 + $0x26] ss:$2 sm:$0xff] }
 0x2ae   :  { %v15696_v37 = vadd.f32 %v3640_v21, %v3420_v24 }
 0x2af   :  { %v3389_v56 = vpop.f32.mrb[230].mxu0  ;;  %v3645_v32 = vpop.f32.mrb[230].mxu1 }
 0x2b0   :  { %v3421_v33 = vadd.f32 %v3389_v56, %v15534_v50  ;;  %v12124_v43 = vpop.f32.mrb[231].mxu0  ;;  %12504 = vmatmul.mubr.msk.f32.vlgmr.msra.gmra.mrb[80].mxu0 %vm68_vm3, %v5503_v42  ;;  %12521 = vmatmul.mubr.msk.f32.vlgmr.msra.gmra.mrb[80].mxu1 %vm68_vm3, %v5625_v38  ;;  %v12177_v59 = vpop.f32.mrb[231].mxu1  ;;  %v5627_v50 = vld [vmem:[#allocation2 + $0x25] ss:$2 sm:$0xff]  ;;  %v5751_v38 = vld [vmem:[#allocation2 + $0x36] ss:$2 sm:$0xff] }
 0x2b1   :  { %12506 = vmatprep.mubr.msk.f32.mxu0 %vm13139_vm2, %v13138_v1  ;;  %12523 = vmatprep.mubr.msk.f32.mxu1 %vm13139_vm2, %v13138_v1  ;;  %v5753_v59 = vld [vmem:[#allocation2 + $0x46] ss:$2 sm:$0xff] }
 0x2b2   :  { %v15708_v60 = vadd.f32 %v3645_v32, %v3421_v33  ;;  %12536 = vmatpush3.msra.mxu0 %v10669_v44  ;;  %12553 = vmatpush3.msra.mxu1 %v15284_v41 }
 0x2b3   :  { %v3394_v0 = vpop.f32.mrb[232].mxu0  ;;  %v3650_v63 = vpop.f32.mrb[232].mxu1  ;;  %12569 = vmatprep.subr.mxu0 %v13138_v1  ;;  %12586 = vmatprep.subr.mxu1 %v13138_v1 }
 0x2b4   :  { %v3422_v6 = vadd.f32 %v3394_v0, %v15543_v3  ;;  %v12127_v10 = vpop.f32.mrb[233].mxu0  ;;  %12507 = vmatmul.mubr.msk.f32.gmra.mrb[82].mxu0 %vm68_vm3, %v5505_v8  ;;  %12524 = vmatmul.mubr.msk.f32.gmra.mrb[82].mxu1 %vm68_vm3, %v5627_v50  ;;  %v12180_v11 = vpop.f32.mrb[233].mxu1 }
 0x2b5   :  { %12509 = vmatprep.mubr.msk.f32.mxu0 %vm13139_vm2, %v13138_v1  ;;  %12526 = vmatprep.mubr.msk.f32.mxu1 %vm13139_vm2, %v13138_v1  ;;  %v5755_v10 = vld [vmem:[#allocation2 + $0x56] ss:$2 sm:$0x3] }
 0x2b6   :  { %v15720_v41 = vadd.f32 %v3650_v63, %v3422_v6 }
 0x2b7   :  { %v3399_v5 = vpop.f32.mrb[234].mxu0  ;;  %v3655_v51 = vpop.f32.mrb[234].mxu1 }
 0x2b8   :  { %v3423_v3 = vadd.f32 %v3399_v5, %v15560_v40  ;;  %v12130_v26 = vpop.f32.mrb[235].mxu0  ;;  %12510 = vmatmul.mubr.msk.f32.gmra.mrb[84].mxu0 %vm68_vm3, %v5507_v52  ;;  %12527 = vmatmul.mubr.msk.f32.gmra.mrb[84].mxu1 %vm68_vm3, %v5629_v20  ;;  %v12183_v18 = vpop.f32.mrb[235].mxu1 }
 0x2b9   :  { %12512 = vmatprep.mubr.msk.f32.mxu0 %vm13139_vm2, %v13138_v1  ;;  %12529 = vmatprep.mubr.msk.f32.mxu1 %vm13139_vm2, %v13138_v1 }
 0x2ba   :  { %v15729_v14 = vadd.f32 %v3655_v51, %v3423_v3 }
 0x2bb   :  { %v3404_v19 = vpop.f32.mrb[236].mxu0  ;;  %v3660_v31 = vpop.f32.mrb[236].mxu1 }
 0x2bc   :  { %v3424_v40 = vadd.f32 %v3404_v19, %v15572_v49  ;;  %v12133_v45 = vpop.f32.mrb[237].mxu0  ;;  %12513 = vmatmul.mubr.msk.f32.gmra.mrb[86].mxu0 %vm68_vm3, %v5509_v58  ;;  %12530 = vmatmul.mubr.msk.f32.gmra.mrb[86].mxu1 %vm68_vm3, %v5631_v13  ;;  %v12186_v7 = vpop.f32.mrb[237].mxu1 }
 0x2bd   :  { %12515 = vmatprep.mubr.msk.f32.mxu0 %vm13139_vm2, %v13138_v1  ;;  %12532 = vmatprep.mubr.msk.f32.mxu1 %vm13139_vm2, %v13138_v1 }
 0x2be   :  { %v15738_v27 = vadd.f32 %v3660_v31, %v3424_v40 }
 0x2bf   :  { %v3836_v25 = vpop.f32.mrb[238].mxu0  ;;  %v4076_v22 = vpop.f32.mrb[238].mxu1 }
 0x2c0   :  { %v3920_v49 = vadd.f32 %v3836_v25, %v15581_v35  ;;  %v12191_v34 = vpop.f32.mrb[239].mxu0  ;;  %12516 = vmatmul.mubr.msk.f32.gmra.mrb[88].mxu0 %vm68_vm3, %v5511_v57  ;;  %12533 = vmatmul.mubr.msk.f32.gmra.mrb[88].mxu1 %vm68_vm3, %v5633_v47  ;;  %v12244_v4 = vpop.f32.mrb[239].mxu1 }
 0x2c1   :  { %12537 = vmatprep.mubr.msk.f32.mxu0 %vm13139_vm2, %v13138_v1  ;;  %12554 = vmatprep.mubr.msk.f32.mxu1 %vm13139_vm2, %v13138_v1 }
 0x2c2   :  { %v15747_v23 = vadd.f32 %v4076_v22, %v3920_v49 }
 0x2c3   :  { %v3841_v36 = vpop.f32.mrb[240].mxu0  ;;  %v4081_v9 = vpop.f32.mrb[240].mxu1 }
 0x2c4   :  { %v12194_v2 = vpop.f32.mrb[241].mxu0  ;;  %12538 = vmatmul.mubr.msk.f32.vlgmr.msra.gmra.mrb[90].mxu0 %vm68_vm3, %v5747_v12  ;;  %v12247_v35 = vpop.f32.mrb[241].mxu1 }
 0x2c5   :  { %12540 = vmatprep.mubr.msk.f32.mxu0 %vm13139_vm2, %v13138_v1  ;;  %12570 = vmatpush3.msra.mxu0 %v15289_v55 }
 0x2c6   :  { %12603 = vmatprep.subr.mxu0 %v13138_v1 }
 0x2c7   :  { %v3846_v54 = vpop.f32.mrb[242].mxu0  ;;  %v4086_v21 = vpop.f32.mrb[242].mxu1 }
 0x2c8   :  { %v3922_v24 = vadd.f32 %v3846_v54, %v15596_v53  ;;  %v12197_v48 = vpop.f32.mrb[243].mxu0  ;;  %12541 = vmatmul.mubr.msk.f32.gmra.mrb[92].mxu0 %vm68_vm3, %v5749_v28  ;;  %v12250_v16 = vpop.f32.mrb[243].mxu1 }
 0x2c9   :  { %12543 = vmatprep.mubr.msk.f32.mxu0 %vm13139_vm2, %v13138_v1 }
 0x2ca   :  { %v15758_v42 = vadd.f32 %v4086_v21, %v3922_v24 }
 0x2cb   :  { %v3851_v56 = vpop.f32.mrb[244].mxu0  ;;  %v4091_v32 = vpop.f32.mrb[244].mxu1 }
 0x2cc   :  { %v3923_v55 = vadd.f32 %v3851_v56, %v15611_v61  ;;  %v12200_v44 = vpop.f32.mrb[245].mxu0  ;;  %12544 = vmatmul.mubr.msk.f32.gmra.mrb[94].mxu0 %vm68_vm3, %v5751_v38  ;;  %v12253_v33 = vpop.f32.mrb[245].mxu1 }
 0x2cd   :  { %12546 = vmatprep.mubr.msk.f32.mxu0 %vm13139_vm2, %v13138_v1 }
 0x2ce   :  { %v15764_v53 = vadd.f32 %v4091_v32, %v3923_v55 }
 0x2cf   :  { %v3856_v43 = vpop.f32.mrb[246].mxu0  ;;  %v4096_v0 = vpop.f32.mrb[246].mxu1 }
 0x2d0   :  { %v3924_v8 = vadd.f32 %v3856_v43, %v15622_v39  ;;  %v12203_v50 = vpop.f32.mrb[247].mxu0  ;;  %12547 = vmatmul.mubr.msk.f32.gmra.mrb[96].mxu0 %vm68_vm3, %v5753_v59  ;;  %v12256_v63 = vpop.f32.mrb[247].mxu1 }
 0x2d1   :  { %12549 = vmatprep.mubr.msk.f32.mxu0 %vm13139_vm2, %v13138_v1 }
 0x2d2   :  { %v15770_v61 = vadd.f32 %v4096_v0, %v3924_v8 }
 0x2d3   :  { %v3861_v6 = vpop.f32.mrb[248].mxu0  ;;  %v4101_v11 = vpop.f32.mrb[248].mxu1 }
 0x2d4   :  { %v3925_v5 = vadd.f32 %v3861_v6, %v15631_v46  ;;  %v12206_v52 = vpop.f32.mrb[249].mxu0  ;;  %12550 = vmatmul.mubr.msk.f32.gmra.mrb[98].mxu0 %vm68_vm3, %v5755_v10  ;;  %v12259_v20 = vpop.f32.mrb[249].mxu1 }
 0x2d5   :  { %12571 = vmatprep.mubr.msk.f32.mxu0 %vm13139_vm2, %v13138_v1 }
 0x2d6   :  { %v15776_v39 = vadd.f32 %v4101_v11, %v3925_v5 }
 0x2d7   :  { %v3866_v51 = vpop.f32.mrb[250].mxu0  ;;  %v4106_v3 = vpop.f32.mrb[250].mxu1 }
 0x2d8   :  { %v3926_v26 = vadd.f32 %v3866_v51, %v15640_v15  ;;  %v12209_v18 = vpop.f32.mrb[251].mxu0  ;;  %v12262_v19 = vpop.f32.mrb[251].mxu1 }
 0x2da   :  { %v15779_v58 = vadd.f32 %v4106_v3, %v3926_v26 }
 0x2db   :  { %v3871_v13 = vpop.f32.mrb[252].mxu0  ;;  %v4111_v31 = vpop.f32.mrb[252].mxu1 }
 0x2dc   :  { %v3927_v46 = vadd.f32 %v3871_v13, %v15649_v17  ;;  %v12212_v40 = vpop.f32.mrb[253].mxu0  ;;  %v12265_v45 = vpop.f32.mrb[253].mxu1 }
 0x2de   :  { %v15782_v7 = vadd.f32 %v4111_v31, %v3927_v46 }
 0x2df   :  { %v3876_v57 = vpop.f32.mrb[254].mxu0  ;;  %v4116_v25 = vpop.f32.mrb[254].mxu1 }
 0x2e0   :  { %v12215_v47 = vpop.f32.mrb[255].mxu0  ;;  %v12268_v22 = vpop.f32.mrb[255].mxu1 }
 0x2e3   :  { %v3881_v49 = vpop.f32.mrb[0].mxu0  ;;  %v4121_v34 = vpop.f32.mrb[0].mxu1 }
 0x2e4   :  { %v3929_v15 = vadd.f32 %v3881_v49, %v15672_v29  ;;  %v12218_v4 = vpop.f32.mrb[1].mxu0  ;;  %v12271_v36 = vpop.f32.mrb[1].mxu1  ;;  %v15809_v49 = vld [vmem:[%s16836_s23] ss:$0 sm:$0xff]  ;;  %s13144_s23 = smov 16  }
 0x2e6   :  { %v15785_v12 = vadd.f32 %v4121_v34, %v3929_v15 }
 0x2e7   :  { %v3886_v9 = vpop.f32.mrb[2].mxu0  ;;  %v4126_v2 = vpop.f32.mrb[2].mxu1 }
 0x2e8   :  { %v12221_v35 = vpop.f32.mrb[3].mxu0  ;;  %v12274_v17 = vpop.f32.mrb[3].mxu1 }
 0x2eb   :  { %v3891_v54 = vpop.f32.mrb[4].mxu0  ;;  %v4131_v28 = vpop.f32.mrb[4].mxu1 }
 0x2ec   :  { %v3931_v21 = vadd.f32 %v3891_v54, %v15687_v30  ;;  %v12224_v24 = vpop.f32.mrb[5].mxu0  ;;  %v12277_v48 = vpop.f32.mrb[5].mxu1 }
 0x2ee   :  { %v15788_v16 = vadd.f32 %v4131_v28, %v3931_v21 }
 0x2ef   :  { %v3896_v56 = vpop.f32.mrb[6].mxu0  ;;  %v4136_v38 = vpop.f32.mrb[6].mxu1 }
 0x2f0   :  { %v3932_v29 = vadd.f32 %v3896_v56, %v15696_v37  ;;  %v12227_v32 = vpop.f32.mrb[7].mxu0  ;;  %v12280_v55 = vpop.f32.mrb[7].mxu1 }
 0x2f2   :  { %v15791_v44 = vadd.f32 %v4136_v38, %v3932_v29 }
 0x2f3   :  { %v3901_v33 = vpop.f32.mrb[8].mxu0  ;;  %v4141_v43 = vpop.f32.mrb[8].mxu1 }
 0x2f4   :  { %v3933_v59 = vadd.f32 %v3901_v33, %v15708_v60  ;;  %v12230_v0 = vpop.f32.mrb[9].mxu0  ;;  %v12283_v8 = vpop.f32.mrb[9].mxu1 }
 0x2f6   :  { %v15794_v50 = vadd.f32 %v4141_v43, %v3933_v59 }
 0x2f7   :  { %v3906_v30 = vpop.f32.mrb[10].mxu0  ;;  %v4146_v63 = vpop.f32.mrb[10].mxu1 }
 0x2f8   :  { %v3934_v6 = vadd.f32 %v3906_v30, %v15720_v41  ;;  %v12233_v10 = vpop.f32.mrb[11].mxu0  ;;  %v12286_v11 = vpop.f32.mrb[11].mxu1 }
 0x2fa   :  { %v15797_v5 = vadd.f32 %v4146_v63, %v3934_v6 }
 0x2fb   :  { %v3911_v37 = vpop.f32.mrb[12].mxu0  ;;  %v4151_v52 = vpop.f32.mrb[12].mxu1 }
 0x2fc   :  { %v3935_v20 = vadd.f32 %v3911_v37, %v15729_v14  ;;  %v12236_v51 = vpop.f32.mrb[13].mxu0  ;;  %v12289_v3 = vpop.f32.mrb[13].mxu1 }
 0x2fe   :  { %v15800_v26 = vadd.f32 %v4151_v52, %v3935_v20 }
 0x2ff   :  { %v3916_v60 = vpop.f32.mrb[14].mxu0  ;;  %v4156_v18 = vpop.f32.mrb[14].mxu1 }
 0x300   :  { %v3936_v19 = vadd.f32 %v3916_v60, %v15738_v27  ;;  %v12239_v13 = vpop.f32.mrb[15].mxu0  ;;  %v12292_v31 = vpop.f32.mrb[15].mxu1 }
 0x302   :  { %v15803_v46 = vadd.f32 %v4156_v18, %v3936_v19 }
 0x303   :  { %v4332_v41 = vpop.f32.mrb[16].mxu0  ;;  %v4588_v40 = vpop.f32.mrb[16].mxu1 }
 0x304   :  { %v4416_v45 = vadd.f32 %v4332_v41, %v15747_v23  ;;  %v12297_v57 = vpop.f32.mrb[17].mxu0  ;;  %v12350_v25 = vpop.f32.mrb[17].mxu1 }
 0x306   :  { %v4672_v47 = vadd.f32 %v4588_v40, %v4416_v45 }
 0x307   :  { %v4337_v14 = vpop.f32.mrb[18].mxu0  ;;  %v4593_v22 = vpop.f32.mrb[18].mxu1 }
 0x308   :  { %v4689_v27 = vadd.f32 %v15809_v49, %v4672_v47  ;;  %v12300_v34 = vpop.f32.mrb[19].mxu0  ;;  %v12353_v15 = vpop.f32.mrb[19].mxu1 }
 0x30a   :  { %v4706_v4 = vmul.f32 0.2, %v4689_v27 }
 0x30b   :  { %v4342_v36 = vpop.f32.mrb[20].mxu0  ;;  %v4598_v9 = vpop.f32.mrb[20].mxu1 }
 0x30c   :  { %v4723_v2 = vmax.f32 %v4689_v27, %v4706_v4  ;;  %v4418_v23 = vadd.f32 %v4342_v36, %v15758_v42  ;;  %v12303_v35 = vpop.f32.mrb[21].mxu0  ;;  %v12356_v17 = vpop.f32.mrb[21].mxu1 }
 0x30e   :  { %4740 = vst.msk [vmem:[#allocation4] sm:$0xff] %vm68_vm3, %v4723_v2  ;;  %v4674_v54 = vadd.f32 %v4598_v9, %v4418_v23 }
 0x30f   :  { %v4347_v28 = vpop.f32.mrb[22].mxu0  ;;  %v4603_v21 = vpop.f32.mrb[22].mxu1 }
 0x310   :  { %v4691_v24 = vadd.f32 %v15809_v49, %v4674_v54  ;;  %v4419_v48 = vadd.f32 %v4347_v28, %v15764_v53  ;;  %v12306_v56 = vpop.f32.mrb[23].mxu0  ;;  %v12359_v38 = vpop.f32.mrb[23].mxu1 }
 0x312   :  { %v4708_v29 = vmul.f32 0.2, %v4691_v24  ;;  %v4675_v32 = vadd.f32 %v4603_v21, %v4419_v48 }
 0x313   :  { %v4352_v55 = vpop.f32.mrb[24].mxu0  ;;  %v4608_v33 = vpop.f32.mrb[24].mxu1 }
 0x314   :  { %v4725_v43 = vmax.f32 %v4691_v24, %v4708_v29  ;;  %v4692_v42 = vadd.f32 %v15809_v49, %v4675_v32  ;;  %v4420_v59 = vadd.f32 %v4352_v55, %v15770_v61  ;;  %v12309_v0 = vpop.f32.mrb[25].mxu0  ;;  %v12362_v8 = vpop.f32.mrb[25].mxu1 }
 0x315   :  { %v4757_v30 = vld [vmem:[#allocation4] sm:$0xff] }
 0x316   :  { %4758 = vst.msk [vmem:[#allocation2 + $0x6f] sm:$0xff] %vm68_vm3, %v4757_v30  ;;  %4759 = vst.msk [vmem:[#allocation13 + $0x40] sm:$0xff] %vm68_vm3, %v4757_v30  ;;  %v4709_v53 = vmul.f32 0.2, %v4692_v42  ;;  %v4676_v63 = vadd.f32 %v4608_v33, %v4420_v59 }
 0x317   :  { %4742 = vst.msk [vmem:[#allocation4 + $0x10] sm:$0xff] %vm68_vm3, %v4725_v43  ;;  %v4357_v6 = vpop.f32.mrb[26].mxu0  ;;  %v4613_v10 = vpop.f32.mrb[26].mxu1 }
 0x318   :  { %v4726_v61 = vmax.f32 %v4692_v42, %v4709_v53  ;;  %v4693_v11 = vadd.f32 %v15809_v49, %v4676_v63  ;;  %v4421_v37 = vadd.f32 %v4357_v6, %v15776_v39  ;;  %v12312_v52 = vpop.f32.mrb[27].mxu0  ;;  %v12365_v20 = vpop.f32.mrb[27].mxu1  ;;  %v10693_v39 = vld [vmem:[%s16837_s30 + $0x18] sm:$0xff] }
 0x31a   :  { %4743 = vst.msk [vmem:[#allocation4 + $0x18] sm:$0xff] %vm68_vm3, %v4726_v61  ;;  %v4710_v51 = vmul.f32 0.2, %v4693_v11  ;;  %v4677_v3 = vadd.f32 %v4613_v10, %v4421_v37 }
 0x31b   :  { %v4362_v60 = vpop.f32.mrb[28].mxu0  ;;  %v4618_v18 = vpop.f32.mrb[28].mxu1 }
 0x31c   :  { %v4727_v19 = vmax.f32 %v4693_v11, %v4710_v51  ;;  %v4694_v13 = vadd.f32 %v15809_v49, %v4677_v3  ;;  %v4422_v31 = vadd.f32 %v4362_v60, %v15779_v58  ;;  %v12315_v41 = vpop.f32.mrb[29].mxu0  ;;  %v12368_v40 = vpop.f32.mrb[29].mxu1 }
 0x31d   :  { %v5920_v45 = vld [vmem:[#allocation2 + $0x65] ss:$2 sm:$0xff]  ;;  %v5909_v57 = vld [vmem:[#allocation2 + $0x64] ss:$2 sm:$0xff] }
 0x31e   :  { %4744 = vst.msk [vmem:[#allocation4 + $0x20] sm:$0xff] %vm68_vm3, %v4727_v19  ;;  %v4711_v25 = vmul.f32 0.2, %v4694_v13  ;;  %v4678_v47 = vadd.f32 %v4618_v18, %v4422_v31  ;;  %12555 = vmatmul.mubr.msk.f32.vlgmr.msra.gmra.mrb[90].mxu1 %vm68_vm3, %v5920_v45  ;;  %12572 = vmatmul.mubr.msk.f32.vlgmr.msra.gmra.mrb[100].mxu0 %vm68_vm3, %v5909_v57 }
 0x31f   :  { %v4367_v14 = vpop.f32.mrb[30].mxu0  ;;  %v4623_v22 = vpop.f32.mrb[30].mxu1  ;;  %12574 = vmatprep.mubr.msk.f32.mxu0 %vm13139_vm2, %v13138_v1  ;;  %12557 = vmatprep.mubr.msk.f32.mxu1 %vm13139_vm2, %v13138_v1 }
 0x320   :  { %v4728_v58 = vmax.f32 %v4694_v13, %v4711_v25  ;;  %v4695_v27 = vadd.f32 %v15809_v49, %v4678_v47  ;;  %v4423_v34 = vadd.f32 %v4367_v14, %v15782_v7  ;;  %v12318_v15 = vpop.f32.mrb[31].mxu0  ;;  %v12371_v4 = vpop.f32.mrb[31].mxu1  ;;  %12587 = vmatpush3.msra.mxu1 %v15548_v62  ;;  %12604 = vmatpush3.msra.mxu0 %v10693_v39 }
 0x321   :  { %v4760_v36 = vld [vmem:[#allocation4 + $0x12] sm:$0xff]  ;;  %12620 = vmatprep.subr.mxu1 %v13138_v1  ;;  %12637 = vmatprep.subr.mxu0 %v13138_v1 }
 0x322   :  { %4745 = vst.msk [vmem:[#allocation4 + $0x28] sm:$0xff] %vm68_vm3, %v4728_v58  ;;  %v4712_v9 = vmul.f32 0.2, %v4695_v27  ;;  %v4679_v2 = vadd.f32 %v4623_v22, %v4423_v34  ;;  %4761 = vst.msk [vmem:[#allocation2 + $0x79] sm:$0xff] %vm68_vm3, %v4760_v36 }
 0x323   :  { %4762 = vst.msk [vmem:[#allocation13 + $0x48] sm:$0xff] %vm68_vm3, %v4760_v36  ;;  %v4372_v23 = vpop.f32.mrb[32].mxu0  ;;  %v4628_v7 = vpop.f32.mrb[32].mxu1 }
 0x324   :  { %v4729_v35 = vmax.f32 %v4695_v27, %v4712_v9  ;;  %v4696_v17 = vadd.f32 %v15809_v49, %v4679_v2  ;;  %v12321_v62 = vpop.f32.mrb[33].mxu0  ;;  %v12374_v54 = vpop.f32.mrb[33].mxu1 }
 0x326   :  { %4746 = vst.msk [vmem:[#allocation4 + $0x30] sm:$0xff] %vm68_vm3, %v4729_v35  ;;  %v4713_v28 = vmul.f32 0.2, %v4696_v17 }
 0x327   :  { %v4377_v21 = vpop.f32.mrb[34].mxu0  ;;  %v4633_v24 = vpop.f32.mrb[34].mxu1 }
 0x328   :  { %v4730_v48 = vmax.f32 %v4696_v17, %v4713_v28  ;;  %v4425_v56 = vadd.f32 %v4377_v21, %v15785_v12  ;;  %v12324_v38 = vpop.f32.mrb[35].mxu0  ;;  %v12377_v29 = vpop.f32.mrb[35].mxu1 }
 0x329   :  { %v5911_v32 = vld [vmem:[#allocation2 + $0x74] ss:$2 sm:$0xff] }
 0x32a   :  { %v4763_v55 = vld [vmem:[#allocation4 + $0x24] sm:$0xff]  ;;  %4747 = vst.msk [vmem:[#allocation4 + $0x38] sm:$0xff] %vm68_vm3, %v4730_v48  ;;  %v4681_v33 = vadd.f32 %v4633_v24, %v4425_v56  ;;  %12575 = vmatmul.mubr.msk.f32.gmra.mrb[102].mxu0 %vm68_vm3, %v5911_v32 }
 0x32b   :  { %4764 = vst.msk [vmem:[#allocation2 + $0x83] sm:$0xff] %vm68_vm3, %v4763_v55  ;;  %4765 = vst.msk [vmem:[#allocation13 + $0x50] sm:$0xff] %vm68_vm3, %v4763_v55  ;;  %v4382_v43 = vpop.f32.mrb[36].mxu0  ;;  %v4638_v42 = vpop.f32.mrb[36].mxu1  ;;  %12577 = vmatprep.mubr.msk.f32.mxu0 %vm13139_vm2, %v13138_v1 }
 0x32c   :  { %v4698_v12 = vadd.f32 %v15809_v49, %v4681_v33  ;;  %v12327_v59 = vpop.f32.mrb[37].mxu0  ;;  %v12380_v0 = vpop.f32.mrb[37].mxu1 }
 0x32e   :  { %v4715_v8 = vmul.f32 0.2, %v4698_v12 }
 0x32f   :  { %v4387_v30 = vpop.f32.mrb[38].mxu0  ;;  %v4643_v53 = vpop.f32.mrb[38].mxu1 }
 0x330   :  { %v4732_v63 = vmax.f32 %v4698_v12, %v4715_v8  ;;  %v4427_v6 = vadd.f32 %v4387_v30, %v15788_v16  ;;  %v12330_v10 = vpop.f32.mrb[39].mxu0  ;;  %v12383_v61 = vpop.f32.mrb[39].mxu1 }
 0x331   :  { %v4766_v37 = vld [vmem:[#allocation4 + $0x36] sm:$0xff] }
 0x332   :  { %v5922_v11 = vld [vmem:[#allocation2 + $0x75] ss:$2 sm:$0xff]  ;;  %4749 = vst.msk [vmem:[#allocation4 + $0x48] sm:$0xff] %vm68_vm3, %v4732_v63  ;;  %v4683_v52 = vadd.f32 %v4643_v53, %v4427_v6  ;;  %4767 = vst.msk [vmem:[#allocation2 + $0x8d] sm:$0xff] %vm68_vm3, %v4766_v37 }
 0x333   :  { %12558 = vmatmul.mubr.msk.f32.gmra.mrb[92].mxu1 %vm68_vm3, %v5922_v11  ;;  %4768 = vst.msk [vmem:[#allocation13 + $0x58] sm:$0xff] %vm68_vm3, %v4766_v37  ;;  %v4392_v20 = vpop.f32.mrb[40].mxu0  ;;  %v4648_v51 = vpop.f32.mrb[40].mxu1 }
 0x334   :  { %12560 = vmatprep.mubr.msk.f32.mxu1 %vm13139_vm2, %v13138_v1  ;;  %v4700_v16 = vadd.f32 %v15809_v49, %v4683_v52  ;;  %v4428_v3 = vadd.f32 %v4392_v20, %v15791_v44  ;;  %v12333_v60 = vpop.f32.mrb[41].mxu0  ;;  %v12386_v18 = vpop.f32.mrb[41].mxu1 }
 0x336   :  { %v4717_v19 = vmul.f32 0.2, %v4700_v16  ;;  %v4684_v13 = vadd.f32 %v4648_v51, %v4428_v3 }
 0x337   :  { %v4397_v31 = vpop.f32.mrb[42].mxu0  ;;  %v4653_v41 = vpop.f32.mrb[42].mxu1 }
 0x338   :  { %v4734_v40 = vmax.f32 %v4700_v16, %v4717_v19  ;;  %v4701_v45 = vadd.f32 %v15809_v49, %v4684_v13  ;;  %v4429_v57 = vadd.f32 %v4397_v31, %v15794_v50  ;;  %v12336_v39 = vpop.f32.mrb[43].mxu0  ;;  %v12389_v25 = vpop.f32.mrb[43].mxu1 }
 0x339   :  { %v5924_v47 = vld [vmem:[#allocation2 + $0x85] ss:$2 sm:$0xff]  ;;  %v5913_v14 = vld [vmem:[#allocation2 + $0x84] ss:$2 sm:$0xff]  ;;  %v4769_v22 = vld [vmem:[#allocation4 + $0x48] sm:$0xff] }
 0x33a   :  { %4751 = vst.msk [vmem:[#allocation4 + $0x58] sm:$0xff] %vm68_vm3, %v4734_v40  ;;  %v4718_v58 = vmul.f32 0.2, %v4701_v45  ;;  %v4685_v44 = vadd.f32 %v4653_v41, %v4429_v57  ;;  %12561 = vmatmul.mubr.msk.f32.gmra.mrb[94].mxu1 %vm68_vm3, %v5924_v47  ;;  %12578 = vmatmul.mubr.msk.f32.gmra.mrb[104].mxu0 %vm68_vm3, %v5913_v14  ;;  %4770 = vst.msk [vmem:[#allocation2 + $0x97] sm:$0xff] %vm68_vm3, %v4769_v22  ;;  %v10705_v25 = vld [vmem:[%s16837_s30 + $0x28] sm:$0xff] }
 0x33b   :  { %4771 = vst.msk [vmem:[#allocation13 + $0x60] sm:$0xff] %vm68_vm3, %v4769_v22  ;;  %v4402_v27 = vpop.f32.mrb[44].mxu0  ;;  %v4658_v34 = vpop.f32.mrb[44].mxu1  ;;  %12563 = vmatprep.mubr.msk.f32.mxu1 %vm13139_vm2, %v13138_v1  ;;  %12580 = vmatprep.mubr.msk.f32.mxu0 %vm13139_vm2, %v13138_v1  ;;  %v6141_v47 = vld [vmem:[#allocation2 + $0x66] ss:$2 sm:$0xff] }
 0x33c   :  { %v4735_v50 = vmax.f32 %v4701_v45, %v4718_v58  ;;  %v4702_v15 = vadd.f32 %v15809_v49, %v4685_v44  ;;  %v4430_v4 = vadd.f32 %v4402_v27, %v15797_v5  ;;  %v12339_v36 = vpop.f32.mrb[45].mxu0  ;;  %v12392_v9 = vpop.f32.mrb[45].mxu1  ;;  %v6262_v14 = vld [vmem:[#allocation2 + $0x6e] ss:$2 sm:$0xff]  ;;  %v13065_v27 = vld [vmem:[%s16837_s30 + $0x20] sm:$0xff] }
 0x33d   :  { %v6264_v36 = vld [vmem:[#allocation2 + $0x7e] ss:$2 sm:$0xff] }
 0x33e   :  { %4752 = vst.msk [vmem:[#allocation4 + $0x60] sm:$0xff] %vm68_vm3, %v4735_v50  ;;  %v4719_v2 = vmul.f32 0.2, %v4702_v15  ;;  %v4686_v23 = vadd.f32 %v4658_v34, %v4430_v4  ;;  %v6143_v4 = vld [vmem:[#allocation2 + $0x76] ss:$2 sm:$0xff] }
 0x33f   :  { %v4407_v7 = vpop.f32.mrb[46].mxu0  ;;  %v4663_v35 = vpop.f32.mrb[46].mxu1 }
 0x340   :  { %v4736_v17 = vmax.f32 %v4702_v15, %v4719_v2  ;;  %v4703_v62 = vadd.f32 %v15809_v49, %v4686_v23  ;;  %v4431_v54 = vadd.f32 %v4407_v7, %v15800_v26  ;;  %v12342_v28 = vpop.f32.mrb[47].mxu0  ;;  %v12395_v21 = vpop.f32.mrb[47].mxu1 }
 0x342   :  { %4753 = vst.msk [vmem:[#allocation4 + $0x68] sm:$0xff] %vm68_vm3, %v4736_v17  ;;  %v4720_v24 = vmul.f32 0.2, %v4703_v62  ;;  %v4687_v48 = vadd.f32 %v4663_v35, %v4431_v54  ;;  %v6145_v17 = vld [vmem:[#allocation2 + $0x86] ss:$2 sm:$0xff] }
 0x343   :  { %v4412_v5 = vpop.f32.mrb[48].mxu0  ;;  %v4668_v56 = vpop.f32.mrb[48].mxu1 }
 0x344   :  { %v4737_v38 = vmax.f32 %v4703_v62, %v4720_v24  ;;  %v4704_v29 = vadd.f32 %v15809_v49, %v4687_v48  ;;  %v4432_v32 = vadd.f32 %v4412_v5, %v15803_v46  ;;  %v12345_v55 = vpop.f32.mrb[49].mxu0  ;;  %v12398_v33 = vpop.f32.mrb[49].mxu1  ;;  %v6266_v62 = vld [vmem:[#allocation2 + $0x8e] ss:$2 sm:$0xff] }
 0x345   :  { %v4772_v43 = vld [vmem:[#allocation4 + $0x5a] sm:$0xff] }
 0x346   :  { %4754 = vst.msk [vmem:[#allocation4 + $0x70] sm:$0xff] %vm68_vm3, %v4737_v38  ;;  %v4721_v42 = vmul.f32 0.2, %v4704_v29  ;;  %v4688_v26 = vadd.f32 %v4668_v56, %v4432_v32  ;;  %4773 = vst.msk [vmem:[#allocation2 + $0xa1] sm:$0xff] %vm68_vm3, %v4772_v43 }
 0x347   :  { %4774 = vst.msk [vmem:[#allocation13 + $0x68] sm:$0xff] %vm68_vm3, %v4772_v43  ;;  %v4885_v12 = vpop.f32.mrb[50].mxu0  ;;  %v4990_v59 = vpop.f32.mrb[50].mxu1 }
 0x348   :  { %v4738_v0 = vmax.f32 %v4704_v29, %v4721_v42  ;;  %v4705_v8 = vadd.f32 %v15809_v49, %v4688_v26  ;;  %v15904_v30 = vadd.f32 %v4990_v59, %v4885_v12  ;;  %v12403_v53 = vpop.f32.mrb[51].mxu0  ;;  %v12420_v46 = vpop.f32.mrb[51].mxu1 }
 0x34a   :  { %4755 = vst.msk [vmem:[#allocation4 + $0x78] sm:$0xff] %vm68_vm3, %v4738_v0  ;;  %v4722_v63 = vmul.f32 0.2, %v4705_v8 }
 0x34b   :  { %v4890_v6 = vpop.f32.mrb[52].mxu0  ;;  %v4995_v10 = vpop.f32.mrb[52].mxu1 }
 0x34c   :  { %v4739_v61 = vmax.f32 %v4705_v8, %v4722_v63  ;;  %v15907_v11 = vadd.f32 %v4995_v10, %v4890_v6  ;;  %v12406_v37 = vpop.f32.mrb[53].mxu0  ;;  %v12423_v52 = vpop.f32.mrb[53].mxu1  ;;  %v6383_v63 = vld [vmem:[#allocation2 + $0x6f] ss:$2 sm:$0xff]  ;;  %v6504_v6 = vld [vmem:[#allocation2 + $0x70] ss:$2 sm:$0xff] }
 0x34d   :  { %v5926_v20 = vld [vmem:[#allocation2 + $0x95] ss:$2 sm:$0xff]  ;;  %v5915_v51 = vld [vmem:[#allocation2 + $0x94] ss:$2 sm:$0xff] }
 0x34e   :  { %4756 = vst.msk [vmem:[#allocation4 + $0x80] sm:$0x3f] %vm2425_vm4, %v4739_v61  ;;  %12564 = vmatmul.mubr.msk.f32.gmra.mrb[96].mxu1 %vm68_vm3, %v5926_v20  ;;  %12581 = vmatmul.mubr.msk.f32.gmra.mrb[106].mxu0 %vm68_vm3, %v5915_v51  ;;  %v4775_v3 = vld [vmem:[#allocation4 + $0x6c] sm:$0xff]  ;;  %v5928_v13 = vld [vmem:[#allocation2 + $0xa5] ss:$2 sm:$0x3] }
 0x34f   :  { %v4895_v49 = vpop.f32.mrb[54].mxu0  ;;  %v5000_v16 = vpop.f32.mrb[54].mxu1  ;;  %12566 = vmatprep.mubr.msk.f32.mxu1 %vm13139_vm2, %v13138_v1  ;;  %12583 = vmatprep.mubr.msk.f32.mxu0 %vm13139_vm2, %v13138_v1  ;;  %4776 = vst.msk [vmem:[#allocation2 + $0xab] sm:$0xff] %vm68_vm3, %v4775_v3  ;;  %4777 = vst.msk [vmem:[#allocation13 + $0x70] sm:$0xff] %vm68_vm3, %v4775_v3  ;;  %v6147_v56 = vld [vmem:[#allocation2 + $0x96] ss:$2 sm:$0xff] }
 0x350   :  { %v15916_v60 = vadd.f32 %v5000_v16, %v4895_v49  ;;  %v12409_v18 = vpop.f32.mrb[55].mxu0  ;;  %v12426_v19 = vpop.f32.mrb[55].mxu1  ;;  %v5917_v31 = vld [vmem:[#allocation2 + $0xa4] ss:$2 sm:$0x3]  ;;  %v10717_v10 = vld [vmem:[%s16837_s30 + $0x38] sm:$0xff] }
 0x351   :  { %v6149_v26 = vld [vmem:[#allocation2 + $0xa6] ss:$2 sm:$0x3]  ;;  %v13066_v52 = vld [vmem:[%s16837_s30 + $0x30] sm:$0xff]  ;;  %v6385_v16 = vld [vmem:[#allocation2 + $0x7f] ss:$2 sm:$0xff] }
 0x352   :  { %12567 = vmatmul.mubr.msk.f32.gmra.mrb[98].mxu1 %vm68_vm3, %v5928_v13  ;;  %12584 = vmatmul.mubr.msk.f32.gmra.mrb[108].mxu0 %vm68_vm3, %v5917_v31  ;;  %v6506_v3 = vld [vmem:[#allocation2 + $0x80] ss:$2 sm:$0xff] }
 0x353   :  { %v4900_v41 = vpop.f32.mrb[56].mxu0  ;;  %v5005_v40 = vpop.f32.mrb[56].mxu1  ;;  %12588 = vmatprep.mubr.msk.f32.mxu1 %vm13139_vm2, %v13138_v1  ;;  %12605 = vmatprep.mubr.msk.f32.mxu0 %vm13139_vm2, %v13138_v1 }
 0x354   :  { %v15926_v45 = vadd.f32 %v5005_v40, %v4900_v41  ;;  %v12412_v57 = vpop.f32.mrb[57].mxu0  ;;  %v12429_v39 = vpop.f32.mrb[57].mxu1 }
 0x355   :  { %v4778_v22 = vld [vmem:[#allocation4 + $0x7e] sm:$0xff] }
 0x356   :  { %12589 = vmatmul.mubr.msk.f32.vlgmr.msra.gmra.mrb[100].mxu1 %vm68_vm3, %v6141_v47  ;;  %12606 = vmatmul.mubr.msk.f32.vlgmr.msra.gmra.mrb[110].mxu0 %vm68_vm3, %v6262_v14  ;;  %4779 = vst.msk [vmem:[#allocation2 + $0xb5] sm:$0xff] %vm68_vm3, %v4778_v22  ;;  %4780 = vst.msk [vmem:[#allocation13 + $0x78] sm:$0xff] %vm68_vm3, %v4778_v22  ;;  %v6268_v38 = vld [vmem:[#allocation2 + $0x9e] ss:$2 sm:$0xff] }
 0x357   :  { %v4905_v58 = vpop.f32.mrb[58].mxu0  ;;  %v5010_v44 = vpop.f32.mrb[58].mxu1  ;;  %12621 = vmatpush3.msra.mxu1 %v13065_v27  ;;  %12591 = vmatprep.mubr.msk.f32.mxu1 %vm13139_vm2, %v13138_v1  ;;  %v6270_v12 = vld [vmem:[#allocation2 + $0xae] ss:$2 sm:$0x3] }
 0x358   :  { %v15940_v34 = vadd.f32 %v5010_v44, %v4905_v58  ;;  %v12415_v50 = vpop.f32.mrb[59].mxu0  ;;  %v12432_v15 = vpop.f32.mrb[59].mxu1  ;;  %12608 = vmatprep.mubr.msk.f32.mxu0 %vm13139_vm2, %v13138_v1  ;;  %12638 = vmatpush3.msra.mxu0 %v10705_v25  ;;  %v6508_v57 = vld [vmem:[#allocation2 + $0x90] ss:$2 sm:$0xff]  ;;  %v6389_v44 = vld [vmem:[#allocation2 + $0x9f] ss:$2 sm:$0xff] }
 0x359   :  { %12654 = vmatprep.subr.mxu1 %v13138_v1  ;;  %12671 = vmatprep.subr.mxu0 %v13138_v1  ;;  %v6510_v27 = vld [vmem:[#allocation2 + $0xa0] ss:$2 sm:$0xff] }
 0x35a   :  { %12592 = vmatmul.mubr.msk.f32.gmra.mrb[102].mxu1 %vm68_vm3, %v6143_v4  ;;  %12609 = vmatmul.mubr.msk.f32.gmra.mrb[112].mxu0 %vm68_vm3, %v6264_v36 }
 0x35b   :  { %v5107_v9 = vpop.f32.mrb[60].mxu0  ;;  %v5229_v2 = vpop.f32.mrb[60].mxu1  ;;  %12594 = vmatprep.mubr.msk.f32.mxu1 %vm13139_vm2, %v13138_v1  ;;  %12611 = vmatprep.mubr.msk.f32.mxu0 %vm13139_vm2, %v13138_v1 }
 0x35c   :  { %v5131_v23 = vadd.f32 %v5107_v9, %v15904_v30  ;;  %v12437_v7 = vpop.f32.mrb[61].mxu0  ;;  %v12454_v35 = vpop.f32.mrb[61].mxu1 }
 0x35d   :  { %v10729_v35 = vld [vmem:[%s16838_s26 + $0x10] sm:$0xff] }
 0x35e   :  { %v5253_v54 = vadd.f32 %v5229_v2, %v5131_v23  ;;  %12595 = vmatmul.mubr.msk.f32.gmra.mrb[104].mxu1 %vm68_vm3, %v6145_v17  ;;  %12612 = vmatmul.mubr.msk.f32.gmra.mrb[114].mxu0 %vm68_vm3, %v6266_v62  ;;  %v6391_v2 = vld [vmem:[#allocation2 + $0xaf] ss:$2 sm:$0x3]  ;;  %v6512_v23 = vld [vmem:[#allocation2 + $0xb0] ss:$2 sm:$0x3] }
 0x35f   :  { %v5112_v28 = vpop.f32.mrb[62].mxu0  ;;  %v5234_v21 = vpop.f32.mrb[62].mxu1  ;;  %12597 = vmatprep.mubr.msk.f32.mxu1 %vm13139_vm2, %v13138_v1  ;;  %12614 = vmatprep.mubr.msk.f32.mxu0 %vm13139_vm2, %v13138_v1  ;;  %v10730_v17 = vld [vmem:[%s16838_s26 + $0x18] sm:$0xff] }
 0x360   :  { %v5132_v24 = vadd.f32 %v5112_v28, %v15907_v11  ;;  %v12440_v48 = vpop.f32.mrb[63].mxu0  ;;  %v12457_v5 = vpop.f32.mrb[63].mxu1 }
 0x361   :  { %v6625_v48 = vld [vmem:[#allocation2 + $0x78] ss:$2 sm:$0xff]  ;;  %v6746_v5 = vld [vmem:[#allocation2 + $0x79] ss:$2 sm:$0xff] }
 0x362   :  { %v5254_v29 = vadd.f32 %v5234_v21, %v5132_v24  ;;  %12598 = vmatmul.mubr.msk.f32.gmra.mrb[106].mxu1 %vm68_vm3, %v6147_v56  ;;  %12615 = vmatmul.mubr.msk.f32.gmra.mrb[116].mxu0 %vm68_vm3, %v6268_v38  ;;  %v16026_v56 = vpack.c.bf16 %v10730_v17, %v10729_v35 }
 0x363   :  { %v5117_v32 = vpop.f32.mrb[64].mxu0  ;;  %v5239_v55 = vpop.f32.mrb[64].mxu1  ;;  %12600 = vmatprep.mubr.msk.f32.mxu1 %vm13139_vm2, %v13138_v1  ;;  %12617 = vmatprep.mubr.msk.f32.mxu0 %vm13139_vm2, %v13138_v1 }
 0x364   :  { %v5133_v33 = vadd.f32 %v5117_v32, %v15916_v60  ;;  %v12443_v43 = vpop.f32.mrb[65].mxu0  ;;  %v12460_v42 = vpop.f32.mrb[65].mxu1  ;;  %v13140_v60 = vmov 0.0|0.0  }
 0x366   :  { %v5255_v59 = vadd.f32 %v5239_v55, %v5133_v33  ;;  %12601 = vmatmul.mubr.msk.f32.gmra.mrb[108].mxu1 %vm68_vm3, %v6149_v26  ;;  %12618 = vmatmul.mubr.msk.f32.gmra.mrb[118].mxu0 %vm68_vm3, %v6270_v12  ;;  %v13067_v55 = vld [vmem:[%s16837_s30 + $0x40] sm:$0xff]  ;;  %v6627_v26 = vld [vmem:[#allocation2 + $0x88] ss:$2 sm:$0xff]  ;;  %v6748_v12 = vld [vmem:[#allocation2 + $0x89] ss:$2 sm:$0xff] }
 0x367   :  { %v5122_v0 = vpop.f32.mrb[66].mxu0  ;;  %v5244_v8 = vpop.f32.mrb[66].mxu1  ;;  %12622 = vmatprep.mubr.msk.f32.mxu1 %vm13139_vm2, %v13138_v1  ;;  %12639 = vmatprep.mubr.msk.f32.mxu0 %vm13139_vm2, %v13138_v1 }
 0x368   :  { %v5134_v30 = vadd.f32 %v5122_v0, %v15926_v45  ;;  %v12446_v53 = vpop.f32.mrb[67].mxu0  ;;  %v12463_v46 = vpop.f32.mrb[67].mxu1  ;;  %v6387_v45 = vld [vmem:[#allocation2 + $0x8f] ss:$2 sm:$0xff] }
 0x36a   :  { %v15977_v61 = vadd.f32 %v5244_v8, %v5134_v30  ;;  %12623 = vmatmul.mubr.msk.f32.vlgmr.msra.gmra.mrb[110].mxu1 %vm68_vm3, %v6383_v63  ;;  %12640 = vmatmul.mubr.msk.f32.vlgmr.msra.gmra.mrb[120].mxu0 %vm68_vm3, %v6504_v6  ;;  %v6629_v63 = vld [vmem:[#allocation2 + $0x98] ss:$2 sm:$0xff]  ;;  %v6750_v6 = vld [vmem:[#allocation2 + $0x99] ss:$2 sm:$0xff] }
 0x36b   :  { %v5127_v11 = vpop.f32.mrb[68].mxu0  ;;  %v5249_v37 = vpop.f32.mrb[68].mxu1  ;;  %12655 = vmatpush3.msra.mxu1 %v13066_v52  ;;  %12625 = vmatprep.mubr.msk.f32.mxu1 %vm13139_vm2, %v13138_v1 }
 0x36c   :  { %v5135_v20 = vadd.f32 %v5127_v11, %v15940_v34  ;;  %v12449_v51 = vpop.f32.mrb[69].mxu0  ;;  %v12466_v49 = vpop.f32.mrb[69].mxu1  ;;  %12642 = vmatprep.mubr.msk.f32.mxu0 %vm13139_vm2, %v13138_v1  ;;  %12672 = vmatpush3.msra.mxu0 %v10717_v10 }
 0x36d   :  { %12688 = vmatprep.subr.mxu1 %v13138_v1  ;;  %12949 = vmatprep.subr.bf16.mxu0 %v13140_v60  ;;  %v6631_v51 = vld [vmem:[#allocation2 + $0xa8] ss:$2 sm:$0xff]  ;;  %v6752_v49 = vld [vmem:[#allocation2 + $0xa9] ss:$2 sm:$0xff] }
 0x36e   :  { %v5257_v18 = vadd.f32 %v5249_v37, %v5135_v20  ;;  %12626 = vmatmul.mubr.msk.f32.gmra.mrb[112].mxu1 %vm68_vm3, %v6385_v16  ;;  %12643 = vmatmul.mubr.msk.f32.gmra.mrb[122].mxu0 %vm68_vm3, %v6506_v3 }
 0x36f   :  { %v5351_v19 = vpop.f32.mrb[70].mxu0  ;;  %v5473_v13 = vpop.f32.mrb[70].mxu1  ;;  %12628 = vmatprep.mubr.msk.f32.mxu1 %vm13139_vm2, %v13138_v1  ;;  %12645 = vmatprep.mubr.msk.f32.mxu0 %vm13139_vm2, %v13138_v1 }
 0x370   :  { %v5375_v31 = vadd.f32 %v5351_v19, %v5253_v54  ;;  %v12471_v41 = vpop.f32.mrb[71].mxu0  ;;  %v12488_v40 = vpop.f32.mrb[71].mxu1 }
 0x371   :  { %v7021_v41 = vld [vmem:[%s16838_s26] sm:$0xff]  ;;  %v7022_v40 = vld [vmem:[%s16838_s26 + $0x8] sm:$0xff] }
 0x372   :  { %v5497_v39 = vadd.f32 %v5473_v13, %v5375_v31  ;;  %12629 = vmatmul.mubr.msk.f32.gmra.mrb[114].mxu1 %vm68_vm3, %v6387_v45  ;;  %12646 = vmatmul.mubr.msk.f32.gmra.mrb[124].mxu0 %vm68_vm3, %v6508_v57  ;;  %v6633_v45 = vld [vmem:[#allocation2 + $0xb8] ss:$2 sm:$0x3]  ;;  %v6754_v57 = vld [vmem:[#allocation2 + $0xb9] ss:$2 sm:$0x3] }
 0x373   :  { %v5356_v25 = vpop.f32.mrb[72].mxu0  ;;  %v5478_v47 = vpop.f32.mrb[72].mxu1  ;;  %12631 = vmatprep.mubr.msk.f32.mxu1 %vm13139_vm2, %v13138_v1  ;;  %12648 = vmatprep.mubr.msk.f32.mxu0 %vm13139_vm2, %v13138_v1 }
 0x374   :  { %v5376_v14 = vadd.f32 %v5356_v25, %v5254_v29  ;;  %v12474_v22 = vpop.f32.mrb[73].mxu0  ;;  %v12491_v58 = vpop.f32.mrb[73].mxu1 }
 0x376   :  { %v16003_v34 = vadd.f32 %v5478_v47, %v5376_v14  ;;  %12632 = vmatmul.mubr.msk.f32.gmra.mrb[116].mxu1 %vm68_vm3, %v6389_v44  ;;  %12649 = vmatmul.mubr.msk.f32.gmra.mrb[126].mxu0 %vm68_vm3, %v6510_v27  ;;  %v16072_v14 = vpack.c.bf16 %v7022_v40, %v7021_v41  ;;  %v6867_v27 = vld [vmem:[#allocation2 + $0x7a] ss:$2 sm:$0xff] }
 0x377   :  { %v5361_v50 = vpop.f32.mrb[74].mxu0  ;;  %v5483_v15 = vpop.f32.mrb[74].mxu1  ;;  %12634 = vmatprep.mubr.msk.f32.mxu1 %vm13139_vm2, %v13138_v1  ;;  %12651 = vmatprep.mubr.msk.f32.mxu0 %vm13139_vm2, %v13138_v1 }
 0x378   :  { %v5377_v4 = vadd.f32 %v5361_v50, %v5255_v59  ;;  %v12477_v36 = vpop.f32.mrb[75].mxu0  ;;  %v12494_v9 = vpop.f32.mrb[75].mxu1 }
 0x37a   :  { %v16011_v7 = vadd.f32 %v5483_v15, %v5377_v4  ;;  %12635 = vmatmul.mubr.msk.f32.gmra.mrb[118].mxu1 %vm68_vm3, %v6391_v2  ;;  %12652 = vmatmul.mubr.msk.f32.gmra.mrb[128].mxu0 %vm68_vm3, %v6512_v23  ;;  %v6869_v2 = vld [vmem:[#allocation2 + $0x8a] ss:$2 sm:$0xff] }
 0x37b   :  { %v5366_v62 = vpop.f32.mrb[76].mxu0  ;;  %v5488_v54 = vpop.f32.mrb[76].mxu1  ;;  %12656 = vmatprep.mubr.msk.f32.mxu1 %vm13139_vm2, %v13138_v1  ;;  %12673 = vmatprep.mubr.msk.f32.mxu0 %vm13139_vm2, %v13138_v1 }
 0x37c   :  { %v5378_v28 = vadd.f32 %v5366_v62, %v15977_v61  ;;  %v12480_v21 = vpop.f32.mrb[77].mxu0  ;;  %v12497_v24 = vpop.f32.mrb[77].mxu1 }
 0x37e   :  { %v16028_v38 = vadd.f32 %v5488_v54, %v5378_v28  ;;  %12657 = vmatmul.mubr.msk.f32.vlgmr.msra.gmra.mrb[120].mxu1 %vm68_vm3, %v6625_v48  ;;  %12674 = vmatmul.mubr.msk.f32.vlgmr.msra.gmra.mrb[130].mxu0 %vm68_vm3, %v6746_v5  ;;  %v6871_v54 = vld [vmem:[#allocation2 + $0x9a] ss:$2 sm:$0xff] }
 0x37f   :  { %v5371_v29 = vpop.f32.mrb[78].mxu0  ;;  %v5493_v32 = vpop.f32.mrb[78].mxu1  ;;  %12689 = vmatpush3.msra.mxu1 %v13067_v55  ;;  %12659 = vmatprep.mubr.msk.f32.mxu1 %vm13139_vm2, %v13138_v1 }
 0x380   :  { %v5379_v33 = vadd.f32 %v5371_v29, %v5257_v18  ;;  %v12483_v43 = vpop.f32.mrb[79].mxu0  ;;  %v12500_v42 = vpop.f32.mrb[79].mxu1  ;;  %12676 = vmatprep.mubr.msk.f32.mxu0 %vm13139_vm2, %v13138_v1  ;;  %12952 = vmatprep.subr.bf16.mxu1 %v13140_v60 }
 0x381   :  { %12951 = vmatpush3.bf16.msra.mxu0 %v16026_v56 }
 0x382   :  { %v5501_v59 = vadd.f32 %v5493_v32, %v5379_v33  ;;  %12660 = vmatmul.mubr.msk.f32.gmra.mrb[122].mxu1 %vm68_vm3, %v6627_v26  ;;  %12677 = vmatmul.mubr.msk.f32.gmra.mrb[132].mxu0 %vm68_vm3, %v6748_v12  ;;  %v6875_v26 = vld [vmem:[#allocation2 + $0xba] ss:$2 sm:$0x3] }
 0x383   :  { %v5595_v0 = vpop.f32.mrb[80].mxu0  ;;  %v5717_v8 = vpop.f32.mrb[80].mxu1  ;;  %12662 = vmatprep.mubr.msk.f32.mxu1 %vm13139_vm2, %v13138_v1  ;;  %12679 = vmatprep.mubr.msk.f32.mxu0 %vm13139_vm2, %v13138_v1 }
 0x384   :  { %v5619_v30 = vadd.f32 %v5595_v0, %v5497_v39  ;;  %v12505_v53 = vpop.f32.mrb[81].mxu0  ;;  %v12522_v46 = vpop.f32.mrb[81].mxu1  ;;  %12955 = vmatprep.subr.bf16.mxu0 %v13140_v60 }
 0x386   :  { %v5741_v10 = vadd.f32 %v5717_v8, %v5619_v30  ;;  %12663 = vmatmul.mubr.msk.f32.gmra.mrb[124].mxu1 %vm68_vm3, %v6629_v63  ;;  %12680 = vmatmul.mubr.msk.f32.gmra.mrb[134].mxu0 %vm68_vm3, %v6750_v6 }
 0x387   :  { %v5600_v61 = vpop.f32.mrb[82].mxu0  ;;  %v5722_v11 = vpop.f32.mrb[82].mxu1  ;;  %12665 = vmatprep.mubr.msk.f32.mxu1 %vm13139_vm2, %v13138_v1  ;;  %12682 = vmatprep.mubr.msk.f32.mxu0 %vm13139_vm2, %v13138_v1 }
 0x388   :  { %v5620_v37 = vadd.f32 %v5600_v61, %v16003_v34  ;;  %v12508_v52 = vpop.f32.mrb[83].mxu0  ;;  %v12525_v20 = vpop.f32.mrb[83].mxu1 }
 0x38a   :  { %v5742_v16 = vadd.f32 %v5722_v11, %v5620_v37  ;;  %12666 = vmatmul.mubr.msk.f32.gmra.mrb[126].mxu1 %vm68_vm3, %v6631_v51  ;;  %12683 = vmatmul.mubr.msk.f32.gmra.mrb[136].mxu0 %vm68_vm3, %v6752_v49 }
 0x38b   :  { %v5605_v3 = vpop.f32.mrb[84].mxu0  ;;  %v5727_v18 = vpop.f32.mrb[84].mxu1  ;;  %12668 = vmatprep.mubr.msk.f32.mxu1 %vm13139_vm2, %v13138_v1  ;;  %12685 = vmatprep.mubr.msk.f32.mxu0 %vm13139_vm2, %v13138_v1 }
 0x38c   :  { %v5621_v19 = vadd.f32 %v5605_v3, %v16011_v7  ;;  %v12511_v13 = vpop.f32.mrb[85].mxu0  ;;  %v12528_v31 = vpop.f32.mrb[85].mxu1  ;;  %v16086_v7 = vld [vmem:[%s16839_s24] ss:$0 sm:$0xff] }
 0x38d   :  { %v10737_v13 = vld [vmem:[%s16838_s26 + $0x38] sm:$0xff] }
 0x38e   :  { %v5743_v39 = vadd.f32 %v5727_v18, %v5621_v19  ;;  %12669 = vmatmul.mubr.msk.f32.gmra.mrb[128].mxu1 %vm68_vm3, %v6633_v45  ;;  %12686 = vmatmul.mubr.msk.f32.gmra.mrb[138].mxu0 %vm68_vm3, %v6754_v57  ;;  %v10734_v18 = vld [vmem:[%s16838_s26 + $0x28] sm:$0xff]  ;;  %v10736_v19 = vld [vmem:[%s16838_s26 + $0x30] sm:$0xff]  ;;  %v10739_v45 = vld [vmem:[%s16838_s26 + $0x40] sm:$0xff] }
 0x38f   :  { %v5610_v25 = vpop.f32.mrb[86].mxu0  ;;  %v5732_v47 = vpop.f32.mrb[86].mxu1  ;;  %12690 = vmatprep.mubr.msk.f32.mxu1 %vm13139_vm2, %v13138_v1  ;;  %12709 = vmatprep.mubr.msk.f32.mxu0 %vm13139_vm2, %v13138_v1  ;;  %v16129_v40 = vpack.c.bf16 %v10737_v13, %v10736_v19  ;;  %v10740_v57 = vld [vmem:[%s16838_s26 + $0x48] sm:$0xff] }
 0x390   :  { %v5622_v22 = vadd.f32 %v5610_v25, %v16028_v38  ;;  %v12514_v58 = vpop.f32.mrb[87].mxu0  ;;  %v12531_v44 = vpop.f32.mrb[87].mxu1  ;;  %v6873_v38 = vld [vmem:[#allocation2 + $0xaa] ss:$2 sm:$0xff] }
 0x391   :  { %v10743_v25 = vld [vmem:[%s16838_s26 + $0x58] sm:$0xff]  ;;  %v16147_v58 = vpack.c.bf16 %v10740_v57, %v10739_v45 }
 0x392   :  { %v5744_v34 = vadd.f32 %v5732_v47, %v5622_v22  ;;  %12691 = vmatmul.mubr.msk.f32.vlgmr.msra.gmra.mrb[130].mxu1 %vm68_vm3, %v6867_v27  ;;  %v10745_v27 = vld [vmem:[%s16838_s26 + $0x60] sm:$0xff] }
 0x393   :  { %v5615_v50 = vpop.f32.mrb[88].mxu0  ;;  %v5737_v15 = vpop.f32.mrb[88].mxu1  ;;  %12693 = vmatprep.mubr.msk.f32.mxu1 %vm13139_vm2, %v13138_v1  ;;  %12954 = vmatpush3.bf16.msra.mxu1 %v16072_v14 }
 0x394   :  { %v5623_v4 = vadd.f32 %v5615_v50, %v5501_v59  ;;  %v12517_v36 = vpop.f32.mrb[89].mxu0  ;;  %v12534_v9 = vpop.f32.mrb[89].mxu1  ;;  %12958 = vmatprep.subr.bf16.mxu1 %v13140_v60  ;;  %v10748_v50 = vld [vmem:[%s16838_s26 + $0x70] sm:$0xff] }
 0x396   :  { %v5745_v23 = vadd.f32 %v5737_v15, %v5623_v4  ;;  %12694 = vmatmul.mubr.msk.f32.gmra.mrb[132].mxu1 %vm68_vm3, %v6869_v2  ;;  %v10749_v15 = vld [vmem:[%s16838_s26 + $0x78] sm:$0xff] }
 0x397   :  { %v5839_v35 = vpop.f32.mrb[90].mxu0  ;;  %12696 = vmatprep.mubr.msk.f32.mxu1 %vm13139_vm2, %v13138_v1 }
 0x398   :  { %v5863_v17 = vadd.f32 %v5839_v35, %v5741_v10  ;;  %v12539_v62 = vpop.f32.mrb[91].mxu0  ;;  %v10751_v35 = vld [vmem:[%s16838_s26 + $0x80] sm:$0xff] }
 0x39a   :  { %v5874_v28 = vadd.f32 %v16086_v7, %v5863_v17  ;;  %12697 = vmatmul.mubr.msk.f32.gmra.mrb[134].mxu1 %vm68_vm3, %v6871_v54  ;;  %v10752_v17 = vld [vmem:[%s16838_s26 + $0x88] sm:$0xff] }
 0x39b   :  { %v5844_v21 = vpop.f32.mrb[92].mxu0  ;;  %12699 = vmatprep.mubr.msk.f32.mxu1 %vm13139_vm2, %v13138_v1 }
 0x39c   :  { %v5879_v24 = vmul.f32 0.2, %v5874_v28  ;;  %v5864_v48 = vadd.f32 %v5844_v21, %v5742_v16  ;;  %v12542_v5 = vpop.f32.mrb[93].mxu0  ;;  %v10733_v16 = vld [vmem:[%s16838_s26 + $0x20] sm:$0xff] }
 0x39d   :  { %v16127_v41 = vpack.c.bf16 %v10734_v18, %v10733_v16 }
 0x39e   :  { %v5884_v29 = vmax.f32 %v5874_v28, %v5879_v24  ;;  %v5875_v32 = vadd.f32 %v16086_v7, %v5864_v48  ;;  %12700 = vmatmul.mubr.msk.f32.gmra.mrb[136].mxu1 %vm68_vm3, %v6873_v38  ;;  %v16195_v28 = vpack.c.bf16 %v10752_v17, %v10751_v35 }
 0x39f   :  { %v5849_v55 = vpop.f32.mrb[94].mxu0  ;;  %12702 = vmatprep.mubr.msk.f32.mxu1 %vm13139_vm2, %v13138_v1 }
 0x3a0   :  { %5889 = vst.msk [vmem:[#allocation5] sm:$0xff] %vm94_vm5, %v5884_v29  ;;  %v5880_v33 = vmul.f32 0.2, %v5875_v32  ;;  %v5865_v43 = vadd.f32 %v5849_v55, %v5743_v39  ;;  %v12545_v42 = vpop.f32.mrb[95].mxu0  ;;  %v10742_v39 = vld [vmem:[%s16838_s26 + $0x50] sm:$0xff] }
 0x3a1   :  { %v16149_v44 = vpack.c.bf16 %v10743_v25, %v10742_v39 }
 0x3a2   :  { %v5885_v12 = vmax.f32 %v5875_v32, %v5880_v33  ;;  %v5876_v59 = vadd.f32 %v16086_v7, %v5865_v43  ;;  %12703 = vmatmul.mubr.msk.f32.gmra.mrb[138].mxu1 %vm68_vm3, %v6875_v26 }
 0x3a3   :  { %v5854_v0 = vpop.f32.mrb[96].mxu0  ;;  %12716 = vmatprep.mubr.msk.f32.mxu1 %vm13139_vm2, %v13138_v1 }
 0x3a4   :  { %5890 = vst.msk [vmem:[#allocation5 + $0x8] sm:$0xff] %vm94_vm5, %v5885_v12  ;;  %v5881_v8 = vmul.f32 0.2, %v5876_v59  ;;  %v5866_v30 = vadd.f32 %v5854_v0, %v5744_v34  ;;  %v12548_v53 = vpop.f32.mrb[97].mxu0  ;;  %v10746_v34 = vld [vmem:[%s16838_s26 + $0x68] sm:$0xff] }
 0x3a5   :  { %v16175_v2 = vpack.c.bf16 %v10746_v34, %v10745_v27 }
 0x3a6   :  { %v5886_v46 = vmax.f32 %v5876_v59, %v5881_v8  ;;  %v5877_v63 = vadd.f32 %v16086_v7, %v5866_v30 }
 0x3a7   :  { %v5895_v6 = vld [vmem:[#allocation5] sm:$0xf]  ;;  %v5859_v10 = vpop.f32.mrb[98].mxu0 }
 0x3a8   :  { %5897 = vst.msk [vmem:[#allocation3 + $0x7] sm:$0xf] %vm5896_vm6, %v5895_v6  ;;  %5898 = vst.msk [vmem:[#allocation11] sm:$0xf] %vm5896_vm6, %v5895_v6  ;;  %v5882_v61 = vmul.f32 0.2, %v5877_v63  ;;  %v5867_v11 = vadd.f32 %v5859_v10, %v5745_v23  ;;  %v16177_v23 = vpack.c.bf16 %v10749_v15, %v10748_v50 }
 0x3a9   :  { %5891 = vst.msk [vmem:[#allocation5 + $0x10] sm:$0xff] %vm94_vm5, %v5886_v46  ;;  %v12551_v37 = vpop.f32.mrb[99].mxu0 }
 0x3aa   :  { %v5887_v52 = vmax.f32 %v5877_v63, %v5882_v61  ;;  %v5878_v20 = vadd.f32 %v16086_v7, %v5867_v11 }
 0x3ab   :  { %v5899_v51 = vld [vmem:[#allocation5 + $0xa] sm:$0xf] }
 0x3ac   :  { %5900 = vst.msk [vmem:[#allocation3 + $0xd] sm:$0xf] %vm5896_vm6, %v5899_v51  ;;  %5901 = vst.msk [vmem:[#allocation11 + $0x4] sm:$0xf] %vm5896_vm6, %v5899_v51  ;;  %v5883_v49 = vmul.f32 0.2, %v5878_v20 }
 0x3ad   :  { %5892 = vst.msk [vmem:[#allocation5 + $0x18] sm:$0xff] %vm94_vm5, %v5887_v52 }
 0x3ae   :  { %v5888_v3 = vmax.f32 %v5878_v20, %v5883_v49 }
 0x3b0   :  { %v5902_v31 = vld [vmem:[#allocation5 + $0x14] sm:$0xf]  ;;  %5894 = vst.msk [vmem:[#allocation5 + $0x20] sm:$0x3] %vm5893_vm7, %v5888_v3 }
 0x3b1   :  { %5903 = vst.msk [vmem:[#allocation3 + $0x13] sm:$0xf] %vm5896_vm6, %v5902_v31  ;;  %5904 = vst.msk [vmem:[#allocation11 + $0x8] sm:$0xf] %vm5896_vm6, %v5902_v31 }
 0x3b3   :  { %v7024_v47 = vld [vmem:[#allocation3 + $0x1] ss:$2 sm:$0xff]  ;;  %v7020_v22 = vld [vmem:[#allocation3] ss:$2 sm:$0xff] }
 0x3b4   :  { %12710 = vmatmul.mubr.msk.f32.vlgmr.msra.gmra.mrb[140].mxu0 %vm94_vm5, %v7024_v47  ;;  %12717 = vmatmul.mubr.msk.f32.vlgmr.msra.gmra.mrb[140].mxu1 %vm94_vm5, %v7020_v22  ;;  %v7175_v36 = vld [vmem:[#allocation3 + $0x2] ss:$2 sm:$0xff] }
 0x3b5   :  { %12957 = vmatpush3.bf16.msra.mxu0 %v16127_v41  ;;  %12960 = vmatpush3.bf16.msra.mxu1 %v16129_v40 }
 0x3b6   :  { %12723 = vmatprep.mubr.msk.f32.mxu0 %vm13139_vm2, %v13138_v1  ;;  %12730 = vmatprep.mubr.msk.f32.mxu1 %vm13139_vm2, %v13138_v1 }
 0x3b7   :  { %v5905_v4 = vld [vmem:[#allocation5 + $0x1e] sm:$0xf]  ;;  %12961 = vmatprep.subr.bf16.mxu0 %v13140_v60  ;;  %12964 = vmatprep.subr.bf16.mxu1 %v13140_v60 }
 0x3b8   :  { %v7254_v9 = vld [vmem:[#allocation3 + $0x6] ss:$2 sm:$0xff]  ;;  %5906 = vst.msk [vmem:[#allocation3 + $0x19] sm:$0xf] %vm5896_vm6, %v5905_v4  ;;  %5907 = vst.msk [vmem:[#allocation11 + $0xc] sm:$0xf] %vm5896_vm6, %v5905_v4  ;;  %12724 = vmatmul.mubr.msk.f32.vlgmr.msra.gmra.mrb[142].mxu0 %vm94_vm5, %v7175_v36 }
 0x3b9   :  { %12731 = vmatmul.mubr.msk.f32.vlgmr.msra.gmra.mrb[142].mxu1 %vm94_vm5, %v7254_v9  ;;  %12963 = vmatpush3.bf16.msra.mxu0 %v16147_v58  ;;  %v7333_v62 = vld [vmem:[#allocation3 + $0x7] ss:$2 sm:$0xff]  ;;  %v7412_v54 = vld [vmem:[#allocation3 + $0x8] ss:$2 sm:$0xff] }
 0x3ba   :  { %12966 = vmatpush3.bf16.msra.mxu1 %v16149_v44  ;;  %12737 = vmatprep.mubr.msk.f32.mxu0 %vm13139_vm2, %v13138_v1 }
 0x3bb   :  { %12744 = vmatprep.mubr.msk.f32.mxu1 %vm13139_vm2, %v13138_v1  ;;  %12967 = vmatprep.subr.bf16.mxu0 %v13140_v60 }
 0x3bc   :  { %12970 = vmatprep.subr.bf16.mxu1 %v13140_v60  ;;  %12738 = vmatmul.mubr.msk.f32.vlgmr.msra.gmra.mrb[144].mxu0 %vm94_vm5, %v7333_v62 }
 0x3bd   :  { %12745 = vmatmul.mubr.msk.f32.vlgmr.msra.gmra.mrb[144].mxu1 %vm94_vm5, %v7412_v54  ;;  %12969 = vmatpush3.bf16.msra.mxu0 %v16175_v2 }
 0x3be   :  { %12972 = vmatpush3.bf16.msra.mxu1 %v16177_v23  ;;  %12751 = vmatprep.mubr.msk.f32.mxu0 %vm13139_vm2, %v13138_v1 }
 0x3bf   :  { %12758 = vmatprep.mubr.msk.f32.mxu1 %vm13139_vm2, %v13138_v1  ;;  %v7491_v21 = vld [vmem:[#allocation3 + $0xc] ss:$2 sm:$0xff]  ;;  %v7570_v24 = vld [vmem:[#allocation3 + $0xd] ss:$2 sm:$0xff]  ;;  %12973 = vmatprep.subr.bf16.mxu0 %v13140_v60 }
 0x3c0   :  { %12976 = vmatprep.subr.bf16.mxu1 %v13140_v60  ;;  %12752 = vmatmul.mubr.msk.f32.vlgmr.msra.gmra.mrb[146].mxu0 %vm94_vm5, %v7491_v21  ;;  %v7649_v48 = vld [vmem:[#allocation3 + $0xe] ss:$2 sm:$0xff] }
 0x3c1   :  { %12759 = vmatmul.mubr.msk.f32.vlgmr.msra.gmra.mrb[146].mxu1 %vm94_vm5, %v7570_v24  ;;  %12975 = vmatpush3.bf16.msra.mxu0 %v16195_v28 }
 0x3c2   :  { %12765 = vmatprep.mubr.msk.f32.mxu0 %vm13139_vm2, %v13138_v1  ;;  %12979 = vmatprep.subr.bf16.mxu0 %v13140_v60 }
 0x3c3   :  { %12978 = vmatpush3.bf16.msra.mxu1 %v16026_v56  ;;  %12772 = vmatprep.mubr.msk.f32.mxu1 %vm13139_vm2, %v13138_v1 }
 0x3c4   :  { %12982 = vmatprep.subr.bf16.mxu1 %v13140_v60  ;;  %12766 = vmatmul.mubr.msk.f32.vlgmr.msra.gmra.mrb[148].mxu0 %vm94_vm5, %v7649_v48 }
 0x3c5   :  { %12981 = vmatpush3.bf16.msra.mxu0 %v16072_v14  ;;  %12779 = vmatprep.mubr.msk.f32.mxu0 %vm13139_vm2, %v13138_v1 }
 0x3c6   :  { %12985 = vmatprep.subr.bf16.mxu0 %v13140_v60 }
 0x3f1   :  { %v6011_v5 = vpop.f32.mrb[90].mxu1  ;;  %v6116_v38 = vpop.f32.mrb[100].mxu0 }
 0x3f2   :  { %v6117_v29 = vadd.f32 %v6116_v38, %v6011_v5  ;;  %v12556_v32 = vpop.f32.mrb[91].mxu1  ;;  %v12573_v56 = vpop.f32.mrb[101].mxu0 }
 0x3fd   :  { %v6121_v55 = vpop.f32.mrb[102].mxu0 }
 0x3fe   :  { %v12576_v33 = vpop.f32.mrb[103].mxu0 }
 0x406   :  { %v6016_v43 = vpop.f32.mrb[92].mxu1 }
 0x407   :  { %v6122_v42 = vadd.f32 %v6121_v55, %v6016_v43  ;;  %v12559_v26 = vpop.f32.mrb[93].mxu1 }
 0x40d   :  { %v6021_v12 = vpop.f32.mrb[94].mxu1  ;;  %v6126_v59 = vpop.f32.mrb[104].mxu0 }
 0x40e   :  { %v6127_v0 = vadd.f32 %v6126_v59, %v6021_v12  ;;  %v12562_v8 = vpop.f32.mrb[95].mxu1  ;;  %v12579_v14 = vpop.f32.mrb[105].mxu0 }
 0x421   :  { %v6026_v30 = vpop.f32.mrb[96].mxu1  ;;  %v6131_v53 = vpop.f32.mrb[106].mxu0 }
 0x422   :  { %v6132_v46 = vadd.f32 %v6131_v53, %v6026_v30  ;;  %v12565_v63 = vpop.f32.mrb[97].mxu1  ;;  %v12582_v6 = vpop.f32.mrb[107].mxu0 }
 0x425   :  { %v6031_v10 = vpop.f32.mrb[98].mxu1  ;;  %v6136_v61 = vpop.f32.mrb[108].mxu0 }
 0x426   :  { %v6137_v11 = vadd.f32 %v6136_v61, %v6031_v10  ;;  %v12568_v37 = vpop.f32.mrb[99].mxu1  ;;  %v12585_v52 = vpop.f32.mrb[109].mxu0 }
 0x429   :  { %v6232_v20 = vpop.f32.mrb[100].mxu1  ;;  %v6353_v51 = vpop.f32.mrb[110].mxu0 }
 0x42a   :  { %v6256_v49 = vadd.f32 %v6232_v20, %v6117_v29  ;;  %v12590_v16 = vpop.f32.mrb[101].mxu1  ;;  %v12607_v3 = vpop.f32.mrb[111].mxu0 }
 0x42c   :  { %v6377_v18 = vadd.f32 %v6353_v51, %v6256_v49 }
 0x42d   :  { %v6237_v19 = vpop.f32.mrb[102].mxu1  ;;  %v6358_v13 = vpop.f32.mrb[112].mxu0 }
 0x42e   :  { %v6257_v31 = vadd.f32 %v6237_v19, %v6122_v42  ;;  %v12593_v45 = vpop.f32.mrb[103].mxu1  ;;  %v12610_v57 = vpop.f32.mrb[113].mxu0 }
 0x430   :  { %v6378_v39 = vadd.f32 %v6358_v13, %v6257_v31 }
 0x431   :  { %v6242_v25 = vpop.f32.mrb[104].mxu1  ;;  %v6363_v47 = vpop.f32.mrb[114].mxu0 }
 0x432   :  { %v6258_v22 = vadd.f32 %v6242_v25, %v6127_v0  ;;  %v12596_v27 = vpop.f32.mrb[105].mxu1  ;;  %v12613_v34 = vpop.f32.mrb[115].mxu0 }
 0x434   :  { %v6379_v50 = vadd.f32 %v6363_v47, %v6258_v22 }
 0x435   :  { %v6247_v15 = vpop.f32.mrb[106].mxu1  ;;  %v6368_v4 = vpop.f32.mrb[116].mxu0 }
 0x436   :  { %v6259_v36 = vadd.f32 %v6247_v15, %v6132_v46  ;;  %v12599_v9 = vpop.f32.mrb[107].mxu1  ;;  %v12616_v35 = vpop.f32.mrb[117].mxu0 }
 0x438   :  { %v6380_v17 = vadd.f32 %v6368_v4, %v6259_v36 }
 0x439   :  { %v6252_v62 = vpop.f32.mrb[108].mxu1  ;;  %v6373_v54 = vpop.f32.mrb[118].mxu0 }
 0x43a   :  { %v6260_v21 = vadd.f32 %v6252_v62, %v6137_v11  ;;  %v12602_v24 = vpop.f32.mrb[109].mxu1  ;;  %v12619_v48 = vpop.f32.mrb[119].mxu0 }
 0x43c   :  { %v6381_v5 = vadd.f32 %v6373_v54, %v6260_v21 }
 0x43d   :  { %v6474_v38 = vpop.f32.mrb[110].mxu1  ;;  %v6595_v29 = vpop.f32.mrb[120].mxu0 }
 0x43e   :  { %v6498_v32 = vadd.f32 %v6474_v38, %v6377_v18  ;;  %v12624_v56 = vpop.f32.mrb[111].mxu1  ;;  %v12641_v55 = vpop.f32.mrb[121].mxu0 }
 0x440   :  { %v6619_v33 = vadd.f32 %v6595_v29, %v6498_v32 }
 0x441   :  { %v6479_v43 = vpop.f32.mrb[112].mxu1  ;;  %v6600_v42 = vpop.f32.mrb[122].mxu0 }
 0x442   :  { %v6499_v26 = vadd.f32 %v6479_v43, %v6378_v39  ;;  %v12627_v12 = vpop.f32.mrb[113].mxu1  ;;  %v12644_v59 = vpop.f32.mrb[123].mxu0 }
 0x444   :  { %v6620_v0 = vadd.f32 %v6600_v42, %v6499_v26 }
 0x445   :  { %v6484_v8 = vpop.f32.mrb[114].mxu1  ;;  %v6605_v14 = vpop.f32.mrb[124].mxu0 }
 0x446   :  { %v6500_v30 = vadd.f32 %v6484_v8, %v6379_v50  ;;  %v12630_v53 = vpop.f32.mrb[115].mxu1  ;;  %v12647_v46 = vpop.f32.mrb[125].mxu0 }
 0x448   :  { %v6621_v63 = vadd.f32 %v6605_v14, %v6500_v30 }
 0x449   :  { %v6489_v6 = vpop.f32.mrb[116].mxu1  ;;  %v6610_v10 = vpop.f32.mrb[126].mxu0 }
 0x44a   :  { %v6501_v61 = vadd.f32 %v6489_v6, %v6380_v17  ;;  %v12633_v11 = vpop.f32.mrb[117].mxu1  ;;  %v12650_v37 = vpop.f32.mrb[127].mxu0 }
 0x44c   :  { %v6622_v52 = vadd.f32 %v6610_v10, %v6501_v61 }
 0x44d   :  { %v6494_v20 = vpop.f32.mrb[118].mxu1  ;;  %v6615_v51 = vpop.f32.mrb[128].mxu0 }
 0x44e   :  { %v6502_v49 = vadd.f32 %v6494_v20, %v6381_v5  ;;  %v12636_v16 = vpop.f32.mrb[119].mxu1  ;;  %v12653_v3 = vpop.f32.mrb[129].mxu0 }
 0x450   :  { %v6623_v18 = vadd.f32 %v6615_v51, %v6502_v49 }
 0x451   :  { %v6716_v19 = vpop.f32.mrb[120].mxu1  ;;  %v6837_v13 = vpop.f32.mrb[130].mxu0 }
 0x452   :  { %v6740_v31 = vadd.f32 %v6716_v19, %v6619_v33  ;;  %v12658_v45 = vpop.f32.mrb[121].mxu1  ;;  %v12675_v57 = vpop.f32.mrb[131].mxu0 }
 0x454   :  { %v6861_v39 = vadd.f32 %v6837_v13, %v6740_v31 }
 0x455   :  { %v6721_v25 = vpop.f32.mrb[122].mxu1  ;;  %v6842_v47 = vpop.f32.mrb[132].mxu0 }
 0x456   :  { %v6741_v22 = vadd.f32 %v6721_v25, %v6620_v0  ;;  %v12661_v27 = vpop.f32.mrb[123].mxu1  ;;  %v12678_v34 = vpop.f32.mrb[133].mxu0 }
 0x458   :  { %v6862_v50 = vadd.f32 %v6842_v47, %v6741_v22 }
 0x459   :  { %v6726_v15 = vpop.f32.mrb[124].mxu1  ;;  %v6847_v4 = vpop.f32.mrb[134].mxu0 }
 0x45a   :  { %v6742_v36 = vadd.f32 %v6726_v15, %v6621_v63  ;;  %v12664_v9 = vpop.f32.mrb[125].mxu1  ;;  %v12681_v35 = vpop.f32.mrb[135].mxu0 }
 0x45c   :  { %v6863_v17 = vadd.f32 %v6847_v4, %v6742_v36 }
 0x45d   :  { %v6731_v62 = vpop.f32.mrb[126].mxu1  ;;  %v6852_v54 = vpop.f32.mrb[136].mxu0 }
 0x45e   :  { %v6743_v21 = vadd.f32 %v6731_v62, %v6622_v52  ;;  %v12667_v24 = vpop.f32.mrb[127].mxu1  ;;  %v12684_v48 = vpop.f32.mrb[137].mxu0 }
 0x460   :  { %v6864_v5 = vadd.f32 %v6852_v54, %v6743_v21 }
 0x461   :  { %v6736_v38 = vpop.f32.mrb[128].mxu1  ;;  %v6857_v29 = vpop.f32.mrb[138].mxu0 }
 0x462   :  { %v6744_v32 = vadd.f32 %v6736_v38, %v6623_v18  ;;  %v12670_v56 = vpop.f32.mrb[129].mxu1  ;;  %v12687_v55 = vpop.f32.mrb[139].mxu0 }
 0x464   :  { %v6865_v33 = vadd.f32 %v6857_v29, %v6744_v32 }
 0x465   :  { %v6958_v43 = vpop.f32.mrb[130].mxu1 }
 0x466   :  { %v6982_v42 = vadd.f32 %v6958_v43, %v6861_v39  ;;  %v12692_v26 = vpop.f32.mrb[131].mxu1 }
 0x468   :  { %v6987_v12 = vadd.f32 %v16086_v7, %v6982_v42 }
 0x469   :  { %v6963_v59 = vpop.f32.mrb[132].mxu1 }
 0x46a   :  { %v6992_v0 = vmul.f32 0.2, %v6987_v12  ;;  %v6983_v8 = vadd.f32 %v6963_v59, %v6862_v50  ;;  %v12695_v14 = vpop.f32.mrb[133].mxu1  ;;  %v10754_v59 = vld [vmem:[%s16840_s25] ss:$0 sm:$0xff] }
 0x46c   :  { %v6997_v30 = vmax.f32 %v6987_v12, %v6992_v0  ;;  %v6988_v53 = vadd.f32 %v16086_v7, %v6983_v8 }
 0x46d   :  { %v6968_v46 = vpop.f32.mrb[134].mxu1 }
 0x46e   :  { %7002 = vst.msk [vmem:[#allocation5] sm:$0xff] %vm94_vm5, %v6997_v30  ;;  %v6993_v63 = vmul.f32 0.2, %v6988_v53  ;;  %v6984_v6 = vadd.f32 %v6968_v46, %v6863_v17  ;;  %v12698_v10 = vpop.f32.mrb[135].mxu1 }
 0x46f   :  { %v8452_v10 = vld [vmem:[%s16806_s7] sm:$0xff] }
 0x470   :  { %v6998_v61 = vmax.f32 %v6988_v53, %v6993_v63  ;;  %v6989_v11 = vadd.f32 %v16086_v7, %v6984_v6 }
 0x471   :  { %v6973_v37 = vpop.f32.mrb[136].mxu1 }
 0x472   :  { %7003 = vst.msk [vmem:[#allocation5 + $0x8] sm:$0xff] %vm94_vm5, %v6998_v61  ;;  %v6994_v52 = vmul.f32 0.2, %v6989_v11  ;;  %v6985_v20 = vadd.f32 %v6973_v37, %v6864_v5  ;;  %v12701_v51 = vpop.f32.mrb[137].mxu1  ;;  %v8453_v61 = vld [vmem:[%s16806_s7 + $0x8] sm:$0xff] }
 0x473   :  { %v13004_v37 = vpack.c.bf16 %v8453_v61, %v8452_v10 }
 0x474   :  { %v6999_v49 = vmax.f32 %v6989_v11, %v6994_v52  ;;  %v6990_v16 = vadd.f32 %v16086_v7, %v6985_v20  ;;  %v8454_v11 = vld [vmem:[%s16806_s7 + $0x10] sm:$0xff]  ;;  %v8455_v52 = vld [vmem:[%s16806_s7 + $0x18] sm:$0xff] }
 0x475   :  { %v7007_v3 = vld [vmem:[#allocation5] sm:$0xf]  ;;  %v6978_v18 = vpop.f32.mrb[138].mxu1  ;;  %v13007_v20 = vpack.c.bf16 %v8455_v52, %v8454_v11  ;;  %v8735_v11 = vld [vmem:[%s16810_s11 + $0x10] sm:$0xff]  ;;  %v8737_v52 = vld [vmem:[%s16810_s11 + $0x20] sm:$0xff] }
 0x476   :  { %7008 = vst.msk [vmem:[#allocation3 + $0x2b] sm:$0xf] %vm5896_vm6, %v7007_v3  ;;  %7009 = vst.msk [vmem:[#allocation11 + $0x10] sm:$0xf] %vm5896_vm6, %v7007_v3  ;;  %v6995_v19 = vmul.f32 0.2, %v6990_v16  ;;  %v6986_v13 = vadd.f32 %v6978_v18, %v6865_v33 }
 0x477   :  { %7004 = vst.msk [vmem:[#allocation5 + $0x10] sm:$0xff] %vm94_vm5, %v6999_v49  ;;  %v12704_v31 = vpop.f32.mrb[139].mxu1 }
 0x478   :  { %v7000_v45 = vmax.f32 %v6990_v16, %v6995_v19  ;;  %v6991_v57 = vadd.f32 %v16086_v7, %v6986_v13 }
 0x479   :  { %v7010_v39 = vld [vmem:[#allocation5 + $0xa] sm:$0xf] }
 0x47a   :  { %7011 = vst.msk [vmem:[#allocation3 + $0x31] sm:$0xf] %vm5896_vm6, %v7010_v39  ;;  %7012 = vst.msk [vmem:[#allocation11 + $0x14] sm:$0xf] %vm5896_vm6, %v7010_v39  ;;  %v6996_v25 = vmul.f32 0.2, %v6991_v57 }
 0x47b   :  { %7005 = vst.msk [vmem:[#allocation5 + $0x18] sm:$0xff] %vm94_vm5, %v7000_v45 }
 0x47c   :  { %v7001_v47 = vmax.f32 %v6991_v57, %v6996_v25 }
 0x47e   :  { %v7013_v22 = vld [vmem:[#allocation5 + $0x14] sm:$0xf]  ;;  %7006 = vst.msk [vmem:[#allocation5 + $0x20] sm:$0x3] %vm5893_vm7, %v7001_v47 }
 0x47f   :  { %7014 = vst.msk [vmem:[#allocation3 + $0x37] sm:$0xf] %vm5896_vm6, %v7013_v22  ;;  %7015 = vst.msk [vmem:[#allocation11 + $0x18] sm:$0xf] %vm5896_vm6, %v7013_v22 }
 0x481   :  { %v7748_v27 = vld [vmem:[#allocation3 + $0x25] ss:$2 sm:$0xff]  ;;  %v7744_v34 = vld [vmem:[#allocation3 + $0x24] ss:$2 sm:$0xff] }
 0x482   :  { %12773 = vmatmul.mubr.msk.f32.vlgmr.msra.gmra.mrb[148].mxu1 %vm94_vm5, %v7748_v27  ;;  %12780 = vmatmul.mubr.msk.f32.vlgmr.msra.gmra.mrb[150].mxu0 %vm94_vm5, %v7744_v34  ;;  %v7898_v50 = vld [vmem:[#allocation3 + $0x26] ss:$2 sm:$0xff] }
 0x483   :  { %12984 = vmatpush3.bf16.msra.mxu1 %v16127_v41  ;;  %12987 = vmatpush3.bf16.msra.mxu0 %v16129_v40 }
 0x484   :  { %12786 = vmatprep.mubr.msk.f32.mxu1 %vm13139_vm2, %v13138_v1  ;;  %12793 = vmatprep.mubr.msk.f32.mxu0 %vm13139_vm2, %v13138_v1 }
 0x485   :  { %v7016_v7 = vld [vmem:[#allocation5 + $0x1e] sm:$0xf]  ;;  %12988 = vmatprep.subr.bf16.mxu1 %v13140_v60  ;;  %12991 = vmatprep.subr.bf16.mxu0 %v13140_v60 }
 0x486   :  { %v7976_v15 = vld [vmem:[#allocation3 + $0x2a] ss:$2 sm:$0xff]  ;;  %7017 = vst.msk [vmem:[#allocation3 + $0x3d] sm:$0xf] %vm5896_vm6, %v7016_v7  ;;  %7018 = vst.msk [vmem:[#allocation11 + $0x1c] sm:$0xf] %vm5896_vm6, %v7016_v7  ;;  %12787 = vmatmul.mubr.msk.f32.vlgmr.msra.gmra.mrb[150].mxu1 %vm94_vm5, %v7898_v50 }
 0x487   :  { %12794 = vmatmul.mubr.msk.f32.vlgmr.msra.gmra.mrb[152].mxu0 %vm94_vm5, %v7976_v15  ;;  %v7097_v41 = vpop.f32.mrb[140].mxu0  ;;  %v7170_v40 = vpop.f32.mrb[140].mxu1  ;;  %12990 = vmatpush3.bf16.msra.mxu1 %v16147_v58  ;;  %v8054_v35 = vld [vmem:[#allocation3 + $0x2b] ss:$2 sm:$0xff]  ;;  %v8132_v17 = vld [vmem:[#allocation3 + $0x2c] ss:$2 sm:$0xff] }
 0x488   :  { %12993 = vmatpush3.bf16.msra.mxu0 %v16149_v44  ;;  %v7171_v4 = vadd.f32 %v7170_v40, %v7097_v41  ;;  %v12711_v36 = vpop.f32.mrb[141].mxu0  ;;  %v12718_v9 = vpop.f32.mrb[141].mxu1  ;;  %12800 = vmatprep.mubr.msk.f32.mxu1 %vm13139_vm2, %v13138_v1 }
 0x489   :  { %12807 = vmatprep.mubr.msk.f32.mxu0 %vm13139_vm2, %v13138_v1  ;;  %12994 = vmatprep.subr.bf16.mxu1 %v13140_v60 }
 0x48a   :  { %12997 = vmatprep.subr.bf16.mxu0 %v13140_v60  ;;  %12801 = vmatmul.mubr.msk.f32.vlgmr.msra.gmra.mrb[152].mxu1 %vm94_vm5, %v8054_v35 }
 0x48b   :  { %12808 = vmatmul.mubr.msk.f32.vlgmr.msra.gmra.mrb[154].mxu0 %vm94_vm5, %v8132_v17  ;;  %v7248_v58 = vpop.f32.mrb[142].mxu0  ;;  %12996 = vmatpush3.bf16.msra.mxu1 %v16175_v2 }
 0x48c   :  { %v7327_v44 = vpop.f32.mrb[142].mxu1  ;;  %12999 = vmatpush3.bf16.msra.mxu0 %v16177_v23  ;;  %v7252_v62 = vadd.f32 %v7248_v58, %v7171_v4  ;;  %v12725_v54 = vpop.f32.mrb[143].mxu0  ;;  %12814 = vmatprep.mubr.msk.f32.mxu1 %vm13139_vm2, %v13138_v1 }
 0x48d   :  { %v12732_v21 = vpop.f32.mrb[143].mxu1  ;;  %12821 = vmatprep.mubr.msk.f32.mxu0 %vm13139_vm2, %v13138_v1  ;;  %v8210_v24 = vld [vmem:[#allocation3 + $0x30] ss:$2 sm:$0xff]  ;;  %v8288_v48 = vld [vmem:[#allocation3 + $0x31] ss:$2 sm:$0xff]  ;;  %13000 = vmatprep.subr.bf16.mxu1 %v13140_v60 }
 0x48e   :  { %13003 = vmatprep.subr.bf16.mxu0 %v13140_v60  ;;  %v7331_v5 = vadd.f32 %v7327_v44, %v7252_v62  ;;  %12815 = vmatmul.mubr.msk.f32.vlgmr.msra.gmra.mrb[154].mxu1 %vm94_vm5, %v8210_v24  ;;  %v8366_v56 = vld [vmem:[#allocation3 + $0x32] ss:$2 sm:$0xff] }
 0x48f   :  { %12822 = vmatmul.mubr.msk.f32.vlgmr.msra.gmra.mrb[156].mxu0 %vm94_vm5, %v8288_v48  ;;  %v7406_v2 = vpop.f32.mrb[144].mxu0  ;;  %13002 = vmatpush3.bf16.msra.mxu1 %v16195_v28  ;;  %v8543_v48 = vld [vmem:[%s16808_s9] sm:$0xff] }
 0x490   :  { %v7485_v23 = vpop.f32.mrb[144].mxu1  ;;  %12828 = vmatprep.mubr.msk.f32.mxu1 %vm13139_vm2, %v13138_v1  ;;  %v7410_v38 = vadd.f32 %v7406_v2, %v7331_v5  ;;  %v12739_v29 = vpop.f32.mrb[145].mxu0  ;;  %12839 = vmatprep.mubr.msk.f32.mxu0 %vm13139_vm2, %v13138_v1  ;;  %v8544_v5 = vld [vmem:[%s16808_s9 + $0x8] sm:$0xff] }
 0x491   :  { %v12746_v32 = vpop.f32.mrb[145].mxu1  ;;  %13009 = vmatprep.subr.bf16.mxu1 %v13140_v60  ;;  %13005 = vmatpush3.bf16.msra.mxu0 %v13004_v37  ;;  %v13010_v2 = vpack.c.bf16 %v8544_v5, %v8543_v48  ;;  %v8736_v37 = vld [vmem:[%s16810_s11 + $0x18] sm:$0xff] }
 0x492   :  { %v7489_v55 = vadd.f32 %v7485_v23, %v7410_v38  ;;  %12829 = vmatmul.mubr.msk.f32.vlgmr.msra.gmra.mrb[156].mxu1 %vm94_vm5, %v8366_v56  ;;  %13006 = vmatprep.subr.bf16.mxu0 %v13140_v60  ;;  %v8545_v23 = vld [vmem:[%s16808_s9 + $0x10] sm:$0xff]  ;;  %v8546_v38 = vld [vmem:[%s16808_s9 + $0x18] sm:$0xff]  ;;  %v8547_v32 = vld [vmem:[%s16808_s9 + $0x20] sm:$0xff]  ;;  %s13143_s9 = smov 96  }
 0x493   :  { %v7564_v33 = vpop.f32.mrb[146].mxu0  ;;  %12852 = vmatprep.mubr.msk.f32.mxu1 %vm13139_vm2, %v13138_v1  ;;  %13011 = vmatpush3.bf16.msra.mxu1 %v13010_v2  ;;  %v13013_v29 = vpack.c.bf16 %v8546_v38, %v8545_v23 }
 0x494   :  { %v7643_v43 = vpop.f32.mrb[146].mxu1  ;;  %v7568_v28 = vadd.f32 %v7564_v33, %v7489_v55  ;;  %v12753_v42 = vpop.f32.mrb[147].mxu0  ;;  %13012 = vmatprep.subr.bf16.mxu1 %v13140_v60  ;;  %v10780_v60 = vld [vmem:[%s16807_s8] ss:$0 sm:$0xff]  ;;  %s13142_s8 = smov 64  }
 0x495   :  { %v12760_v26 = vpop.f32.mrb[147].mxu1  ;;  %13008 = vmatpush3.bf16.msra.mxu0 %v13007_v20  ;;  %v13019_v20 = vpack.c.bf16 %v8736_v37, %v8735_v11  ;;  %v9216_v11 = vld [vmem:[%s16814_s15] sm:$0xff]  ;;  %v9217_v37 = vld [vmem:[%s16814_s15 + $0x8] sm:$0xff] }
 0x496   :  { %v7647_v12 = vadd.f32 %v7643_v43, %v7568_v28  ;;  %v10782_v28 = vld [vmem:[%s16809_s10] ss:$0 sm:$0xff] }
 0x497   :  { %v7722_v0 = vpop.f32.mrb[148].mxu0  ;;  %13014 = vmatpush3.bf16.msra.mxu1 %v13013_v29  ;;  %v10789_v29 = vld [vmem:[%s16813_s14] ss:$0 sm:$0xff] }
 0x498   :  { %v7726_v8 = vadd.f32 %v7722_v0, %v7647_v12  ;;  %v12767_v14 = vpop.f32.mrb[149].mxu0  ;;  %12850 = vmatprep.subr.mxu1 %v13138_v1 }
 0x49a   :  { %v7733_v30 = vadd.f32 %v10754_v59, %v7726_v8 }
 0x49b   :  { %12851 = vmatpush3.msra.mxu1 %v8547_v32 }
 0x49c   :  { %v7734_v53 = vmul.f32 0.2, %v7733_v30 }
 0x49e   :  { %v7735_v46 = vmax.f32 %v7733_v30, %v7734_v53 }
 0x4a0   :  { %7737 = vst.msk [vmem:[#allocation6] sm:$0xff] %vm7736_vm8, %v7735_v46  ;;  %v8733_v46 = vld [vmem:[%s16810_s11] sm:$0xff] }
 0x4a7   :  { %v7738_v63 = vld [vmem:[#allocation6] sm:$0x3]  ;;  %v7741_v6 = vld [vmem:[#allocation6 + $0x6] sm:$0x3] }
 0x4a8   :  { %7740 = vst.msk [vmem:[#allocation9] sm:$0x3] %vm7739_vm9, %v7738_v63  ;;  %7742 = vst.msk [vmem:[#allocation9 + $0x2] sm:$0x3] %vm7739_vm9, %v7741_v6  ;;  %v8734_v63 = vld [vmem:[%s16810_s11 + $0x8] sm:$0xff] }
 0x4a9   :  { %v13015_v6 = vpack.c.bf16 %v8734_v63, %v8733_v46 }
 0x4ab   :  { %13016 = vmatprep.subr.bf16.mxu0 %v13015_v6 }
 0x555   :  { %v7820_v51 = vpop.f32.mrb[148].mxu1  ;;  %v7893_v49 = vpop.f32.mrb[150].mxu0 }
 0x556   :  { %v7894_v16 = vadd.f32 %v7893_v49, %v7820_v51  ;;  %v12774_v3 = vpop.f32.mrb[149].mxu1  ;;  %v12781_v18 = vpop.f32.mrb[151].mxu0  ;;  %v8738_v51 = vld [vmem:[%s16810_s11 + $0x28] sm:$0xff] }
 0x557   :  { %v13023_v49 = vpack.c.bf16 %v8738_v51, %v8737_v52  ;;  %v13035_v52 = vpack.c.bf16 %v9217_v37, %v9216_v11 }
 0x559   :  { %v7970_v19 = vpop.f32.mrb[150].mxu1 }
 0x55a   :  { %v8048_v13 = vpop.f32.mrb[152].mxu0  ;;  %v7974_v31 = vadd.f32 %v7970_v19, %v7894_v16  ;;  %v12788_v45 = vpop.f32.mrb[151].mxu1 }
 0x55b   :  { %v12795_v57 = vpop.f32.mrb[153].mxu0 }
 0x55c   :  { %v8052_v39 = vadd.f32 %v8048_v13, %v7974_v31 }
 0x55d   :  { %v8126_v25 = vpop.f32.mrb[152].mxu1 }
 0x55e   :  { %v8204_v47 = vpop.f32.mrb[154].mxu0  ;;  %v8130_v22 = vadd.f32 %v8126_v25, %v8052_v39  ;;  %v12802_v27 = vpop.f32.mrb[153].mxu1 }
 0x55f   :  { %v12809_v34 = vpop.f32.mrb[155].mxu0  ;;  %v8845_v27 = vld [vmem:[%s16812_s13 + $0x8] sm:$0xff] }
 0x560   :  { %v8208_v7 = vadd.f32 %v8204_v47, %v8130_v22  ;;  %v8844_v22 = vld [vmem:[%s16812_s13] sm:$0xff] }
 0x561   :  { %v8282_v50 = vpop.f32.mrb[154].mxu1  ;;  %v13027_v34 = vpack.c.bf16 %v8845_v27, %v8844_v22 }
 0x562   :  { %v8360_v15 = vpop.f32.mrb[156].mxu0  ;;  %v8286_v41 = vadd.f32 %v8282_v50, %v8208_v7  ;;  %v12816_v40 = vpop.f32.mrb[155].mxu1 }
 0x563   :  { %v12823_v4 = vpop.f32.mrb[157].mxu0  ;;  %13028 = vmatprep.subr.bf16.mxu1 %v13027_v34 }
 0x564   :  { %v8364_v36 = vadd.f32 %v8360_v15, %v8286_v41 }
 0x565   :  { %v8438_v9 = vpop.f32.mrb[156].mxu1 }
 0x566   :  { %v8442_v35 = vadd.f32 %v8438_v9, %v8364_v36  ;;  %v12830_v17 = vpop.f32.mrb[157].mxu1 }
 0x567   :  { %v8846_v17 = vld [vmem:[%s16812_s13 + $0x10] sm:$0xff] }
 0x568   :  { %v8443_v58 = vadd.f32 %v10754_v59, %v8442_v35 }
 0x56a   :  { %v8444_v44 = vmul.f32 0.2, %v8443_v58 }
 0x56c   :  { %v8445_v62 = vmax.f32 %v8443_v58, %v8444_v44  ;;  %v8847_v58 = vld [vmem:[%s16812_s13 + $0x18] sm:$0xff]  ;;  %s13149_s13 = smov 124  }
 0x56d   :  { %v13031_v44 = vpack.c.bf16 %v8847_v58, %v8846_v17 }
 0x56e   :  { %8446 = vst.msk [vmem:[#allocation6] sm:$0xff] %vm7736_vm8, %v8445_v62  ;;  %v10784_v62 = vld [vmem:[%s16811_s12] ss:$0 sm:$0xff]  ;;  %s13145_s12 = smov 112  }
 0x575   :  { %v8447_v54 = vld [vmem:[#allocation6] sm:$0x3]  ;;  %v8449_v21 = vld [vmem:[#allocation6 + $0x6] sm:$0x3] }
 0x576   :  { %8448 = vst.msk [vmem:[#allocation9 + $0x4] sm:$0x3] %vm7739_vm9, %v8447_v54  ;;  %8450 = vst.msk [vmem:[#allocation9 + $0x6] sm:$0x3] %vm7739_vm9, %v8449_v21 }
 0x57d   :  { %v8451_v24 = vld [vmem:[#allocation9] sm:$0xff] }
 0x57e   :  { %12840 = vmatmul.mubr.msk.f32.vlgmr.msra.gmra.mrb[158].mxu0 %vm7736_vm8, %v8451_v24 }
 0x57f   :  { %13018 = vmatpush3.bf16.msra.mxu0 %v13015_v6 }
 0x580   :  { %13020 = vmatprep.subr.bf16.mxu0 %v13019_v20 }
 0x583   :  { %13022 = vmatpush3.bf16.msra.mxu0 %v13019_v20 }
 0x584   :  { %13024 = vmatprep.subr.bf16.mxu0 %v13023_v49 }
 0x587   :  { %13026 = vmatpush3.bf16.msra.mxu0 %v13023_v49  ;;  %v9218_v49 = vld [vmem:[%s16814_s15 + $0x10] sm:$0xff]  ;;  %s13152_s15 = smov [#allocation9]  }
 0x588   :  { %s9935_s2 = sshll.u32 %s13152_s15, 4  ;;  %s9936_s2 = int_to_ptr.vmem [resolvable:$true] %s9935_s2 }
 0x651   :  { %v8532_v56 = vpop.f32.mrb[158].mxu0 }
 0x652   :  { %v8533_v55 = vadd.f32 %v10780_v60, %v8532_v56  ;;  %v12841_v33 = vpop.f32.mrb[159].mxu0 }
 0x654   :  { %8537 = vrot.lane.b32.xlu0 %v8533_v55, %s13141_s29 }
 0x6c6   :  { %v8538_v43 = vpop.permute.xlu0 %8537 }
 0x6c7   :  { %8541 = vst.msk [vmem:[#allocation9] sm:$0xff] %vm8540_vm10, %v8538_v43 }
 0x6ce   :  { %v8542_v1 = vld [vmem:[#allocation9] sm:$0xff] }
 0x6cf   :  { %12853 = vmatmul.mubr.msk.f32.vlgmr.msra.gmra.mrb[158].mxu1 %vm8555_vm11, %v8542_v1 }
 0x6d0   :  { %13030 = vmatpush3.bf16.msra.mxu1 %v13027_v34 }
 0x6d1   :  { %13032 = vmatprep.subr.bf16.mxu1 %v13031_v44 }
 0x6d4   :  { %13034 = vmatpush3.bf16.msra.mxu1 %v13031_v44 }
 0x6d5   :  { %13036 = vmatprep.subr.bf16.mxu1 %v13035_v52 }
 0x7a2   :  { %v8625_v42 = vpop.f32.mrb[158].mxu1 }
 0x7a3   :  { %v8626_v26 = vadd.f32 %v10782_v28, %v8625_v42  ;;  %v12854_v12 = vpop.f32.mrb[159].mxu1 }
 0x7a5   :  { %v8629_v59 = vmax.f32 %v8626_v26, 0.0 }
 0x7a7   :  { %8630 = vst [vmem:[#allocation7] ss:$2 sm:$0x3] %v8629_v59  ;;  %8637 = vrot.lane.b32.xlu1 %v8629_v59, %s13142_s8  ;;  %8632 = vrot.lane.b32.xlu0 %v8629_v59, %s13143_s9  ;;  %v8647_v0 = vrot.slane %v8629_v59, 2  ;;  %v8666_v8 = vrot.slane %v8629_v59, 4  ;;  %v8685_v14 = vrot.slane %v8629_v59, 6 }
 0x7a9   :  { %8650 = vst [vmem:[#allocation7 + $0x8] ss:$2 sm:$0x3] %v8647_v0  ;;  %8669 = vst [vmem:[#allocation7 + $0x10] ss:$2 sm:$0x3] %v8666_v8 }
 0x7aa   :  { %8688 = vst [vmem:[#allocation7 + $0x18] ss:$2 sm:$0x3] %v8685_v14 }
 0x7ab   :  { %8642 = vrot.lane.b32.xlu1 %v8629_v59, %s13141_s29  ;;  %8651 = vrot.lane.b32.xlu0 %v8647_v0, %s13143_s9 }
 0x7af   :  { %8656 = vrot.lane.b32.xlu1 %v8647_v0, %s13142_s8  ;;  %8661 = vrot.lane.b32.xlu0 %v8647_v0, %s13141_s29 }
 0x7b3   :  { %8670 = vrot.lane.b32.xlu1 %v8666_v8, %s13143_s9  ;;  %8675 = vrot.lane.b32.xlu0 %v8666_v8, %s13142_s8 }
 0x7b7   :  { %8680 = vrot.lane.b32.xlu1 %v8666_v8, %s13141_s29  ;;  %8689 = vrot.lane.b32.xlu0 %v8685_v14, %s13143_s9 }
 0x7bb   :  { %8694 = vrot.lane.b32.xlu1 %v8685_v14, %s13142_s8  ;;  %8699 = vrot.lane.b32.xlu0 %v8685_v14, %s13141_s29 }
 0x819   :  { %v8638_v30 = vpop.permute.xlu1 %8637  ;;  %v8633_v53 = vpop.permute.xlu0 %8632 }
 0x81a   :  { %8641 = vst [vmem:[#allocation7 + $0x4] ss:$2 sm:$0x3] %v8638_v30  ;;  %8636 = vst [vmem:[#allocation7 + $0x1] ss:$2 sm:$0x3] %v8633_v53 }
 0x81d   :  { %v8643_v10 = vpop.permute.xlu1 %8642  ;;  %v8652_v61 = vpop.permute.xlu0 %8651 }
 0x81e   :  { %8646 = vst [vmem:[#allocation7 + $0x5] ss:$2 sm:$0x3] %v8643_v10  ;;  %8655 = vst [vmem:[#allocation7 + $0x9] ss:$2 sm:$0x3] %v8652_v61 }
 0x821   :  { %v8657_v16 = vpop.permute.xlu1 %8656  ;;  %v8662_v3 = vpop.permute.xlu0 %8661 }
 0x822   :  { %8660 = vst [vmem:[#allocation7 + $0xc] ss:$2 sm:$0x3] %v8657_v16  ;;  %8665 = vst [vmem:[#allocation7 + $0xd] ss:$2 sm:$0x3] %v8662_v3 }
 0x825   :  { %v8671_v18 = vpop.permute.xlu1 %8670  ;;  %v8676_v19 = vpop.permute.xlu0 %8675  ;;  %v8704_v13 = vld [vmem:[#allocation7] sm:$0xff] }
 0x826   :  { %8674 = vst [vmem:[#allocation7 + $0x11] ss:$2 sm:$0x3] %v8671_v18  ;;  %8679 = vst [vmem:[#allocation7 + $0x14] ss:$2 sm:$0x3] %v8676_v19  ;;  %8712 = vrot.lane.b32.xlu1 %v8704_v13, %s13144_s23 }
 0x829   :  { %v8681_v31 = vpop.permute.xlu1 %8680  ;;  %v8690_v45 = vpop.permute.xlu0 %8689  ;;  %v8705_v57 = vld [vmem:[#allocation7 + $0x8] sm:$0xff] }
 0x82a   :  { %8684 = vst [vmem:[#allocation7 + $0x15] ss:$2 sm:$0x3] %v8681_v31  ;;  %8693 = vst [vmem:[#allocation7 + $0x19] ss:$2 sm:$0x3] %v8690_v45  ;;  %8714 = vrot.lane.b32.xlu0 %v8705_v57, %s13144_s23 }
 0x82d   :  { %v8695_v39 = vpop.permute.xlu1 %8694  ;;  %v8700_v25 = vpop.permute.xlu0 %8699 }
 0x82e   :  { %8698 = vst [vmem:[#allocation7 + $0x1c] ss:$2 sm:$0x3] %v8695_v39  ;;  %8703 = vst [vmem:[#allocation7 + $0x1d] ss:$2 sm:$0x3] %v8700_v25 }
 0x831   :  { %v8706_v47 = vld [vmem:[#allocation7 + $0x10] sm:$0xff] }
 0x832   :  { %8716 = vrot.lane.b32.xlu1 %v8706_v47, %s13144_s23 }
 0x835   :  { %v8707_v7 = vld [vmem:[#allocation7 + $0x18] sm:$0xff] }
 0x836   :  { %8718 = vrot.lane.b32.xlu0 %v8707_v7, %s13144_s23 }
 0x898   :  { %v8713_v50 = vpop.permute.xlu1 %8712 }
 0x899   :  { %8725 = vst.msk [vmem:[#allocation11] sm:$0xff] %vm8724_vm12, %v8713_v50 }
 0x89c   :  { %v8715_v15 = vpop.permute.xlu0 %8714 }
 0x89d   :  { %8726 = vst.msk [vmem:[#allocation11 + $0x8] sm:$0xff] %vm8724_vm12, %v8715_v15 }
 0x8a0   :  { %v8729_v41 = vld [vmem:[#allocation11] sm:$0xff] }
 0x8a1   :  { %12867 = vmatprep.mubr.msk.f32.mxu0 %vm8746_vm13, %v8729_v41 }
 0x8a4   :  { %v8717_v40 = vpop.permute.xlu1 %8716  ;;  %v8730_v4 = vld [vmem:[#allocation11 + $0x8] sm:$0xff] }
 0x8a5   :  { %8727 = vst.msk [vmem:[#allocation11 + $0x10] sm:$0xff] %vm8724_vm12, %v8717_v40  ;;  %12868 = vmatmul.mubr.msk.f32.vlgmr.msra.gmra.mrb[160].mxu0 %vm8746_vm13, %v8730_v4 }
 0x8a8   :  { %v8719_v36 = vpop.permute.xlu0 %8718 }
 0x8a9   :  { %8728 = vst.msk [vmem:[#allocation11 + $0x18] sm:$0xff] %vm8724_vm12, %v8719_v36 }
 0x8ac   :  { %v8731_v9 = vld [vmem:[#allocation11 + $0x10] sm:$0xff] }
 0x8ad   :  { %12870 = vmatprep.mubr.msk.f32.mxu0 %vm8746_vm13, %v8731_v9 }
 0x8b0   :  { %v8732_v35 = vld [vmem:[#allocation11 + $0x18] sm:$0xff] }
 0x8b1   :  { %12871 = vmatmul.mubr.msk.f32.gmra.mrb[162].mxu0 %vm8746_vm13, %v8732_v35 }
 0x978   :  { %v12869_v54 = vpop.f32.mrb[160].mxu0 }
 0x979   :  { %v8825_v21 = vpop.f32.mrb[161].mxu0  ;;  %v8831_v48 = vadd.f32 %v12869_v54, %v10784_v62 }
 0x97a   :  { %v8826_v24 = vadd.f32 %v10784_v62, %v8825_v21 }
 0x97c   :  { %12881 = vmatprep.mubr.msk.f32.mxu1 %vm7736_vm8, %v8826_v24 }
 0x97d   :  { %12882 = vmatmul.mubr.msk.f32.vlgmr.msra.gmra.mrb[160].mxu1 %vm7736_vm8, %v8831_v48 }
 0x97e   :  { %13038 = vmatpush3.bf16.msra.mxu1 %v13035_v52 }
 0x97f   :  { %12891 = vmatprep.subr.mxu1 %v9218_v49 }
 0x982   :  { %12892 = vmatpush3.msra.mxu1 %v9218_v49 }
 0x984   :  { %v12872_v5 = vpop.f32.mrb[162].mxu0 }
 0x985   :  { %v8835_v2 = vpop.f32.mrb[163].mxu0  ;;  %v8841_v38 = vadd.f32 %v12872_v5, %v10784_v62  ;;  %v9436_v5 = vld [vmem:[%s16816_s17] sm:$0xff] }
 0x986   :  { %v8836_v23 = vadd.f32 %v10784_v62, %v8835_v2  ;;  %v9437_v2 = vld [vmem:[%s16816_s17 + $0x8] sm:$0xff] }
 0x988   :  { %12884 = vmatprep.mubr.msk.f32.mxu1 %vm7736_vm8, %v8836_v23  ;;  %v13039_v23 = vpack.c.bf16 %v9437_v2, %v9436_v5 }
 0x989   :  { %12885 = vmatmul.mubr.msk.f32.gmra.mrb[162].mxu1 %vm7736_vm8, %v8841_v38 }
 0x98a   :  { %13040 = vmatprep.subr.bf16.mxu0 %v13039_v23 }
 0x98b   :  { %13042 = vmatpush3.bf16.msra.mxu0 %v13039_v23 }
 0xa50   :  { %v12883_v32 = vpop.f32.mrb[160].mxu1 }
 0xa51   :  { %v8939_v60 = vadd.f32 %v12883_v32, %v10789_v29  ;;  %v8933_v56 = vpop.f32.mrb[161].mxu1 }
 0xa52   :  { %v8934_v55 = vadd.f32 %v10789_v29, %v8933_v56 }
 0xa53   :  { %v8953_v33 = vmax.f32 %v8939_v60, 0.0 }
 0xa54   :  { %v8952_v43 = vmax.f32 %v8934_v55, 0.0 }
 0xa55   :  { %8993 = vst [vmem:[#allocation8 + $0x20] ss:$2 sm:$0xf] %v8953_v33  ;;  %9000 = vrot.lane.b32.xlu0 %v8953_v33, %s13143_s9  ;;  %8995 = vrot.lane.b32.xlu1 %v8953_v33, %s13145_s12  ;;  %v9010_v1 = vrot.slane %v8953_v33, 4 }
 0xa56   :  { %8956 = vst [vmem:[#allocation8] ss:$2 sm:$0xf] %v8952_v43  ;;  %v8973_v28 = vrot.slane %v8952_v43, 4 }
 0xa57   :  { %9013 = vst [vmem:[#allocation8 + $0x30] ss:$2 sm:$0xf] %v9010_v1 }
 0xa58   :  { %8976 = vst [vmem:[#allocation8 + $0x10] ss:$2 sm:$0xf] %v8973_v28 }
 0xa59   :  { %9005 = vrot.lane.b32.xlu1 %v8953_v33, %s13146_s5  ;;  %8963 = vrot.lane.b32.xlu0 %v8952_v43, %s13143_s9 }
 0xa5c   :  { %v12886_v42 = vpop.f32.mrb[162].mxu1 }
 0xa5d   :  { %v8949_v26 = vadd.f32 %v12886_v42, %v10789_v29  ;;  %v8943_v12 = vpop.f32.mrb[163].mxu1  ;;  %9014 = vrot.lane.b32.xlu0 %v9010_v1, %s13145_s12  ;;  %8958 = vrot.lane.b32.xlu1 %v8952_v43, %s13145_s12 }
 0xa5e   :  { %v8944_v59 = vadd.f32 %v10789_v29, %v8943_v12 }
 0xa5f   :  { %v8955_v0 = vmax.f32 %v8949_v26, 0.0 }
 0xa60   :  { %v8954_v8 = vmax.f32 %v8944_v59, 0.0 }
 0xa61   :  { %9067 = vst [vmem:[#allocation8 + $0x60] ss:$2 sm:$0xf] %v8955_v0  ;;  %9024 = vrot.lane.b32.xlu0 %v9010_v1, %s13146_s5  ;;  %8968 = vrot.lane.b32.xlu1 %v8952_v43, %s13146_s5  ;;  %v9084_v14 = vrot.slane %v8955_v0, 4 }
 0xa62   :  { %9030 = vst [vmem:[#allocation8 + $0x40] ss:$2 sm:$0xf] %v8954_v8  ;;  %v9047_v30 = vrot.slane %v8954_v8, 4 }
 0xa63   :  { %9087 = vst [vmem:[#allocation8 + $0x70] ss:$2 sm:$0xf] %v9084_v14 }
 0xa64   :  { %9050 = vst [vmem:[#allocation8 + $0x50] ss:$2 sm:$0xf] %v9047_v30 }
 0xa65   :  { %9019 = vrot.lane.b32.xlu1 %v9010_v1, %s13143_s9  ;;  %8977 = vrot.lane.b32.xlu0 %v8973_v28, %s13145_s12 }
 0xa69   :  { %8982 = vrot.lane.b32.xlu1 %v8973_v28, %s13143_s9  ;;  %8987 = vrot.lane.b32.xlu0 %v8973_v28, %s13146_s5 }
 0xa6d   :  { %9069 = vrot.lane.b32.xlu1 %v8955_v0, %s13145_s12  ;;  %9074 = vrot.lane.b32.xlu0 %v8955_v0, %s13143_s9 }
 0xa71   :  { %9032 = vrot.lane.b32.xlu1 %v8954_v8, %s13145_s12  ;;  %9037 = vrot.lane.b32.xlu0 %v8954_v8, %s13143_s9 }
 0xa75   :  { %9042 = vrot.lane.b32.xlu1 %v8954_v8, %s13146_s5  ;;  %9051 = vrot.lane.b32.xlu0 %v9047_v30, %s13145_s12 }
 0xa79   :  { %9056 = vrot.lane.b32.xlu1 %v9047_v30, %s13143_s9  ;;  %9061 = vrot.lane.b32.xlu0 %v9047_v30, %s13146_s5 }
 0xa7d   :  { %9079 = vrot.lane.b32.xlu1 %v8955_v0, %s13146_s5  ;;  %9088 = vrot.lane.b32.xlu0 %v9084_v14, %s13145_s12 }
 0xa81   :  { %9093 = vrot.lane.b32.xlu1 %v9084_v14, %s13143_s9  ;;  %9098 = vrot.lane.b32.xlu0 %v9084_v14, %s13146_s5  ;;  %s13151_s9 = smov [#allocation11]  }
 0xa82   :  { %s9944_s25 = sshll.u32 %s13151_s9, 4  ;;  %s9945_s25 = int_to_ptr.vmem [resolvable:$true] %s9944_s25 }
 0xa83   :  { %s13068_s23 = scalar_lea.vmem %s9945_s25, 512  ;;  %p13073_p1 = scmp.lt.s32.totalorder %s9945_s25, %s9945_s25 }
 0xa84   :  { %p13069_p0 = scmp.ne.s32.totalorder %s9945_s25, %s13068_s23  ;;  %p13074_p2 = scmp.lt.s32.totalorder %s13068_s23, %s13068_s23 }
 0xa86   :  { %p13075_p3 = por %p13074_p2, %p13073_p1 }
 0xa88   :  { %p13076_p4 = pnand %p13075_p3, %p13069_p0 }
 0xac7   :  { %v9001_v53 = vpop.permute.xlu0 %9000  ;;  %v8996_v46 = vpop.permute.xlu1 %8995 }
 0xac8   :  { %9004 = vst [vmem:[#allocation8 + $0x28] ss:$2 sm:$0xf] %v9001_v53  ;;  %8999 = vst [vmem:[#allocation8 + $0x21] ss:$2 sm:$0xf] %v8996_v46 }
 0xacb   :  { %v9006_v63 = vpop.permute.xlu1 %9005  ;;  %v8964_v6 = vpop.permute.xlu0 %8963 }
 0xacc   :  { %9009 = vst [vmem:[#allocation8 + $0x29] ss:$2 sm:$0xf] %v9006_v63  ;;  %8967 = vst [vmem:[#allocation8 + $0x8] ss:$2 sm:$0xf] %v8964_v6 }
 0xacf   :  { %v9015_v10 = vpop.permute.xlu0 %9014  ;;  %v8959_v61 = vpop.permute.xlu1 %8958  ;;  %v9107_v27 = vld [vmem:[#allocation8 + $0x20] sm:$0xff] }
 0xad0   :  { %9018 = vst [vmem:[#allocation8 + $0x31] ss:$2 sm:$0xf] %v9015_v10  ;;  %8962 = vst [vmem:[#allocation8 + $0x1] ss:$2 sm:$0xf] %v8959_v61 }
 0xad3   :  { %v9025_v20 = vpop.permute.xlu0 %9024  ;;  %v8969_v51 = vpop.permute.xlu1 %8968  ;;  %v9108_v50 = vld [vmem:[#allocation8 + $0x28] sm:$0xff] }
 0xad4   :  { %9028 = vst [vmem:[#allocation8 + $0x39] ss:$2 sm:$0xf] %v9025_v20  ;;  %8972 = vst [vmem:[#allocation8 + $0x9] ss:$2 sm:$0xf] %v8969_v51 }
 0xad7   :  { %v9020_v16 = vpop.permute.xlu1 %9019  ;;  %v8978_v3 = vpop.permute.xlu0 %8977  ;;  %v9103_v18 = vld [vmem:[#allocation8] sm:$0xff]  ;;  %v9109_v15 = vld [vmem:[#allocation8 + $0x30] sm:$0xff] }
 0xad8   :  { %9023 = vst [vmem:[#allocation8 + $0x38] ss:$2 sm:$0xf] %v9020_v16  ;;  %8981 = vst [vmem:[#allocation8 + $0x11] ss:$2 sm:$0xf] %v8978_v3  ;;  %9135 = vrot.lane.b32.xlu1 %v9103_v18, %s13147_s1 }
 0xadb   :  { %v8983_v19 = vpop.permute.xlu1 %8982  ;;  %v8988_v13 = vpop.permute.xlu0 %8987  ;;  %v9104_v31 = vld [vmem:[#allocation8 + $0x8] sm:$0xff] }
 0xadc   :  { %8986 = vst [vmem:[#allocation8 + $0x18] ss:$2 sm:$0xf] %v8983_v19  ;;  %8991 = vst [vmem:[#allocation8 + $0x19] ss:$2 sm:$0xf] %v8988_v13  ;;  %9137 = vrot.lane.b32.xlu0 %v9104_v31, %s13147_s1 }
 0xadd   :  { %v9438_v19 = vld [vmem:[%s16816_s17 + $0x10] sm:$0xff]  ;;  %v9439_v13 = vld [vmem:[%s16816_s17 + $0x18] sm:$0xff] }
 0xade   :  { %v13043_v31 = vpack.c.bf16 %v9439_v13, %v9438_v19 }
 0xadf   :  { %v9070_v45 = vpop.permute.xlu1 %9069  ;;  %v9075_v57 = vpop.permute.xlu0 %9074  ;;  %v9105_v39 = vld [vmem:[#allocation8 + $0x10] sm:$0xff]  ;;  %v9110_v4 = vld [vmem:[#allocation8 + $0x38] sm:$0xff] }
 0xae0   :  { %9073 = vst [vmem:[#allocation8 + $0x61] ss:$2 sm:$0xf] %v9070_v45  ;;  %9078 = vst [vmem:[#allocation8 + $0x68] ss:$2 sm:$0xf] %v9075_v57  ;;  %9139 = vrot.lane.b32.xlu1 %v9105_v39, %s13147_s1  ;;  %13044 = vmatprep.subr.bf16.mxu0 %v13043_v31 }
 0xae1   :  { %13046 = vmatpush3.bf16.msra.mxu0 %v13043_v31  ;;  %v10794_v45 = vld [vmem:[%s16815_s16] ss:$0 sm:$0xff] }
 0xae3   :  { %v9033_v25 = vpop.permute.xlu1 %9032  ;;  %v9038_v47 = vpop.permute.xlu0 %9037  ;;  %v9106_v22 = vld [vmem:[#allocation8 + $0x18] sm:$0xff] }
 0xae4   :  { %9036 = vst [vmem:[#allocation8 + $0x41] ss:$2 sm:$0xf] %v9033_v25  ;;  %9041 = vst [vmem:[#allocation8 + $0x48] ss:$2 sm:$0xf] %v9038_v47  ;;  %9141 = vrot.lane.b32.xlu0 %v9106_v22, %s13147_s1  ;;  %9143 = vrot.lane.b32.xlu1 %v9107_v27, %s13147_s1 }
 0xae7   :  { %v9043_v34 = vpop.permute.xlu1 %9042  ;;  %v9052_v7 = vpop.permute.xlu0 %9051  ;;  %v9115_v21 = vld [vmem:[#allocation8 + $0x60] sm:$0xff] }
 0xae8   :  { %9046 = vst [vmem:[#allocation8 + $0x49] ss:$2 sm:$0xf] %v9043_v34  ;;  %9055 = vst [vmem:[#allocation8 + $0x51] ss:$2 sm:$0xf] %v9052_v7  ;;  %9145 = vrot.lane.b32.xlu0 %v9108_v50, %s13147_s1  ;;  %9147 = vrot.lane.b32.xlu1 %v9109_v15, %s13147_s1 }
 0xaeb   :  { %v9057_v41 = vpop.permute.xlu1 %9056  ;;  %v9062_v40 = vpop.permute.xlu0 %9061  ;;  %v9111_v36 = vld [vmem:[#allocation8 + $0x40] sm:$0xff] }
 0xaec   :  { %9060 = vst [vmem:[#allocation8 + $0x58] ss:$2 sm:$0xf] %v9057_v41  ;;  %9065 = vst [vmem:[#allocation8 + $0x59] ss:$2 sm:$0xf] %v9062_v40  ;;  %9149 = vrot.lane.b32.xlu0 %v9110_v4, %s13147_s1  ;;  %9151 = vrot.lane.b32.xlu1 %v9111_v36, %s13147_s1 }
 0xaef   :  { %v9080_v9 = vpop.permute.xlu1 %9079  ;;  %v9089_v35 = vpop.permute.xlu0 %9088  ;;  %v9112_v17 = vld [vmem:[#allocation8 + $0x48] sm:$0xff]  ;;  %v9113_v58 = vld [vmem:[#allocation8 + $0x50] sm:$0xff] }
 0xaf0   :  { %9083 = vst [vmem:[#allocation8 + $0x69] ss:$2 sm:$0xf] %v9080_v9  ;;  %9092 = vst [vmem:[#allocation8 + $0x71] ss:$2 sm:$0xf] %v9089_v35  ;;  %9153 = vrot.lane.b32.xlu0 %v9112_v17, %s13147_s1  ;;  %9155 = vrot.lane.b32.xlu1 %v9113_v58, %s13147_s1 }
 0xaf3   :  { %v9094_v44 = vpop.permute.xlu1 %9093  ;;  %v9099_v62 = vpop.permute.xlu0 %9098  ;;  %v9114_v54 = vld [vmem:[#allocation8 + $0x58] sm:$0xff] }
 0xaf4   :  { %9097 = vst [vmem:[#allocation8 + $0x78] ss:$2 sm:$0xf] %v9094_v44  ;;  %9102 = vst [vmem:[#allocation8 + $0x79] ss:$2 sm:$0xf] %v9099_v62  ;;  %9157 = vrot.lane.b32.xlu0 %v9114_v54, %s13147_s1  ;;  %9159 = vrot.lane.b32.xlu1 %v9115_v21, %s13147_s1 }
 0xaf7   :  { %v9116_v24 = vld [vmem:[#allocation8 + $0x68] sm:$0xff]  ;;  %v9117_v48 = vld [vmem:[#allocation8 + $0x70] sm:$0xff] }
 0xaf8   :  { %9161 = vrot.lane.b32.xlu0 %v9116_v24, %s13147_s1  ;;  %9163 = vrot.lane.b32.xlu1 %v9117_v48, %s13147_s1 }
 0xafb   :  { %v9118_v38 = vld [vmem:[#allocation8 + $0x78] sm:$0xff] }
 0xafc   :  { %9165 = vrot.lane.b32.xlu0 %v9118_v38, %s13147_s1 }
 0xb4a   :  { %v9136_v29 = vpop.permute.xlu1 %9135 }
 0xb4b   :  { %9184 = vst.msk [vmem:[#allocation13] sm:$0xff] %vm9183_vm14, %v9136_v29 }
 0xb4e   :  { %v9138_v32 = vpop.permute.xlu0 %9137 }
 0xb4f   :  { %9185 = vst.msk [vmem:[#allocation13 + $0x8] sm:$0xff] %vm9183_vm14, %v9138_v32 }
 0xb52   :  { %v9140_v60 = vpop.permute.xlu1 %9139  ;;  %v9200_v56 = vld [vmem:[#allocation13] sm:$0xff] }
 0xb53   :  { %9186 = vst.msk [vmem:[#allocation13 + $0x10] sm:$0xff] %vm9183_vm14, %v9140_v60  ;;  %12893 = vmatprep.mubr.msk.f32.mxu1 %vm9226_vm15, %v9200_v56 }
 0xb56   :  { %v9142_v55 = vpop.permute.xlu0 %9141  ;;  %v9144_v33 = vpop.permute.xlu1 %9143  ;;  %v9201_v43 = vld [vmem:[#allocation13 + $0x8] sm:$0xff] }
 0xb57   :  { %9187 = vst.msk [vmem:[#allocation13 + $0x18] sm:$0xff] %vm9183_vm14, %v9142_v55  ;;  %9188 = vst.msk [vmem:[#allocation13 + $0x20] sm:$0xff] %vm9183_vm14, %v9144_v33  ;;  %12894 = vmatmul.mubr.msk.f32.vlgmr.msra.gmra.mrb[164].mxu1 %vm9226_vm15, %v9201_v43 }
 0xb5a   :  { %v9146_v1 = vpop.permute.xlu0 %9145  ;;  %v9148_v28 = vpop.permute.xlu1 %9147  ;;  %v9202_v42 = vld [vmem:[#allocation13 + $0x10] sm:$0xff] }
 0xb5b   :  { %9189 = vst.msk [vmem:[#allocation13 + $0x28] sm:$0xff] %vm9183_vm14, %v9146_v1  ;;  %9190 = vst.msk [vmem:[#allocation13 + $0x30] sm:$0xff] %vm9183_vm14, %v9148_v28  ;;  %12896 = vmatprep.mubr.msk.f32.mxu1 %vm9226_vm15, %v9202_v42 }
 0xb5e   :  { %v9150_v26 = vpop.permute.xlu0 %9149  ;;  %v9152_v12 = vpop.permute.xlu1 %9151  ;;  %v9203_v59 = vld [vmem:[#allocation13 + $0x18] sm:$0xff]  ;;  %v9204_v0 = vld [vmem:[#allocation13 + $0x20] sm:$0xff] }
 0xb5f   :  { %9191 = vst.msk [vmem:[#allocation13 + $0x38] sm:$0xff] %vm9183_vm14, %v9150_v26  ;;  %9192 = vst.msk [vmem:[#allocation13 + $0x40] sm:$0xff] %vm9183_vm14, %v9152_v12  ;;  %12897 = vmatmul.mubr.msk.f32.gmra.mrb[166].mxu1 %vm9226_vm15, %v9203_v59 }
 0xb60   :  { %12899 = vmatprep.mubr.msk.f32.mxu1 %vm9226_vm15, %v9204_v0 }
 0xb62   :  { %v9154_v8 = vpop.permute.xlu0 %9153  ;;  %v9156_v14 = vpop.permute.xlu1 %9155  ;;  %v9205_v30 = vld [vmem:[#allocation13 + $0x28] sm:$0xff]  ;;  %v9206_v53 = vld [vmem:[#allocation13 + $0x30] sm:$0xff] }
 0xb63   :  { %9193 = vst.msk [vmem:[#allocation13 + $0x48] sm:$0xff] %vm9183_vm14, %v9154_v8  ;;  %9194 = vst.msk [vmem:[#allocation13 + $0x50] sm:$0xff] %vm9183_vm14, %v9156_v14  ;;  %12900 = vmatmul.mubr.msk.f32.gmra.mrb[168].mxu1 %vm9226_vm15, %v9205_v30 }
 0xb64   :  { %12902 = vmatprep.mubr.msk.f32.mxu1 %vm9226_vm15, %v9206_v53 }
 0xb66   :  { %v9158_v46 = vpop.permute.xlu0 %9157  ;;  %v9160_v63 = vpop.permute.xlu1 %9159  ;;  %v9207_v6 = vld [vmem:[#allocation13 + $0x38] sm:$0xff]  ;;  %v9208_v10 = vld [vmem:[#allocation13 + $0x40] sm:$0xff] }
 0xb67   :  { %9195 = vst.msk [vmem:[#allocation13 + $0x58] sm:$0xff] %vm9183_vm14, %v9158_v46  ;;  %9196 = vst.msk [vmem:[#allocation13 + $0x60] sm:$0xff] %vm9183_vm14, %v9160_v63  ;;  %12903 = vmatmul.mubr.msk.f32.gmra.mrb[170].mxu1 %vm9226_vm15, %v9207_v6  ;;  %v16487_v6 = vld [vmem:[%s16817_s18] ss:$0 sm:$0xff]  ;;  %s13150_s18 = smov 116  }
 0xb68   :  { %12905 = vmatprep.mubr.msk.f32.mxu1 %vm9226_vm15, %v9208_v10 }
 0xb6a   :  { %v9162_v61 = vpop.permute.xlu0 %9161  ;;  %v9164_v11 = vpop.permute.xlu1 %9163  ;;  %v9209_v37 = vld [vmem:[#allocation13 + $0x48] sm:$0xff]  ;;  %v9210_v52 = vld [vmem:[#allocation13 + $0x50] sm:$0xff] }
 0xb6b   :  { %9197 = vst.msk [vmem:[#allocation13 + $0x68] sm:$0xff] %vm9183_vm14, %v9162_v61  ;;  %9198 = vst.msk [vmem:[#allocation13 + $0x70] sm:$0xff] %vm9183_vm14, %v9164_v11  ;;  %12906 = vmatmul.mubr.msk.f32.gmra.mrb[172].mxu1 %vm9226_vm15, %v9209_v37 }
 0xb6c   :  { %12908 = vmatprep.mubr.msk.f32.mxu1 %vm9226_vm15, %v9210_v52 }
 0xb6e   :  { %v9166_v20 = vpop.permute.xlu0 %9165  ;;  %v9211_v51 = vld [vmem:[#allocation13 + $0x58] sm:$0xff]  ;;  %v9212_v49 = vld [vmem:[#allocation13 + $0x60] sm:$0xff] }
 0xb6f   :  { %9199 = vst.msk [vmem:[#allocation13 + $0x78] sm:$0xff] %vm9183_vm14, %v9166_v20  ;;  %12909 = vmatmul.mubr.msk.f32.gmra.mrb[174].mxu1 %vm9226_vm15, %v9211_v51 }
 0xb70   :  { %12911 = vmatprep.mubr.msk.f32.mxu1 %vm9226_vm15, %v9212_v49 }
 0xb72   :  { %v9213_v16 = vld [vmem:[#allocation13 + $0x68] sm:$0xff]  ;;  %v9214_v3 = vld [vmem:[#allocation13 + $0x70] sm:$0xff] }
 0xb73   :  { %12912 = vmatmul.mubr.msk.f32.gmra.mrb[176].mxu1 %vm9226_vm15, %v9213_v16 }
 0xb74   :  { %12914 = vmatprep.mubr.msk.f32.mxu1 %vm9226_vm15, %v9214_v3 }
 0xb76   :  { %v9215_v18 = vld [vmem:[#allocation13 + $0x78] sm:$0xff] }
 0xb77   :  { %12915 = vmatmul.mubr.msk.f32.gmra.mrb[178].mxu1 %vm9226_vm15, %v9215_v18 }
 0xc2a   :  { %v12895_v57 = vpop.f32.mrb[164].mxu1 }
 0xc2b   :  { %v9347_v39 = vadd.f32 %v12895_v57, %v10794_v45  ;;  %v9341_v25 = vpop.f32.mrb[165].mxu1 }
 0xc2c   :  { %v9342_v47 = vadd.f32 %v10794_v45, %v9341_v25 }
 0xc2d   :  { %v9421_v27 = vmax.f32 %v9347_v39, 0.0 }
 0xc2e   :  { %v9420_v22 = vmax.f32 %v9342_v47, 0.0 }
 0xc30   :  { %12925 = vmatprep.mubr.msk.f32.mxu0 %vm7736_vm8, %v9420_v22 }
 0xc31   :  { %12926 = vmatmul.mubr.msk.f32.vlgmr.msra.gmra.mrb[164].mxu0 %vm7736_vm8, %v9421_v27 }
 0xc32   :  { %v12898_v34 = vpop.f32.mrb[166].mxu1 }
 0xc33   :  { %v9357_v7 = vadd.f32 %v12898_v34, %v10794_v45  ;;  %v9351_v50 = vpop.f32.mrb[167].mxu1 }
 0xc34   :  { %v9352_v15 = vadd.f32 %v10794_v45, %v9351_v50 }
 0xc35   :  { %v9423_v4 = vmax.f32 %v9357_v7, 0.0 }
 0xc36   :  { %v9422_v41 = vmax.f32 %v9352_v15, 0.0  ;;  %v12901_v40 = vpop.f32.mrb[168].mxu1 }
 0xc37   :  { %v9367_v36 = vadd.f32 %v12901_v40, %v10794_v45  ;;  %v9361_v9 = vpop.f32.mrb[169].mxu1 }
 0xc38   :  { %v9362_v35 = vadd.f32 %v10794_v45, %v9361_v9  ;;  %12928 = vmatprep.mubr.msk.f32.mxu0 %vm7736_vm8, %v9422_v41 }
 0xc39   :  { %12929 = vmatmul.mubr.msk.f32.gmra.mrb[166].mxu0 %vm7736_vm8, %v9423_v4  ;;  %v9425_v44 = vmax.f32 %v9367_v36, 0.0 }
 0xc3a   :  { %v9424_v17 = vmax.f32 %v9362_v35, 0.0  ;;  %v12904_v58 = vpop.f32.mrb[170].mxu1 }
 0xc3b   :  { %v9377_v62 = vadd.f32 %v12904_v58, %v10794_v45  ;;  %v9371_v54 = vpop.f32.mrb[171].mxu1 }
 0xc3c   :  { %v9372_v21 = vadd.f32 %v10794_v45, %v9371_v54  ;;  %12931 = vmatprep.mubr.msk.f32.mxu0 %vm7736_vm8, %v9424_v17 }
 0xc3d   :  { %12932 = vmatmul.mubr.msk.f32.gmra.mrb[168].mxu0 %vm7736_vm8, %v9425_v44  ;;  %v9427_v5 = vmax.f32 %v9377_v62, 0.0 }
 0xc3e   :  { %v9426_v24 = vmax.f32 %v9372_v21, 0.0  ;;  %v12907_v48 = vpop.f32.mrb[172].mxu1 }
 0xc3f   :  { %v9387_v2 = vadd.f32 %v12907_v48, %v10794_v45  ;;  %v9381_v23 = vpop.f32.mrb[173].mxu1 }
 0xc40   :  { %v9382_v38 = vadd.f32 %v10794_v45, %v9381_v23  ;;  %12934 = vmatprep.mubr.msk.f32.mxu0 %vm7736_vm8, %v9426_v24 }
 0xc41   :  { %12935 = vmatmul.mubr.msk.f32.gmra.mrb[170].mxu0 %vm7736_vm8, %v9427_v5  ;;  %v9429_v60 = vmax.f32 %v9387_v2, 0.0 }
 0xc42   :  { %v9428_v29 = vmax.f32 %v9382_v38, 0.0  ;;  %v12910_v32 = vpop.f32.mrb[174].mxu1 }
 0xc43   :  { %v9397_v56 = vadd.f32 %v12910_v32, %v10794_v45  ;;  %v9391_v55 = vpop.f32.mrb[175].mxu1 }
 0xc44   :  { %v9392_v33 = vadd.f32 %v10794_v45, %v9391_v55  ;;  %12937 = vmatprep.mubr.msk.f32.mxu0 %vm7736_vm8, %v9428_v29 }
 0xc45   :  { %12938 = vmatmul.mubr.msk.f32.gmra.mrb[172].mxu0 %vm7736_vm8, %v9429_v60  ;;  %v9431_v28 = vmax.f32 %v9397_v56, 0.0 }
 0xc46   :  { %v9430_v43 = vmax.f32 %v9392_v33, 0.0  ;;  %v12913_v1 = vpop.f32.mrb[176].mxu1 }
 0xc47   :  { %v9407_v42 = vadd.f32 %v12913_v1, %v10794_v45  ;;  %v9401_v26 = vpop.f32.mrb[177].mxu1 }
 0xc48   :  { %v9402_v12 = vadd.f32 %v10794_v45, %v9401_v26  ;;  %12940 = vmatprep.mubr.msk.f32.mxu0 %vm7736_vm8, %v9430_v43 }
 0xc49   :  { %12941 = vmatmul.mubr.msk.f32.gmra.mrb[174].mxu0 %vm7736_vm8, %v9431_v28  ;;  %v9433_v8 = vmax.f32 %v9407_v42, 0.0 }
 0xc4a   :  { %v9432_v59 = vmax.f32 %v9402_v12, 0.0  ;;  %v12916_v0 = vpop.f32.mrb[178].mxu1 }
 0xc4b   :  { %v9417_v14 = vadd.f32 %v12916_v0, %v10794_v45  ;;  %v9411_v30 = vpop.f32.mrb[179].mxu1 }
 0xc4c   :  { %v9412_v53 = vadd.f32 %v10794_v45, %v9411_v30  ;;  %12943 = vmatprep.mubr.msk.f32.mxu0 %vm7736_vm8, %v9432_v59 }
 0xc4d   :  { %12944 = vmatmul.mubr.msk.f32.gmra.mrb[176].mxu0 %vm7736_vm8, %v9433_v8  ;;  %v9435_v63 = vmax.f32 %v9417_v14, 0.0 }
 0xc4e   :  { %v9434_v46 = vmax.f32 %v9412_v53, 0.0 }
 0xc50   :  { %12946 = vmatprep.mubr.msk.f32.mxu0 %vm7736_vm8, %v9434_v46 }
 0xc51   :  { %12947 = vmatmul.mubr.msk.f32.gmra.mrb[178].mxu0 %vm7736_vm8, %v9435_v63 }
 0xd04   :  { %v12927_v10 = vpop.f32.mrb[164].mxu0 }
 0xd05   :  { %v9567_v61 = vadd.f32 %v12927_v10, %v16487_v6  ;;  %v9561_v11 = vpop.f32.mrb[165].mxu0 }
 0xd06   :  { %v9562_v37 = vadd.f32 %v16487_v6, %v9561_v11 }
 0xd07   :  { %10831 = vst [vmem:[%s16818_s19 + $0x20] ss:$2 sm:$0xff] %v9567_v61  ;;  %9665 = vrot.lane.b32.xlu1 %v9567_v61, %s13148_s4  ;;  %9660 = vrot.lane.b32.xlu0 %v9567_v61, %s13149_s13 }
 0xd08   :  { %9640 = vst [vmem:[%s16818_s19] ss:$2 sm:$0xff] %v9562_v37 }
 0xd0b   :  { %9670 = vrot.lane.b32.xlu0 %v9567_v61, %s13150_s18  ;;  %9642 = vrot.lane.b32.xlu1 %v9562_v37, %s13149_s13 }
 0xd0c   :  { %v12930_v52 = vpop.f32.mrb[166].mxu0 }
 0xd0d   :  { %v9577_v20 = vadd.f32 %v12930_v52, %v16487_v6  ;;  %v9571_v51 = vpop.f32.mrb[167].mxu0 }
 0xd0e   :  { %v9572_v49 = vadd.f32 %v16487_v6, %v9571_v51 }
 0xd0f   :  { %10839 = vst [vmem:[%s16818_s19 + $0x60] ss:$2 sm:$0xff] %v9577_v20  ;;  %9647 = vrot.lane.b32.xlu0 %v9562_v37, %s13148_s4  ;;  %9652 = vrot.lane.b32.xlu1 %v9562_v37, %s13150_s18 }
 0xd10   :  { %10835 = vst [vmem:[%s16818_s19 + $0x40] ss:$2 sm:$0xff] %v9572_v49  ;;  %v12933_v16 = vpop.f32.mrb[168].mxu0 }
 0xd11   :  { %v9587_v3 = vadd.f32 %v12933_v16, %v16487_v6  ;;  %v9581_v18 = vpop.f32.mrb[169].mxu0 }
 0xd12   :  { %v9582_v19 = vadd.f32 %v16487_v6, %v9581_v18 }
 0xd13   :  { %10847 = vst [vmem:[%s16818_s19 + $0xa0] ss:$2 sm:$0xff] %v9587_v3  ;;  %9701 = vrot.lane.b32.xlu1 %v9577_v20, %s13148_s4  ;;  %9696 = vrot.lane.b32.xlu0 %v9577_v20, %s13149_s13 }
 0xd14   :  { %10843 = vst [vmem:[%s16818_s19 + $0x80] ss:$2 sm:$0xff] %v9582_v19  ;;  %v12936_v13 = vpop.f32.mrb[170].mxu0 }
 0xd15   :  { %v9597_v31 = vadd.f32 %v12936_v13, %v16487_v6  ;;  %v9591_v45 = vpop.f32.mrb[171].mxu0 }
 0xd16   :  { %v9592_v57 = vadd.f32 %v16487_v6, %v9591_v45 }
 0xd17   :  { %10855 = vst [vmem:[%s16818_s19 + $0xe0] ss:$2 sm:$0xff] %v9597_v31  ;;  %9706 = vrot.lane.b32.xlu0 %v9577_v20, %s13150_s18  ;;  %9678 = vrot.lane.b32.xlu1 %v9572_v49, %s13149_s13 }
 0xd18   :  { %10851 = vst [vmem:[%s16818_s19 + $0xc0] ss:$2 sm:$0xff] %v9592_v57  ;;  %v12939_v39 = vpop.f32.mrb[172].mxu0 }
 0xd19   :  { %v9607_v25 = vadd.f32 %v12939_v39, %v16487_v6  ;;  %v9601_v47 = vpop.f32.mrb[173].mxu0 }
 0xd1a   :  { %v9602_v22 = vadd.f32 %v16487_v6, %v9601_v47 }
 0xd1b   :  { %10863 = vst [vmem:[%s16818_s19 + $0x120] ss:$2 sm:$0xff] %v9607_v25  ;;  %9683 = vrot.lane.b32.xlu0 %v9572_v49, %s13148_s4  ;;  %9688 = vrot.lane.b32.xlu1 %v9572_v49, %s13150_s18 }
 0xd1c   :  { %10859 = vst [vmem:[%s16818_s19 + $0x100] ss:$2 sm:$0xff] %v9602_v22  ;;  %v12942_v27 = vpop.f32.mrb[174].mxu0 }
 0xd1d   :  { %v9617_v34 = vadd.f32 %v12942_v27, %v16487_v6  ;;  %v9611_v7 = vpop.f32.mrb[175].mxu0 }
 0xd1e   :  { %v9612_v50 = vadd.f32 %v16487_v6, %v9611_v7 }
 0xd1f   :  { %10871 = vst [vmem:[%s16818_s19 + $0x160] ss:$2 sm:$0xff] %v9617_v34  ;;  %9737 = vrot.lane.b32.xlu1 %v9587_v3, %s13148_s4  ;;  %9732 = vrot.lane.b32.xlu0 %v9587_v3, %s13149_s13 }
 0xd20   :  { %10867 = vst [vmem:[%s16818_s19 + $0x140] ss:$2 sm:$0xff] %v9612_v50  ;;  %v12945_v15 = vpop.f32.mrb[176].mxu0 }
 0xd21   :  { %v9627_v41 = vadd.f32 %v12945_v15, %v16487_v6  ;;  %v9621_v40 = vpop.f32.mrb[177].mxu0 }
 0xd22   :  { %v9622_v4 = vadd.f32 %v16487_v6, %v9621_v40 }
 0xd23   :  { %10879 = vst [vmem:[%s16818_s19 + $0x1a0] ss:$2 sm:$0xff] %v9627_v41  ;;  %9742 = vrot.lane.b32.xlu0 %v9587_v3, %s13150_s18  ;;  %9714 = vrot.lane.b32.xlu1 %v9582_v19, %s13149_s13 }
 0xd24   :  { %10875 = vst [vmem:[%s16818_s19 + $0x180] ss:$2 sm:$0xff] %v9622_v4  ;;  %v12948_v36 = vpop.f32.mrb[178].mxu0 }
 0xd25   :  { %v16562_v9 = vadd.f32 %v12948_v36, %v16487_v6  ;;  %v9631_v35 = vpop.f32.mrb[179].mxu0 }
 0xd26   :  { %v16565_v17 = vadd.f32 %v16487_v6, %v9631_v35 }
 0xd27   :  { %10887 = vst [vmem:[%s16818_s19 + $0x1e0] ss:$2 sm:$0xff] %v16562_v9  ;;  %9719 = vrot.lane.b32.xlu0 %v9582_v19, %s13148_s4  ;;  %9724 = vrot.lane.b32.xlu1 %v9582_v19, %s13150_s18 }
 0xd28   :  { %10883 = vst [vmem:[%s16818_s19 + $0x1c0] ss:$2 sm:$0xff] %v16565_v17 }
 0xd2b   :  { %9773 = vrot.lane.b32.xlu1 %v9597_v31, %s13148_s4  ;;  %9768 = vrot.lane.b32.xlu0 %v9597_v31, %s13149_s13 }
 0xd2f   :  { %9778 = vrot.lane.b32.xlu0 %v9597_v31, %s13150_s18  ;;  %9750 = vrot.lane.b32.xlu1 %v9592_v57, %s13149_s13 }
 0xd33   :  { %9755 = vrot.lane.b32.xlu0 %v9592_v57, %s13148_s4  ;;  %9760 = vrot.lane.b32.xlu1 %v9592_v57, %s13150_s18 }
 0xd37   :  { %9809 = vrot.lane.b32.xlu1 %v9607_v25, %s13148_s4  ;;  %9804 = vrot.lane.b32.xlu0 %v9607_v25, %s13149_s13 }
 0xd3b   :  { %9814 = vrot.lane.b32.xlu0 %v9607_v25, %s13150_s18  ;;  %9786 = vrot.lane.b32.xlu1 %v9602_v22, %s13149_s13 }
 0xd3f   :  { %9791 = vrot.lane.b32.xlu0 %v9602_v22, %s13148_s4  ;;  %9796 = vrot.lane.b32.xlu1 %v9602_v22, %s13150_s18 }
 0xd43   :  { %9845 = vrot.lane.b32.xlu1 %v9617_v34, %s13148_s4  ;;  %9840 = vrot.lane.b32.xlu0 %v9617_v34, %s13149_s13 }
 0xd47   :  { %9850 = vrot.lane.b32.xlu0 %v9617_v34, %s13150_s18  ;;  %9822 = vrot.lane.b32.xlu1 %v9612_v50, %s13149_s13 }
 0xd4b   :  { %9827 = vrot.lane.b32.xlu0 %v9612_v50, %s13148_s4  ;;  %9832 = vrot.lane.b32.xlu1 %v9612_v50, %s13150_s18 }
 0xd4f   :  { %9881 = vrot.lane.b32.xlu1 %v9627_v41, %s13148_s4  ;;  %9876 = vrot.lane.b32.xlu0 %v9627_v41, %s13149_s13 }
 0xd53   :  { %9886 = vrot.lane.b32.xlu0 %v9627_v41, %s13150_s18  ;;  %9858 = vrot.lane.b32.xlu1 %v9622_v4, %s13149_s13 }
 0xd57   :  { %9863 = vrot.lane.b32.xlu0 %v9622_v4, %s13148_s4  ;;  %9868 = vrot.lane.b32.xlu1 %v9622_v4, %s13150_s18 }
 0xd58   :  { %13079 = shalt.err (!%p13076_p4)
}
 0xd59   :  { %s13080_s29 = scalar_lea.hbm %s16820_s21, 512 }
 0xd5a   :  { %p13081_p5 = scmp.ne.s32.totalorder %s16820_s21, %s13080_s29  ;;  %p13084_p6 = scmp.lt.u32.totalorder %s13080_s29, %s16820_s21 }
 0xd5c   :  { %p13086_p7 = pnand %p13084_p6, %p13081_p5 }
 0xd5e   :  { %13089 = shalt.err (!%p13086_p7)
}
 0xd5f   :  { %s13153_s16 = smov 128   ;;  %9912 = vrot.lane.b32.xlu0 %v16562_v9, %s13149_s13  ;;  %9894 = vrot.lane.b32.xlu1 %v16565_v17, %s13149_s13  ;;  %s13090_s7 = scalar_lea.vmem %s9936_s2, 128 }
 0xd60   :  { %9950 = dma.vmem_to_hbm [thread:$0]  %s9945_s25, 512, %s16820_s21, [#allocation12], %s13153_s16, %s13153_s16, %s13147_s1  }
 0xd61   :  { %p13091_p8 = scmp.ne.s32.totalorder %s9936_s2, %s13090_s7  ;;  %p13095_p9 = scmp.lt.s32.totalorder %s9936_s2, %s9936_s2 }
 0xd62   :  { %p13096_p10 = scmp.lt.s32.totalorder %s13090_s7, %s13090_s7 }
 0xd64   :  { %p13097_p11 = por %p13096_p10, %p13095_p9 }
 0xd66   :  { %p13098_p12 = pnand %p13097_p11, %p13091_p8 }
 0xd68   :  { %13101 = shalt.err (!%p13098_p12)
}
 0xd69   :  { %s13102_s5 = scalar_lea.hbm %s16819_s20, 128 }
 0xd6a   :  { %p13103_p13 = scmp.ne.s32.totalorder %s16819_s20, %s13102_s5  ;;  %p13106_p0 = scmp.lt.u32.totalorder %s13102_s5, %s16819_s20 }
 0xd6c   :  { %p13108_p1 = pnand %p13106_p0, %p13103_p13 }
 0xd6e   :  { %13111 = shalt.err (!%p13108_p1)
}
 0xd6f   :  { %9938 = dma.vmem_to_hbm [thread:$0]  %s9936_s2, 128, %s16819_s20, [#allocation10]  }
 0xd70   :  { %s13154_s9 = smov [#allocation13]  }
 0xd71   :  { %s9956_s25 = sshll.u32 %s13154_s9, 4  ;;  %s9957_s25 = int_to_ptr.vmem [resolvable:$true] %s9956_s25 }
 0xd72   :  { %s13112_s15 = scalar_lea.vmem %s9957_s25, 2048  ;;  %p13117_p3 = scmp.lt.s32.totalorder %s9957_s25, %s9957_s25 }
 0xd73   :  { %p13113_p2 = scmp.ne.s32.totalorder %s9957_s25, %s13112_s15  ;;  %p13118_p4 = scmp.lt.s32.totalorder %s13112_s15, %s13112_s15 }
 0xd75   :  { %p13119_p5 = por %p13118_p4, %p13117_p3 }
 0xd77   :  { %p13120_p6 = pnand %p13119_p5, %p13113_p2 }
 0xd79   :  { %13123 = shalt.err (!%p13120_p6)
}
 0xd7a   :  { %s13124_s27 = scalar_lea.hbm %s16821_s22, 2048 }
 0xd7b   :  { %p13125_p7 = scmp.ne.s32.totalorder %s16821_s22, %s13124_s27  ;;  %p13128_p8 = scmp.lt.u32.totalorder %s13124_s27, %s16821_s22 }
 0xd7d   :  { %p13130_p9 = pnand %p13128_p8, %p13125_p7 }
 0xd7f   :  { %13133 = shalt.err (!%p13130_p9)
}
 0xd80   :  { %9962 = dma.vmem_to_hbm [thread:$0]  %s9957_s25, 2048, %s16821_s22, [#allocation12], %s13153_s16, %s13153_s16, %s13147_s1   ;;  %v9661_v58 = vpop.permute.xlu0 %9660  ;;  %v9666_v44 = vpop.permute.xlu1 %9665 }
 0xd81   :  { %9899 = vrot.lane.b32.xlu0 %v16565_v17, %s13148_s4  ;;  %9904 = vrot.lane.b32.xlu1 %v16565_v17, %s13150_s18  ;;  %10832 = vst [vmem:[%s16818_s19 + $0x21] ss:$2 sm:$0xff] %v9661_v58  ;;  %10833 = vst [vmem:[%s16818_s19 + $0x30] ss:$2 sm:$0xff] %v9666_v44 }
 0xd84   :  { %v9671_v62 = vpop.permute.xlu0 %9670  ;;  %v9643_v54 = vpop.permute.xlu1 %9642 }
 0xd85   :  { %9922 = vrot.lane.b32.xlu0 %v16562_v9, %s13150_s18  ;;  %9917 = vrot.lane.b32.xlu1 %v16562_v9, %s13148_s4  ;;  %10834 = vst [vmem:[%s16818_s19 + $0x31] ss:$2 sm:$0xff] %v9671_v62  ;;  %10828 = vst [vmem:[%s16818_s19 + $0x1] ss:$2 sm:$0xff] %v9643_v54 }
 0xd88   :  { %v9648_v21 = vpop.permute.xlu0 %9647  ;;  %v9653_v24 = vpop.permute.xlu1 %9652 }
 0xd89   :  { %10829 = vst [vmem:[%s16818_s19 + $0x10] ss:$2 sm:$0xff] %v9648_v21  ;;  %10830 = vst [vmem:[%s16818_s19 + $0x11] ss:$2 sm:$0xff] %v9653_v24 }
 0xd8c   :  { %v9697_v48 = vpop.permute.xlu0 %9696  ;;  %v9702_v5 = vpop.permute.xlu1 %9701 }
 0xd8d   :  { %10840 = vst [vmem:[%s16818_s19 + $0x61] ss:$2 sm:$0xff] %v9697_v48  ;;  %10841 = vst [vmem:[%s16818_s19 + $0x70] ss:$2 sm:$0xff] %v9702_v5 }
 0xd90   :  { %v9707_v2 = vpop.permute.xlu0 %9706  ;;  %v9679_v23 = vpop.permute.xlu1 %9678 }
 0xd91   :  { %10842 = vst [vmem:[%s16818_s19 + $0x71] ss:$2 sm:$0xff] %v9707_v2  ;;  %10836 = vst [vmem:[%s16818_s19 + $0x41] ss:$2 sm:$0xff] %v9679_v23 }
 0xd94   :  { %v9684_v38 = vpop.permute.xlu0 %9683  ;;  %v9689_v29 = vpop.permute.xlu1 %9688 }
 0xd95   :  { %10837 = vst [vmem:[%s16818_s19 + $0x50] ss:$2 sm:$0xff] %v9684_v38  ;;  %10838 = vst [vmem:[%s16818_s19 + $0x51] ss:$2 sm:$0xff] %v9689_v29 }
 0xd98   :  { %v9733_v32 = vpop.permute.xlu0 %9732  ;;  %v9738_v60 = vpop.permute.xlu1 %9737 }
 0xd99   :  { %10848 = vst [vmem:[%s16818_s19 + $0xa1] ss:$2 sm:$0xff] %v9733_v32  ;;  %10849 = vst [vmem:[%s16818_s19 + $0xb0] ss:$2 sm:$0xff] %v9738_v60 }
 0xd9c   :  { %v9743_v56 = vpop.permute.xlu0 %9742  ;;  %v9715_v55 = vpop.permute.xlu1 %9714 }
 0xd9d   :  { %10850 = vst [vmem:[%s16818_s19 + $0xb1] ss:$2 sm:$0xff] %v9743_v56  ;;  %10844 = vst [vmem:[%s16818_s19 + $0x81] ss:$2 sm:$0xff] %v9715_v55 }
 0xda0   :  { %v9720_v33 = vpop.permute.xlu0 %9719  ;;  %v9725_v43 = vpop.permute.xlu1 %9724 }
 0xda1   :  { %10845 = vst [vmem:[%s16818_s19 + $0x90] ss:$2 sm:$0xff] %v9720_v33  ;;  %10846 = vst [vmem:[%s16818_s19 + $0x91] ss:$2 sm:$0xff] %v9725_v43 }
 0xda4   :  { %v9769_v1 = vpop.permute.xlu0 %9768  ;;  %v9774_v28 = vpop.permute.xlu1 %9773 }
 0xda5   :  { %10856 = vst [vmem:[%s16818_s19 + $0xe1] ss:$2 sm:$0xff] %v9769_v1  ;;  %10857 = vst [vmem:[%s16818_s19 + $0xf0] ss:$2 sm:$0xff] %v9774_v28 }
 0xda8   :  { %v9779_v42 = vpop.permute.xlu0 %9778  ;;  %v9751_v26 = vpop.permute.xlu1 %9750 }
 0xda9   :  { %10858 = vst [vmem:[%s16818_s19 + $0xf1] ss:$2 sm:$0xff] %v9779_v42  ;;  %10852 = vst [vmem:[%s16818_s19 + $0xc1] ss:$2 sm:$0xff] %v9751_v26 }
 0xdac   :  { %v9756_v12 = vpop.permute.xlu0 %9755  ;;  %v9761_v59 = vpop.permute.xlu1 %9760 }
 0xdad   :  { %10853 = vst [vmem:[%s16818_s19 + $0xd0] ss:$2 sm:$0xff] %v9756_v12  ;;  %10854 = vst [vmem:[%s16818_s19 + $0xd1] ss:$2 sm:$0xff] %v9761_v59 }
 0xdb0   :  { %v9805_v0 = vpop.permute.xlu0 %9804  ;;  %v9810_v8 = vpop.permute.xlu1 %9809 }
 0xdb1   :  { %10864 = vst [vmem:[%s16818_s19 + $0x121] ss:$2 sm:$0xff] %v9805_v0  ;;  %10865 = vst [vmem:[%s16818_s19 + $0x130] ss:$2 sm:$0xff] %v9810_v8 }
 0xdb4   :  { %v9815_v14 = vpop.permute.xlu0 %9814  ;;  %v9787_v30 = vpop.permute.xlu1 %9786 }
 0xdb5   :  { %10866 = vst [vmem:[%s16818_s19 + $0x131] ss:$2 sm:$0xff] %v9815_v14  ;;  %10860 = vst [vmem:[%s16818_s19 + $0x101] ss:$2 sm:$0xff] %v9787_v30 }
 0xdb8   :  { %v9792_v53 = vpop.permute.xlu0 %9791  ;;  %v9797_v46 = vpop.permute.xlu1 %9796 }
 0xdb9   :  { %10861 = vst [vmem:[%s16818_s19 + $0x110] ss:$2 sm:$0xff] %v9792_v53  ;;  %10862 = vst [vmem:[%s16818_s19 + $0x111] ss:$2 sm:$0xff] %v9797_v46 }
 0xdbc   :  { %v9841_v63 = vpop.permute.xlu0 %9840  ;;  %v9846_v6 = vpop.permute.xlu1 %9845 }
 0xdbd   :  { %10872 = vst [vmem:[%s16818_s19 + $0x161] ss:$2 sm:$0xff] %v9841_v63  ;;  %10873 = vst [vmem:[%s16818_s19 + $0x170] ss:$2 sm:$0xff] %v9846_v6 }
 0xdc0   :  { %v9851_v10 = vpop.permute.xlu0 %9850  ;;  %v9823_v61 = vpop.permute.xlu1 %9822 }
 0xdc1   :  { %10874 = vst [vmem:[%s16818_s19 + $0x171] ss:$2 sm:$0xff] %v9851_v10  ;;  %10868 = vst [vmem:[%s16818_s19 + $0x141] ss:$2 sm:$0xff] %v9823_v61 }
 0xdc4   :  { %v9828_v11 = vpop.permute.xlu0 %9827  ;;  %v9833_v37 = vpop.permute.xlu1 %9832 }
 0xdc5   :  { %10869 = vst [vmem:[%s16818_s19 + $0x150] ss:$2 sm:$0xff] %v9828_v11  ;;  %10870 = vst [vmem:[%s16818_s19 + $0x151] ss:$2 sm:$0xff] %v9833_v37 }
 0xdc8   :  { %v9877_v52 = vpop.permute.xlu0 %9876  ;;  %v9882_v20 = vpop.permute.xlu1 %9881 }
 0xdc9   :  { %10880 = vst [vmem:[%s16818_s19 + $0x1a1] ss:$2 sm:$0xff] %v9877_v52  ;;  %10881 = vst [vmem:[%s16818_s19 + $0x1b0] ss:$2 sm:$0xff] %v9882_v20 }
 0xdcc   :  { %v9887_v51 = vpop.permute.xlu0 %9886  ;;  %v9859_v49 = vpop.permute.xlu1 %9858 }
 0xdcd   :  { %10882 = vst [vmem:[%s16818_s19 + $0x1b1] ss:$2 sm:$0xff] %v9887_v51  ;;  %10876 = vst [vmem:[%s16818_s19 + $0x181] ss:$2 sm:$0xff] %v9859_v49 }
 0xdd0   :  { %v9864_v16 = vpop.permute.xlu0 %9863  ;;  %v9869_v3 = vpop.permute.xlu1 %9868 }
 0xdd1   :  { %10877 = vst [vmem:[%s16818_s19 + $0x190] ss:$2 sm:$0xff] %v9864_v16  ;;  %10878 = vst [vmem:[%s16818_s19 + $0x191] ss:$2 sm:$0xff] %v9869_v3 }
 0xdd4   :  { %v9913_v18 = vpop.permute.xlu0 %9912  ;;  %v9895_v19 = vpop.permute.xlu1 %9894 }
 0xdd5   :  { %10888 = vst [vmem:[%s16818_s19 + $0x1e1] ss:$2 sm:$0xff] %v9913_v18  ;;  %10884 = vst [vmem:[%s16818_s19 + $0x1c1] ss:$2 sm:$0xff] %v9895_v19 }
 0xdf3   :  { %v9900_v13 = vpop.permute.xlu0 %9899  ;;  %v9905_v31 = vpop.permute.xlu1 %9904 }
 0xdf4   :  { %10885 = vst [vmem:[%s16818_s19 + $0x1d0] ss:$2 sm:$0xff] %v9900_v13  ;;  %10886 = vst [vmem:[%s16818_s19 + $0x1d1] ss:$2 sm:$0xff] %v9905_v31 }
 0xdf7   :  { %v9923_v45 = vpop.permute.xlu0 %9922  ;;  %v9918_v57 = vpop.permute.xlu1 %9917 }
 0xdf8   :  { %10890 = vst [vmem:[%s16818_s19 + $0x1f1] ss:$2 sm:$0xff] %v9923_v45  ;;  %10889 = vst [vmem:[%s16818_s19 + $0x1f0] ss:$2 sm:$0xff] %v9918_v57 }
 0xdf9   :  { %13134 = dma.done.wait [#allocation10], 128  }
 0xdfa   :  { %13135 = vsyncadd [#allocation10], 4294967168 }
 0xdfb   :  { %13136 = dma.done.wait [#allocation12], 2560  }
 0xdfc   :  { %13137 = vsyncadd [#allocation12], 4294964736 }
 0xdfd   :  { %9974 = vsyncpa [#allocation10], 1 }
 0xdfe   :  { %9975 = vsyncpa [#allocation12], 1 }

</bundles_post_ra>
